<compile_context>
chip_gen: v5e
topology: v5e:2x2
jax: 0.10.0
libtpu: 0.0.40
codegen_flags: <defaults>
</compile_context>

<pallas_src>
import jax
import jax.numpy as jnp
import numpy as np
from jax.experimental import pallas as pl
from jax.experimental.pallas import tpu as pltpu


# ---------------------------------------------------------------------------
# Fused Pallas kernel: 4 x (conv3x3/s2 + bias + LeakyReLU + BN affine) + head
# ---------------------------------------------------------------------------
def _disc_kernel(x_ref,
                 s1_ref, w1_ref, a1_ref,
                 s2_ref, w2_ref, a2_ref,
                 s3_ref, w3_ref, a3_ref,
                 s4_ref, w4_ref, a4_ref,
                 advw_ref, advb_ref,
                 o_ref):
    # x_ref block: (1, H, W*Cin) for one sample; lane index = w*Cin + c.
    x = x_ref[0]                                            # (H, W*Cin), f32

    for s_ref, w_ref, a_ref in ((s1_ref, w1_ref, a1_ref),
                                (s2_ref, w2_ref, a2_ref),
                                (s3_ref, w3_ref, a3_ref),
                                (s4_ref, w4_ref, a4_ref)):
        # Gather the 3 kernel-row taps (stride 2, zero padded) with constant
        # 0/1 selection matmuls; concat along lanes -> patch rows.
        taps = [jnp.dot(s_ref[dh], x, preferred_element_type=jnp.float32)
                for dh in range(3)]                         # each (Ho, W*Cin)
        patches = jnp.concatenate(taps, axis=-1).astype(jnp.bfloat16)

        # Conv: dw taps + W-stride are folded into the unfolded weight.
        acc = jnp.dot(patches, w_ref[...],
                      preferred_element_type=jnp.float32)   # (Ho, Wo*Cout)
        acc = acc + a_ref[0]                                # conv bias (tiled)
        acc = jnp.where(acc > 0.0, acc, 0.2 * acc)          # LeakyReLU(0.2)
        x = acc * a_ref[1] + a_ref[2]                       # BN(eval) affine
        # Dropout2d(0.25) is identity at inference.

    # Adversarial head: Linear(feat, 1) + Sigmoid as VPU mul + lane reduce.
    feat = jnp.concatenate([x[r:r + 1, :] for r in range(x.shape[0])], axis=-1)
    logit = jnp.sum(feat * advw_ref[...], axis=-1, keepdims=True) + advb_ref[...]
    val = 1.0 / (1.0 + jnp.exp(-logit))                     # (1, 1)
    o_ref[...] = jnp.broadcast_to(val.reshape(1, 1, 1), o_ref.shape)


# ---------------------------------------------------------------------------
# Parameter packing (done once, on parameters only — no per-input data blowup)
# ---------------------------------------------------------------------------
def _make_row_select(h_in):
    """(3, Ho, H) 0/1 matrices: S[dh] @ x picks rows ih = 2*ho + dh - 1 (pad=0)."""
    ho_n = h_in // 2
    s = np.zeros((3, ho_n, h_in), np.float32)
    for dh in range(3):
        for ho in range(ho_n):
            ih = 2 * ho + dh - 1
            if 0 <= ih < h_in:
                s[dh, ho, ih] = 1.0
    return jnp.asarray(s)


def _unfold_conv_weight(w_hwio, w_in):
    """HWIO (3,3,Cin,Cout) -> block-banded (3*w_in*Cin, Wo*Cout), bf16.

    row index = (dh, iw, ci), col index = (wo, co);
    entry = w[dh, iw - 2*wo + 1, ci, co] when that dw is in [0, 3), else 0.
    """
    kh, kw, cin, cout = w_hwio.shape
    wo_n = w_in // 2
    w_np = np.asarray(w_hwio, np.float32)
    big = np.zeros((kh, w_in, cin, wo_n, cout), np.float32)
    for dh in range(kh):
        for wo in range(wo_n):
            for dw in range(kw):
                iw = 2 * wo + dw - 1
                if 0 <= iw < w_in:
                    big[dh, iw, :, wo, :] = w_np[dh, dw]
    return jnp.asarray(big.reshape(kh * w_in * cin, wo_n * cout), jnp.bfloat16)


def _pack_affine(bias, scale, shift, wo_n):
    """Stack bias/scale/shift, each tiled over wo -> (3, 1, Wo*Cout), f32."""
    rows = [np.tile(np.asarray(v, np.float32), wo_n) for v in (bias, scale, shift)]
    return jnp.asarray(np.stack(rows)[:, None, :])


def init_params(key, classes=10, img_size=16, channels=3):
    """Base (PyTorch-like) parameters, deterministic synthetic values."""
    keys = jax.random.split(key, 12)
    ki = iter(range(12))
    params = {"classes": classes, "img_size": img_size, "channels": channels}
    params["embedding"] = 0.1 * jax.random.normal(
        keys[next(ki)], (classes, classes), jnp.float32)

    chans = [channels + classes, 64, 128, 256, 512]
    bn_flags = [False, True, True, True]
    eps = 0.8                       # nn.BatchNorm2d(out_filters, 0.8) -> eps=0.8
    blocks = []
    for li in range(4):
        cin, cout = chans[li], chans[li + 1]
        w = 0.05 * jax.random.normal(keys[next(ki)], (3, 3, cin, cout), jnp.float32)
        b = 0.01 * jax.random.normal(keys[next(ki)], (cout,), jnp.float32)
        if bn_flags[li]:
            gamma = jnp.ones((cout,), jnp.float32)
            beta = jnp.zeros((cout,), jnp.float32)
            mean = jnp.zeros((cout,), jnp.float32)
            var = jnp.ones((cout,), jnp.float32)
            scale = gamma / jnp.sqrt(var + eps)
            shift = beta - mean * scale
        else:
            scale = jnp.ones((cout,), jnp.float32)
            shift = jnp.zeros((cout,), jnp.float32)
        blocks.append({"w": w, "b": b, "scale": scale, "shift": shift})
    params["blocks"] = blocks

    ds = img_size // 2 ** 4
    feat = 512 * ds * ds
    params["adv_w"] = 0.05 * jax.random.normal(keys[next(ki)], (feat, 1), jnp.float32)
    params["adv_b"] = jnp.zeros((1,), jnp.float32)
    return params


def pack_kernel_params(params):
    """Build kernel operands: row-select matrices, unfolded bf16 weights, affines."""
    img_size = params["img_size"]
    cin0 = params["channels"] + params["classes"]
    cin_pad = ((cin0 + 7) // 8) * 8                       # 13 -> 16
    layers = []
    h = img_size
    for li, blk in enumerate(params["blocks"]):
        w = blk["w"]
        if li == 0 and cin_pad != cin0:
            w = jnp.pad(w, ((0, 0), (0, 0), (0, cin_pad - cin0), (0, 0)))
        wo_n = h // 2
        layers.append({
            "S": _make_row_select(h),                                   # (3, Ho, H)
            "W": _unfold_conv_weight(w, h),                             # bf16
            "A": _pack_affine(blk["b"], blk["scale"], blk["shift"], wo_n),
        })
        h = wo_n
    feat = params["adv_w"].shape[0]
    return {
        "cin_pad": cin_pad,
        "layers": layers,
        "adv_w": params["adv_w"].reshape(1, feat).astype(jnp.float32),
        "adv_b": params["adv_b"].reshape(1, 1).astype(jnp.float32),
    }


# ---------------------------------------------------------------------------
# Forward pass (single fused pallas_call)
# ---------------------------------------------------------------------------
def discriminator_forward(params, kparams, img_nchw, labels):
    B, _, H, W = img_nchw.shape
    classes = params["classes"]
    cpad = kparams["cin_pad"]

    # Input relayout only (1x data, no im2col blowup): NCHW -> NHWC, concat
    # label-embedding channels, zero-pad channels to a lane-friendly count,
    # fold W into the lane dim.
    img = jnp.transpose(img_nchw, (0, 2, 3, 1))
    emb = params["embedding"][labels]                               # (B, classes)
    lab = jnp.broadcast_to(emb[:, None, None, :], (B, H, W, classes))
    x = jnp.concatenate([img, lab], axis=-1)                        # (B,H,W,13)
    x = jnp.pad(x, ((0, 0), (0, 0), (0, 0), (0, cpad - x.shape[-1])))
    x3d = x.reshape(B, H, W * cpad)                                 # (B, H, W*C)

    in_specs = [pl.BlockSpec((1, H, W * cpad), lambda i: (i, 0, 0))]
    operands = [x3d]
    for l in kparams["layers"]:
        in_specs += [
            pl.BlockSpec(l["S"].shape, lambda i: (0, 0, 0)),
            pl.BlockSpec(l["W"].shape, lambda i: (0, 0)),
            pl.BlockSpec(l["A"].shape, lambda i: (0, 0, 0)),
        ]
        operands += [l["S"], l["W"], l["A"]]
    in_specs += [
        pl.BlockSpec(kparams["adv_w"].shape, lambda i: (0, 0)),
        pl.BlockSpec(kparams["adv_b"].shape, lambda i: (0, 0)),
    ]
    operands += [kparams["adv_w"], kparams["adv_b"]]

    out3d = pl.pallas_call(
        _disc_kernel,
        out_shape=jax.ShapeDtypeStruct((B, 1, 128), jnp.float32),
        grid=(B,),
        in_specs=in_specs,
        out_specs=pl.BlockSpec((1, 1, 128), lambda i: (i, 0, 0)),
        compiler_params=pltpu.CompilerParams(
            dimension_semantics=("parallel",),          # 2 TCs on v7x
            vmem_limit_bytes=32 * 1024 * 1024,
        ),
    )(*operands)
    return out3d[:, 0, :1]                                          # (B, 1)


# ---------------------------------------------------------------------------
# Pure-JAX reference (for a sanity check against the fused kernel)
# ---------------------------------------------------------------------------
def reference_forward(params, img_nchw, labels):
    B, _, H, W = img_nchw.shape
    classes = params["classes"]
    img = jnp.transpose(img_nchw, (0, 2, 3, 1))
    emb = params["embedding"][labels]
    lab = jnp.broadcast_to(emb[:, None, None, :], (B, H, W, classes))
    x = jnp.concatenate([img, lab], axis=-1)
    for blk in params["blocks"]:
        x = jax.lax.conv_general_dilated(
            x, blk["w"], window_strides=(2, 2), padding=((1, 1), (1, 1)),
            dimension_numbers=("NHWC", "HWIO", "NHWC"))
        x = x + blk["b"]
        x = jnp.where(x > 0, x, 0.2 * x)
        x = x * blk["scale"] + blk["shift"]
    feat = x.reshape(B, -1)
    logit = feat @ params["adv_w"] + params["adv_b"]
    return jax.nn.sigmoid(logit)


# ---------------------------------------------------------------------------
if __name__ == "__main__":
    CLASSES, IMG_SIZE, CHANNELS, BATCH = 10, 16, 3, 2

    key = jax.random.PRNGKey(0)
    k_params, k_img, k_lab = jax.random.split(key, 3)

    params = init_params(k_params, classes=CLASSES, img_size=IMG_SIZE,
                         channels=CHANNELS)
    kparams = pack_kernel_params(params)

    img = jax.random.normal(k_img, (BATCH, CHANNELS, IMG_SIZE, IMG_SIZE),
                            jnp.float32)
    labels = jax.random.randint(k_lab, (BATCH,), 0, CLASSES)

    validity = discriminator_forward(params, kparams, img, labels)
    validity = jax.block_until_ready(validity)
    assert validity.shape == (BATCH, 1)
    assert bool(jnp.all((validity >= 0.0) & (validity <= 1.0)))

    # Sanity check against the pure-JAX reference (loose tol: bf16 matmuls).
    ref = reference_forward(params, img, labels)
    assert bool(jnp.max(jnp.abs(validity - ref)) < 5e-2)

    print("KERNEL_OK")
</pallas_src>

<mosaic_0001>
module attributes {stable_mosaic.version = 11 : i64} {
  func.func @_disc_kernel(%arg0: i32, %arg1: memref<1x16x256xf32, #tpu.memory_space<vmem>>, %arg2: memref<3x8x16xf32, #tpu.memory_space<vmem>>, %arg3: memref<768x512xbf16, #tpu.memory_space<vmem>>, %arg4: memref<3x1x512xf32, #tpu.memory_space<vmem>>, %arg5: memref<3x4x8xf32, #tpu.memory_space<vmem>>, %arg6: memref<1536x512xbf16, #tpu.memory_space<vmem>>, %arg7: memref<3x1x512xf32, #tpu.memory_space<vmem>>, %arg8: memref<3x2x4xf32, #tpu.memory_space<vmem>>, %arg9: memref<1536x512xbf16, #tpu.memory_space<vmem>>, %arg10: memref<3x1x512xf32, #tpu.memory_space<vmem>>, %arg11: memref<3x1x2xf32, #tpu.memory_space<vmem>>, %arg12: memref<1536x512xbf16, #tpu.memory_space<vmem>>, %arg13: memref<3x1x512xf32, #tpu.memory_space<vmem>>, %arg14: memref<1x512xf32, #tpu.memory_space<vmem>>, %arg15: memref<1x1xf32, #tpu.memory_space<vmem>>, %arg16: memref<1x1x128xf32, #tpu.memory_space<vmem>>) attributes {dimension_semantics = [#tpu.dimension_semantics<parallel>], iteration_bounds = array<i64: 2>, scalar_prefetch = 0 : i64, scratch_operands = 0 : i64, tpu.core_type = #tpu.core_type<tc>, window_params = [{transform_indices = @transform_0, window_bounds = array<i64: 1, 16, 256>}, {pipeline_mode = #tpu.pipeline_mode<synchronous>, transform_indices = @transform_1, window_bounds = array<i64: 3, 8, 16>}, {pipeline_mode = #tpu.pipeline_mode<synchronous>, transform_indices = @transform_2, window_bounds = array<i64: 768, 512>}, {pipeline_mode = #tpu.pipeline_mode<synchronous>, transform_indices = @transform_3, window_bounds = array<i64: 3, 1, 512>}, {pipeline_mode = #tpu.pipeline_mode<synchronous>, transform_indices = @transform_4, window_bounds = array<i64: 3, 4, 8>}, {pipeline_mode = #tpu.pipeline_mode<synchronous>, transform_indices = @transform_5, window_bounds = array<i64: 1536, 512>}, {pipeline_mode = #tpu.pipeline_mode<synchronous>, transform_indices = @transform_6, window_bounds = array<i64: 3, 1, 512>}, {pipeline_mode = #tpu.pipeline_mode<synchronous>, transform_indices = @transform_7, window_bounds = array<i64: 3, 2, 4>}, {pipeline_mode = #tpu.pipeline_mode<synchronous>, transform_indices = @transform_8, window_bounds = array<i64: 1536, 512>}, {pipeline_mode = #tpu.pipeline_mode<synchronous>, transform_indices = @transform_9, window_bounds = array<i64: 3, 1, 512>}, {pipeline_mode = #tpu.pipeline_mode<synchronous>, transform_indices = @transform_10, window_bounds = array<i64: 3, 1, 2>}, {pipeline_mode = #tpu.pipeline_mode<synchronous>, transform_indices = @transform_11, window_bounds = array<i64: 1536, 512>}, {pipeline_mode = #tpu.pipeline_mode<synchronous>, transform_indices = @transform_12, window_bounds = array<i64: 3, 1, 512>}, {pipeline_mode = #tpu.pipeline_mode<synchronous>, transform_indices = @transform_13, window_bounds = array<i64: 1, 512>}, {pipeline_mode = #tpu.pipeline_mode<synchronous>, transform_indices = @transform_14, window_bounds = array<i64: 1, 1>}, {transform_indices = @transform_15, window_bounds = array<i64: 1, 1, 128>}]} {
    %c0 = arith.constant 0 : index
    %c0_0 = arith.constant 0 : index
    %c0_1 = arith.constant 0 : index
    %0 = vector.load %arg1[%c0, %c0_0, %c0_1] : memref<1x16x256xf32, #tpu.memory_space<vmem>>, vector<1x16x256xf32>
    %1 = vector.shape_cast %0 : vector<1x16x256xf32> to vector<16x256xf32>
    %c0_2 = arith.constant 0 : index
    %c0_3 = arith.constant 0 : index
    %c0_4 = arith.constant 0 : index
    %2 = vector.load %arg2[%c0_2, %c0_3, %c0_4] : memref<3x8x16xf32, #tpu.memory_space<vmem>>, vector<1x8x16xf32>
    %3 = vector.shape_cast %2 : vector<1x8x16xf32> to vector<8x16xf32>
    %cst = arith.constant dense<0.000000e+00> : vector<8x256xf32>
    %4 = tpu.matmul %3, %1, %cst {dimension_numbers = #tpu.dot_dimension_numbers<[1], [0], [0], [1], [0, 0, 1, 1], [], []>} : vector<8x16xf32>, vector<16x256xf32>, vector<8x256xf32> -> vector<8x256xf32>
    %c1 = arith.constant 1 : index
    %c0_5 = arith.constant 0 : index
    %c0_6 = arith.constant 0 : index
    %5 = vector.load %arg2[%c1, %c0_5, %c0_6] : memref<3x8x16xf32, #tpu.memory_space<vmem>>, vector<1x8x16xf32>
    %6 = vector.shape_cast %5 : vector<1x8x16xf32> to vector<8x16xf32>
    %cst_7 = arith.constant dense<0.000000e+00> : vector<8x256xf32>
    %7 = tpu.matmul %6, %1, %cst_7 {dimension_numbers = #tpu.dot_dimension_numbers<[1], [0], [0], [1], [0, 0, 1, 1], [], []>} : vector<8x16xf32>, vector<16x256xf32>, vector<8x256xf32> -> vector<8x256xf32>
    %c2 = arith.constant 2 : index
    %c0_8 = arith.constant 0 : index
    %c0_9 = arith.constant 0 : index
    %8 = vector.load %arg2[%c2, %c0_8, %c0_9] : memref<3x8x16xf32, #tpu.memory_space<vmem>>, vector<1x8x16xf32>
    %9 = vector.shape_cast %8 : vector<1x8x16xf32> to vector<8x16xf32>
    %cst_10 = arith.constant dense<0.000000e+00> : vector<8x256xf32>
    %10 = tpu.matmul %9, %1, %cst_10 {dimension_numbers = #tpu.dot_dimension_numbers<[1], [0], [0], [1], [0, 0, 1, 1], [], []>} : vector<8x16xf32>, vector<16x256xf32>, vector<8x256xf32> -> vector<8x256xf32>
    %11 = tpu.concatenate %4, %7, %10 in 1 : vector<8x256xf32>, vector<8x256xf32>, vector<8x256xf32> -> vector<8x768xf32>
    %12 = arith.truncf %11 : vector<8x768xf32> to vector<8x768xbf16>
    %c0_11 = arith.constant 0 : index
    %c0_12 = arith.constant 0 : index
    %13 = vector.load %arg3[%c0_11, %c0_12] : memref<768x512xbf16, #tpu.memory_space<vmem>>, vector<768x512xbf16>
    %cst_13 = arith.constant dense<0.000000e+00> : vector<8x512xf32>
    %14 = tpu.matmul %12, %13, %cst_13 {dimension_numbers = #tpu.dot_dimension_numbers<[1], [0], [0], [1], [0, 0, 1, 1], [], []>} : vector<8x768xbf16>, vector<768x512xbf16>, vector<8x512xf32> -> vector<8x512xf32>
    %c0_14 = arith.constant 0 : index
    %c0_15 = arith.constant 0 : index
    %c0_16 = arith.constant 0 : index
    %15 = vector.load %arg4[%c0_14, %c0_15, %c0_16] : memref<3x1x512xf32, #tpu.memory_space<vmem>>, vector<1x1x512xf32>
    %16 = vector.shape_cast %15 : vector<1x1x512xf32> to vector<1x512xf32>
    %17 = vector.broadcast %16 : vector<1x512xf32> to vector<8x512xf32>
    %18 = arith.addf %14, %17 : vector<8x512xf32>
    %cst_17 = arith.constant 0.000000e+00 : f32
    %19 = vector.broadcast %cst_17 : f32 to vector<8x512xf32>
    %20 = arith.cmpf ogt, %18, %19 : vector<8x512xf32>
    %cst_18 = arith.constant 2.000000e-01 : f32
    %21 = vector.broadcast %cst_18 : f32 to vector<8x512xf32>
    %22 = arith.mulf %21, %18 : vector<8x512xf32>
    %23 = arith.select %20, %18, %22 : vector<8x512xi1>, vector<8x512xf32>
    %c1_19 = arith.constant 1 : index
    %c0_20 = arith.constant 0 : index
    %c0_21 = arith.constant 0 : index
    %24 = vector.load %arg4[%c1_19, %c0_20, %c0_21] : memref<3x1x512xf32, #tpu.memory_space<vmem>>, vector<1x1x512xf32>
    %25 = vector.shape_cast %24 : vector<1x1x512xf32> to vector<1x512xf32>
    %26 = vector.broadcast %25 : vector<1x512xf32> to vector<8x512xf32>
    %27 = arith.mulf %23, %26 : vector<8x512xf32>
    %c2_22 = arith.constant 2 : index
    %c0_23 = arith.constant 0 : index
    %c0_24 = arith.constant 0 : index
    %28 = vector.load %arg4[%c2_22, %c0_23, %c0_24] : memref<3x1x512xf32, #tpu.memory_space<vmem>>, vector<1x1x512xf32>
    %29 = vector.shape_cast %28 : vector<1x1x512xf32> to vector<1x512xf32>
    %30 = vector.broadcast %29 : vector<1x512xf32> to vector<8x512xf32>
    %31 = arith.addf %27, %30 : vector<8x512xf32>
    %c0_25 = arith.constant 0 : index
    %c0_26 = arith.constant 0 : index
    %c0_27 = arith.constant 0 : index
    %32 = vector.load %arg5[%c0_25, %c0_26, %c0_27] : memref<3x4x8xf32, #tpu.memory_space<vmem>>, vector<1x4x8xf32>
    %33 = vector.shape_cast %32 : vector<1x4x8xf32> to vector<4x8xf32>
    %cst_28 = arith.constant dense<0.000000e+00> : vector<4x512xf32>
    %34 = tpu.matmul %33, %31, %cst_28 {dimension_numbers = #tpu.dot_dimension_numbers<[1], [0], [0], [1], [0, 0, 1, 1], [], []>} : vector<4x8xf32>, vector<8x512xf32>, vector<4x512xf32> -> vector<4x512xf32>
    %c1_29 = arith.constant 1 : index
    %c0_30 = arith.constant 0 : index
    %c0_31 = arith.constant 0 : index
    %35 = vector.load %arg5[%c1_29, %c0_30, %c0_31] : memref<3x4x8xf32, #tpu.memory_space<vmem>>, vector<1x4x8xf32>
    %36 = vector.shape_cast %35 : vector<1x4x8xf32> to vector<4x8xf32>
    %cst_32 = arith.constant dense<0.000000e+00> : vector<4x512xf32>
    %37 = tpu.matmul %36, %31, %cst_32 {dimension_numbers = #tpu.dot_dimension_numbers<[1], [0], [0], [1], [0, 0, 1, 1], [], []>} : vector<4x8xf32>, vector<8x512xf32>, vector<4x512xf32> -> vector<4x512xf32>
    %c2_33 = arith.constant 2 : index
    %c0_34 = arith.constant 0 : index
    %c0_35 = arith.constant 0 : index
    %38 = vector.load %arg5[%c2_33, %c0_34, %c0_35] : memref<3x4x8xf32, #tpu.memory_space<vmem>>, vector<1x4x8xf32>
    %39 = vector.shape_cast %38 : vector<1x4x8xf32> to vector<4x8xf32>
    %cst_36 = arith.constant dense<0.000000e+00> : vector<4x512xf32>
    %40 = tpu.matmul %39, %31, %cst_36 {dimension_numbers = #tpu.dot_dimension_numbers<[1], [0], [0], [1], [0, 0, 1, 1], [], []>} : vector<4x8xf32>, vector<8x512xf32>, vector<4x512xf32> -> vector<4x512xf32>
    %41 = tpu.concatenate %34, %37, %40 in 1 : vector<4x512xf32>, vector<4x512xf32>, vector<4x512xf32> -> vector<4x1536xf32>
    %42 = arith.truncf %41 : vector<4x1536xf32> to vector<4x1536xbf16>
    %c0_37 = arith.constant 0 : index
    %c0_38 = arith.constant 0 : index
    %43 = vector.load %arg6[%c0_37, %c0_38] : memref<1536x512xbf16, #tpu.memory_space<vmem>>, vector<1536x512xbf16>
    %cst_39 = arith.constant dense<0.000000e+00> : vector<4x512xf32>
    %44 = tpu.matmul %42, %43, %cst_39 {dimension_numbers = #tpu.dot_dimension_numbers<[1], [0], [0], [1], [0, 0, 1, 1], [], []>} : vector<4x1536xbf16>, vector<1536x512xbf16>, vector<4x512xf32> -> vector<4x512xf32>
    %c0_40 = arith.constant 0 : index
    %c0_41 = arith.constant 0 : index
    %c0_42 = arith.constant 0 : index
    %45 = vector.load %arg7[%c0_40, %c0_41, %c0_42] : memref<3x1x512xf32, #tpu.memory_space<vmem>>, vector<1x1x512xf32>
    %46 = vector.shape_cast %45 : vector<1x1x512xf32> to vector<1x512xf32>
    %47 = vector.broadcast %46 : vector<1x512xf32> to vector<4x512xf32>
    %48 = arith.addf %44, %47 : vector<4x512xf32>
    %cst_43 = arith.constant 0.000000e+00 : f32
    %49 = vector.broadcast %cst_43 : f32 to vector<4x512xf32>
    %50 = arith.cmpf ogt, %48, %49 : vector<4x512xf32>
    %cst_44 = arith.constant 2.000000e-01 : f32
    %51 = vector.broadcast %cst_44 : f32 to vector<4x512xf32>
    %52 = arith.mulf %51, %48 : vector<4x512xf32>
    %53 = arith.select %50, %48, %52 : vector<4x512xi1>, vector<4x512xf32>
    %c1_45 = arith.constant 1 : index
    %c0_46 = arith.constant 0 : index
    %c0_47 = arith.constant 0 : index
    %54 = vector.load %arg7[%c1_45, %c0_46, %c0_47] : memref<3x1x512xf32, #tpu.memory_space<vmem>>, vector<1x1x512xf32>
    %55 = vector.shape_cast %54 : vector<1x1x512xf32> to vector<1x512xf32>
    %56 = vector.broadcast %55 : vector<1x512xf32> to vector<4x512xf32>
    %57 = arith.mulf %53, %56 : vector<4x512xf32>
    %c2_48 = arith.constant 2 : index
    %c0_49 = arith.constant 0 : index
    %c0_50 = arith.constant 0 : index
    %58 = vector.load %arg7[%c2_48, %c0_49, %c0_50] : memref<3x1x512xf32, #tpu.memory_space<vmem>>, vector<1x1x512xf32>
    %59 = vector.shape_cast %58 : vector<1x1x512xf32> to vector<1x512xf32>
    %60 = vector.broadcast %59 : vector<1x512xf32> to vector<4x512xf32>
    %61 = arith.addf %57, %60 : vector<4x512xf32>
    %c0_51 = arith.constant 0 : index
    %c0_52 = arith.constant 0 : index
    %c0_53 = arith.constant 0 : index
    %62 = vector.load %arg8[%c0_51, %c0_52, %c0_53] : memref<3x2x4xf32, #tpu.memory_space<vmem>>, vector<1x2x4xf32>
    %63 = vector.shape_cast %62 : vector<1x2x4xf32> to vector<2x4xf32>
    %cst_54 = arith.constant dense<0.000000e+00> : vector<2x512xf32>
    %64 = tpu.matmul %63, %61, %cst_54 {dimension_numbers = #tpu.dot_dimension_numbers<[1], [0], [0], [1], [0, 0, 1, 1], [], []>} : vector<2x4xf32>, vector<4x512xf32>, vector<2x512xf32> -> vector<2x512xf32>
    %c1_55 = arith.constant 1 : index
    %c0_56 = arith.constant 0 : index
    %c0_57 = arith.constant 0 : index
    %65 = vector.load %arg8[%c1_55, %c0_56, %c0_57] : memref<3x2x4xf32, #tpu.memory_space<vmem>>, vector<1x2x4xf32>
    %66 = vector.shape_cast %65 : vector<1x2x4xf32> to vector<2x4xf32>
    %cst_58 = arith.constant dense<0.000000e+00> : vector<2x512xf32>
    %67 = tpu.matmul %66, %61, %cst_58 {dimension_numbers = #tpu.dot_dimension_numbers<[1], [0], [0], [1], [0, 0, 1, 1], [], []>} : vector<2x4xf32>, vector<4x512xf32>, vector<2x512xf32> -> vector<2x512xf32>
    %c2_59 = arith.constant 2 : index
    %c0_60 = arith.constant 0 : index
    %c0_61 = arith.constant 0 : index
    %68 = vector.load %arg8[%c2_59, %c0_60, %c0_61] : memref<3x2x4xf32, #tpu.memory_space<vmem>>, vector<1x2x4xf32>
    %69 = vector.shape_cast %68 : vector<1x2x4xf32> to vector<2x4xf32>
    %cst_62 = arith.constant dense<0.000000e+00> : vector<2x512xf32>
    %70 = tpu.matmul %69, %61, %cst_62 {dimension_numbers = #tpu.dot_dimension_numbers<[1], [0], [0], [1], [0, 0, 1, 1], [], []>} : vector<2x4xf32>, vector<4x512xf32>, vector<2x512xf32> -> vector<2x512xf32>
    %71 = tpu.concatenate %64, %67, %70 in 1 : vector<2x512xf32>, vector<2x512xf32>, vector<2x512xf32> -> vector<2x1536xf32>
    %72 = arith.truncf %71 : vector<2x1536xf32> to vector<2x1536xbf16>
    %c0_63 = arith.constant 0 : index
    %c0_64 = arith.constant 0 : index
    %73 = vector.load %arg9[%c0_63, %c0_64] : memref<1536x512xbf16, #tpu.memory_space<vmem>>, vector<1536x512xbf16>
    %cst_65 = arith.constant dense<0.000000e+00> : vector<2x512xf32>
    %74 = tpu.matmul %72, %73, %cst_65 {dimension_numbers = #tpu.dot_dimension_numbers<[1], [0], [0], [1], [0, 0, 1, 1], [], []>} : vector<2x1536xbf16>, vector<1536x512xbf16>, vector<2x512xf32> -> vector<2x512xf32>
    %c0_66 = arith.constant 0 : index
    %c0_67 = arith.constant 0 : index
    %c0_68 = arith.constant 0 : index
    %75 = vector.load %arg10[%c0_66, %c0_67, %c0_68] : memref<3x1x512xf32, #tpu.memory_space<vmem>>, vector<1x1x512xf32>
    %76 = vector.shape_cast %75 : vector<1x1x512xf32> to vector<1x512xf32>
    %77 = vector.broadcast %76 : vector<1x512xf32> to vector<2x512xf32>
    %78 = arith.addf %74, %77 : vector<2x512xf32>
    %cst_69 = arith.constant 0.000000e+00 : f32
    %79 = vector.broadcast %cst_69 : f32 to vector<2x512xf32>
    %80 = arith.cmpf ogt, %78, %79 : vector<2x512xf32>
    %cst_70 = arith.constant 2.000000e-01 : f32
    %81 = vector.broadcast %cst_70 : f32 to vector<2x512xf32>
    %82 = arith.mulf %81, %78 : vector<2x512xf32>
    %83 = arith.select %80, %78, %82 : vector<2x512xi1>, vector<2x512xf32>
    %c1_71 = arith.constant 1 : index
    %c0_72 = arith.constant 0 : index
    %c0_73 = arith.constant 0 : index
    %84 = vector.load %arg10[%c1_71, %c0_72, %c0_73] : memref<3x1x512xf32, #tpu.memory_space<vmem>>, vector<1x1x512xf32>
    %85 = vector.shape_cast %84 : vector<1x1x512xf32> to vector<1x512xf32>
    %86 = vector.broadcast %85 : vector<1x512xf32> to vector<2x512xf32>
    %87 = arith.mulf %83, %86 : vector<2x512xf32>
    %c2_74 = arith.constant 2 : index
    %c0_75 = arith.constant 0 : index
    %c0_76 = arith.constant 0 : index
    %88 = vector.load %arg10[%c2_74, %c0_75, %c0_76] : memref<3x1x512xf32, #tpu.memory_space<vmem>>, vector<1x1x512xf32>
    %89 = vector.shape_cast %88 : vector<1x1x512xf32> to vector<1x512xf32>
    %90 = vector.broadcast %89 : vector<1x512xf32> to vector<2x512xf32>
    %91 = arith.addf %87, %90 : vector<2x512xf32>
    %c0_77 = arith.constant 0 : index
    %c0_78 = arith.constant 0 : index
    %c0_79 = arith.constant 0 : index
    %92 = vector.load %arg11[%c0_77, %c0_78, %c0_79] : memref<3x1x2xf32, #tpu.memory_space<vmem>>, vector<1x1x2xf32>
    %93 = vector.shape_cast %92 : vector<1x1x2xf32> to vector<1x2xf32>
    %cst_80 = arith.constant dense<0.000000e+00> : vector<1x512xf32>
    %94 = tpu.matmul %93, %91, %cst_80 {dimension_numbers = #tpu.dot_dimension_numbers<[1], [0], [0], [1], [0, 0, 1, 1], [], []>} : vector<1x2xf32>, vector<2x512xf32>, vector<1x512xf32> -> vector<1x512xf32>
    %c1_81 = arith.constant 1 : index
    %c0_82 = arith.constant 0 : index
    %c0_83 = arith.constant 0 : index
    %95 = vector.load %arg11[%c1_81, %c0_82, %c0_83] : memref<3x1x2xf32, #tpu.memory_space<vmem>>, vector<1x1x2xf32>
    %96 = vector.shape_cast %95 : vector<1x1x2xf32> to vector<1x2xf32>
    %cst_84 = arith.constant dense<0.000000e+00> : vector<1x512xf32>
    %97 = tpu.matmul %96, %91, %cst_84 {dimension_numbers = #tpu.dot_dimension_numbers<[1], [0], [0], [1], [0, 0, 1, 1], [], []>} : vector<1x2xf32>, vector<2x512xf32>, vector<1x512xf32> -> vector<1x512xf32>
    %c2_85 = arith.constant 2 : index
    %c0_86 = arith.constant 0 : index
    %c0_87 = arith.constant 0 : index
    %98 = vector.load %arg11[%c2_85, %c0_86, %c0_87] : memref<3x1x2xf32, #tpu.memory_space<vmem>>, vector<1x1x2xf32>
    %99 = vector.shape_cast %98 : vector<1x1x2xf32> to vector<1x2xf32>
    %cst_88 = arith.constant dense<0.000000e+00> : vector<1x512xf32>
    %100 = tpu.matmul %99, %91, %cst_88 {dimension_numbers = #tpu.dot_dimension_numbers<[1], [0], [0], [1], [0, 0, 1, 1], [], []>} : vector<1x2xf32>, vector<2x512xf32>, vector<1x512xf32> -> vector<1x512xf32>
    %101 = tpu.concatenate %94, %97, %100 in 1 : vector<1x512xf32>, vector<1x512xf32>, vector<1x512xf32> -> vector<1x1536xf32>
    %102 = arith.truncf %101 : vector<1x1536xf32> to vector<1x1536xbf16>
    %c0_89 = arith.constant 0 : index
    %c0_90 = arith.constant 0 : index
    %103 = vector.load %arg12[%c0_89, %c0_90] : memref<1536x512xbf16, #tpu.memory_space<vmem>>, vector<1536x512xbf16>
    %cst_91 = arith.constant dense<0.000000e+00> : vector<1x512xf32>
    %104 = tpu.matmul %102, %103, %cst_91 {dimension_numbers = #tpu.dot_dimension_numbers<[1], [0], [0], [1], [0, 0, 1, 1], [], []>} : vector<1x1536xbf16>, vector<1536x512xbf16>, vector<1x512xf32> -> vector<1x512xf32>
    %c0_92 = arith.constant 0 : index
    %c0_93 = arith.constant 0 : index
    %c0_94 = arith.constant 0 : index
    %105 = vector.load %arg13[%c0_92, %c0_93, %c0_94] : memref<3x1x512xf32, #tpu.memory_space<vmem>>, vector<1x1x512xf32>
    %106 = vector.shape_cast %105 : vector<1x1x512xf32> to vector<1x512xf32>
    %107 = arith.addf %104, %106 : vector<1x512xf32>
    %cst_95 = arith.constant 0.000000e+00 : f32
    %108 = vector.broadcast %cst_95 : f32 to vector<1x512xf32>
    %109 = arith.cmpf ogt, %107, %108 : vector<1x512xf32>
    %cst_96 = arith.constant 2.000000e-01 : f32
    %110 = vector.broadcast %cst_96 : f32 to vector<1x512xf32>
    %111 = arith.mulf %110, %107 : vector<1x512xf32>
    %112 = arith.select %109, %107, %111 : vector<1x512xi1>, vector<1x512xf32>
    %c1_97 = arith.constant 1 : index
    %c0_98 = arith.constant 0 : index
    %c0_99 = arith.constant 0 : index
    %113 = vector.load %arg13[%c1_97, %c0_98, %c0_99] : memref<3x1x512xf32, #tpu.memory_space<vmem>>, vector<1x1x512xf32>
    %114 = vector.shape_cast %113 : vector<1x1x512xf32> to vector<1x512xf32>
    %115 = arith.mulf %112, %114 : vector<1x512xf32>
    %c2_100 = arith.constant 2 : index
    %c0_101 = arith.constant 0 : index
    %c0_102 = arith.constant 0 : index
    %116 = vector.load %arg13[%c2_100, %c0_101, %c0_102] : memref<3x1x512xf32, #tpu.memory_space<vmem>>, vector<1x1x512xf32>
    %117 = vector.shape_cast %116 : vector<1x1x512xf32> to vector<1x512xf32>
    %118 = arith.addf %115, %117 : vector<1x512xf32>
    %c0_103 = arith.constant 0 : index
    %c0_104 = arith.constant 0 : index
    %119 = vector.load %arg14[%c0_103, %c0_104] : memref<1x512xf32, #tpu.memory_space<vmem>>, vector<1x512xf32>
    %120 = arith.mulf %118, %119 : vector<1x512xf32>
    %cst_105 = arith.constant dense<0.000000e+00> : vector<1xf32>
    %121 = vector.multi_reduction <add>, %120, %cst_105 [1] : vector<1x512xf32> to vector<1xf32>
    %122 = vector.shape_cast %121 : vector<1xf32> to vector<1x1xf32>
    %c0_106 = arith.constant 0 : index
    %c0_107 = arith.constant 0 : index
    %123 = vector.load %arg15[%c0_106, %c0_107] : memref<1x1xf32, #tpu.memory_space<vmem>>, vector<1x1xf32>
    %124 = arith.addf %122, %123 : vector<1x1xf32>
    %cst_108 = arith.constant 0.000000e+00 : f32
    %125 = vector.broadcast %cst_108 : f32 to vector<1x1xf32>
    %126 = arith.subf %125, %124 : vector<1x1xf32>
    %127 = math.exp %126 : vector<1x1xf32>
    %cst_109 = arith.constant 1.000000e+00 : f32
    %128 = vector.broadcast %cst_109 : f32 to vector<1x1xf32>
    %129 = arith.addf %128, %127 : vector<1x1xf32>
    %cst_110 = arith.constant 1.000000e+00 : f32
    %130 = vector.broadcast %cst_110 : f32 to vector<1x1xf32>
    %131 = arith.divf %130, %129 : vector<1x1xf32>
    %132 = vector.shape_cast %131 : vector<1x1xf32> to vector<1x1x1xf32>
    %133 = vector.shape_cast %132 : vector<1x1x1xf32> to vector<1x1x1xf32>
    %134 = vector.broadcast %133 : vector<1x1x1xf32> to vector<1x1x128xf32>
    %c0_111 = arith.constant 0 : index
    %c0_112 = arith.constant 0 : index
    %c0_113 = arith.constant 0 : index
    %135 = vector.load %arg16[%c0_111, %c0_112, %c0_113] : memref<1x1x128xf32, #tpu.memory_space<vmem>>, vector<1x1x128xf32>
    tpu.vector_store %arg16[%c0_111, %c0_112, %c0_113], %134 {strides = array<i32>} : memref<1x1x128xf32, #tpu.memory_space<vmem>>, vector<1x1x128xf32>,
    return
  }
  func.func @transform_0(%arg0: i32) -> (i32, i32, i32) {
    %c0_i32 = arith.constant 0 : i32
    %c0_i32_0 = arith.constant 0 : i32
    %c0_i32_1 = arith.constant 0 : i32
    return %arg0, %c0_i32, %c0_i32_0 : i32, i32, i32
  }
  func.func @transform_1(%arg0: i32) -> (i32, i32, i32) {
    %c0_i32 = arith.constant 0 : i32
    %c0_i32_0 = arith.constant 0 : i32
    %c0_i32_1 = arith.constant 0 : i32
    %c0_i32_2 = arith.constant 0 : i32
    return %c0_i32, %c0_i32_0, %c0_i32_1 : i32, i32, i32
  }
  func.func @transform_2(%arg0: i32) -> (i32, i32) {
    %c0_i32 = arith.constant 0 : i32
    %c0_i32_0 = arith.constant 0 : i32
    %c0_i32_1 = arith.constant 0 : i32
    return %c0_i32, %c0_i32_0 : i32, i32
  }
  func.func @transform_3(%arg0: i32) -> (i32, i32, i32) {
    %c0_i32 = arith.constant 0 : i32
    %c0_i32_0 = arith.constant 0 : i32
    %c0_i32_1 = arith.constant 0 : i32
    %c0_i32_2 = arith.constant 0 : i32
    return %c0_i32, %c0_i32_0, %c0_i32_1 : i32, i32, i32
  }
  func.func @transform_4(%arg0: i32) -> (i32, i32, i32) {
    %c0_i32 = arith.constant 0 : i32
    %c0_i32_0 = arith.constant 0 : i32
    %c0_i32_1 = arith.constant 0 : i32
    %c0_i32_2 = arith.constant 0 : i32
    return %c0_i32, %c0_i32_0, %c0_i32_1 : i32, i32, i32
  }
  func.func @transform_5(%arg0: i32) -> (i32, i32) {
    %c0_i32 = arith.constant 0 : i32
    %c0_i32_0 = arith.constant 0 : i32
    %c0_i32_1 = arith.constant 0 : i32
    return %c0_i32, %c0_i32_0 : i32, i32
  }
  func.func @transform_6(%arg0: i32) -> (i32, i32, i32) {
    %c0_i32 = arith.constant 0 : i32
    %c0_i32_0 = arith.constant 0 : i32
    %c0_i32_1 = arith.constant 0 : i32
    %c0_i32_2 = arith.constant 0 : i32
    return %c0_i32, %c0_i32_0, %c0_i32_1 : i32, i32, i32
  }
  func.func @transform_7(%arg0: i32) -> (i32, i32, i32) {
    %c0_i32 = arith.constant 0 : i32
    %c0_i32_0 = arith.constant 0 : i32
    %c0_i32_1 = arith.constant 0 : i32
    %c0_i32_2 = arith.constant 0 : i32
    return %c0_i32, %c0_i32_0, %c0_i32_1 : i32, i32, i32
  }
  func.func @transform_8(%arg0: i32) -> (i32, i32) {
    %c0_i32 = arith.constant 0 : i32
    %c0_i32_0 = arith.constant 0 : i32
    %c0_i32_1 = arith.constant 0 : i32
    return %c0_i32, %c0_i32_0 : i32, i32
  }
  func.func @transform_9(%arg0: i32) -> (i32, i32, i32) {
    %c0_i32 = arith.constant 0 : i32
    %c0_i32_0 = arith.constant 0 : i32
    %c0_i32_1 = arith.constant 0 : i32
    %c0_i32_2 = arith.constant 0 : i32
    return %c0_i32, %c0_i32_0, %c0_i32_1 : i32, i32, i32
  }
  func.func @transform_10(%arg0: i32) -> (i32, i32, i32) {
    %c0_i32 = arith.constant 0 : i32
    %c0_i32_0 = arith.constant 0 : i32
    %c0_i32_1 = arith.constant 0 : i32
    %c0_i32_2 = arith.constant 0 : i32
    return %c0_i32, %c0_i32_0, %c0_i32_1 : i32, i32, i32
  }
  func.func @transform_11(%arg0: i32) -> (i32, i32) {
    %c0_i32 = arith.constant 0 : i32
    %c0_i32_0 = arith.constant 0 : i32
    %c0_i32_1 = arith.constant 0 : i32
    return %c0_i32, %c0_i32_0 : i32, i32
  }
  func.func @transform_12(%arg0: i32) -> (i32, i32, i32) {
    %c0_i32 = arith.constant 0 : i32
    %c0_i32_0 = arith.constant 0 : i32
    %c0_i32_1 = arith.constant 0 : i32
    %c0_i32_2 = arith.constant 0 : i32
    return %c0_i32, %c0_i32_0, %c0_i32_1 : i32, i32, i32
  }
  func.func @transform_13(%arg0: i32) -> (i32, i32) {
    %c0_i32 = arith.constant 0 : i32
    %c0_i32_0 = arith.constant 0 : i32
    %c0_i32_1 = arith.constant 0 : i32
    return %c0_i32, %c0_i32_0 : i32, i32
  }
  func.func @transform_14(%arg0: i32) -> (i32, i32) {
    %c0_i32 = arith.constant 0 : i32
    %c0_i32_0 = arith.constant 0 : i32
    %c0_i32_1 = arith.constant 0 : i32
    return %c0_i32, %c0_i32_0 : i32, i32
  }
  func.func @transform_15(%arg0: i32) -> (i32, i32, i32) {
    %c0_i32 = arith.constant 0 : i32
    %c0_i32_0 = arith.constant 0 : i32
    %c0_i32_1 = arith.constant 0 : i32
    return %arg0, %c0_i32, %c0_i32_0 : i32, i32, i32
  }
}

</mosaic_0001>

<bundles_post_ra>
// kernel: tpu_custom_call.1
= control target key start
LH: loop header
LB: loop body
LE: loop exit
PB: predicated region body
PF: predicated region fallthrough
CT: control target
= control target key end

     0   :  { %s21064_s0 = inlined_call_operand.hbm [shape: f32[2,16,256], index: 0, kind: input, shape index: {}]   ;;  %s21065_s1 = inlined_call_operand.hbm [shape: f32[3,8,16], index: 1, kind: input, shape index: {}]   ;;  %s21066_s2 = inlined_call_operand.hbm [shape: bf16[768,512], index: 2, kind: input, shape index: {}]   ;;  %s21067_s3 = inlined_call_operand.hbm [shape: f32[3,1,512], index: 3, kind: input, shape index: {}]   ;;  %s21068_s4 = inlined_call_operand.hbm [shape: f32[3,4,8], index: 4, kind: input, shape index: {}]   ;;  %s21069_s5 = inlined_call_operand.hbm [shape: bf16[1536,512], index: 5, kind: input, shape index: {}]   ;;  %s21070_s6 = inlined_call_operand.hbm [shape: f32[3,1,512], index: 6, kind: input, shape index: {}]   ;;  %s21071_s7 = inlined_call_operand.hbm [shape: f32[3,2,4], index: 7, kind: input, shape index: {}]   ;;  %s21072_s8 = inlined_call_operand.hbm [shape: bf16[1536,512], index: 8, kind: input, shape index: {}]   ;;  %s21073_s9 = inlined_call_operand.hbm [shape: f32[3,1,512], index: 9, kind: input, shape index: {}]   ;;  %s21074_s10 = inlined_call_operand.vmem [shape: f32[3,1,2], index: 10, kind: input, shape index: {}]   ;;  %s21075_s11 = inlined_call_operand.hbm [shape: bf16[1536,512], index: 11, kind: input, shape index: {}]   ;;  %s21076_s12 = inlined_call_operand.hbm [shape: f32[3,1,512], index: 12, kind: input, shape index: {}]   ;;  %s21077_s13 = inlined_call_operand.hbm [shape: f32[1,512], index: 13, kind: input, shape index: {}]   ;;  %s21078_s14 = inlined_call_operand.<no memory space> [shape: f32[1,1], index: 14, kind: input, shape index: {}]   ;;  %s21079_s15 = inlined_call_operand.hbm [shape: f32[2,1,128], index: 15, kind: output, shape index: {}]  }
   0x1   :  { %21091 = sst [smem:[#allocation34_spill]] %s21064_s0  ;;  %v20_v0 = vstv %s21078_s14 }
   0x2   :  { %21092 = sst [smem:[#allocation35_spill]] %s21065_s1  ;;  %21 = vst [vmem:[#allocation2] sm:$0x1] %v20_v0 }
   0x3   :  { %21093 = sst [smem:[#allocation36_spill]] %s21066_s2 }
   0x4   :  { %21094 = sst [smem:[#allocation37_spill]] %s21067_s3 }
   0x5   :  { %21095 = sst [smem:[#allocation38_spill]] %s21068_s4 }
   0x6   :  { %21096 = sst [smem:[#allocation39_spill]] %s21069_s5 }
   0x7   :  { %21097 = sst [smem:[#allocation40_spill]] %s21070_s6 }
   0x8   :  { %21098 = sst [smem:[#allocation41_spill]] %s21071_s7 }
   0x9   :  { %21099 = sst [smem:[#allocation42_spill]] %s21074_s10 }
   0xa   :  { %21100 = sst [smem:[#allocation43_spill]] %s21079_s15 }
   0xb   :  { %22 = vsyncpa [#allocation4], 0 }
   0xc   :  { %24 = vsyncpa [#allocation4 + $0x1], 0 }
   0xd   :  { %25 = vsyncpa [#allocation7], 0 }
   0xe   :  { %26 = vsyncpa [#allocation10], 0 }
   0xf   :  { %27 = vsyncpa [#allocation13], 0 }
  0x10   :  { %28 = vsyncpa [#allocation16], 0 }
  0x11   :  { %29 = vsyncpa [#allocation19], 0 }
  0x12   :  { %30 = vsyncpa [#allocation22], 0 }
  0x13   :  { %31 = vsyncpa [#allocation5], 0 }
  0x14   :  { %33 = vsyncpa [#allocation5 + $0x1], 0  ;;  %s19987_s20 = smov 0   ;;  %s19989_s21 = smov 0  }
  0x15   :  { %s19991_s22 = smov 0   ;;  %s19993_s23 = smov 0  }
  0x16 LB: > { %s21101_s1 = sld [smem:[#allocation35_spill]]  ;;  %s20011_s26 = sadd.s32 4294967295, %s19881_s23   ;;  %s19881_s23 = sphi %s19993_s23, %s21128_s23   ;;  %s19877_s22 = sphi %s19991_s22, %s21127_s22   ;;  %s19873_s21 = sphi %s19989_s21, %s21126_s21   ;;  %s19869_s20 = sphi %s19987_s20, %s21125_s20  }
  0x17   : > { %p12385_p0 = scmp.ge.s32.totalorder %s19881_s23, 1  ;;  %p60_p1 = scmp.eq.s32.totalorder %s20011_s26, 0 }
  0x18   : > { %p390_p2 = scmp.lt.s32.totalorder %s19881_s23, 3  ;;  %s19883_s28 = smov [#allocation6]  }
  0x19   : > { %s403_s29 = sshll.u32 %s19883_s28, 4  ;;  %s21104_s3 = sld [smem:[#allocation37_spill]]  ;;  %s404_s29 = int_to_ptr.vmem [resolvable:$true] %s403_s29 }
  0x1a   : > { %p20016_p3 = pnand %p12385_p0, %p390_p2  ;;  %s19884_s19 = smov [#allocation9]  }
  0x1b   : > { %s431_s14 = sshll.u32 %s19884_s19, 4  ;;  %s19885_s24 = smov 128   ;;  %s432_s14 = int_to_ptr.vmem [resolvable:$true] %s431_s14 }
  0x1c   : > { %s401_s25 = sshll.u32 %s21101_s1, 4  ;;  %p19259_p4 = pneg %p20016_p3  ;;  %s402_s25 = int_to_ptr.hbm [resolvable:$true] %s401_s25 }
  0x1d   : > { %s21102_s27 = scalar_select %p20016_p3, 1, 0 }
  0x1e   : > { %p20028_p6 = pnand %p19259_p4, %p60_p1  ;;  %s19886_s28 = smov 8  }
  0x1f   : > { %21103 = sst [smem:[#allocation33_spill]] %s21102_s27  ;;  %s429_s17 = sshll.u32 %s21104_s3, 4  ;;  %s430_s17 = int_to_ptr.hbm [resolvable:$true] %s429_s17 }
  0x20   : > { %19262 = dma.hbm_to_vmem [thread:$0]  (!%p20028_p6), %s402_s25, 384, %s404_s29, [#allocation7], %s19885_s24, %s19885_s24, %s19886_s28  }
  0x21   : > { %s21084_s1 = smov 64   ;;  %s21086_s15 = smov 4  }
  0x22   : > { %19268 = dma.hbm_to_vmem [thread:$0]  (!%p20028_p6), %s430_s17, 192, %s432_s14, [#allocation10], %s21084_s1, %s21084_s1, %s21086_s15  }
  0x23   : > { %s21106_s5 = sld [smem:[#allocation39_spill]]  ;;  %s19889_s19 = smov [#allocation12]  }
  0x24   : > { %s459_s10 = sshll.u32 %s19889_s19, 4  ;;  %s21107_s7 = sld [smem:[#allocation41_spill]]  ;;  %s460_s10 = int_to_ptr.vmem [resolvable:$true] %s459_s10 }
  0x25   : > { %s21088_s29 = smov 256   ;;  %s21090_s24 = smov 16  }
  0x26   : > { %s19892_s17 = smov [#allocation15]   ;;  %s19893_s28 = smov 32  }
  0x27   : > { %s487_s14 = sshll.u32 %s19892_s17, 4  ;;  %s19894_s30 = smov 2   ;;  %s488_s14 = int_to_ptr.vmem [resolvable:$true] %s487_s14 }
  0x28   : > { %s513_s27 = sshll.u32 %s21073_s9, 4  ;;  %s19895_s19 = smov [#allocation18]   ;;  %s514_s27 = int_to_ptr.hbm [resolvable:$true] %s513_s27 }
  0x29   : > { %s457_s3 = sshll.u32 %s21106_s5, 4  ;;  %s515_s1 = sshll.u32 %s19895_s19, 4  ;;  %s458_s3 = int_to_ptr.hbm [resolvable:$true] %s457_s3  ;;  %s516_s1 = int_to_ptr.vmem [resolvable:$true] %s515_s1 }
  0x2a   : > { %s485_s25 = sshll.u32 %s21107_s7, 4  ;;  %s21108_s17 = smov 4   ;;  %s486_s25 = int_to_ptr.hbm [resolvable:$true] %s485_s25 }
  0x2b   : > { %19274 = dma.hbm_to_vmem [thread:$0]  (!%p20028_p6), %s458_s3, 49152, %s460_s10, [#allocation13], %s21088_s29, %s21088_s29, %s21090_s24  }
  0x2c   : > { %19280 = dma.hbm_to_vmem [thread:$0]  (!%p20028_p6), %s486_s25, 96, %s488_s14, [#allocation16], %s19893_s28, %s19893_s28, %s19894_s30  }
  0x2d   : > { %s544_s10 = sshll.u32 %s21076_s12, 4  ;;  %s21109_s29 = smov 64   ;;  %s545_s10 = int_to_ptr.hbm [resolvable:$true] %s544_s10 }
  0x2e   : > { %19286 = dma.hbm_to_vmem [thread:$0]  (!%p20028_p6), %s514_s27, 192, %s516_s1, [#allocation19], %s21109_s29, %s21109_s29, %s21108_s17  }
  0x2f   : > { %s19896_s25 = smov [#allocation21]   ;;  %s21110_s2 = sld [smem:[#allocation36_spill]] }
  0x30   : > { %s546_s14 = sshll.u32 %s19896_s25, 4  ;;  %s21111_s4 = sld [smem:[#allocation38_spill]]  ;;  %s547_s14 = int_to_ptr.vmem [resolvable:$true] %s546_s14 }
  0x31   : > { %19292 = dma.hbm_to_vmem [thread:$0]  (!%p20028_p6), %s545_s10, 192, %s547_s14, [#allocation22], %s21109_s29, %s21109_s29, %s21108_s17  }
  0x32   : > { %s19897_s1 = smov [#allocation8]   ;;  %s21112_s3 = smov 256  }
  0x33   : > { %s417_s27 = sshll.u32 %s19897_s1, 4  ;;  %s19898_s25 = smov [#allocation11]   ;;  %s418_s27 = int_to_ptr.vmem [resolvable:$true] %s417_s27 }
  0x34   : > { %s445_s28 = sshll.u32 %s19898_s25, 4  ;;  %s21113_s6 = sld [smem:[#allocation40_spill]]  ;;  %s446_s28 = int_to_ptr.vmem [resolvable:$true] %s445_s28 }
  0x35   : > { %s415_s16 = sshll.u32 %s21110_s2, 4  ;;  %s499_s0 = sshll.u32 %s21072_s8, 4  ;;  %s416_s16 = int_to_ptr.hbm [resolvable:$true] %s415_s16  ;;  %s500_s0 = int_to_ptr.hbm [resolvable:$true] %s499_s0 }
  0x36   : > { %s443_s19 = sshll.u32 %s21111_s4, 4  ;;  %s19899_s1 = smov [#allocation14]   ;;  %s444_s19 = int_to_ptr.hbm [resolvable:$true] %s443_s19 }
  0x37   : > { %19265 = dma.hbm_to_vmem [thread:$0]  (!%p20028_p6), %s416_s16, 24576, %s418_s27, [#allocation7], %s21112_s3, %s21112_s3, %s21090_s24  }
  0x38   : > { %19271 = dma.hbm_to_vmem [thread:$0]  (!%p20028_p6), %s444_s19, 192, %s446_s28, [#allocation10], %s21109_s29, %s21109_s29, %s21108_s17  }
  0x39   : > { %s473_s16 = sshll.u32 %s19899_s1, 4  ;;  %s19900_s2 = smov [#allocation17]   ;;  %s474_s16 = int_to_ptr.vmem [resolvable:$true] %s473_s16 }
  0x3a   : > { %s471_s10 = sshll.u32 %s21113_s6, 4  ;;  %s501_s27 = sshll.u32 %s19900_s2, 4  ;;  %s472_s10 = int_to_ptr.hbm [resolvable:$true] %s471_s10  ;;  %s502_s27 = int_to_ptr.vmem [resolvable:$true] %s501_s27 }
  0x3b   : > { %19277 = dma.hbm_to_vmem [thread:$0]  (!%p20028_p6), %s472_s10, 192, %s474_s16, [#allocation13], %s21109_s29, %s21109_s29, %s21108_s17  }
  0x3c   : > { %s530_s28 = sshll.u32 %s21075_s11, 4  ;;  %s559_s17 = sshll.u32 %s21077_s13, 4  ;;  %s531_s28 = int_to_ptr.hbm [resolvable:$true] %s530_s28  ;;  %s560_s17 = int_to_ptr.hbm [resolvable:$true] %s559_s17 }
  0x3d   : > { %19283 = dma.hbm_to_vmem [thread:$0]  (!%p20028_p6), %s500_s0, 49152, %s502_s27, [#allocation16], %s21112_s3, %s21112_s3, %s21090_s24  }
  0x3e   : > { %s19901_s10 = smov [#allocation20]   ;;  %s19902_s15 = smov [#allocation23]  }
  0x3f   : > { %s532_s14 = sshll.u32 %s19901_s10, 4  ;;  %s561_s0 = sshll.u32 %s19902_s15, 4  ;;  %s533_s14 = int_to_ptr.vmem [resolvable:$true] %s532_s14  ;;  %s562_s0 = int_to_ptr.vmem [resolvable:$true] %s561_s0 }
  0x40   : > { %19289 = dma.hbm_to_vmem [thread:$0]  (!%p20028_p6), %s531_s28, 49152, %s533_s14, [#allocation19], %s21112_s3, %s21112_s3, %s21090_s24  }
  0x41   : > { %19295 = dma.hbm_to_vmem [thread:$0]  (!%p20028_p6), %s560_s17, 64, %s562_s0, [#allocation22]  }
  0x42   : > { %s12384_s1 = sadd.s32 4294967294, %s19881_s23   ;;  %s20115_s16 = sadd.s32 1, %s19881_s23  }
  0x43   : > { %s43_s2 = ssub.s32 %s19881_s23, %s20115_s16  ;;  %s46_s27 = sadd.s32 1, %s19877_s22 }
  0x44   : > { %p44_p7 = scmp.eq.s32.totalorder %s43_s2, 0  ;;  %p53_p8 = scmp.ne.s32.totalorder %s19877_s22, %s19873_s21 }
  0x45   : > { %p54_p9 = scmp.eq.s32.totalorder %s19881_s23, 0  ;;  %p59_p10 = scmp.ne.s32.totalorder %s19873_s21, %s19869_s20 }
  0x46   : > { %s20126_s25 = scalar_select %p44_p7, %s19877_s22, %s46_s27  }
  0x47   : > { %p20128_p11 = por %p54_p9, %p53_p8  ;;  %p20134_p12 = por %p60_p1, %p59_p10 }
  0x48   : > { %p377_p13 = scmp.eq.s32.totalorder %s20011_s26, 1  ;;  %p383_p0 = scmp.eq.s32.totalorder %s12384_s1, 1 }
  0x49   : > { %p19316_p2 = scmp.lt.s32.totalorder %s19881_s23, 2  ;;  %s575_s28 = sand.u32 1, %s19877_s22  }
  0x4a   : > { %p20141_p4 = por %p377_p13, %p53_p8  ;;  %p20145_p6 = por %p383_p0, %p59_p10 }
  0x4b   : > { %s12399_s17 = sshll.u32 %s575_s28, 5  ;;  %s17862_s10 = sshll.u32 %s19881_s23, 5 }
  0x4c   : > { %s21118_s0 = sld [smem:[#allocation34_spill]]  ;;  %s579_s27 = scalar_lea.vmem [#allocation3], %s12399_s17 }
  0x4d   : > { %s587_s24 = sshll.u32 %s579_s27, 4  ;;  %p20155_p7 = pnand %p19316_p2, %p20128_p11  ;;  %s588_s24 = int_to_ptr.vmem [resolvable:$true] %s587_s24 }
  0x4e   : > { %s576_s5 = scalar_lea.sflag [#allocation4], %s575_s28 }
  0x4f   : > { %p19765_p9 = pneg %p20155_p7 }
  0x52   : > { %s584_s2 = scalar_lea.hbm %s21118_s0, %s17862_s10  ;;  %s19768_s14 = scalar_lea.hbm %s21118_s0, 64 }
  0x53   : > { %s585_s4 = sshll.u32 %s584_s2, 4  ;;  %s586_s4 = int_to_ptr.hbm [resolvable:$true] %s585_s4 }
  0x54   : > { %s19761_s6 = sshra.s32 %s586_s4, 4  ;;  %s19762_s6 = int_to_ptr.hbm [resolvable:$true] %s19761_s6 }
  0x55   : > { %s19763_s7 = scalar_lea.hbm %s19762_s6, 32  ;;  %p19769_p11 = scmp.lt.s32.totalorder %s19762_s6, %s21118_s0 }
  0x56   : > { %p19764_p8 = scmp.ne.s32.totalorder %s19762_s6, %s19763_s7  ;;  %p19770_p0 = scmp.lt.s32.totalorder %s19768_s14, %s19763_s7 }
  0x58   : > { %p19766_p10 = pnand %p19765_p9, %p19764_p8  ;;  %p19771_p2 = por %p19770_p0, %p19769_p11 }
  0x5a   : > { %p19767_p13 = pneg %p19766_p10 }
  0x5c   : > { %p19772_p5 = pnand %p19771_p2, %p19767_p13 }
  0x5e   : > { %19775 = shalt.err (!%p19772_p5)
}
  0x5f   : > { %s21120_s28 = smov 16   ;;  %599 = sbr.rel (%p20016_p3) target bundleno = 2546 (0x9f2), region = 80 }
  0x60   : > { %19299 = dma.hbm_to_vmem [thread:$0]  (!%p20155_p7), %s586_s4, 512, %s588_s24, %s576_s5, %s21112_s3, %s21112_s3, %s21120_s28  }
  0x61   : > { %s20175_s27 = sand.u32 (!%p20016_p3), 1, %s19873_s21  }
  0x62   : > { %s12403_s6 = sshll.u32 (!%p20016_p3), %s20175_s27, 5  ;;  %s602_s7 = scalar_lea.sflag (!%p20016_p3), [#allocation4], %s20175_s27 }
  0x63   : > { %s605_s17 = scalar_lea.vmem (!%p20016_p3), [#allocation3], %s12403_s6 }
  0x64   : > { %19836 = dma.done.wait (%p20134_p12), %s602_s7, 512  }
  0x65   : > { %19838 = vsyncadd (%p20134_p12), %s602_s7, 4294966784 }
  0x66   : > { %19840 = dma.done.wait (%p60_p1), [#allocation7], 24960  }
  0x67   : > { %19842 = vsyncadd (%p60_p1), [#allocation7], 4294942336 }
  0x68   : > { %19844 = dma.done.wait (%p60_p1), [#allocation10], 384  }
  0x69   : > { %19846 = vsyncadd (%p60_p1), [#allocation10], 4294966912 }
  0x6a   : > { %19848 = dma.done.wait (%p60_p1), [#allocation13], 49344  }
  0x6b   : > { %19850 = vsyncadd (%p60_p1), [#allocation13], 4294917952 }
  0x6c   : > { %19852 = dma.done.wait (%p60_p1), [#allocation16], 49248  }
  0x6d   : > { %19854 = vsyncadd (%p60_p1), [#allocation16], 4294918048 }
  0x6e   : > { %19856 = dma.done.wait (%p60_p1), [#allocation19], 49344  }
  0x6f   : > { %19858 = vsyncadd (%p60_p1), [#allocation19], 4294917952 }
  0x70   : > { %19860 = dma.done.wait (%p60_p1), [#allocation22], 256  }
  0x71   : > { %19862 = vsyncadd (%p60_p1), [#allocation22], 4294967040  ;;  %v714_v1 = vld [vmem:[%s605_s17 + $0x10] sm:$0xff]  ;;  %v715_v2 = vld [vmem:[%s605_s17 + $0x18] sm:$0xff]  ;;  %vm717_vm0 = vcmask 130048   ;;  %vm2374_vm2 = vcmask 64512  }
  0x72   : > { %v712_v3 = vld [vmem:[%s605_s17] sm:$0xff]  ;;  %735 = vmatpush.msra.mxu0 %v714_v1  ;;  %755 = vmatpush.msra.mxu1 %v715_v2  ;;  %v713_v4 = vld [vmem:[%s605_s17 + $0x8] sm:$0xff]  ;;  %v12536_v7 = vld [vmem:[#allocation8 + $0xe0] sm:$0xf]  ;;  %vm5625_vm7 = vcmask 1043456   ;;  %vm5621_vm8 = vcmask 31744  }
  0x73   : > { %v716_v5 = vld [vmem:[#allocation6] sm:$0xff]  ;;  %780 = vmatpush.msra.mxu2 %v714_v1  ;;  %800 = vmatpush.msra.mxu3 %v715_v2  ;;  %v762_v6 = vld [vmem:[#allocation6 + $0x8] sm:$0xff]  ;;  %v12664_v9 = vld [vmem:[#allocation8 + $0x1e0] sm:$0xf]  ;;  %vm8885_vm13 = vcmask 1041408   ;;  %s21122_s24 = sld [smem:[#allocation42_spill]] }
  0x74   : > { %v17893_v8 = vld [vmem:[#allocation8 + $0xec] sm:$0xf0]  ;;  %736 = vmatpush.msra.mxu0 %v712_v3  ;;  %756 = vmatpush.msra.mxu1 %v713_v4  ;;  %v12520_v11 = vld [vmem:[#allocation8 + $0xc0] sm:$0xf]  ;;  %v807_v33 = vld [vmem:[#allocation6 + $0x10] sm:$0xff]  ;;  %vm8881_vm14 = vcmask 15360  }
  0x75   : > { %v17925_v10 = vld [vmem:[#allocation8 + $0x1ec] sm:$0xf0]  ;;  %781 = vmatpush.msra.mxu2 %v712_v3  ;;  %801 = vmatpush.msra.mxu3 %v713_v4  ;;  %v12537_v12 = vor.u32 %v17893_v8, %v12536_v7  ;;  %v12648_v15 = vld [vmem:[#allocation8 + $0x1c0] sm:$0xf]  ;;  %s21123_s4 = sld [smem:[#allocation43_spill]]  ;;  %s711_s3 = scalar_lea.vmem [#allocation24], %s20175_s27 }
  0x76   : > { %v12665_v13 = vor.u32 %v17925_v10, %v12664_v9  ;;  %v17889_v14 = vld [vmem:[#allocation8 + $0xcc] sm:$0xf0]  ;;  %12416 = vmatmul.msk.f32.vlgmr.msra.gmra.mxu0 %vm717_vm0, %v716_v5  ;;  %12417 = vmatmul.msk.f32.vlgmr.msra.gmra.mxu1 %vm717_vm0, %v716_v5  ;;  %v12792_v17 = vld [vmem:[#allocation8 + $0x2e0] sm:$0xf]  ;;  %s12202_s18 = sshll.u32 %s711_s3, 4  ;;  %s12192_s10 = scalar_lea.sflag [#allocation5], %s20175_s27  ;;  %s12203_s18 = int_to_ptr.vmem [resolvable:$true] %s12202_s18 }
  0x77   : > { %v17921_v16 = vld [vmem:[#allocation8 + $0x1cc] sm:$0xf0]  ;;  %v12920_v19 = vld [vmem:[#allocation8 + $0x3e0] sm:$0xf]  ;;  %12418 = vmatmul.msk.f32.vlgmr.msra.gmra.mxu2 %vm717_vm0, %v762_v6  ;;  %12419 = vmatmul.msk.f32.vlgmr.msra.gmra.mxu3 %vm717_vm0, %v762_v6  ;;  %v12521_v25 = vor.u32 %v17889_v14, %v12520_v11 }
  0x78   : > { %v17957_v18 = vld [vmem:[#allocation8 + $0x2ec] sm:$0xf0]  ;;  %825 = vmatpush.msrb.mxu0 %v714_v1  ;;  %845 = vmatpush.msrb.mxu1 %v715_v2  ;;  %v12504_v23 = vld [vmem:[#allocation8 + $0xa0] sm:$0xf]  ;;  %v12649_v26 = vor.u32 %v17921_v16, %v12648_v15 }
  0x79   : > { %v12793_v20 = vor.u32 %v17957_v18, %v12792_v17  ;;  %v17989_v21 = vld [vmem:[#allocation8 + $0x3ec] sm:$0xf0]  ;;  %v12776_v24 = vld [vmem:[#allocation8 + $0x2c0] sm:$0xf]  ;;  %2019 = vmatpush.bf16.msrb.mxu2 %v12537_v12  ;;  %2032 = vmatpush.bf16.msrb.mxu3 %v12665_v13 }
  0x7a   : > { %v12921_v22 = vor.u32 %v17989_v21, %v12920_v19  ;;  %v17953_v27 = vld [vmem:[#allocation8 + $0x2cc] sm:$0xf0]  ;;  %v12904_v28 = vld [vmem:[#allocation8 + $0x3c0] sm:$0xf]  ;;  %826 = vmatpush.msrb.mxu0 %v712_v3  ;;  %846 = vmatpush.msrb.mxu1 %v713_v4 }
  0x7b   : > { %v17985_v29 = vld [vmem:[#allocation8 + $0x3cc] sm:$0xf0]  ;;  %v12632_v31 = vld [vmem:[#allocation8 + $0x1a0] sm:$0xf]  ;;  %v12777_v34 = vor.u32 %v17953_v27, %v12776_v24  ;;  %s12200_s5 = scalar_lea.hbm %s21123_s4, %s20011_s26  ;;  %s19811_s2 = scalar_lea.hbm %s21123_s4, 2 }
  0x7c   : > { %v17885_v30 = vld [vmem:[#allocation8 + $0xac] sm:$0xf0]  ;;  %2045 = vmatpush.bf16.msra.mxu0 %v12793_v20  ;;  %2058 = vmatpush.bf16.msra.mxu1 %v12921_v22  ;;  %v12905_v35 = vor.u32 %v17985_v29, %v12904_v28  ;;  %v12760_v36 = vld [vmem:[#allocation8 + $0x2a0] sm:$0xf]  ;;  %s12204_s1 = sshll.u32 %s12200_s5, 4  ;;  %s12205_s1 = int_to_ptr.hbm [resolvable:$true] %s12204_s1 }
  0x7d   : > { %v17917_v32 = vld [vmem:[#allocation8 + $0x1ac] sm:$0xf0]  ;;  %v12888_v38 = vld [vmem:[#allocation8 + $0x3a0] sm:$0xf]  ;;  %2020 = vmatpush.bf16.msrb.mxu2 %v12521_v25  ;;  %2033 = vmatpush.bf16.msrb.mxu3 %v12649_v26  ;;  %v12505_v40 = vor.u32 %v17885_v30, %v12504_v23  ;;  %s19805_s14 = sshra.s32 %s12205_s1, 4  ;;  %s19806_s14 = int_to_ptr.hbm [resolvable:$true] %s19805_s14 }
  0x7e   : > { %v17949_v37 = vld [vmem:[#allocation8 + $0x2ac] sm:$0xf0]  ;;  %v12633_v41 = vor.u32 %v17917_v32, %v12632_v31  ;;  %v12488_v42 = vld [vmem:[#allocation8 + $0x80] sm:$0xf]  ;;  %12420 = vmatmul.msk.f32.vlgmr.msrb.gmra.mxu0 %vm717_vm0, %v807_v33  ;;  %12421 = vmatmul.msk.f32.vlgmr.msrb.gmra.mxu1 %vm717_vm0, %v807_v33  ;;  %s19807_s15 = scalar_lea.hbm %s19806_s14, 1  ;;  %p19812_p12 = scmp.lt.s32.totalorder %s19806_s14, %s21123_s4 }
  0x7f   : > { %v17981_v39 = vld [vmem:[#allocation8 + $0x3ac] sm:$0xf0]  ;;  %v12616_v44 = vld [vmem:[#allocation8 + $0x180] sm:$0xf]  ;;  %v12761_v46 = vor.u32 %v17949_v37, %v12760_v36  ;;  %p19808_p1 = scmp.ne.s32.totalorder %s19806_s14, %s19807_s15  ;;  %p19813_p7 = scmp.lt.s32.totalorder %s19811_s2, %s19807_s15 }
  0x80   : > { %v17881_v43 = vld [vmem:[#allocation8 + $0x8c] sm:$0xf0]  ;;  %2046 = vmatpush.bf16.msra.mxu0 %v12777_v34  ;;  %2059 = vmatpush.bf16.msra.mxu1 %v12905_v35  ;;  %v12889_v47 = vor.u32 %v17981_v39, %v12888_v38  ;;  %v12744_v48 = vld [vmem:[#allocation8 + $0x280] sm:$0xf] }
  0x81   : > { %v17913_v45 = vld [vmem:[#allocation8 + $0x18c] sm:$0xf0]  ;;  %v12872_v50 = vld [vmem:[#allocation8 + $0x380] sm:$0xf]  ;;  %2021 = vmatpush.bf16.msrb.mxu2 %v12505_v40  ;;  %2034 = vmatpush.bf16.msrb.mxu3 %v12633_v41  ;;  %v12489_v52 = vor.u32 %v17881_v43, %v12488_v42  ;;  %v17891_v40 = vld [vmem:[#allocation8 + $0xe4] sm:$0xf]  ;;  %p19809_p3 = pnand %p19808_p1, %p20141_p4  ;;  %p19814_p8 = por %p19813_p7, %p19812_p12 }
  0x82   : > { %v17945_v49 = vld [vmem:[#allocation8 + $0x28c] sm:$0xf0]  ;;  %v12617_v53 = vor.u32 %v17913_v45, %v12616_v44  ;;  %v12472_v54 = vld [vmem:[#allocation8 + $0x60] sm:$0xf]  ;;  %v12538_v43 = vld [vmem:[#allocation8 + $0xf0] sm:$0xf0] }
  0x83   : > { %v17977_v51 = vld [vmem:[#allocation8 + $0x38c] sm:$0xf0]  ;;  %v12600_v56 = vld [vmem:[#allocation8 + $0x160] sm:$0xf]  ;;  %v12745_v58 = vor.u32 %v17945_v49, %v12744_v48  ;;  %v17923_v44 = vld [vmem:[#allocation8 + $0x1e4] sm:$0xf]  ;;  %p19810_p5 = pneg %p19809_p3 }
  0x84   : > { %v17877_v55 = vld [vmem:[#allocation8 + $0x6c] sm:$0xf0]  ;;  %2047 = vmatpush.bf16.msra.mxu0 %v12761_v46  ;;  %2060 = vmatpush.bf16.msra.mxu1 %v12889_v47  ;;  %v12873_v59 = vor.u32 %v17977_v51, %v12872_v50  ;;  %v12728_v60 = vld [vmem:[#allocation8 + $0x260] sm:$0xf]  ;;  %v12666_v45 = vld [vmem:[#allocation8 + $0x1f0] sm:$0xf0] }
  0x85   : > { %v17909_v57 = vld [vmem:[#allocation8 + $0x16c] sm:$0xf0]  ;;  %v12856_v62 = vld [vmem:[#allocation8 + $0x360] sm:$0xf]  ;;  %2022 = vmatpush.bf16.msrb.mxu2 %v12489_v52  ;;  %2035 = vmatpush.bf16.msrb.mxu3 %v12617_v53  ;;  %v12473_v0 = vor.u32 %v17877_v55, %v12472_v54  ;;  %v12541_v54 = vor.u32 %v17891_v40, %v12538_v43  ;;  %v12669_v55 = vor.u32 %v17923_v44, %v12666_v45  ;;  %p19815_p9 = pnand %p19814_p8, %p19810_p5 }
  0x86   : > { %v17941_v61 = vld [vmem:[#allocation8 + $0x26c] sm:$0xf0]  ;;  %v12601_v1 = vor.u32 %v17909_v57, %v12600_v56  ;;  %v12456_v2 = vld [vmem:[#allocation8 + $0x40] sm:$0xf]  ;;  %v17887_v56 = vld [vmem:[#allocation8 + $0xc4] sm:$0xf] }
  0x87   : > { %v17973_v63 = vld [vmem:[#allocation8 + $0x36c] sm:$0xf0]  ;;  %v12584_v4 = vld [vmem:[#allocation8 + $0x140] sm:$0xf]  ;;  %v12729_v6 = vor.u32 %v17941_v61, %v12728_v60  ;;  %v12522_v57 = vld [vmem:[#allocation8 + $0xd0] sm:$0xf0] }
  0x88   : > { %v17873_v3 = vld [vmem:[#allocation8 + $0x4c] sm:$0xf0]  ;;  %2048 = vmatpush.bf16.msra.mxu0 %v12745_v58  ;;  %2061 = vmatpush.bf16.msra.mxu1 %v12873_v59  ;;  %v12857_v7 = vor.u32 %v17973_v63, %v12856_v62  ;;  %v12712_v8 = vld [vmem:[#allocation8 + $0x240] sm:$0xf]  ;;  %v17919_v58 = vld [vmem:[#allocation8 + $0x1c4] sm:$0xf] }
  0x89   : > { %v17905_v5 = vld [vmem:[#allocation8 + $0x14c] sm:$0xf0]  ;;  %v12840_v10 = vld [vmem:[#allocation8 + $0x340] sm:$0xf]  ;;  %2023 = vmatpush.bf16.msrb.mxu2 %v12473_v0  ;;  %2036 = vmatpush.bf16.msrb.mxu3 %v12601_v1  ;;  %v12457_v12 = vor.u32 %v17873_v3, %v12456_v2  ;;  %v12650_v59 = vld [vmem:[#allocation8 + $0x1d0] sm:$0xf0]  ;;  %v12525_v2 = vor.u32 %v17887_v56, %v12522_v57 }
  0x8a   : > { %v17937_v9 = vld [vmem:[#allocation8 + $0x24c] sm:$0xf0]  ;;  %v12585_v13 = vor.u32 %v17905_v5, %v12584_v4  ;;  %v12440_v14 = vld [vmem:[#allocation8 + $0x20] sm:$0xf]  ;;  %v12653_v3 = vor.u32 %v17919_v58, %v12650_v59  ;;  %v17883_v4 = vld [vmem:[#allocation8 + $0xa4] sm:$0xf] }
  0x8b   : > { %v17969_v11 = vld [vmem:[#allocation8 + $0x34c] sm:$0xf0]  ;;  %v12568_v16 = vld [vmem:[#allocation8 + $0x120] sm:$0xf]  ;;  %v12713_v18 = vor.u32 %v17937_v9, %v12712_v8  ;;  %v12506_v5 = vld [vmem:[#allocation8 + $0xb0] sm:$0xf0] }
  0x8c   : > { %v17869_v15 = vld [vmem:[#allocation8 + $0x2c] sm:$0xf0]  ;;  %2049 = vmatpush.bf16.msra.mxu0 %v12729_v6  ;;  %2062 = vmatpush.bf16.msra.mxu1 %v12857_v7  ;;  %v12841_v19 = vor.u32 %v17969_v11, %v12840_v10  ;;  %v12696_v20 = vld [vmem:[#allocation8 + $0x220] sm:$0xf]  ;;  %v17915_v6 = vld [vmem:[#allocation8 + $0x1a4] sm:$0xf] }
  0x8d   : > { %v17901_v17 = vld [vmem:[#allocation8 + $0x12c] sm:$0xf0]  ;;  %v12424_v21 = vld [vmem:[#allocation8] sm:$0xf]  ;;  %2024 = vmatpush.bf16.msrb.mxu2 %v12457_v12  ;;  %2037 = vmatpush.bf16.msrb.mxu3 %v12585_v13  ;;  %v12441_v25 = vor.u32 %v17869_v15, %v12440_v14  ;;  %v12634_v7 = vld [vmem:[#allocation8 + $0x1b0] sm:$0xf0]  ;;  %v12509_v14 = vor.u32 %v17883_v4, %v12506_v5 }
  0x8e   : > { %v17933_v22 = vld [vmem:[#allocation8 + $0x22c] sm:$0xf0]  ;;  %v12824_v23 = vld [vmem:[#allocation8 + $0x320] sm:$0xf]  ;;  %v12569_v26 = vor.u32 %v17901_v17, %v12568_v16  ;;  %v12637_v15 = vor.u32 %v17915_v6, %v12634_v7  ;;  %v17879_v16 = vld [vmem:[#allocation8 + $0x84] sm:$0xf] }
  0x8f   : > { %v17965_v24 = vld [vmem:[#allocation8 + $0x32c] sm:$0xf0]  ;;  %v12552_v28 = vld [vmem:[#allocation8 + $0x100] sm:$0xf]  ;;  %v12697_v34 = vor.u32 %v17933_v22, %v12696_v20  ;;  %v12490_v17 = vld [vmem:[#allocation8 + $0x90] sm:$0xf0] }
  0x90   : > { %v17865_v27 = vld [vmem:[#allocation8 + $0xc] sm:$0xf0]  ;;  %v13048_v30 = vld [vmem:[#allocation8 + $0x4e0] sm:$0xf]  ;;  %2050 = vmatpush.bf16.msra.mxu0 %v12713_v18  ;;  %2063 = vmatpush.bf16.msra.mxu1 %v12841_v19  ;;  %v12825_v35 = vor.u32 %v17965_v24, %v12824_v23  ;;  %v17911_v18 = vld [vmem:[#allocation8 + $0x184] sm:$0xf] }
  0x91   : > { %v17897_v29 = vld [vmem:[#allocation8 + $0x10c] sm:$0xf0]  ;;  %v13176_v32 = vld [vmem:[#allocation8 + $0x5e0] sm:$0xf]  ;;  %2025 = vmatpush.bf16.msrb.mxu2 %v12441_v25  ;;  %2038 = vmatpush.bf16.msrb.mxu3 %v12569_v26  ;;  %v12425_v41 = vor.u32 %v17865_v27, %v12424_v21  ;;  %v12618_v19 = vld [vmem:[#allocation8 + $0x190] sm:$0xf0]  ;;  %v12493_v26 = vor.u32 %v17879_v16, %v12490_v17 }
  0x92   : > { %v18021_v31 = vld [vmem:[#allocation8 + $0x4ec] sm:$0xf0]  ;;  %v12680_v36 = vld [vmem:[#allocation8 + $0x200] sm:$0xf]  ;;  %v12553_v42 = vor.u32 %v17897_v29, %v12552_v28  ;;  %v12621_v27 = vor.u32 %v17911_v18, %v12618_v19  ;;  %v17875_v28 = vld [vmem:[#allocation8 + $0x64] sm:$0xf] }
  0x93   : > { %v18053_v33 = vld [vmem:[#allocation8 + $0x5ec] sm:$0xf0]  ;;  %v12808_v38 = vld [vmem:[#allocation8 + $0x300] sm:$0xf]  ;;  %v13049_v46 = vor.u32 %v18021_v31, %v13048_v30  ;;  %v12474_v29 = vld [vmem:[#allocation8 + $0x70] sm:$0xf0] }
  0x94   : > { %v17929_v37 = vld [vmem:[#allocation8 + $0x20c] sm:$0xf0]  ;;  %v13177_v47 = vor.u32 %v18053_v33, %v13176_v32  ;;  %v13032_v48 = vld [vmem:[#allocation8 + $0x4c0] sm:$0xf]  ;;  %2051 = vmatpush.bf16.msra.mxu0 %v12697_v34  ;;  %2064 = vmatpush.bf16.msra.mxu1 %v12825_v35  ;;  %v17907_v30 = vld [vmem:[#allocation8 + $0x164] sm:$0xf] }
  0x95   : > { %v17961_v39 = vld [vmem:[#allocation8 + $0x30c] sm:$0xf0]  ;;  %v13160_v50 = vld [vmem:[#allocation8 + $0x5c0] sm:$0xf]  ;;  %v12681_v52 = vor.u32 %v17929_v37, %v12680_v36  ;;  %2026 = vmatpush.bf16.msrb.mxu2 %v12425_v41  ;;  %2039 = vmatpush.bf16.msrb.mxu3 %v12553_v42  ;;  %v12602_v31 = vld [vmem:[#allocation8 + $0x170] sm:$0xf0] }
  0x96   : > { %v18017_v49 = vld [vmem:[#allocation8 + $0x4cc] sm:$0xf0]  ;;  %v12809_v53 = vor.u32 %v17961_v39, %v12808_v38  ;;  %v13016_v62 = vld [vmem:[#allocation8 + $0x4a0] sm:$0xf]  ;;  %v12477_v38 = vor.u32 %v17875_v28, %v12474_v29  ;;  %v12605_v39 = vor.u32 %v17907_v30, %v12602_v31  ;;  %v17895_v5 = vld [vmem:[#allocation8 + $0x104] sm:$0xf] }
  0x97   : > { %v18049_v51 = vld [vmem:[#allocation8 + $0x5cc] sm:$0xf0]  ;;  %v13033_v60 = vor.u32 %v18017_v49, %v13032_v48  ;;  %v13144_v0 = vld [vmem:[#allocation8 + $0x5a0] sm:$0xf]  ;;  %v17871_v48 = vld [vmem:[#allocation8 + $0x44] sm:$0xf] }
  0x98   : > { %v13161_v61 = vor.u32 %v18049_v51, %v13160_v50  ;;  %2052 = vmatpush.bf16.msra.mxu0 %v12681_v52  ;;  %2065 = vmatpush.bf16.msra.mxu1 %v12809_v53  ;;  %v18013_v63 = vld [vmem:[#allocation8 + $0x4ac] sm:$0xf0]  ;;  %v13000_v10 = vld [vmem:[#allocation8 + $0x480] sm:$0xf]  ;;  %v12458_v49 = vld [vmem:[#allocation8 + $0x50] sm:$0xf0] }
  0x99   : > { %2071 = vmatpush.bf16.msra.mxu2 %v13049_v46  ;;  %2084 = vmatpush.bf16.msra.mxu3 %v13177_v47  ;;  %v18045_v1 = vld [vmem:[#allocation8 + $0x5ac] sm:$0xf0]  ;;  %v13017_v8 = vor.u32 %v18013_v63, %v13016_v62  ;;  %v13128_v12 = vld [vmem:[#allocation8 + $0x580] sm:$0xf]  ;;  %v17903_v50 = vld [vmem:[#allocation8 + $0x144] sm:$0xf]  ;;  %v12461_v51 = vor.u32 %v17871_v48, %v12458_v49 }
  0x9a   : > { %v13145_v9 = vor.u32 %v18045_v1, %v13144_v0  ;;  %v18009_v11 = vld [vmem:[#allocation8 + $0x48c] sm:$0xf0]  ;;  %v12984_v22 = vld [vmem:[#allocation8 + $0x460] sm:$0xf]  ;;  %v12586_v52 = vld [vmem:[#allocation8 + $0x150] sm:$0xf0] }
  0x9b   : > { %v18041_v13 = vld [vmem:[#allocation8 + $0x58c] sm:$0xf0]  ;;  %v13001_v20 = vor.u32 %v18009_v11, %v13000_v10  ;;  %v13112_v24 = vld [vmem:[#allocation8 + $0x560] sm:$0xf]  ;;  %v12589_v53 = vor.u32 %v17903_v50, %v12586_v52  ;;  %v17899_v62 = vld [vmem:[#allocation8 + $0x124] sm:$0xf] }
  0x9c   : > { %2097 = vmatpush.bf16.msrb.mxu0 %v12541_v54  ;;  %2110 = vmatpush.bf16.msrb.mxu1 %v12669_v55  ;;  %v13129_v21 = vor.u32 %v18041_v13, %v13128_v12  ;;  %v18005_v23 = vld [vmem:[#allocation8 + $0x46c] sm:$0xf0]  ;;  %v12968_v34 = vld [vmem:[#allocation8 + $0x440] sm:$0xf]  ;;  %v12570_v63 = vld [vmem:[#allocation8 + $0x130] sm:$0xf0] }
  0x9d   : > { %2072 = vmatpush.bf16.msra.mxu2 %v13033_v60  ;;  %2085 = vmatpush.bf16.msra.mxu3 %v13161_v61  ;;  %v18037_v25 = vld [vmem:[#allocation8 + $0x56c] sm:$0xf0]  ;;  %v12985_v32 = vor.u32 %v18005_v23, %v12984_v22  ;;  %v13096_v36 = vld [vmem:[#allocation8 + $0x540] sm:$0xf]  ;;  %v17867_v60 = vld [vmem:[#allocation8 + $0x24] sm:$0xf]  ;;  %v12573_v1 = vor.u32 %v17899_v62, %v12570_v63 }
  0x9e   : > { %v13113_v33 = vor.u32 %v18037_v25, %v13112_v24  ;;  %v18001_v35 = vld [vmem:[#allocation8 + $0x44c] sm:$0xf0]  ;;  %v12952_v42 = vld [vmem:[#allocation8 + $0x420] sm:$0xf]  ;;  %v12442_v61 = vld [vmem:[#allocation8 + $0x30] sm:$0xf0] }
  0x9f   : > { %v18033_v37 = vld [vmem:[#allocation8 + $0x54c] sm:$0xf0]  ;;  %v12969_v40 = vor.u32 %v18001_v35, %v12968_v34  ;;  %v13080_v44 = vld [vmem:[#allocation8 + $0x520] sm:$0xf]  ;;  %v12445_v0 = vor.u32 %v17867_v60, %v12442_v61  ;;  %v12554_v6 = vld [vmem:[#allocation8 + $0x110] sm:$0xf0] }
  0xa0   : > { %2098 = vmatpush.bf16.msrb.mxu0 %v12525_v2  ;;  %2111 = vmatpush.bf16.msrb.mxu1 %v12653_v3  ;;  %v13097_v41 = vor.u32 %v18033_v37, %v13096_v36  ;;  %v17997_v43 = vld [vmem:[#allocation8 + $0x42c] sm:$0xf0]  ;;  %v12936_v54 = vld [vmem:[#allocation8 + $0x400] sm:$0xf]  ;;  %v17863_v2 = vld [vmem:[#allocation8 + $0x4] sm:$0xf]  ;;  %v12557_v7 = vor.u32 %v17895_v5, %v12554_v6 }
  0xa1   : > { %2073 = vmatpush.bf16.msra.mxu2 %v13017_v8  ;;  %2086 = vmatpush.bf16.msra.mxu3 %v13145_v9  ;;  %v18029_v45 = vld [vmem:[#allocation8 + $0x52c] sm:$0xf0]  ;;  %v12953_v46 = vor.u32 %v17997_v43, %v12952_v42  ;;  %v13064_v56 = vld [vmem:[#allocation8 + $0x500] sm:$0xf]  ;;  %v12426_v3 = vld [vmem:[#allocation8 + $0x10] sm:$0xf0] }
  0xa2   : > { %v13081_v47 = vor.u32 %v18029_v45, %v13080_v44  ;;  %v17993_v55 = vld [vmem:[#allocation8 + $0x40c] sm:$0xf0]  ;;  %v12429_v4 = vor.u32 %v17863_v2, %v12426_v3  ;;  %v17955_v8 = vld [vmem:[#allocation8 + $0x2e4] sm:$0xf]  ;;  %v12794_v9 = vld [vmem:[#allocation8 + $0x2f0] sm:$0xf0] }
  0xa3   : > { %v12937_v57 = vor.u32 %v17993_v55, %v12936_v54  ;;  %v18025_v58 = vld [vmem:[#allocation8 + $0x50c] sm:$0xf0]  ;;  %v17987_v10 = vld [vmem:[#allocation8 + $0x3e4] sm:$0xf]  ;;  %v12922_v11 = vld [vmem:[#allocation8 + $0x3f0] sm:$0xf0] }
  0xa4   : > { %2099 = vmatpush.bf16.msrb.mxu0 %v12509_v14  ;;  %2112 = vmatpush.bf16.msrb.mxu1 %v12637_v15  ;;  %v13065_v59 = vor.u32 %v18025_v58, %v13064_v56  ;;  %v12797_v14 = vor.u32 %v17955_v8, %v12794_v9  ;;  %v12925_v15 = vor.u32 %v17987_v10, %v12922_v11  ;;  %v17951_v16 = vld [vmem:[#allocation8 + $0x2c4] sm:$0xf]  ;;  %v12778_v19 = vld [vmem:[#allocation8 + $0x2d0] sm:$0xf0] }
  0xa5   : > { %2074 = vmatpush.bf16.msra.mxu2 %v13001_v20  ;;  %2087 = vmatpush.bf16.msra.mxu3 %v13129_v21  ;;  %v17983_v20 = vld [vmem:[#allocation8 + $0x3c4] sm:$0xf]  ;;  %v12906_v21 = vld [vmem:[#allocation8 + $0x3d0] sm:$0xf0]  ;;  %v12781_v25 = vor.u32 %v17951_v16, %v12778_v19 }
  0xa6   : > { %v18019_v22 = vld [vmem:[#allocation8 + $0x4e4] sm:$0xf]  ;;  %v13050_v23 = vld [vmem:[#allocation8 + $0x4f0] sm:$0xf0] }
  0xa7   : > { %v18051_v24 = vld [vmem:[#allocation8 + $0x5e4] sm:$0xf]  ;;  %v12762_v29 = vld [vmem:[#allocation8 + $0x2b0] sm:$0xf0]  ;;  %v13053_v34 = vor.u32 %v18019_v22, %v13050_v23 }
  0xa8   : > { %2100 = vmatpush.bf16.msrb.mxu0 %v12493_v26  ;;  %2113 = vmatpush.bf16.msrb.mxu1 %v12621_v27  ;;  %v12909_v26 = vor.u32 %v17983_v20, %v12906_v21  ;;  %v13178_v27 = vld [vmem:[#allocation8 + $0x5f0] sm:$0xf0]  ;;  %v17947_v28 = vld [vmem:[#allocation8 + $0x2a4] sm:$0xf] }
  0xa9   : > { %2075 = vmatpush.bf16.msra.mxu2 %v12985_v32  ;;  %2088 = vmatpush.bf16.msra.mxu3 %v13113_v33  ;;  %v17979_v30 = vld [vmem:[#allocation8 + $0x3a4] sm:$0xf]  ;;  %v12890_v31 = vld [vmem:[#allocation8 + $0x3b0] sm:$0xf0]  ;;  %v13181_v35 = vor.u32 %v18051_v24, %v13178_v27  ;;  %v12765_v36 = vor.u32 %v17947_v28, %v12762_v29 }
  0xaa   : > { %v18015_v37 = vld [vmem:[#allocation8 + $0x4c4] sm:$0xf]  ;;  %v13162_v43 = vld [vmem:[#allocation8 + $0x5d0] sm:$0xf0] }
  0xab   : > { %v18047_v42 = vld [vmem:[#allocation8 + $0x5c4] sm:$0xf]  ;;  %v12746_v45 = vld [vmem:[#allocation8 + $0x290] sm:$0xf0] }
  0xac   : > { %2101 = vmatpush.bf16.msrb.mxu0 %v12477_v38  ;;  %2114 = vmatpush.bf16.msrb.mxu1 %v12605_v39  ;;  %v13034_v38 = vld [vmem:[#allocation8 + $0x4d0] sm:$0xf0]  ;;  %v17943_v44 = vld [vmem:[#allocation8 + $0x284] sm:$0xf]  ;;  %v13165_v49 = vor.u32 %v18047_v42, %v13162_v43 }
  0xad   : > { %2076 = vmatpush.bf16.msra.mxu2 %v12969_v40  ;;  %2089 = vmatpush.bf16.msra.mxu3 %v13097_v41  ;;  %v12893_v41 = vor.u32 %v17979_v30, %v12890_v31  ;;  %v13037_v48 = vor.u32 %v18015_v37, %v13034_v38  ;;  %v18011_v50 = vld [vmem:[#allocation8 + $0x4a4] sm:$0xf]  ;;  %v13146_v55 = vld [vmem:[#allocation8 + $0x5b0] sm:$0xf0]  ;;  %v12544_v38 = vld [vmem:[#allocation8 + $0xe8] sm:$0xf] }
  0xae   : > { %v18043_v54 = vld [vmem:[#allocation8 + $0x5a4] sm:$0xf]  ;;  %v12858_v61 = vld [vmem:[#allocation8 + $0x370] sm:$0xf0] }
  0xaf   : > { %v17939_v58 = vld [vmem:[#allocation8 + $0x264] sm:$0xf]  ;;  %v13149_v63 = vor.u32 %v18043_v54, %v13146_v55  ;;  %v13002_v3 = vld [vmem:[#allocation8 + $0x490] sm:$0xf0]  ;;  %v12528_v54 = vld [vmem:[#allocation8 + $0xc8] sm:$0xf] }
  0xb0   : > { %2102 = vmatpush.bf16.msrb.mxu0 %v12461_v51  ;;  %2115 = vmatpush.bf16.msrb.mxu1 %v12589_v53  ;;  %v12749_v51 = vor.u32 %v17943_v44, %v12746_v45  ;;  %v13018_v53 = vld [vmem:[#allocation8 + $0x4b0] sm:$0xf0]  ;;  %v17971_v60 = vld [vmem:[#allocation8 + $0x364] sm:$0xf]  ;;  %v12672_v44 = vld [vmem:[#allocation8 + $0x1e8] sm:$0xf] }
  0xb1   : > { %2077 = vmatpush.bf16.msra.mxu2 %v12953_v46  ;;  %2090 = vmatpush.bf16.msra.mxu3 %v13081_v47  ;;  %v17975_v46 = vld [vmem:[#allocation8 + $0x384] sm:$0xf]  ;;  %v12874_v47 = vld [vmem:[#allocation8 + $0x390] sm:$0xf0]  ;;  %v13021_v62 = vor.u32 %v18011_v50, %v13018_v53  ;;  %v17926_v45 = vld [vmem:[#allocation8 + $0x1f4] sm:$0xf0] }
  0xb2   : > { %v12877_v52 = vor.u32 %v17975_v46, %v12874_v47  ;;  %v13130_v5 = vld [vmem:[#allocation8 + $0x590] sm:$0xf0]  ;;  %v17935_v8 = vld [vmem:[#allocation8 + $0x244] sm:$0xf]  ;;  %v12673_v53 = vor.u32 %v17926_v45, %v12672_v44  ;;  %v17890_v55 = vld [vmem:[#allocation8 + $0xd4] sm:$0xf0] }
  0xb3   : > { %v12714_v9 = vld [vmem:[#allocation8 + $0x250] sm:$0xf0]  ;;  %v17967_v10 = vld [vmem:[#allocation8 + $0x344] sm:$0xf]  ;;  %v12752_v44 = vld [vmem:[#allocation8 + $0x288] sm:$0xf] }
  0xb4   : > { %2103 = vmatpush.bf16.msrb.mxu0 %v12445_v0  ;;  %2116 = vmatpush.bf16.msrb.mxu1 %v12573_v1  ;;  %v18007_v0 = vld [vmem:[#allocation8 + $0x484] sm:$0xf]  ;;  %v12842_v11 = vld [vmem:[#allocation8 + $0x350] sm:$0xf0]  ;;  %v12717_v20 = vor.u32 %v17935_v8, %v12714_v9  ;;  %v12512_v8 = vld [vmem:[#allocation8 + $0xa8] sm:$0xf] }
  0xb5   : > { %2078 = vmatpush.bf16.msra.mxu2 %v12937_v57  ;;  %2091 = vmatpush.bf16.msra.mxu3 %v13065_v59  ;;  %v12730_v59 = vld [vmem:[#allocation8 + $0x270] sm:$0xf0]  ;;  %v18035_v16 = vld [vmem:[#allocation8 + $0x564] sm:$0xf]  ;;  %v12845_v21 = vor.u32 %v17967_v10, %v12842_v11  ;;  %v17886_v11 = vld [vmem:[#allocation8 + $0xb4] sm:$0xf0] }
  0xb6   : > { %v12733_v6 = vor.u32 %v17939_v58, %v12730_v59  ;;  %v13114_v19 = vld [vmem:[#allocation8 + $0x570] sm:$0xf0]  ;;  %v17931_v22 = vld [vmem:[#allocation8 + $0x224] sm:$0xf]  ;;  %v17922_v59 = vld [vmem:[#allocation8 + $0x1d4] sm:$0xf0] }
  0xb7   : > { %v12698_v23 = vld [vmem:[#allocation8 + $0x230] sm:$0xf0]  ;;  %v17963_v24 = vld [vmem:[#allocation8 + $0x324] sm:$0xf]  ;;  %v13117_v27 = vor.u32 %v18035_v16, %v13114_v19  ;;  %v12784_v16 = vld [vmem:[#allocation8 + $0x2c8] sm:$0xf] }
  0xb8   : > { %2104 = vmatpush.bf16.msrb.mxu0 %v12429_v4  ;;  %2117 = vmatpush.bf16.msrb.mxu1 %v12557_v7  ;;  %v18039_v4 = vld [vmem:[#allocation8 + $0x584] sm:$0xf]  ;;  %v12861_v7 = vor.u32 %v17971_v60, %v12858_v61  ;;  %v12970_v29 = vld [vmem:[#allocation8 + $0x450] sm:$0xf0]  ;;  %v17954_v19 = vld [vmem:[#allocation8 + $0x2d4] sm:$0xf0] }
  0xb9   : > { %v17999_v28 = vld [vmem:[#allocation8 + $0x444] sm:$0xf]  ;;  %v13098_v31 = vld [vmem:[#allocation8 + $0x550] sm:$0xf0]  ;;  %v17946_v45 = vld [vmem:[#allocation8 + $0x294] sm:$0xf0] }
  0xba   : > { %v18031_v30 = vld [vmem:[#allocation8 + $0x544] sm:$0xf]  ;;  %v12810_v37 = vld [vmem:[#allocation8 + $0x310] sm:$0xf0]  ;;  %v12973_v42 = vor.u32 %v17999_v28, %v12970_v29  ;;  %v12785_v28 = vor.u32 %v17954_v19, %v12784_v16  ;;  %v13056_v16 = vld [vmem:[#allocation8 + $0x4e8] sm:$0xf] }
  0xbb   : > { %v13101_v43 = vor.u32 %v18031_v30, %v13098_v31  ;;  %v17995_v46 = vld [vmem:[#allocation8 + $0x424] sm:$0xf]  ;;  %v12954_v47 = vld [vmem:[#allocation8 + $0x430] sm:$0xf0]  ;;  %v12768_v30 = vld [vmem:[#allocation8 + $0x2a8] sm:$0xf] }
  0xbc   : > { %v17991_v60 = vld [vmem:[#allocation8 + $0x404] sm:$0xf]  ;;  %v12938_v61 = vld [vmem:[#allocation8 + $0x410] sm:$0xf0]  ;;  %v17950_v31 = vld [vmem:[#allocation8 + $0x2b4] sm:$0xf0] }
  0xbd   : > { %v12941_v9 = vor.u32 %v17991_v60, %v12938_v61  ;;  %v18022_v19 = vld [vmem:[#allocation8 + $0x4f4] sm:$0xf0] }
  0xf3   : > { %v738_v12 = vpop.f32.mrf.mxu0  ;;  %v758_v13 = vpop.f32.mrf.mxu1 }
  0xf4   : > { %v20213_v17 = vpack.c.bf16 %v738_v12, %v738_v12  ;;  %v20215_v18 = vpack.c.bf16 %v758_v13, %v758_v13  ;;  %v13005_v12 = vor.u32 %v18007_v0, %v13002_v3  ;;  %v13133_v13 = vor.u32 %v18039_v4, %v13130_v5  ;;  %v12800_v0 = vld [vmem:[#allocation8 + $0x2e8] sm:$0xf]  ;;  %v17958_v3 = vld [vmem:[#allocation8 + $0x2f4] sm:$0xf0] }
  0xf5   : > { %v12928_v4 = vld [vmem:[#allocation8 + $0x3e8] sm:$0xf]  ;;  %v17990_v5 = vld [vmem:[#allocation8 + $0x3f4] sm:$0xf0] }
  0xf6   : > { %2027 = vmatmul.bf16.vlgmr.msrb.gmra.mxu2 %v20213_v17  ;;  %2040 = vmatmul.bf16.vlgmr.msrb.gmra.mxu3 %v20215_v18 }
  0xf7   : > { %2123 = vmatpush.bf16.msrb.mxu2 %v12797_v14  ;;  %2136 = vmatpush.bf16.msrb.mxu3 %v12925_v15  ;;  %v18003_v14 = vld [vmem:[#allocation8 + $0x464] sm:$0xf]  ;;  %v12986_v15 = vld [vmem:[#allocation8 + $0x470] sm:$0xf0] }
  0xfa   : > { %v783_v32 = vpop.f32.mrf.mxu2  ;;  %v803_v33 = vpop.f32.mrf.mxu3 }
  0xfb   : > { %v20219_v39 = vpack.c.bf16 %v783_v32, %v783_v32  ;;  %v20221_v40 = vpack.c.bf16 %v803_v33, %v803_v33  ;;  %2124 = vmatpush.bf16.msrb.mxu2 %v12781_v25  ;;  %2137 = vmatpush.bf16.msrb.mxu3 %v12909_v26  ;;  %v828_v56 = vpop.f32.mrf.mxu0  ;;  %v848_v57 = vpop.f32.mrf.mxu1  ;;  %v12826_v25 = vld [vmem:[#allocation8 + $0x330] sm:$0xf0]  ;;  %v12989_v26 = vor.u32 %v18003_v14, %v12986_v15 }
  0xfc   : > { %v20225_v1 = vpack.c.bf16 %v828_v56, %v828_v56  ;;  %v20227_v2 = vpack.c.bf16 %v848_v57, %v848_v57  ;;  %v12701_v32 = vor.u32 %v17931_v22, %v12698_v23  ;;  %v12829_v33 = vor.u32 %v17963_v24, %v12826_v25  ;;  %v12656_v56 = vld [vmem:[#allocation8 + $0x1c8] sm:$0xf]  ;;  %v17882_v25 = vld [vmem:[#allocation8 + $0x94] sm:$0xf0] }
  0xfd   : > { %2053 = vmatmul.bf16.vlgmr.msra.gmra.mxu0 %v20219_v39  ;;  %2066 = vmatmul.bf16.vlgmr.msra.gmra.mxu1 %v20221_v40  ;;  %v12957_v57 = vor.u32 %v17995_v46, %v12954_v47  ;;  %v12801_v14 = vor.u32 %v17958_v3, %v12800_v0  ;;  %v12929_v15 = vor.u32 %v17990_v5, %v12928_v4  ;;  %v12496_v24 = vld [vmem:[#allocation8 + $0x88] sm:$0xf]  ;;  %v17978_v47 = vld [vmem:[#allocation8 + $0x394] sm:$0xf0] }
  0xfe   : > { %2149 = vmatpush.bf16.msra.mxu0 %v13053_v34  ;;  %2162 = vmatpush.bf16.msra.mxu1 %v13181_v35  ;;  %v17927_v34 = vld [vmem:[#allocation8 + $0x204] sm:$0xf]  ;;  %v12682_v35 = vld [vmem:[#allocation8 + $0x210] sm:$0xf0]  ;;  %v12513_v22 = vor.u32 %v17886_v11, %v12512_v8  ;;  %v12880_v46 = vld [vmem:[#allocation8 + $0x388] sm:$0xf] }
  0xff   : > { %2125 = vmatpush.bf16.msrb.mxu2 %v12765_v36  ;;  %2138 = vmatpush.bf16.msrb.mxu3 %v12893_v41  ;;  %v17959_v36 = vld [vmem:[#allocation8 + $0x304] sm:$0xf]  ;;  %v17894_v41 = vld [vmem:[#allocation8 + $0xf4] sm:$0xf0]  ;;  %v12685_v50 = vor.u32 %v17927_v34, %v12682_v35  ;;  %v12497_v34 = vor.u32 %v17882_v25, %v12496_v24  ;;  %v12576_v0 = vld [vmem:[#allocation8 + $0x128] sm:$0xf] }
 0x100   : > { %v17902_v3 = vld [vmem:[#allocation8 + $0x134] sm:$0xf0]  ;;  %v12848_v8 = vld [vmem:[#allocation8 + $0x348] sm:$0xf] }
 0x101   : > { %v12577_v11 = vor.u32 %v17902_v3, %v12576_v0  ;;  %v12704_v24 = vld [vmem:[#allocation8 + $0x228] sm:$0xf]  ;;  %v17934_v25 = vld [vmem:[#allocation8 + $0x234] sm:$0xf0] }
 0x102   : > { %2150 = vmatpush.bf16.msra.mxu0 %v13037_v48  ;;  %2163 = vmatpush.bf16.msra.mxu1 %v13165_v49  ;;  %v18027_v48 = vld [vmem:[#allocation8 + $0x524] sm:$0xf]  ;;  %v13082_v49 = vld [vmem:[#allocation8 + $0x530] sm:$0xf0]  ;;  %v13008_v0 = vld [vmem:[#allocation8 + $0x488] sm:$0xf] }
 0x103   : > { %2126 = vmatpush.bf16.msrb.mxu2 %v12749_v51  ;;  %2139 = vmatpush.bf16.msrb.mxu3 %v12877_v52  ;;  %v12813_v51 = vor.u32 %v17959_v36, %v12810_v37  ;;  %v12545_v52 = vor.u32 %v17894_v41, %v12544_v38  ;;  %v13085_v58 = vor.u32 %v18027_v48, %v13082_v49  ;;  %v12480_v36 = vld [vmem:[#allocation8 + $0x68] sm:$0xf]  ;;  %v17878_v37 = vld [vmem:[#allocation8 + $0x74] sm:$0xf0] }
 0x104   : > { %v12608_v38 = vld [vmem:[#allocation8 + $0x168] sm:$0xf]  ;;  %v17910_v41 = vld [vmem:[#allocation8 + $0x174] sm:$0xf0]  ;;  %v12481_v48 = vor.u32 %v17878_v37, %v12480_v36 }
 0x105   : > { %v12609_v49 = vor.u32 %v17910_v41, %v12608_v38  ;;  %v18050_v37 = vld [vmem:[#allocation8 + $0x5d4] sm:$0xf0]  ;;  %v12688_v38 = vld [vmem:[#allocation8 + $0x208] sm:$0xf] }
 0x106   : > { %2151 = vmatpush.bf16.msra.mxu0 %v13021_v62  ;;  %2164 = vmatpush.bf16.msra.mxu1 %v13149_v63  ;;  %v18023_v62 = vld [vmem:[#allocation8 + $0x504] sm:$0xf]  ;;  %v13066_v63 = vld [vmem:[#allocation8 + $0x510] sm:$0xf0]  ;;  %v17930_v41 = vld [vmem:[#allocation8 + $0x214] sm:$0xf0] }
 0x107   : > { %2079 = vmatmul.bf16.vlgmr.msra.gmra.mxu2 %v20225_v1  ;;  %2092 = vmatmul.bf16.vlgmr.msra.gmra.mxu3 %v20227_v2  ;;  %v13069_v10 = vor.u32 %v18023_v62, %v13066_v63  ;;  %v12448_v62 = vld [vmem:[#allocation8 + $0x28] sm:$0xf]  ;;  %v17870_v63 = vld [vmem:[#allocation8 + $0x34] sm:$0xf0] }
 0x108   : > { %2127 = vmatpush.bf16.msrb.mxu2 %v12733_v6  ;;  %2140 = vmatpush.bf16.msrb.mxu3 %v12861_v7  ;;  %v12529_v6 = vor.u32 %v17890_v55, %v12528_v54  ;;  %v12657_v7 = vor.u32 %v17922_v59, %v12656_v56  ;;  %v12753_v54 = vor.u32 %v17946_v45, %v12752_v44  ;;  %v12736_v56 = vld [vmem:[#allocation8 + $0x268] sm:$0xf]  ;;  %v17974_v59 = vld [vmem:[#allocation8 + $0x374] sm:$0xf0]  ;;  %v17892_v44 = vld [vmem:[#allocation8 + $0xec] sm:$0xf] }
 0x109   : > { %v12881_v55 = vor.u32 %v17978_v47, %v12880_v46  ;;  %v12546_v45 = vld [vmem:[#allocation8 + $0xf8] sm:$0xf0]  ;;  %v17924_v46 = vld [vmem:[#allocation8 + $0x1ec] sm:$0xf]  ;;  %v18010_v3 = vld [vmem:[#allocation8 + $0x494] sm:$0xf0] }
 0x10a   : > { %2152 = vmatpush.bf16.msra.mxu0 %v13005_v12  ;;  %2165 = vmatpush.bf16.msra.mxu1 %v13133_v13  ;;  %v12640_v12 = vld [vmem:[#allocation8 + $0x1a8] sm:$0xf]  ;;  %v17918_v13 = vld [vmem:[#allocation8 + $0x1b4] sm:$0xf0]  ;;  %v12674_v47 = vld [vmem:[#allocation8 + $0x1f8] sm:$0xf0] }
 0x10b   : > { %v12641_v23 = vor.u32 %v17918_v13, %v12640_v12  ;;  %v12432_v12 = vld [vmem:[#allocation8 + $0x8] sm:$0xf]  ;;  %v17866_v13 = vld [vmem:[#allocation8 + $0x14] sm:$0xf0] }
 0x10c   : > { %2128 = vmatpush.bf16.msrb.mxu2 %v12717_v20  ;;  %2141 = vmatpush.bf16.msrb.mxu3 %v12845_v21  ;;  %v12912_v20 = vld [vmem:[#allocation8 + $0x3c8] sm:$0xf]  ;;  %v17986_v21 = vld [vmem:[#allocation8 + $0x3d4] sm:$0xf0] }
 0x10d   : > { %2105 = vmatmul.bf16.vlgmr.msrb.gmra.mxu0 %v20213_v17  ;;  %2118 = vmatmul.bf16.vlgmr.msrb.gmra.mxu1 %v20215_v18  ;;  %v12913_v29 = vor.u32 %v17986_v21, %v12912_v20 }
 0x10e   : > { %2153 = vmatpush.bf16.msra.mxu0 %v12989_v26  ;;  %2166 = vmatpush.bf16.msra.mxu1 %v13117_v27  ;;  %v12624_v26 = vld [vmem:[#allocation8 + $0x188] sm:$0xf]  ;;  %v17914_v27 = vld [vmem:[#allocation8 + $0x194] sm:$0xf0] }
 0x10f   : > { %v12625_v35 = vor.u32 %v17914_v27, %v12624_v26  ;;  %v12832_v26 = vld [vmem:[#allocation8 + $0x328] sm:$0xf]  ;;  %v17966_v27 = vld [vmem:[#allocation8 + $0x334] sm:$0xf0] }
 0x110   : > { %2129 = vmatpush.bf16.msrb.mxu2 %v12701_v32  ;;  %2142 = vmatpush.bf16.msrb.mxu3 %v12829_v33  ;;  %v12896_v32 = vld [vmem:[#allocation8 + $0x3a8] sm:$0xf]  ;;  %v17982_v33 = vld [vmem:[#allocation8 + $0x3b4] sm:$0xf0]  ;;  %v12833_v36 = vor.u32 %v17966_v27, %v12832_v26 }
 0x112   : > { %2154 = vmatpush.bf16.msra.mxu0 %v12973_v42  ;;  %2167 = vmatpush.bf16.msra.mxu1 %v13101_v43  ;;  %v12769_v42 = vor.u32 %v17950_v31, %v12768_v30  ;;  %v12897_v43 = vor.u32 %v17982_v33, %v12896_v32  ;;  %v13057_v30 = vor.u32 %v18022_v19, %v13056_v16  ;;  %v13040_v32 = vld [vmem:[#allocation8 + $0x4c8] sm:$0xf]  ;;  %v18018_v33 = vld [vmem:[#allocation8 + $0x4d4] sm:$0xf0] }
 0x114   : > { %2130 = vmatpush.bf16.msrb.mxu2 %v12685_v50  ;;  %2143 = vmatpush.bf16.msrb.mxu3 %v12813_v51  ;;  %v12464_v50 = vld [vmem:[#allocation8 + $0x48] sm:$0xf]  ;;  %v17874_v51 = vld [vmem:[#allocation8 + $0x54] sm:$0xf0] }
 0x115   : > { %v12465_v60 = vor.u32 %v17874_v51, %v12464_v50  ;;  %v12689_v50 = vor.u32 %v17930_v41, %v12688_v38 }
 0x116   : > { %2155 = vmatpush.bf16.msra.mxu0 %v12957_v57  ;;  %2168 = vmatpush.bf16.msra.mxu1 %v13085_v58  ;;  %v17942_v57 = vld [vmem:[#allocation8 + $0x274] sm:$0xf0]  ;;  %v12864_v58 = vld [vmem:[#allocation8 + $0x368] sm:$0xf] }
 0x117   : > { %2131 = vmatmul.bf16.vlgmr.msrb.gmra.mxu2 %v20219_v39  ;;  %2144 = vmatmul.bf16.vlgmr.msrb.gmra.mxu3 %v20221_v40  ;;  %v12737_v4 = vor.u32 %v17942_v57, %v12736_v56  ;;  %v12865_v5 = vor.u32 %v17974_v59, %v12864_v58  ;;  %v13152_v56 = vld [vmem:[#allocation8 + $0x5a8] sm:$0xf]  ;;  %v18046_v57 = vld [vmem:[#allocation8 + $0x5b4] sm:$0xf0]  ;;  %v17888_v58 = vld [vmem:[#allocation8 + $0xcc] sm:$0xf] }
 0x118   : > { %2175 = vmatpush.bf16.msra.mxu2 %v12545_v52  ;;  %2188 = vmatpush.bf16.msra.mxu3 %v12673_v53  ;;  %v12592_v52 = vld [vmem:[#allocation8 + $0x148] sm:$0xf]  ;;  %v17906_v53 = vld [vmem:[#allocation8 + $0x154] sm:$0xf0]  ;;  %v12530_v59 = vld [vmem:[#allocation8 + $0xd8] sm:$0xf0] }
 0x119   : > { %v12593_v61 = vor.u32 %v17906_v53, %v12592_v52  ;;  %v13024_v52 = vld [vmem:[#allocation8 + $0x4a8] sm:$0xf]  ;;  %v18014_v53 = vld [vmem:[#allocation8 + $0x4b4] sm:$0xf0] }
 0x11a   : > { %2156 = vmatpush.bf16.msra.mxu0 %v12941_v9  ;;  %2169 = vmatpush.bf16.msra.mxu1 %v13069_v10  ;;  %v17970_v9 = vld [vmem:[#allocation8 + $0x354] sm:$0xf0]  ;;  %v12449_v10 = vor.u32 %v17870_v63, %v12448_v62  ;;  %v13025_v62 = vor.u32 %v18014_v53, %v13024_v52  ;;  %v13153_v63 = vor.u32 %v18046_v57, %v13152_v56  ;;  %v13072_v56 = vld [vmem:[#allocation8 + $0x508] sm:$0xf] }
 0x11b   : > { %v12849_v21 = vor.u32 %v17970_v9, %v12848_v8  ;;  %v17884_v8 = vld [vmem:[#allocation8 + $0xac] sm:$0xf]  ;;  %v12514_v9 = vld [vmem:[#allocation8 + $0xb8] sm:$0xf0] }
 0x11c   : > { %2176 = vmatpush.bf16.msra.mxu2 %v12529_v6  ;;  %2189 = vmatpush.bf16.msra.mxu3 %v12657_v7  ;;  %v12720_v6 = vld [vmem:[#allocation8 + $0x248] sm:$0xf]  ;;  %v17938_v7 = vld [vmem:[#allocation8 + $0x254] sm:$0xf0]  ;;  %v12517_v16 = vor.u32 %v17884_v8, %v12514_v9 }
 0x11d   : > { %2157 = vmatmul.bf16.vlgmr.msra.gmra.mxu0 %v20225_v1  ;;  %2170 = vmatmul.bf16.vlgmr.msra.gmra.mxu1 %v20227_v2  ;;  %v12721_v20 = vor.u32 %v17938_v7, %v12720_v6  ;;  %v13136_v6 = vld [vmem:[#allocation8 + $0x588] sm:$0xf]  ;;  %v18042_v7 = vld [vmem:[#allocation8 + $0x594] sm:$0xf0] }
 0x11e   : > { %2201 = vmatpush.bf16.msrb.mxu0 %v12801_v14  ;;  %2214 = vmatpush.bf16.msrb.mxu1 %v12929_v15  ;;  %v12560_v14 = vld [vmem:[#allocation8 + $0x108] sm:$0xf]  ;;  %v17898_v15 = vld [vmem:[#allocation8 + $0x114] sm:$0xf0] }
 0x120   : > { %2177 = vmatpush.bf16.msra.mxu2 %v12513_v22  ;;  %2190 = vmatpush.bf16.msra.mxu3 %v12641_v23  ;;  %v13184_v22 = vld [vmem:[#allocation8 + $0x5e8] sm:$0xf]  ;;  %v18054_v23 = vld [vmem:[#allocation8 + $0x5f4] sm:$0xf0] }
 0x121   : > { %v13185_v31 = vor.u32 %v18054_v23, %v13184_v22  ;;  %v17880_v22 = vld [vmem:[#allocation8 + $0x8c] sm:$0xf]  ;;  %v12498_v23 = vld [vmem:[#allocation8 + $0x98] sm:$0xf0] }
 0x122   : > { %2202 = vmatpush.bf16.msrb.mxu0 %v12785_v28  ;;  %2215 = vmatpush.bf16.msrb.mxu1 %v12913_v29  ;;  %v12433_v28 = vor.u32 %v17866_v13, %v12432_v12  ;;  %v12561_v29 = vor.u32 %v17898_v15, %v12560_v14  ;;  %v13009_v12 = vor.u32 %v18010_v3, %v13008_v0  ;;  %v12992_v14 = vld [vmem:[#allocation8 + $0x468] sm:$0xf]  ;;  %v18006_v15 = vld [vmem:[#allocation8 + $0x474] sm:$0xf0]  ;;  %v17868_v0 = vld [vmem:[#allocation8 + $0x2c] sm:$0xf] }
 0x123   : > { %v13137_v13 = vor.u32 %v18042_v7, %v13136_v6  ;;  %v12993_v26 = vor.u32 %v18006_v15, %v12992_v14  ;;  %v12450_v3 = vld [vmem:[#allocation8 + $0x38] sm:$0xf0] }
 0x124   : > { %2178 = vmatpush.bf16.msra.mxu2 %v12497_v34  ;;  %2191 = vmatpush.bf16.msra.mxu3 %v12625_v35  ;;  %v13168_v34 = vld [vmem:[#allocation8 + $0x5c8] sm:$0xf]  ;;  %v12705_v35 = vor.u32 %v17934_v25, %v12704_v24  ;;  %v17912_v24 = vld [vmem:[#allocation8 + $0x18c] sm:$0xf]  ;;  %v12626_v25 = vld [vmem:[#allocation8 + $0x198] sm:$0xf0] }
 0x125   : > { %v12914_v15 = vld [vmem:[#allocation8 + $0x3d8] sm:$0xf0] }
 0x126   : > { %2203 = vmatpush.bf16.msrb.mxu0 %v12769_v42  ;;  %2216 = vmatpush.bf16.msrb.mxu1 %v12897_v43  ;;  %v12816_v42 = vld [vmem:[#allocation8 + $0x308] sm:$0xf]  ;;  %v17962_v43 = vld [vmem:[#allocation8 + $0x314] sm:$0xf0] }
 0x127   : > { %v12817_v51 = vor.u32 %v17962_v43, %v12816_v42  ;;  %v12960_v42 = vld [vmem:[#allocation8 + $0x428] sm:$0xf]  ;;  %v17998_v43 = vld [vmem:[#allocation8 + $0x434] sm:$0xf0] }
 0x128   : > { %2179 = vmatpush.bf16.msra.mxu2 %v12481_v48  ;;  %2192 = vmatpush.bf16.msra.mxu3 %v12609_v49  ;;  %v13041_v48 = vor.u32 %v18018_v33, %v13040_v32  ;;  %v13169_v49 = vor.u32 %v18050_v37, %v13168_v34  ;;  %v13104_v32 = vld [vmem:[#allocation8 + $0x548] sm:$0xf]  ;;  %v18034_v33 = vld [vmem:[#allocation8 + $0x554] sm:$0xf0]  ;;  %v17876_v34 = vld [vmem:[#allocation8 + $0x6c] sm:$0xf]  ;;  %v12961_v52 = vor.u32 %v17998_v43, %v12960_v42 }
 0x129   : > { %v12610_v37 = vld [vmem:[#allocation8 + $0x178] sm:$0xf0]  ;;  %v13105_v41 = vor.u32 %v18034_v33, %v13104_v32 }
 0x12a   : > { %2204 = vmatpush.bf16.msrb.mxu0 %v12753_v54  ;;  %2217 = vmatpush.bf16.msrb.mxu1 %v12881_v55  ;;  %v12549_v54 = vor.u32 %v17892_v44, %v12546_v45  ;;  %v12677_v55 = vor.u32 %v17924_v46, %v12674_v47  ;;  %v13088_v46 = vld [vmem:[#allocation8 + $0x528] sm:$0xf]  ;;  %v18030_v47 = vld [vmem:[#allocation8 + $0x534] sm:$0xf0] }
 0x12b   : > { %v13089_v53 = vor.u32 %v18030_v47, %v13088_v46 }
 0x12c   : > { %2180 = vmatpush.bf16.msra.mxu2 %v12465_v60  ;;  %2193 = vmatpush.bf16.msra.mxu3 %v12593_v61  ;;  %v17920_v60 = vld [vmem:[#allocation8 + $0x1cc] sm:$0xf]  ;;  %v12658_v61 = vld [vmem:[#allocation8 + $0x1d8] sm:$0xf0] }
 0x12e   : > { %2205 = vmatpush.bf16.msrb.mxu0 %v12737_v4  ;;  %2218 = vmatpush.bf16.msrb.mxu1 %v12865_v5  ;;  %v12533_v4 = vor.u32 %v17888_v58, %v12530_v59  ;;  %v12661_v5 = vor.u32 %v17920_v60, %v12658_v61  ;;  %v18026_v59 = vld [vmem:[#allocation8 + $0x514] sm:$0xf0]  ;;  %v17956_v60 = vld [vmem:[#allocation8 + $0x2ec] sm:$0xf]  ;;  %v12802_v61 = vld [vmem:[#allocation8 + $0x2f8] sm:$0xf0] }
 0x12f   : > { %v13073_v7 = vor.u32 %v18026_v59, %v13072_v56  ;;  %v12805_v8 = vor.u32 %v17956_v60, %v12802_v61  ;;  %v17940_v56 = vld [vmem:[#allocation8 + $0x26c] sm:$0xf]  ;;  %v12866_v61 = vld [vmem:[#allocation8 + $0x378] sm:$0xf0] }
 0x130   : > { %2181 = vmatpush.bf16.msra.mxu2 %v12449_v10  ;;  %2194 = vmatpush.bf16.msra.mxu3 %v12577_v11  ;;  %v17916_v10 = vld [vmem:[#allocation8 + $0x1ac] sm:$0xf]  ;;  %v12642_v11 = vld [vmem:[#allocation8 + $0x1b8] sm:$0xf0] }
 0x131   : > { %v12645_v19 = vor.u32 %v17916_v10, %v12642_v11  ;;  %v17952_v10 = vld [vmem:[#allocation8 + $0x2cc] sm:$0xf]  ;;  %v12786_v11 = vld [vmem:[#allocation8 + $0x2d8] sm:$0xf0] }
 0x132   : > { %2206 = vmatpush.bf16.msrb.mxu0 %v12721_v20  ;;  %2219 = vmatpush.bf16.msrb.mxu1 %v12849_v21  ;;  %v13120_v20 = vld [vmem:[#allocation8 + $0x568] sm:$0xf]  ;;  %v18038_v21 = vld [vmem:[#allocation8 + $0x574] sm:$0xf0]  ;;  %v17972_v60 = vld [vmem:[#allocation8 + $0x36c] sm:$0xf] }
 0x133   : > { %v13121_v27 = vor.u32 %v18038_v21, %v13120_v20  ;;  %v17896_v20 = vld [vmem:[#allocation8 + $0x10c] sm:$0xf]  ;;  %v12562_v21 = vld [vmem:[#allocation8 + $0x118] sm:$0xf0] }
 0x134   : > { %2182 = vmatpush.bf16.msra.mxu2 %v12433_v28  ;;  %2195 = vmatpush.bf16.msra.mxu3 %v12561_v29  ;;  %v12976_v28 = vld [vmem:[#allocation8 + $0x448] sm:$0xf]  ;;  %v18002_v29 = vld [vmem:[#allocation8 + $0x454] sm:$0xf0] }
 0x135   : > { %v12977_v38 = vor.u32 %v18002_v29, %v12976_v28  ;;  %v12565_v29 = vor.u32 %v17896_v20, %v12562_v21 }
 0x136   : > { %2207 = vmatpush.bf16.msrb.mxu0 %v12705_v35  ;;  %2220 = vmatpush.bf16.msrb.mxu1 %v12833_v36  ;;  %v12482_v35 = vld [vmem:[#allocation8 + $0x78] sm:$0xf0]  ;;  %v17908_v36 = vld [vmem:[#allocation8 + $0x16c] sm:$0xf] }
 0x137   : > { %2183 = vmatmul.bf16.vlgmr.msra.gmra.mxu2 %v20213_v17  ;;  %2196 = vmatmul.bf16.vlgmr.msra.gmra.mxu3 %v20215_v18  ;;  %v12485_v44 = vor.u32 %v17876_v34, %v12482_v35  ;;  %v12613_v45 = vor.u32 %v17908_v36, %v12610_v37  ;;  %v17980_v34 = vld [vmem:[#allocation8 + $0x3ac] sm:$0xf]  ;;  %v12898_v35 = vld [vmem:[#allocation8 + $0x3b8] sm:$0xf0] }
 0x138   : > { %2227 = vmatpush.bf16.msrb.mxu2 %v13057_v30  ;;  %2240 = vmatpush.bf16.msrb.mxu3 %v13185_v31  ;;  %v12501_v30 = vor.u32 %v17880_v22, %v12498_v23  ;;  %v12629_v31 = vor.u32 %v17912_v24, %v12626_v25  ;;  %v18020_v22 = vld [vmem:[#allocation8 + $0x4ec] sm:$0xf]  ;;  %v13058_v23 = vld [vmem:[#allocation8 + $0x4f8] sm:$0xf0]  ;;  %v12901_v43 = vor.u32 %v17980_v34, %v12898_v35 }
 0x139   : > { %v18052_v24 = vld [vmem:[#allocation8 + $0x5ec] sm:$0xf]  ;;  %v13186_v25 = vld [vmem:[#allocation8 + $0x5f8] sm:$0xf0]  ;;  %v13061_v32 = vor.u32 %v18020_v22, %v13058_v23 }
 0x13a   : > { %2208 = vmatpush.bf16.msrb.mxu0 %v12689_v50  ;;  %2221 = vmatpush.bf16.msrb.mxu1 %v12817_v51  ;;  %v17904_v50 = vld [vmem:[#allocation8 + $0x14c] sm:$0xf]  ;;  %v12594_v51 = vld [vmem:[#allocation8 + $0x158] sm:$0xf0]  ;;  %v13189_v33 = vor.u32 %v18052_v24, %v13186_v25 }
 0x13b   : > { %v12597_v58 = vor.u32 %v17904_v50, %v12594_v51  ;;  %v18016_v36 = vld [vmem:[#allocation8 + $0x4cc] sm:$0xf]  ;;  %v13042_v37 = vld [vmem:[#allocation8 + $0x4d8] sm:$0xf0] }
 0x13c   : > { %2228 = vmatpush.bf16.msrb.mxu2 %v13041_v48  ;;  %2241 = vmatpush.bf16.msrb.mxu3 %v13169_v49  ;;  %v17872_v48 = vld [vmem:[#allocation8 + $0x4c] sm:$0xf]  ;;  %v12466_v49 = vld [vmem:[#allocation8 + $0x58] sm:$0xf0]  ;;  %v13045_v46 = vor.u32 %v18016_v36, %v13042_v37 }
 0x13d   : > { %2209 = vmatmul.bf16.vlgmr.msrb.gmra.mxu0 %v20219_v39  ;;  %2222 = vmatmul.bf16.vlgmr.msrb.gmra.mxu1 %v20221_v40  ;;  %v12469_v57 = vor.u32 %v17872_v48, %v12466_v49  ;;  %v17976_v48 = vld [vmem:[#allocation8 + $0x38c] sm:$0xf]  ;;  %v12882_v49 = vld [vmem:[#allocation8 + $0x398] sm:$0xf0] }
 0x13e   : > { %2253 = vmatpush.bf16.msra.mxu0 %v12549_v54  ;;  %2266 = vmatpush.bf16.msra.mxu1 %v12677_v55  ;;  %v12944_v54 = vld [vmem:[#allocation8 + $0x408] sm:$0xf]  ;;  %v17994_v55 = vld [vmem:[#allocation8 + $0x414] sm:$0xf0]  ;;  %v18012_v50 = vld [vmem:[#allocation8 + $0x4ac] sm:$0xf] }
 0x13f   : > { %v12945_v6 = vor.u32 %v17994_v55, %v12944_v54  ;;  %v13026_v51 = vld [vmem:[#allocation8 + $0x4b8] sm:$0xf0]  ;;  %v12885_v55 = vor.u32 %v17976_v48, %v12882_v49  ;;  %v17964_v22 = vld [vmem:[#allocation8 + $0x32c] sm:$0xf] }
 0x140   : > { %2229 = vmatpush.bf16.msrb.mxu2 %v13025_v62  ;;  %2242 = vmatpush.bf16.msrb.mxu3 %v13153_v63  ;;  %v17988_v62 = vld [vmem:[#allocation8 + $0x3ec] sm:$0xf]  ;;  %v12930_v63 = vld [vmem:[#allocation8 + $0x3f8] sm:$0xf0] }
 0x141   : > { %v12933_v9 = vor.u32 %v17988_v62, %v12930_v63  ;;  %v18008_v62 = vld [vmem:[#allocation8 + $0x48c] sm:$0xf]  ;;  %v13010_v63 = vld [vmem:[#allocation8 + $0x498] sm:$0xf0] }
 0x142   : > { %2254 = vmatpush.bf16.msra.mxu0 %v12533_v4  ;;  %2267 = vmatpush.bf16.msra.mxu1 %v12661_v5  ;;  %v17900_v4 = vld [vmem:[#allocation8 + $0x12c] sm:$0xf]  ;;  %v12578_v5 = vld [vmem:[#allocation8 + $0x138] sm:$0xf0] }
 0x143   : > { %v12581_v14 = vor.u32 %v17900_v4, %v12578_v5  ;;  %v17936_v4 = vld [vmem:[#allocation8 + $0x24c] sm:$0xf]  ;;  %v12722_v5 = vld [vmem:[#allocation8 + $0x258] sm:$0xf0] }
 0x144   : > { %2230 = vmatpush.bf16.msrb.mxu2 %v13009_v12  ;;  %2243 = vmatpush.bf16.msrb.mxu3 %v13137_v13  ;;  %v17984_v12 = vld [vmem:[#allocation8 + $0x3cc] sm:$0xf]  ;;  %v12453_v13 = vor.u32 %v17868_v0, %v12450_v3  ;;  %v13138_v3 = vld [vmem:[#allocation8 + $0x598] sm:$0xf0] }
 0x145   : > { %v18040_v0 = vld [vmem:[#allocation8 + $0x58c] sm:$0xf]  ;;  %v12834_v23 = vld [vmem:[#allocation8 + $0x338] sm:$0xf0] }
 0x146   : > { %2255 = vmatpush.bf16.msra.mxu0 %v12517_v16  ;;  %2268 = vmatpush.bf16.msra.mxu1 %v12645_v19  ;;  %v17864_v16 = vld [vmem:[#allocation8 + $0xc] sm:$0xf]  ;;  %v12434_v19 = vld [vmem:[#allocation8 + $0x18] sm:$0xf0] }
 0x147   : > { %v12437_v28 = vor.u32 %v17864_v16, %v12434_v19  ;;  %v17932_v16 = vld [vmem:[#allocation8 + $0x22c] sm:$0xf]  ;;  %v12706_v19 = vld [vmem:[#allocation8 + $0x238] sm:$0xf0] }
 0x148   : > { %2231 = vmatpush.bf16.msrb.mxu2 %v12993_v26  ;;  %2244 = vmatpush.bf16.msrb.mxu3 %v13121_v27  ;;  %v12789_v26 = vor.u32 %v17952_v10, %v12786_v11  ;;  %v12917_v27 = vor.u32 %v17984_v12, %v12914_v15  ;;  %v18004_v10 = vld [vmem:[#allocation8 + $0x46c] sm:$0xf]  ;;  %v12994_v11 = vld [vmem:[#allocation8 + $0x478] sm:$0xf0] }
 0x149   : > { %v18036_v12 = vld [vmem:[#allocation8 + $0x56c] sm:$0xf]  ;;  %v12997_v20 = vor.u32 %v18004_v10, %v12994_v11  ;;  %v12978_v25 = vld [vmem:[#allocation8 + $0x458] sm:$0xf0] }
 0x14a   : > { %2256 = vmatpush.bf16.msra.mxu0 %v12501_v30  ;;  %2269 = vmatpush.bf16.msra.mxu1 %v12629_v31  ;;  %v17948_v30 = vld [vmem:[#allocation8 + $0x2ac] sm:$0xf]  ;;  %v12770_v31 = vld [vmem:[#allocation8 + $0x2b8] sm:$0xf0] }
 0x14b   : > { %v12773_v42 = vor.u32 %v17948_v30, %v12770_v31  ;;  %v18000_v24 = vld [vmem:[#allocation8 + $0x44c] sm:$0xf]  ;;  %v12690_v31 = vld [vmem:[#allocation8 + $0x218] sm:$0xf0] }
 0x14c   : > { %2232 = vmatpush.bf16.msrb.mxu2 %v12977_v38  ;;  %2245 = vmatpush.bf16.msrb.mxu3 %v13105_v41  ;;  %v18048_v38 = vld [vmem:[#allocation8 + $0x5cc] sm:$0xf]  ;;  %v13170_v41 = vld [vmem:[#allocation8 + $0x5d8] sm:$0xf0] }
 0x14d   : > { %v13173_v47 = vor.u32 %v18048_v38, %v13170_v41  ;;  %v17928_v30 = vld [vmem:[#allocation8 + $0x20c] sm:$0xf]  ;;  %v12818_v35 = vld [vmem:[#allocation8 + $0x318] sm:$0xf0] }
 0x14e   : > { %2257 = vmatpush.bf16.msra.mxu0 %v12485_v44  ;;  %2270 = vmatpush.bf16.msra.mxu1 %v12613_v45  ;;  %v17944_v44 = vld [vmem:[#allocation8 + $0x28c] sm:$0xf]  ;;  %v12754_v45 = vld [vmem:[#allocation8 + $0x298] sm:$0xf0] }
 0x14f   : > { %v12757_v54 = vor.u32 %v17944_v44, %v12754_v45  ;;  %v17960_v34 = vld [vmem:[#allocation8 + $0x30c] sm:$0xf]  ;;  %v12962_v37 = vld [vmem:[#allocation8 + $0x438] sm:$0xf0] }
 0x150   : > { %2233 = vmatpush.bf16.msrb.mxu2 %v12961_v52  ;;  %2246 = vmatpush.bf16.msrb.mxu3 %v13089_v53  ;;  %v18044_v52 = vld [vmem:[#allocation8 + $0x5ac] sm:$0xf]  ;;  %v13154_v53 = vld [vmem:[#allocation8 + $0x5b8] sm:$0xf0] }
 0x151   : > { %v13157_v59 = vor.u32 %v18044_v52, %v13154_v53  ;;  %v17996_v36 = vld [vmem:[#allocation8 + $0x42c] sm:$0xf]  ;;  %v13090_v41 = vld [vmem:[#allocation8 + $0x538] sm:$0xf0]  ;;  %v20249_v52 = vld [vmem:[#allocation9] sm:$0xf] }
 0x152   : > { %2258 = vmatpush.bf16.msra.mxu0 %v12469_v57  ;;  %2271 = vmatpush.bf16.msra.mxu1 %v12597_v58  ;;  %v12738_v57 = vld [vmem:[#allocation8 + $0x278] sm:$0xf0]  ;;  %v13029_v58 = vor.u32 %v18012_v50, %v13026_v51  ;;  %v18028_v38 = vld [vmem:[#allocation8 + $0x52c] sm:$0xf]  ;;  %v12965_v44 = vor.u32 %v17996_v36, %v12962_v37  ;;  %v1051_v53 = vperm.slane %v20249_v52, 0  ;;  %v1052_v10 = vperm.slane %v20249_v52, 1 }
 0x153   : > { %v13093_v45 = vor.u32 %v18028_v38, %v13090_v41  ;;  %v18024_v48 = vld [vmem:[#allocation8 + $0x50c] sm:$0xf]  ;;  %v13074_v49 = vld [vmem:[#allocation8 + $0x518] sm:$0xf0]  ;;  %v20269_v38 = vld [vmem:[#allocation11 + $0x8] sm:$0xf] }
 0x154   : > { %2234 = vmatpush.bf16.msrb.mxu2 %v12945_v6  ;;  %2247 = vmatpush.bf16.msrb.mxu3 %v13073_v7  ;;  %v13013_v6 = vor.u32 %v18008_v62, %v13010_v63  ;;  %v13141_v7 = vor.u32 %v18040_v0, %v13138_v3  ;;  %v13077_v51 = vor.u32 %v18024_v48, %v13074_v49 }
 0x156   : > { %2259 = vmatpush.bf16.msra.mxu0 %v12453_v13  ;;  %2272 = vmatpush.bf16.msra.mxu1 %v12581_v14  ;;  %v13122_v13 = vld [vmem:[#allocation8 + $0x578] sm:$0xf0]  ;;  %v12725_v14 = vor.u32 %v17936_v4, %v12722_v5  ;;  %v20254_v5 = vld [vmem:[#allocation9 + $0x8] sm:$0xf] }
 0x157   : > { %2235 = vmatmul.bf16.vlgmr.msrb.gmra.mxu2 %v20225_v1  ;;  %2248 = vmatmul.bf16.vlgmr.msrb.gmra.mxu3 %v20227_v2  ;;  %v13125_v21 = vor.u32 %v18036_v12, %v13122_v13  ;;  %v2362_v37 = vperm.slane %v20254_v5, 1 }
 0x158   : > { %2279 = vmatpush.bf16.msra.mxu2 %v12805_v8  ;;  %2292 = vmatpush.bf16.msra.mxu3 %v12933_v9  ;;  %v17968_v8 = vld [vmem:[#allocation8 + $0x34c] sm:$0xf]  ;;  %v12850_v9 = vld [vmem:[#allocation8 + $0x358] sm:$0xf0] }
 0x159   : > { %v12853_v15 = vor.u32 %v17968_v8, %v12850_v9  ;;  %v2361_v8 = vperm.slane %v20254_v5, 0 }
 0x15a   : > { %2260 = vmatpush.bf16.msra.mxu0 %v12437_v28  ;;  %2273 = vmatpush.bf16.msra.mxu1 %v12565_v29  ;;  %v12709_v28 = vor.u32 %v17932_v16, %v12706_v19  ;;  %v12837_v29 = vor.u32 %v17964_v22, %v12834_v23  ;;  %v20259_v19 = vld [vmem:[#allocation11] sm:$0xf] }
 0x15c   : > { %2280 = vmatpush.bf16.msra.mxu2 %v12789_v26  ;;  %2293 = vmatpush.bf16.msra.mxu3 %v12917_v27  ;;  %v18032_v26 = vld [vmem:[#allocation8 + $0x54c] sm:$0xf]  ;;  %v13106_v27 = vld [vmem:[#allocation8 + $0x558] sm:$0xf0] }
 0x15d   : > { %2261 = vmatmul.bf16.vlgmr.msra.gmra.mxu0 %v20213_v17  ;;  %2274 = vmatmul.bf16.vlgmr.msra.gmra.mxu1 %v20215_v18  ;;  %v12741_v17 = vor.u32 %v17940_v56, %v12738_v57  ;;  %v12869_v18 = vor.u32 %v17972_v60, %v12866_v61 }
 0x15e   : > { %2305 = vmatpush.bf16.msrb.mxu0 %v13061_v32  ;;  %2318 = vmatpush.bf16.msrb.mxu1 %v13189_v33  ;;  %v12981_v32 = vor.u32 %v18000_v24, %v12978_v25  ;;  %v13109_v33 = vor.u32 %v18032_v26, %v13106_v27  ;;  %v20263_v27 = vld [vmem:[#allocation11 + $0x4] sm:$0xf] }
 0x160   : > { %2281 = vmatpush.bf16.msra.mxu2 %v12773_v42  ;;  %2294 = vmatpush.bf16.msra.mxu3 %v12901_v43  ;;  %v12693_v42 = vor.u32 %v17928_v30, %v12690_v31  ;;  %v12821_v43 = vor.u32 %v17960_v34, %v12818_v35 }
 0x162   : > { %2306 = vmatpush.bf16.msrb.mxu0 %v13045_v46  ;;  %2319 = vmatpush.bf16.msrb.mxu1 %v13173_v47  ;;  %v17992_v46 = vld [vmem:[#allocation8 + $0x40c] sm:$0xf]  ;;  %v12946_v47 = vld [vmem:[#allocation8 + $0x418] sm:$0xf0] }
 0x163   : > { %v12949_v50 = vor.u32 %v17992_v46, %v12946_v47 }
 0x164   : > { %2282 = vmatpush.bf16.msra.mxu2 %v12757_v54  ;;  %2295 = vmatpush.bf16.msra.mxu3 %v12885_v55 }
 0x166   : > { %2307 = vmatpush.bf16.msrb.mxu0 %v13029_v58  ;;  %2320 = vmatpush.bf16.msrb.mxu1 %v13157_v59 }
 0x168   : > { %2283 = vmatpush.bf16.msra.mxu2 %v12741_v17  ;;  %2296 = vmatpush.bf16.msra.mxu3 %v12869_v18 }
 0x16a   : > { %2308 = vmatpush.bf16.msrb.mxu0 %v13013_v6  ;;  %2321 = vmatpush.bf16.msrb.mxu1 %v13141_v7 }
 0x16c   : > { %2284 = vmatpush.bf16.msra.mxu2 %v12725_v14  ;;  %2297 = vmatpush.bf16.msra.mxu3 %v12853_v15 }
 0x16e   : > { %2309 = vmatpush.bf16.msrb.mxu0 %v12997_v20  ;;  %2322 = vmatpush.bf16.msrb.mxu1 %v13125_v21 }
 0x170   : > { %2285 = vmatpush.bf16.msra.mxu2 %v12709_v28  ;;  %2298 = vmatpush.bf16.msra.mxu3 %v12837_v29 }
 0x172   : > { %2310 = vmatpush.bf16.msrb.mxu0 %v12981_v32  ;;  %2323 = vmatpush.bf16.msrb.mxu1 %v13109_v33 }
 0x174   : > { %2286 = vmatpush.bf16.msra.mxu2 %v12693_v42  ;;  %2299 = vmatpush.bf16.msra.mxu3 %v12821_v43 }
 0x176   : > { %2311 = vmatpush.bf16.msrb.mxu0 %v12965_v44  ;;  %2324 = vmatpush.bf16.msrb.mxu1 %v13093_v45 }
 0x177   : > { %2287 = vmatmul.bf16.vlgmr.msra.gmra.mxu2 %v20219_v39  ;;  %2300 = vmatmul.bf16.vlgmr.msra.gmra.mxu3 %v20221_v40 }
 0x179   : > { %v2028_v54 = vpop.f32.mrf.mxu2  ;;  %v2041_v55 = vpop.f32.mrf.mxu3 }
 0x17a   : > { %2312 = vmatpush.bf16.msrb.mxu0 %v12949_v50  ;;  %2325 = vmatpush.bf16.msrb.mxu1 %v13077_v51  ;;  %v2054_v56 = vpop.f32.mrf.mxu0  ;;  %v2067_v57 = vpop.f32.mrf.mxu1  ;;  %v2029_v58 = vadd.f32 %v2028_v54, %v1051_v53  ;;  %v13316_v53 = vld [vmem:[#allocation12 + $0xe0] sm:$0xf]  ;;  %v18085_v54 = vld [vmem:[#allocation12 + $0xec] sm:$0xf0] }
 0x17c   : > { %v2042_v59 = vadd.f32 %v2041_v55, %v2029_v58  ;;  %v1053_v55 = vperm.slane %v20249_v52, 2  ;;  %v18081_v58 = vld [vmem:[#allocation12 + $0xcc] sm:$0xf0] }
 0x17d   : > { %2313 = vmatmul.bf16.vlgmr.msrb.gmra.mxu0 %v20225_v1  ;;  %2326 = vmatmul.bf16.vlgmr.msrb.gmra.mxu1 %v20227_v2  ;;  %v20252_v2 = vld [vmem:[#allocation9 + $0x4] sm:$0xf] }
 0x17e   : > { %v2055_v62 = vadd.f32 %v2054_v56, %v2042_v59  ;;  %v2346_v6 = vperm.slane %v20252_v2, 0  ;;  %v2347_v31 = vperm.slane %v20252_v2, 1  ;;  %v13317_v56 = vor.u32 %v18085_v54, %v13316_v53  ;;  %v18105_v53 = vld [vmem:[#allocation12 + $0x18c] sm:$0xf0] }
 0x180   : > { %v2068_v63 = vadd.f32 %v2067_v57, %v2055_v62  ;;  %v13300_v57 = vld [vmem:[#allocation12 + $0xc0] sm:$0xf] }
 0x181   : > { %v2030_v60 = vpop.f32.mrf.mxu2  ;;  %v2043_v39 = vpop.f32.mrf.mxu3  ;;  %v13301_v59 = vor.u32 %v18081_v58, %v13300_v57  ;;  %v13268_v62 = vld [vmem:[#allocation12 + $0x80] sm:$0xf] }
 0x182   : > { %v2056_v61 = vpop.f32.mrf.mxu0  ;;  %v2069_v40 = vpop.f32.mrf.mxu1  ;;  %v13284_v60 = vld [vmem:[#allocation12 + $0xa0] sm:$0xf]  ;;  %v18077_v39 = vld [vmem:[#allocation12 + $0xac] sm:$0xf0] }
 0x183   : > { %v13285_v40 = vor.u32 %v18077_v39, %v13284_v60  ;;  %v13380_v58 = vld [vmem:[#allocation12 + $0x160] sm:$0xf] }
 0x184   : > { %v13796_v60 = vld [vmem:[#allocation12 + $0x4a0] sm:$0xf] }
 0x18a   : > { %v2080_v0 = vpop.f32.mrf.mxu2  ;;  %v2093_v1 = vpop.f32.mrf.mxu3 }
 0x18b   : > { %v2081_v3 = vadd.f32 %v2080_v0, %v2068_v63  ;;  %v2106_v17 = vpop.f32.mrf.mxu0  ;;  %v2119_v18 = vpop.f32.mrf.mxu1  ;;  %v18073_v63 = vld [vmem:[#allocation12 + $0x8c] sm:$0xf0] }
 0x18c   : > { %v2107_v20 = vadd.f32 %v2106_v17, %v1052_v10  ;;  %v13252_v17 = vld [vmem:[#allocation12 + $0x60] sm:$0xf] }
 0x18d   : > { %v2094_v4 = vadd.f32 %v2093_v1, %v2081_v3  ;;  %v13269_v1 = vor.u32 %v18073_v63, %v13268_v62  ;;  %v13364_v62 = vld [vmem:[#allocation12 + $0x140] sm:$0xf]  ;;  %v18097_v63 = vld [vmem:[#allocation12 + $0x14c] sm:$0xf0] }
 0x18e   : > { %v2120_v21 = vadd.f32 %v2119_v18, %v2107_v20  ;;  %v18069_v18 = vld [vmem:[#allocation12 + $0x6c] sm:$0xf0] }
 0x18f   : > { %vm2331_vm1 = vcmp.gt.f32.partialorder %v2094_v4, 0.0  ;;  %v2335_v7 = vmul.f32 0.2, %v2094_v4  ;;  %v18117_v20 = vld [vmem:[#allocation12 + $0x1ec] sm:$0xf0] }
 0x191   : > { %v2339_v9 = vsel %vm2331_vm1, %v2094_v4, %v2335_v7 }
 0x192   : > { %v2354_v11 = vmul.f32 %v2346_v6, %v2339_v9  ;;  %v2082_v12 = vpop.f32.mrf.mxu2  ;;  %v2095_v13 = vpop.f32.mrf.mxu3  ;;  %v13253_v6 = vor.u32 %v18069_v18, %v13252_v17  ;;  %v13365_v17 = vor.u32 %v18097_v63, %v13364_v62  ;;  %v18149_v62 = vld [vmem:[#allocation12 + $0x2ec] sm:$0xf0]  ;;  %v13876_v63 = vld [vmem:[#allocation12 + $0x540] sm:$0xf] }
 0x193   : > { %v2108_v14 = vpop.f32.mrf.mxu0  ;;  %v2121_v15 = vpop.f32.mrf.mxu1  ;;  %v13236_v12 = vld [vmem:[#allocation12 + $0x40] sm:$0xf]  ;;  %v18065_v13 = vld [vmem:[#allocation12 + $0x4c] sm:$0xf0] }
 0x194   : > { %v2369_v16 = vadd.f32 %v2361_v8, %v2354_v11  ;;  %v13444_v14 = vld [vmem:[#allocation12 + $0x1e0] sm:$0xf] }
 0x196   : > { %2393 = vmatpush.msrb.mxu2 %v2369_v16 }
 0x197   : > { %13190 = vmatmul.msk.f32.vlgmr.msrb.gmra.mxu2 %vm2374_vm2, %v20259_v19 }
 0x198   : > { %2478 = vmatpush.msra.mxu2 %v2369_v16 }
 0x19a   : > { %2563 = vmatpush.msrb.mxu2 %v2369_v16  ;;  %v2132_v22 = vpop.f32.mrf.mxu2  ;;  %v2145_v23 = vpop.f32.mrf.mxu3  ;;  %v13237_v16 = vor.u32 %v18065_v13, %v13236_v12 }
 0x19b   : > { %v2133_v24 = vadd.f32 %v2132_v22, %v2120_v21  ;;  %v2158_v25 = vpop.f32.mrf.mxu0  ;;  %v2171_v26 = vpop.f32.mrf.mxu1  ;;  %v2348_v21 = vperm.slane %v20252_v2, 2  ;;  %v13445_v22 = vor.u32 %v18117_v20, %v13444_v14  ;;  %v13332_v14 = vld [vmem:[#allocation12 + $0x100] sm:$0xf] }
 0x19c   : > { %v13956_v20 = vld [vmem:[#allocation12 + $0x5e0] sm:$0xf] }
 0x19d   : > { %v2146_v28 = vadd.f32 %v2145_v23, %v2133_v24  ;;  %v2363_v24 = vperm.slane %v20254_v5, 2 }
 0x19f   : > { %v2159_v29 = vadd.f32 %v2158_v25, %v2146_v28  ;;  %13194 = vmatmul.msk.f32.vlgmr.msra.gmra.mxu2 %vm2374_vm2, %v20263_v27  ;;  %v13220_v25 = vld [vmem:[#allocation12 + $0x20] sm:$0xf] }
 0x1a0   : > { %4954 = vmatpush.bf16.msra.mxu2 %v13317_v56  ;;  %v13428_v28 = vld [vmem:[#allocation12 + $0x1c0] sm:$0xf]  ;;  %v18209_v56 = vld [vmem:[#allocation12 + $0x4cc] sm:$0xf0] }
 0x1a1   : > { %v2172_v30 = vadd.f32 %v2171_v26, %v2159_v29  ;;  %v18061_v26 = vld [vmem:[#allocation12 + $0x2c] sm:$0xf0] }
 0x1a2   : > { %v2134_v32 = vpop.f32.mrf.mxu2  ;;  %v2147_v33 = vpop.f32.mrf.mxu3 }
 0x1a3   : > { %vm2332_vm3 = vcmp.gt.f32.partialorder %v2172_v30, 0.0  ;;  %v2336_v34 = vmul.f32 0.2, %v2172_v30  ;;  %v2160_v35 = vpop.f32.mrf.mxu0  ;;  %v2173_v36 = vpop.f32.mrf.mxu1 }
 0x1a4   : > { %4955 = vmatpush.bf16.msra.mxu2 %v13301_v59  ;;  %v18101_v59 = vld [vmem:[#allocation12 + $0x16c] sm:$0xf0] }
 0x1a5   : > { %v2340_v41 = vsel %vm2332_vm3, %v2172_v30, %v2336_v34  ;;  %v13221_v30 = vor.u32 %v18061_v26, %v13220_v25  ;;  %v13381_v39 = vor.u32 %v18101_v59, %v13380_v58  ;;  %v18233_v58 = vld [vmem:[#allocation12 + $0x58c] sm:$0xf0] }
 0x1a6   : > { %v2355_v42 = vmul.f32 %v2347_v31, %v2340_v41  ;;  %v18113_v31 = vld [vmem:[#allocation12 + $0x1cc] sm:$0xf0] }
 0x1a7   : > { %13198 = vmatmul.msk.f32.vlgmr.msrb.gmra.mxu2 %vm2374_vm2, %v20269_v38  ;;  %v13429_v35 = vor.u32 %v18113_v31, %v13428_v28  ;;  %v13732_v31 = vld [vmem:[#allocation12 + $0x420] sm:$0xf] }
 0x1a8   : > { %v2370_v43 = vadd.f32 %v2362_v37, %v2355_v42  ;;  %4956 = vmatpush.bf16.msra.mxu2 %v13285_v40  ;;  %v13204_v42 = vld [vmem:[#allocation12] sm:$0xf] }
 0x1aa   : > { %2413 = vmatpush.msrb.mxu3 %v2370_v43 }
 0x1ab   : > { %13191 = vmatmul.msk.f32.vlgmr.msrb.gmra.mxu3 %vm2374_vm2, %v20259_v19 }
 0x1ac   : > { %2498 = vmatpush.msra.mxu3 %v2370_v43  ;;  %4957 = vmatpush.bf16.msra.mxu2 %v13269_v1  ;;  %v18201_v1 = vld [vmem:[#allocation12 + $0x48c] sm:$0xf0] }
 0x1ae   : > { %2583 = vmatpush.msrb.mxu3 %v2370_v43  ;;  %v18057_v43 = vld [vmem:[#allocation12 + $0xc] sm:$0xf0] }
 0x1b0   : > { %4958 = vmatpush.bf16.msra.mxu2 %v13253_v6  ;;  %v18093_v6 = vld [vmem:[#allocation12 + $0x12c] sm:$0xf0] }
 0x1b3   : > { %13195 = vmatmul.msk.f32.vlgmr.msra.gmra.mxu3 %vm2374_vm2, %v20263_v27 }
 0x1b4   : > { %4959 = vmatpush.bf16.msra.mxu2 %v13237_v16  ;;  %4967 = vmatpush.bf16.msra.mxu3 %v13445_v22  ;;  %v18193_v16 = vld [vmem:[#allocation12 + $0x44c] sm:$0xf0] }
 0x1b8   : > { %4960 = vmatpush.bf16.msra.mxu2 %v13221_v30  ;;  %4968 = vmatpush.bf16.msra.mxu3 %v13429_v35 }
 0x1ba   : > { %v2184_v44 = vpop.f32.mrf.mxu2  ;;  %v2197_v45 = vpop.f32.mrf.mxu3 }
 0x1bb   : > { %v2210_v46 = vpop.f32.mrf.mxu0  ;;  %v2223_v47 = vpop.f32.mrf.mxu1  ;;  %13199 = vmatmul.msk.f32.vlgmr.msrb.gmra.mxu3 %vm2374_vm2, %v20269_v38  ;;  %v2185_v61 = vadd.f32 %v2184_v44, %v1053_v55  ;;  %v13412_v44 = vld [vmem:[#allocation12 + $0x1a0] sm:$0xf] }
 0x1bc   : > { %v13812_v55 = vld [vmem:[#allocation12 + $0x4c0] sm:$0xf] }
 0x1bd   : > { %v2198_v0 = vadd.f32 %v2197_v45, %v2185_v61  ;;  %v13205_v45 = vor.u32 %v18057_v43, %v13204_v42  ;;  %v13813_v57 = vor.u32 %v18209_v56, %v13812_v55  ;;  %v18205_v61 = vld [vmem:[#allocation12 + $0x4ac] sm:$0xf0]  ;;  %v2349_v42 = vperm.slane %v20252_v2, 3 }
 0x1be   : > { %v13797_v40 = vor.u32 %v18205_v61, %v13796_v60  ;;  %v18229_v61 = vld [vmem:[#allocation12 + $0x56c] sm:$0xf0] }
 0x1bf   : > { %v2211_v3 = vadd.f32 %v2210_v46, %v2198_v0  ;;  %v18109_v46 = vld [vmem:[#allocation12 + $0x1ac] sm:$0xf0]  ;;  %4961 = vmatpush.bf16.msra.mxu2 %v13205_v45  ;;  %v13780_v0 = vld [vmem:[#allocation12 + $0x480] sm:$0xf] }
 0x1c0   : > { %v13781_v18 = vor.u32 %v18201_v1, %v13780_v0  ;;  %v18225_v1 = vld [vmem:[#allocation12 + $0x54c] sm:$0xf0] }
 0x1c1   : > { %v2224_v4 = vadd.f32 %v2223_v47, %v2211_v3  ;;  %v13828_v47 = vld [vmem:[#allocation12 + $0x4e0] sm:$0xf]  ;;  %v1054_v3 = vperm.slane %v20249_v52, 3 }
 0x1c2   : > { %v2186_v48 = vpop.f32.mrf.mxu2  ;;  %v2199_v49 = vpop.f32.mrf.mxu3  ;;  %v13748_v52 = vld [vmem:[#allocation12 + $0x440] sm:$0xf] }
 0x1c3   : > { %v2212_v50 = vpop.f32.mrf.mxu0  ;;  %v2225_v51 = vpop.f32.mrf.mxu1  ;;  %v13413_v48 = vor.u32 %v18109_v46, %v13412_v44  ;;  %v18213_v49 = vld [vmem:[#allocation12 + $0x4ec] sm:$0xf0] }
 0x1c4   : > { %v13829_v50 = vor.u32 %v18213_v49, %v13828_v47  ;;  %v13396_v51 = vld [vmem:[#allocation12 + $0x180] sm:$0xf] }
 0x1c5   : > { %4969 = vmatpush.bf16.msra.mxu3 %v13413_v48  ;;  %v13397_v54 = vor.u32 %v18105_v53, %v13396_v51  ;;  %v13716_v47 = vld [vmem:[#allocation12 + $0x400] sm:$0xf]  ;;  %v18185_v48 = vld [vmem:[#allocation12 + $0x40c] sm:$0xf0] }
 0x1c6   : > { %5006 = vmatpush.bf16.msrb.mxu2 %v13829_v50  ;;  %v13924_v49 = vld [vmem:[#allocation12 + $0x5a0] sm:$0xf]  ;;  %v13717_v51 = vor.u32 %v18185_v48, %v13716_v47  ;;  %v18237_v53 = vld [vmem:[#allocation12 + $0x5ac] sm:$0xf0] }
 0x1c7   : > { %v13925_v55 = vor.u32 %v18237_v53, %v13924_v49  ;;  %v18277_v47 = vld [vmem:[#allocation12 + $0x6ec] sm:$0xf0] }
 0x1c9   : > { %4970 = vmatpush.bf16.msra.mxu3 %v13397_v54  ;;  %v2364_v54 = vperm.slane %v20254_v5, 3  ;;  %v13572_v5 = vld [vmem:[#allocation12 + $0x2e0] sm:$0xf] }
 0x1ca   : > { %5007 = vmatpush.bf16.msrb.mxu2 %v13813_v57  ;;  %v13908_v57 = vld [vmem:[#allocation12 + $0x580] sm:$0xf]  ;;  %v13573_v0 = vor.u32 %v18149_v62, %v13572_v5  ;;  %v18373_v5 = vld [vmem:[#allocation12 + $0x9ec] sm:$0xf0] }
 0x1cb   : > { %v13909_v59 = vor.u32 %v18233_v58, %v13908_v57  ;;  %v18273_v58 = vld [vmem:[#allocation12 + $0x6cc] sm:$0xf0]  ;;  %v13684_v62 = vld [vmem:[#allocation12 + $0x3c0] sm:$0xf] }
 0x1cd   : > { %4971 = vmatpush.bf16.msra.mxu3 %v13381_v39  ;;  %v13892_v39 = vld [vmem:[#allocation12 + $0x560] sm:$0xf] }
 0x1ce   : > { %5008 = vmatpush.bf16.msrb.mxu2 %v13797_v40  ;;  %v13893_v40 = vor.u32 %v18229_v61, %v13892_v39  ;;  %v18321_v61 = vld [vmem:[#allocation12 + $0x84c] sm:$0xf0] }
 0x1d1   : > { %4972 = vmatpush.bf16.msra.mxu3 %v13365_v17  ;;  %v13556_v17 = vld [vmem:[#allocation12 + $0x2c0] sm:$0xf] }
 0x1d2   : > { %5009 = vmatpush.bf16.msrb.mxu2 %v13781_v18  ;;  %v18145_v18 = vld [vmem:[#allocation12 + $0x2cc] sm:$0xf0] }
 0x1da   : > { %v2236_v7 = vpop.f32.mrf.mxu2  ;;  %v2249_v8 = vpop.f32.mrf.mxu3 }
 0x1db   : > { %v2237_v9 = vadd.f32 %v2236_v7, %v2224_v4  ;;  %v20280_v10 = vpop.f32.mrf.mxu0  ;;  %v20282_v11 = vpop.f32.mrf.mxu1  ;;  %v13348_v4 = vld [vmem:[#allocation12 + $0x120] sm:$0xf] }
 0x1dc   : > { %v13764_v7 = vld [vmem:[#allocation12 + $0x460] sm:$0xf]  ;;  %v13349_v12 = vor.u32 %v18093_v6, %v13348_v4  ;;  %v13557_v6 = vor.u32 %v18145_v18, %v13556_v17 }
 0x1dd   : > { %v2250_v15 = vadd.f32 %v2249_v8, %v2237_v9  ;;  %v18197_v8 = vld [vmem:[#allocation12 + $0x46c] sm:$0xf0]  ;;  %v2263_v9 = vadd.f32 %v20280_v10, %v1054_v3  ;;  %v13877_v3 = vor.u32 %v18225_v1, %v13876_v63  ;;  %v13860_v4 = vld [vmem:[#allocation12 + $0x520] sm:$0xf] }
 0x1de   : > { %v13765_v13 = vor.u32 %v18197_v8, %v13764_v7  ;;  %4973 = vmatpush.bf16.msra.mxu3 %v13349_v12  ;;  %v18221_v7 = vld [vmem:[#allocation12 + $0x52c] sm:$0xf0]  ;;  %v13540_v8 = vld [vmem:[#allocation12 + $0x2a0] sm:$0xf] }
 0x1df   : > { %vm2333_vm4 = vcmp.gt.f32.partialorder %v2250_v15, 0.0  ;;  %v2337_v23 = vmul.f32 0.2, %v2250_v15  ;;  %v2276_v22 = vadd.f32 %v20282_v11, %v2263_v9  ;;  %v18141_v9 = vld [vmem:[#allocation12 + $0x2ac] sm:$0xf0] }
 0x1e0   : > { %5010 = vmatpush.bf16.msrb.mxu2 %v13765_v13  ;;  %v13844_v12 = vld [vmem:[#allocation12 + $0x500] sm:$0xf]  ;;  %v13541_v13 = vor.u32 %v18141_v9, %v13540_v8  ;;  %v18177_v63 = vld [vmem:[#allocation12 + $0x3cc] sm:$0xf0] }
 0x1e1   : > { %v2341_v29 = vsel %vm2333_vm4, %v2250_v15, %v2337_v23  ;;  %v18089_v15 = vld [vmem:[#allocation12 + $0x10c] sm:$0xf0]  ;;  %v13685_v1 = vor.u32 %v18177_v63, %v13684_v62  ;;  %v14452_v9 = vld [vmem:[#allocation12 + $0x9c0] sm:$0xf]  ;;  %vm12154_vm4 = vcmask 1040384  }
 0x1e2   : > { %v2356_v32 = vmul.f32 %v2348_v21, %v2341_v29  ;;  %v2238_v33 = vpop.f32.mrf.mxu2  ;;  %v2251_v34 = vpop.f32.mrf.mxu3  ;;  %v18245_v21 = vld [vmem:[#allocation12 + $0x5ec] sm:$0xf0]  ;;  %v13333_v10 = vor.u32 %v18089_v15, %v13332_v14  ;;  %v13749_v29 = vor.u32 %v18193_v16, %v13748_v52  ;;  %v13524_v52 = vld [vmem:[#allocation12 + $0x280] sm:$0xf] }
 0x1e3   : > { %v2264_v36 = vpop.f32.mrf.mxu0  ;;  %v2277_v37 = vpop.f32.mrf.mxu1  ;;  %v13957_v30 = vor.u32 %v18245_v21, %v13956_v20  ;;  %v13940_v33 = vld [vmem:[#allocation12 + $0x5c0] sm:$0xf]  ;;  %v18241_v34 = vld [vmem:[#allocation12 + $0x5cc] sm:$0xf0] }
 0x1e4   : > { %v2371_v41 = vadd.f32 %v2363_v24, %v2356_v32  ;;  %v18189_v32 = vld [vmem:[#allocation12 + $0x42c] sm:$0xf0]  ;;  %4974 = vmatpush.bf16.msra.mxu3 %v13333_v10  ;;  %5011 = vmatpush.bf16.msrb.mxu2 %v13749_v29  ;;  %v13941_v37 = vor.u32 %v18241_v34, %v13940_v33  ;;  %v14340_v21 = vld [vmem:[#allocation12 + $0x8e0] sm:$0xf] }
 0x1e5   : > { %v13733_v36 = vor.u32 %v18189_v32, %v13732_v31  ;;  %v18217_v14 = vld [vmem:[#allocation12 + $0x50c] sm:$0xf0]  ;;  %v13492_v10 = vld [vmem:[#allocation12 + $0x240] sm:$0xf] }
 0x1e6   : > { %2433 = vmatpush.msra.mxu0 %v2371_v41  ;;  %v13845_v15 = vor.u32 %v18217_v14, %v13844_v12  ;;  %v18137_v16 = vld [vmem:[#allocation12 + $0x28c] sm:$0xf0]  ;;  %v14324_v29 = vld [vmem:[#allocation12 + $0x8c0] sm:$0xf] }
 0x1e7   : > { %13192 = vmatmul.msk.f32.vlgmr.msra.gmra.mxu0 %vm2374_vm2, %v20259_v19  ;;  %v13525_v20 = vor.u32 %v18137_v16, %v13524_v52  ;;  %v18129_v31 = vld [vmem:[#allocation12 + $0x24c] sm:$0xf0]  ;;  %v13476_v33 = vld [vmem:[#allocation12 + $0x220] sm:$0xf] }
 0x1e8   : > { %2518 = vmatpush.msrb.mxu0 %v2371_v41  ;;  %5019 = vmatpush.bf16.msrb.mxu3 %v13957_v30  ;;  %v18337_v30 = vld [vmem:[#allocation12 + $0x8cc] sm:$0xf0]  ;;  %v13493_v32 = vor.u32 %v18129_v31, %v13492_v10  ;;  %v14228_v16 = vld [vmem:[#allocation12 + $0x800] sm:$0xf]  ;;  %v13318_v10 = vld [vmem:[#allocation12 + $0xf0] sm:$0xf0] }
 0x1e9   : > { %5012 = vmatpush.bf16.msrb.mxu2 %v13733_v36  ;;  %v18125_v34 = vld [vmem:[#allocation12 + $0x22c] sm:$0xf0]  ;;  %v14020_v31 = vld [vmem:[#allocation12 + $0x660] sm:$0xf] }
 0x1ea   : > { %2603 = vmatpush.msra.mxu0 %v2371_v41  ;;  %v13477_v36 = vor.u32 %v18125_v34, %v13476_v33  ;;  %v18369_v12 = vld [vmem:[#allocation12 + $0x9cc] sm:$0xf0] }
 0x1eb   : > { %v18173_v14 = vld [vmem:[#allocation12 + $0x3ac] sm:$0xf0] }
 0x1ec   : > { %5020 = vmatpush.bf16.msrb.mxu3 %v13941_v37  ;;  %v18265_v52 = vld [vmem:[#allocation12 + $0x68c] sm:$0xf0] }
 0x1ed   : > { %5013 = vmatpush.bf16.msrb.mxu2 %v13717_v51  ;;  %v18325_v51 = vld [vmem:[#allocation12 + $0x86c] sm:$0xf0] }
 0x1ef   : > { %13196 = vmatmul.msk.f32.vlgmr.msrb.gmra.mxu0 %vm2374_vm2, %v20263_v27 }
 0x1f0   : > { %5021 = vmatpush.bf16.msrb.mxu3 %v13925_v55  ;;  %4980 = vmatpush.bf16.msrb.mxu0 %v13573_v0  ;;  %v18181_v55 = vld [vmem:[#allocation12 + $0x3ec] sm:$0xf0]  ;;  %v14052_v0 = vld [vmem:[#allocation12 + $0x6a0] sm:$0xf] }
 0x1f4   : > { %5022 = vmatpush.bf16.msrb.mxu3 %v13909_v59  ;;  %4981 = vmatpush.bf16.msrb.mxu0 %v13557_v6 }
 0x1f7   : > { %13200 = vmatmul.msk.f32.vlgmr.msra.gmra.mxu0 %vm2374_vm2, %v20269_v38 }
 0x1f8   : > { %5023 = vmatpush.bf16.msrb.mxu3 %v13893_v40  ;;  %4982 = vmatpush.bf16.msrb.mxu0 %v13541_v13  ;;  %v14468_v40 = vld [vmem:[#allocation12 + $0x9e0] sm:$0xf] }
 0x1f9   : > { %v14469_v6 = vor.u32 %v18373_v5, %v14468_v40  ;;  %v13668_v13 = vld [vmem:[#allocation12 + $0x3a0] sm:$0xf]  ;;  %v18253_v40 = vld [vmem:[#allocation12 + $0x62c] sm:$0xf0] }
 0x1fa   : > { %v2314_v23 = vpop.f32.mrf.mxu0  ;;  %v2327_v24 = vpop.f32.mrf.mxu1 }
 0x1fb   : > { %v2288_v25 = vpop.f32.mrf.mxu2  ;;  %v2301_v26 = vpop.f32.mrf.mxu3 }
 0x1fc   : > { %v2289_v28 = vadd.f32 %v2288_v25, %v2276_v22  ;;  %5024 = vmatpush.bf16.msrb.mxu3 %v13877_v3  ;;  %4983 = vmatpush.bf16.msrb.mxu0 %v13525_v20  ;;  %v18341_v22 = vld [vmem:[#allocation12 + $0x8ec] sm:$0xf0]  ;;  %v13669_v20 = vor.u32 %v18173_v14, %v13668_v13 }
 0x1fd   : > { %v18269_v3 = vld [vmem:[#allocation12 + $0x6ac] sm:$0xf0] }
 0x1fe   : > { %v2302_v35 = vadd.f32 %v2301_v26, %v2289_v28  ;;  %v14341_v26 = vor.u32 %v18341_v22, %v14340_v21  ;;  %v14053_v17 = vor.u32 %v18269_v3, %v14052_v0  ;;  %v14453_v22 = vor.u32 %v18369_v12, %v14452_v9  ;;  %v14388_v0 = vld [vmem:[#allocation12 + $0x940] sm:$0xf]  ;;  %v18353_v3 = vld [vmem:[#allocation12 + $0x94c] sm:$0xf0] }
 0x1ff   : > { %v18249_v9 = vld [vmem:[#allocation12 + $0x60c] sm:$0xf0]  ;;  %v14389_v12 = vor.u32 %v18353_v3, %v14388_v0  ;;  %v13398_v3 = vld [vmem:[#allocation12 + $0x190] sm:$0xf0] }
 0x200   : > { %v2315_v11 = vadd.f32 %v2314_v23, %v2302_v35  ;;  %v18133_v23 = vld [vmem:[#allocation12 + $0x26c] sm:$0xf0]  ;;  %v14308_v35 = vld [vmem:[#allocation12 + $0x8a0] sm:$0xf] }
 0x202   : > { %v2328_v41 = vadd.f32 %v2327_v24, %v2315_v11  ;;  %v2316_v43 = vpop.f32.mrf.mxu0  ;;  %v2329_v44 = vpop.f32.mrf.mxu1  ;;  %v18333_v11 = vld [vmem:[#allocation12 + $0x8ac] sm:$0xf0] }
 0x203   : > { %v2290_v45 = vpop.f32.mrf.mxu2  ;;  %v2303_v46 = vpop.f32.mrf.mxu3  ;;  %v14309_v37 = vor.u32 %v18333_v11, %v14308_v35  ;;  %v18121_v43 = vld [vmem:[#allocation12 + $0x20c] sm:$0xf0]  ;;  %v14420_v11 = vld [vmem:[#allocation12 + $0x980] sm:$0xf] }
 0x204   : > { %vm2334_vm5 = vcmp.gt.f32.partialorder %v2328_v41, 0.0  ;;  %v2338_v50 = vmul.f32 0.2, %v2328_v41  ;;  %v18329_v44 = vld [vmem:[#allocation12 + $0x88c] sm:$0xf0] }
 0x205   : > { %v14084_v46 = vld [vmem:[#allocation12 + $0x6e0] sm:$0xf] }
 0x206   : > { %v2342_v56 = vsel %vm2334_vm5, %v2328_v41, %v2338_v50  ;;  %v14292_v41 = vld [vmem:[#allocation12 + $0x880] sm:$0xf]  ;;  %v14085_v48 = vor.u32 %v18277_v47, %v14084_v46  ;;  %v18257_v47 = vld [vmem:[#allocation12 + $0x64c] sm:$0xf0] }
 0x207   : > { %v2357_v2 = vmul.f32 %v2349_v42, %v2342_v56  ;;  %v13460_v42 = vld [vmem:[#allocation12 + $0x200] sm:$0xf]  ;;  %v14293_v49 = vor.u32 %v18329_v44, %v14292_v41 }
 0x208   : > { %v13461_v45 = vor.u32 %v18121_v43, %v13460_v42  ;;  %v14276_v50 = vld [vmem:[#allocation12 + $0x860] sm:$0xf]  ;;  %v18079_v42 = vld [vmem:[#allocation12 + $0xc4] sm:$0xf]  ;;  %v13302_v43 = vld [vmem:[#allocation12 + $0xd0] sm:$0xf0] }
 0x209   : > { %v2372_v60 = vadd.f32 %v2364_v54, %v2357_v2  ;;  %v13700_v54 = vld [vmem:[#allocation12 + $0x3e0] sm:$0xf]  ;;  %v14277_v39 = vor.u32 %v18325_v51, %v14276_v50 }
 0x20a   : > { %v14068_v56 = vld [vmem:[#allocation12 + $0x6c0] sm:$0xf]  ;;  %v13701_v57 = vor.u32 %v18181_v55, %v13700_v54  ;;  %v18357_v54 = vld [vmem:[#allocation12 + $0x96c] sm:$0xf0] }
 0x20b   : > { %2453 = vmatpush.msra.mxu1 %v2372_v60  ;;  %v14260_v2 = vld [vmem:[#allocation12 + $0x840] sm:$0xf] }
 0x20c   : > { %13193 = vmatmul.msk.f32.vlgmr.msra.gmra.mxu1 %vm2374_vm2, %v20259_v19  ;;  %v13861_v19 = vor.u32 %v18221_v7, %v13860_v4  ;;  %v14261_v4 = vor.u32 %v18321_v61, %v14260_v2  ;;  %v14244_v7 = vld [vmem:[#allocation12 + $0x820] sm:$0xf] }
 0x20d   : > { %2538 = vmatpush.msrb.mxu1 %v2372_v60  ;;  %v13636_v44 = vld [vmem:[#allocation12 + $0x360] sm:$0xf] }
 0x20e   : > { %5025 = vmatpush.bf16.msrb.mxu3 %v13861_v19  ;;  %v18317_v19 = vld [vmem:[#allocation12 + $0x82c] sm:$0xf0]  ;;  %v14004_v46 = vld [vmem:[#allocation12 + $0x640] sm:$0xf] }
 0x20f   : > { %2623 = vmatpush.msra.mxu1 %v2372_v60  ;;  %v14069_v60 = vor.u32 %v18273_v58, %v14068_v56  ;;  %v14245_v21 = vor.u32 %v18317_v19, %v14244_v7  ;;  %v14005_v50 = vor.u32 %v18257_v47, %v14004_v46  ;;  %v13305_v56 = vor.u32 %v18079_v42, %v13302_v43  ;;  %v18161_v58 = vld [vmem:[#allocation12 + $0x34c] sm:$0xf0]  ;;  %v13988_v2 = vld [vmem:[#allocation12 + $0x620] sm:$0xf]  ;;  %v18059_v43 = vld [vmem:[#allocation12 + $0x24] sm:$0xf] }
 0x210   : > { %v13989_v62 = vor.u32 %v18253_v40, %v13988_v2  ;;  %v13972_v7 = vld [vmem:[#allocation12 + $0x600] sm:$0xf]  ;;  %v13430_v46 = vld [vmem:[#allocation12 + $0x1d0] sm:$0xf0] }
 0x211   : > { %v13973_v13 = vor.u32 %v18249_v9, %v13972_v7  ;;  %v14164_v2 = vld [vmem:[#allocation12 + $0x780] sm:$0xf]  ;;  %v18099_v9 = vld [vmem:[#allocation12 + $0x164] sm:$0xf] }
 0x212   : > { %5026 = vmatpush.bf16.msrb.mxu3 %v13845_v15  ;;  %v14036_v15 = vld [vmem:[#allocation12 + $0x680] sm:$0xf] }
 0x214   : > { %13197 = vmatmul.msk.f32.vlgmr.msrb.gmra.mxu1 %vm2374_vm2, %v20263_v27  ;;  %v13508_v27 = vld [vmem:[#allocation12 + $0x260] sm:$0xf] }
 0x215   : > { %v13509_v24 = vor.u32 %v18133_v23, %v13508_v27  ;;  %4993 = vmatpush.bf16.msrb.mxu1 %v13701_v57  ;;  %v14037_v27 = vor.u32 %v18265_v52, %v14036_v15  ;;  %v18313_v23 = vld [vmem:[#allocation12 + $0x80c] sm:$0xf0]  ;;  %v13620_v57 = vld [vmem:[#allocation12 + $0x340] sm:$0xf] }
 0x216   : > { %v14229_v34 = vor.u32 %v18313_v23, %v14228_v16  ;;  %v13621_v61 = vor.u32 %v18161_v58, %v13620_v57  ;;  %v14372_v15 = vld [vmem:[#allocation12 + $0x920] sm:$0xf]  ;;  %v18349_v52 = vld [vmem:[#allocation12 + $0x92c] sm:$0xf0]  ;;  %v18107_v57 = vld [vmem:[#allocation12 + $0x1a4] sm:$0xf] }
 0x217   : > { %4984 = vmatpush.bf16.msrb.mxu0 %v13509_v24  ;;  %v14436_v24 = vld [vmem:[#allocation12 + $0x9a0] sm:$0xf]  ;;  %v13414_v58 = vld [vmem:[#allocation12 + $0x1b0] sm:$0xf0] }
 0x218   : > { %v13588_v16 = vld [vmem:[#allocation12 + $0x300] sm:$0xf] }
 0x219   : > { %4994 = vmatpush.bf16.msrb.mxu1 %v13685_v1  ;;  %v14212_v23 = vld [vmem:[#allocation12 + $0x7e0] sm:$0xf] }
 0x21a   : > { %v2395_v25 = vpop.f32.mrf.mxu2 }
 0x21b   : > { %v20303_v28 = vpack.c.bf16 %v2395_v25, %v2395_v25  ;;  %4985 = vmatpush.bf16.msrb.mxu0 %v13493_v32  ;;  %v18365_v25 = vld [vmem:[#allocation12 + $0x9ac] sm:$0xf0] }
 0x21c   : > { %13201 = vmatmul.msk.f32.vlgmr.msra.gmra.mxu1 %vm2374_vm2, %v20269_v38  ;;  %v14325_v38 = vor.u32 %v18337_v30, %v14324_v29  ;;  %v13652_v29 = vld [vmem:[#allocation12 + $0x380] sm:$0xf]  ;;  %v18169_v30 = vld [vmem:[#allocation12 + $0x38c] sm:$0xf0]  ;;  %v14437_v35 = vor.u32 %v18365_v25, %v14436_v24  ;;  %v14373_v25 = vor.u32 %v18349_v52, %v14372_v15  ;;  %v18203_v52 = vld [vmem:[#allocation12 + $0x4a4] sm:$0xf] }
 0x21d   : > { %4962 = vmatmul.bf16.vlgmr.msra.gmra.mxu2 %v20303_v28  ;;  %4995 = vmatpush.bf16.msrb.mxu1 %v13669_v20  ;;  %v18261_v32 = vld [vmem:[#allocation12 + $0x66c] sm:$0xf0]  ;;  %v18067_v20 = vld [vmem:[#allocation12 + $0x64] sm:$0xf] }
 0x21e   : > { %5058 = vmatpush.bf16.msra.mxu2 %v14341_v26  ;;  %v18083_v26 = vld [vmem:[#allocation12 + $0xe4] sm:$0xf]  ;;  %v14021_v33 = vor.u32 %v18261_v32, %v14020_v31  ;;  %v18309_v24 = vld [vmem:[#allocation12 + $0x7ec] sm:$0xf0]  ;;  %v13238_v32 = vld [vmem:[#allocation12 + $0x50] sm:$0xf0] }
 0x21f   : > { %4986 = vmatpush.bf16.msrb.mxu0 %v13477_v36  ;;  %v18361_v36 = vld [vmem:[#allocation12 + $0x98c] sm:$0xf0]  ;;  %v13321_v41 = vor.u32 %v18083_v26, %v13318_v10  ;;  %v14356_v26 = vld [vmem:[#allocation12 + $0x900] sm:$0xf]  ;;  %v18063_v31 = vld [vmem:[#allocation12 + $0x44] sm:$0xf] }
 0x220   : > { %v14421_v51 = vor.u32 %v18361_v36, %v14420_v11  ;;  %v18345_v10 = vld [vmem:[#allocation12 + $0x90c] sm:$0xf0] }
 0x221   : > { %v14357_v36 = vor.u32 %v18345_v10, %v14356_v26  ;;  %v18289_v15 = vld [vmem:[#allocation12 + $0x74c] sm:$0xf0]  ;;  %v14116_v26 = vld [vmem:[#allocation12 + $0x720] sm:$0xf] }
 0x222   : > { %5059 = vmatpush.bf16.msra.mxu2 %v14325_v38  ;;  %v2480_v53 = vpop.f32.mrf.mxu2  ;;  %v13653_v38 = vor.u32 %v18169_v30, %v13652_v29  ;;  %v14213_v29 = vor.u32 %v18309_v24, %v14212_v23  ;;  %v18095_v23 = vld [vmem:[#allocation12 + $0x144] sm:$0xf]  ;;  %v18285_v10 = vld [vmem:[#allocation12 + $0x72c] sm:$0xf0] }
 0x223   : > { %4987 = vmatpush.bf16.msrb.mxu0 %v13461_v45  ;;  %v20306_v59 = vpack.c.bf16 %v2480_v53, %v2480_v53  ;;  %v18165_v45 = vld [vmem:[#allocation12 + $0x36c] sm:$0xf0]  ;;  %v14404_v53 = vld [vmem:[#allocation12 + $0x960] sm:$0xf] }
 0x224   : > { %4996 = vmatpush.bf16.msrb.mxu1 %v13653_v38  ;;  %v14405_v63 = vor.u32 %v18357_v54, %v14404_v53  ;;  %v18115_v38 = vld [vmem:[#allocation12 + $0x1e4] sm:$0xf] }
 0x226   : > { %5060 = vmatpush.bf16.msra.mxu2 %v14309_v37 }
 0x227   : > { %5032 = vmatpush.bf16.msra.mxu0 %v14085_v48 }
 0x22a   : > { %5061 = vmatpush.bf16.msra.mxu2 %v14293_v49  ;;  %v2565_v37 = vpop.f32.mrf.mxu2  ;;  %v13637_v49 = vor.u32 %v18165_v45, %v13636_v44  ;;  %v13222_v44 = vld [vmem:[#allocation12 + $0x30] sm:$0xf0]  ;;  %v18111_v45 = vld [vmem:[#allocation12 + $0x1c4] sm:$0xf] }
 0x22b   : > { %5033 = vmatpush.bf16.msra.mxu0 %v14069_v60  ;;  %v20312_v48 = vpack.c.bf16 %v2565_v37, %v2565_v37  ;;  %v18075_v60 = vld [vmem:[#allocation12 + $0xa4] sm:$0xf]  ;;  %v13225_v53 = vor.u32 %v18059_v43, %v13222_v44  ;;  %v13433_v54 = vor.u32 %v18111_v45, %v13430_v46  ;;  %v13766_v43 = vld [vmem:[#allocation12 + $0x470] sm:$0xf0]  ;;  %v14100_v44 = vld [vmem:[#allocation12 + $0x700] sm:$0xf] }
 0x22c   : > { %4997 = vmatpush.bf16.msrb.mxu1 %v13637_v49  ;;  %v14180_v49 = vld [vmem:[#allocation12 + $0x7a0] sm:$0xf]  ;;  %v18281_v45 = vld [vmem:[#allocation12 + $0x70c] sm:$0xf0] }
 0x22d   : > { %5014 = vmatmul.bf16.vlgmr.msrb.gmra.mxu2 %v20306_v59  ;;  %v14101_v46 = vor.u32 %v18281_v45, %v14100_v44  ;;  %v14484_v45 = vld [vmem:[#allocation12 + $0xa00] sm:$0xf] }
 0x22e   : > { %5062 = vmatpush.bf16.msra.mxu2 %v14277_v39  ;;  %v2415_v18 = vpop.f32.mrf.mxu3  ;;  %v13286_v39 = vld [vmem:[#allocation12 + $0xb0] sm:$0xf0] }
 0x22f   : > { %v20309_v8 = vpack.c.bf16 %v2415_v18, %v2415_v18  ;;  %5034 = vmatpush.bf16.msra.mxu0 %v14053_v17  ;;  %v13289_v1 = vor.u32 %v18075_v60, %v13286_v39  ;;  %v18071_v17 = vld [vmem:[#allocation12 + $0x84] sm:$0xf]  ;;  %v13270_v18 = vld [vmem:[#allocation12 + $0x90] sm:$0xf0] }
 0x230   : > { %4998 = vmatpush.bf16.msrb.mxu1 %v13621_v61  ;;  %v13273_v14 = vor.u32 %v18071_v17, %v13270_v18  ;;  %v18211_v60 = vld [vmem:[#allocation12 + $0x4e4] sm:$0xf]  ;;  %v13830_v39 = vld [vmem:[#allocation12 + $0x4f0] sm:$0xf0]  ;;  %v18297_v61 = vld [vmem:[#allocation12 + $0x78c] sm:$0xf0] }
 0x231   : > { %4975 = vmatmul.bf16.vlgmr.msra.gmra.mxu3 %v20309_v8  ;;  %v14165_v40 = vor.u32 %v18297_v61, %v14164_v2  ;;  %v13833_v0 = vor.u32 %v18211_v60, %v13830_v39  ;;  %v14148_v17 = vld [vmem:[#allocation12 + $0x760] sm:$0xf]  ;;  %v18207_v18 = vld [vmem:[#allocation12 + $0x4c4] sm:$0xf]  ;;  %v13958_v60 = vld [vmem:[#allocation12 + $0x5f0] sm:$0xf0] }
 0x232   : > { %5063 = vmatpush.bf16.msra.mxu2 %v14261_v4  ;;  %5071 = vmatpush.bf16.msra.mxu3 %v14469_v6  ;;  %v13604_v4 = vld [vmem:[#allocation12 + $0x320] sm:$0xf]  ;;  %v18157_v6 = vld [vmem:[#allocation12 + $0x32c] sm:$0xf0]  ;;  %v18243_v2 = vld [vmem:[#allocation12 + $0x5e4] sm:$0xf] }
 0x233   : > { %5035 = vmatpush.bf16.msra.mxu0 %v14037_v27  ;;  %v13605_v19 = vor.u32 %v18157_v6, %v13604_v4  ;;  %v13254_v27 = vld [vmem:[#allocation12 + $0x70] sm:$0xf0]  ;;  %v18293_v6 = vld [vmem:[#allocation12 + $0x76c] sm:$0xf0] }
 0x234   : > { %v13257_v30 = vor.u32 %v18067_v20, %v13254_v27  ;;  %v13814_v4 = vld [vmem:[#allocation12 + $0x4d0] sm:$0xf0]  ;;  %v14149_v7 = vor.u32 %v18293_v6, %v14148_v17  ;;  %v18239_v17 = vld [vmem:[#allocation12 + $0x5c4] sm:$0xf] }
 0x235   : > { %4999 = vmatpush.bf16.msrb.mxu1 %v13605_v19 }
 0x236   : > { %5064 = vmatpush.bf16.msra.mxu2 %v14245_v21  ;;  %5072 = vmatpush.bf16.msra.mxu3 %v14453_v22  ;;  %v2500_v55 = vpop.f32.mrf.mxu3  ;;  %v18153_v21 = vld [vmem:[#allocation12 + $0x30c] sm:$0xf0] }
 0x237   : > { %5036 = vmatpush.bf16.msra.mxu0 %v14021_v33  ;;  %v20314_v5 = vpack.c.bf16 %v2500_v55, %v2500_v55  ;;  %v13589_v22 = vor.u32 %v18153_v21, %v13588_v16  ;;  %v13446_v33 = vld [vmem:[#allocation12 + $0x1f0] sm:$0xf0]  ;;  %v18055_v55 = vld [vmem:[#allocation12 + $0x4] sm:$0xf]  ;;  %v14596_v21 = vld [vmem:[#allocation12 + $0xae0] sm:$0xf] }
 0x238   : > { %v13449_v42 = vor.u32 %v18115_v38, %v13446_v33  ;;  %v13798_v16 = vld [vmem:[#allocation12 + $0x4b0] sm:$0xf0] }
 0x239   : > { %5000 = vmatpush.bf16.msrb.mxu1 %v13589_v22  ;;  %v18405_v22 = vld [vmem:[#allocation12 + $0xaec] sm:$0xf0]  ;;  %v13801_v24 = vor.u32 %v18203_v52, %v13798_v16  ;;  %v13926_v52 = vld [vmem:[#allocation12 + $0x5b0] sm:$0xf0]  ;;  %v18339_v16 = vld [vmem:[#allocation12 + $0x8e4] sm:$0xf] }
 0x23a   : > { %5065 = vmatpush.bf16.msra.mxu2 %v14229_v34  ;;  %5073 = vmatpush.bf16.msra.mxu3 %v14437_v35  ;;  %v14196_v34 = vld [vmem:[#allocation12 + $0x7c0] sm:$0xf]  ;;  %v18305_v35 = vld [vmem:[#allocation12 + $0x7cc] sm:$0xf0]  ;;  %v14597_v38 = vor.u32 %v18405_v22, %v14596_v21 }
 0x23b   : > { %5037 = vmatpush.bf16.msra.mxu0 %v14005_v50  ;;  %v14197_v11 = vor.u32 %v18305_v35, %v14196_v34  ;;  %v18301_v50 = vld [vmem:[#allocation12 + $0x7ac] sm:$0xf0]  ;;  %v14580_v34 = vld [vmem:[#allocation12 + $0xac0] sm:$0xf] }
 0x23c   : > { %v18401_v35 = vld [vmem:[#allocation12 + $0xacc] sm:$0xf0] }
 0x23d   : > { %5066 = vmatmul.bf16.vlgmr.msra.gmra.mxu2 %v20312_v48  ;;  %5045 = vmatpush.bf16.msra.mxu1 %v14213_v29  ;;  %v18199_v29 = vld [vmem:[#allocation12 + $0x484] sm:$0xf] }
 0x23e   : > { %5110 = vmatpush.bf16.msrb.mxu2 %v13321_v41  ;;  %5074 = vmatpush.bf16.msra.mxu3 %v14421_v51  ;;  %v2585_v37 = vpop.f32.mrf.mxu3  ;;  %v13241_v41 = vor.u32 %v18063_v31, %v13238_v32  ;;  %v14181_v51 = vor.u32 %v18301_v50, %v14180_v49  ;;  %v14117_v31 = vor.u32 %v18285_v10, %v14116_v26  ;;  %v18231_v10 = vld [vmem:[#allocation12 + $0x584] sm:$0xf] }
 0x23f   : > { %5038 = vmatpush.bf16.msra.mxu0 %v13989_v62  ;;  %v20318_v47 = vpack.c.bf16 %v2585_v37, %v2585_v37  ;;  %v18091_v37 = vld [vmem:[#allocation12 + $0x124] sm:$0xf]  ;;  %v14581_v49 = vor.u32 %v18401_v35, %v14580_v34  ;;  %v18381_v34 = vld [vmem:[#allocation12 + $0xa2c] sm:$0xf0] }
 0x241   : > { %5027 = vmatmul.bf16.vlgmr.msrb.gmra.mxu3 %v20314_v5  ;;  %5046 = vmatpush.bf16.msra.mxu1 %v14197_v11 }
 0x242   : > { %5111 = vmatpush.bf16.msrb.mxu2 %v13305_v56  ;;  %5075 = vmatpush.bf16.msra.mxu3 %v14405_v63  ;;  %v13206_v56 = vld [vmem:[#allocation12 + $0x10] sm:$0xf0]  ;;  %v13417_v63 = vor.u32 %v18107_v57, %v13414_v58  ;;  %v18191_v57 = vld [vmem:[#allocation12 + $0x444] sm:$0xf] }
 0x243   : > { %5039 = vmatpush.bf16.msra.mxu0 %v13973_v13  ;;  %v13209_v62 = vor.u32 %v18055_v55, %v13206_v56  ;;  %v13382_v13 = vld [vmem:[#allocation12 + $0x170] sm:$0xf0]  ;;  %v18087_v55 = vld [vmem:[#allocation12 + $0x104] sm:$0xf] }
 0x244   : > { %v13385_v27 = vor.u32 %v18099_v9, %v13382_v13  ;;  %v13334_v56 = vld [vmem:[#allocation12 + $0x110] sm:$0xf0]  ;;  %v14532_v9 = vld [vmem:[#allocation12 + $0xa60] sm:$0xf]  ;;  %v18183_v13 = vld [vmem:[#allocation12 + $0x404] sm:$0xf] }
 0x245   : > { %5047 = vmatpush.bf16.msra.mxu1 %v14181_v51  ;;  %v14564_v51 = vld [vmem:[#allocation12 + $0xaa0] sm:$0xf]  ;;  %v13750_v58 = vld [vmem:[#allocation12 + $0x450] sm:$0xf0]  ;;  %v13337_v61 = vor.u32 %v18087_v55, %v13334_v56  ;;  %v18327_v55 = vld [vmem:[#allocation12 + $0x884] sm:$0xf] }
 0x246   : > { %5112 = vmatpush.bf16.msrb.mxu2 %v13289_v1  ;;  %5076 = vmatpush.bf16.msra.mxu3 %v14389_v12  ;;  %v18103_v1 = vld [vmem:[#allocation12 + $0x184] sm:$0xf]  ;;  %v13817_v12 = vor.u32 %v18207_v18, %v13814_v4  ;;  %v13942_v18 = vld [vmem:[#allocation12 + $0x5d0] sm:$0xf0] }
 0x247   : > { %v13401_v19 = vor.u32 %v18103_v1, %v13398_v3  ;;  %v18187_v1 = vld [vmem:[#allocation12 + $0x424] sm:$0xf]  ;;  %v13734_v3 = vld [vmem:[#allocation12 + $0x430] sm:$0xf0] }
 0x248   : > { %v14294_v56 = vld [vmem:[#allocation12 + $0x890] sm:$0xf0] }
 0x249   : > { %5048 = vmatpush.bf16.msra.mxu1 %v14165_v40  ;;  %v13753_v40 = vor.u32 %v18191_v57, %v13750_v58 }
 0x24a   : > { %5113 = vmatpush.bf16.msrb.mxu2 %v13273_v14  ;;  %5077 = vmatpush.bf16.msra.mxu3 %v14373_v25  ;;  %v14132_v14 = vld [vmem:[#allocation12 + $0x740] sm:$0xf]  ;;  %v13366_v25 = vld [vmem:[#allocation12 + $0x150] sm:$0xf0] }
 0x24b   : > { %v14133_v20 = vor.u32 %v18289_v15, %v14132_v14  ;;  %v13369_v33 = vor.u32 %v18095_v23, %v13366_v25  ;;  %v13718_v14 = vld [vmem:[#allocation12 + $0x410] sm:$0xf0]  ;;  %v18235_v15 = vld [vmem:[#allocation12 + $0x5a4] sm:$0xf]  ;;  %v18385_v25 = vld [vmem:[#allocation12 + $0xa4c] sm:$0xf0] }
 0x24c   : > { %v13721_v22 = vor.u32 %v18183_v13, %v13718_v14  ;;  %v13929_v23 = vor.u32 %v18235_v15, %v13926_v52  ;;  %v18139_v13 = vld [vmem:[#allocation12 + $0x2a4] sm:$0xf]  ;;  %v13542_v14 = vld [vmem:[#allocation12 + $0x2b0] sm:$0xf0] }
 0x24d   : > { %5049 = vmatpush.bf16.msra.mxu1 %v14149_v7  ;;  %v13737_v7 = vor.u32 %v18187_v1, %v13734_v3  ;;  %v13862_v1 = vld [vmem:[#allocation12 + $0x530] sm:$0xf0] }
 0x24e   : > { %5114 = vmatpush.bf16.msrb.mxu2 %v13257_v30  ;;  %5078 = vmatpush.bf16.msra.mxu3 %v14357_v36  ;;  %v13782_v30 = vld [vmem:[#allocation12 + $0x490] sm:$0xf0] }
 0x24f   : > { %v13785_v36 = vor.u32 %v18199_v29, %v13782_v30  ;;  %v13910_v29 = vld [vmem:[#allocation12 + $0x590] sm:$0xf0]  ;;  %v18335_v30 = vld [vmem:[#allocation12 + $0x8c4] sm:$0xf] }
 0x251   : > { %5079 = vmatmul.bf16.vlgmr.msra.gmra.mxu3 %v20318_v47  ;;  %5050 = vmatpush.bf16.msra.mxu1 %v14133_v20  ;;  %v14342_v20 = vld [vmem:[#allocation12 + $0x8f0] sm:$0xf0] }
 0x252   : > { %5115 = vmatpush.bf16.msrb.mxu2 %v13241_v41  ;;  %5123 = vmatpush.bf16.msrb.mxu3 %v13449_v42  ;;  %v13350_v41 = vld [vmem:[#allocation12 + $0x130] sm:$0xf0]  ;;  %v18195_v42 = vld [vmem:[#allocation12 + $0x464] sm:$0xf]  ;;  %v14345_v26 = vor.u32 %v18339_v16, %v14342_v20 }
 0x253   : > { %v13353_v50 = vor.u32 %v18091_v37, %v13350_v41  ;;  %v13894_v37 = vld [vmem:[#allocation12 + $0x570] sm:$0xf0]  ;;  %v18331_v41 = vld [vmem:[#allocation12 + $0x8a4] sm:$0xf] }
 0x254   : > { %v18215_v16 = vld [vmem:[#allocation12 + $0x504] sm:$0xf]  ;;  %v13846_v20 = vld [vmem:[#allocation12 + $0x510] sm:$0xf0] }
 0x255   : > { %5051 = vmatpush.bf16.msra.mxu1 %v14117_v31  ;;  %v14326_v31 = vld [vmem:[#allocation12 + $0x8d0] sm:$0xf0] }
 0x256   : > { %5116 = vmatpush.bf16.msrb.mxu2 %v13225_v53  ;;  %5124 = vmatpush.bf16.msrb.mxu3 %v13433_v54  ;;  %v18397_v53 = vld [vmem:[#allocation12 + $0xaac] sm:$0xf0]  ;;  %v13769_v54 = vor.u32 %v18195_v42, %v13766_v43  ;;  %v14329_v35 = vor.u32 %v18335_v30, %v14326_v31  ;;  %v14310_v42 = vld [vmem:[#allocation12 + $0x8b0] sm:$0xf0] }
 0x257   : > { %v14565_v39 = vor.u32 %v18397_v53, %v14564_v51  ;;  %v13574_v51 = vld [vmem:[#allocation12 + $0x2f0] sm:$0xf0]  ;;  %v18223_v53 = vld [vmem:[#allocation12 + $0x544] sm:$0xf] }
 0x258   : > { %v13526_v30 = vld [vmem:[#allocation12 + $0x290] sm:$0xf0] }
 0x259   : > { %5052 = vmatpush.bf16.msra.mxu1 %v14101_v46  ;;  %v18377_v46 = vld [vmem:[#allocation12 + $0xa0c] sm:$0xf0] }
 0x25a   : > { %5117 = vmatpush.bf16.msrb.mxu2 %v13209_v62  ;;  %5125 = vmatpush.bf16.msrb.mxu3 %v13417_v63  ;;  %v13961_v62 = vor.u32 %v18243_v2, %v13958_v60  ;;  %v14548_v63 = vld [vmem:[#allocation12 + $0xa80] sm:$0xf]  ;;  %v14485_v57 = vor.u32 %v18377_v46, %v14484_v45 }
 0x25d   : > { %5118 = vmatmul.bf16.vlgmr.msrb.gmra.mxu2 %v20303_v28 }
 0x25e   : > { %5162 = vmatpush.bf16.msra.mxu2 %v13833_v0  ;;  %5126 = vmatpush.bf16.msrb.mxu3 %v13401_v19  ;;  %v18393_v0 = vld [vmem:[#allocation12 + $0xa8c] sm:$0xf0]  ;;  %v13945_v19 = vor.u32 %v18239_v17, %v13942_v18  ;;  %v18323_v17 = vld [vmem:[#allocation12 + $0x864] sm:$0xf]  ;;  %v14278_v18 = vld [vmem:[#allocation12 + $0x870] sm:$0xf0] }
 0x25f   : > { %v14549_v4 = vor.u32 %v18393_v0, %v14548_v63  ;;  %v18437_v63 = vld [vmem:[#allocation12 + $0xbec] sm:$0xf0]  ;;  %v18219_v0 = vld [vmem:[#allocation12 + $0x524] sm:$0xf]  ;;  %v14281_v52 = vor.u32 %v18323_v17, %v14278_v18  ;;  %v14422_v18 = vld [vmem:[#allocation12 + $0x990] sm:$0xf0] }
 0x260   : > { %v18359_v17 = vld [vmem:[#allocation12 + $0x984] sm:$0xf] }
 0x262   : > { %5163 = vmatpush.bf16.msra.mxu2 %v13817_v12  ;;  %5127 = vmatpush.bf16.msrb.mxu3 %v13385_v27  ;;  %v18389_v12 = vld [vmem:[#allocation12 + $0xa6c] sm:$0xf0] }
 0x263   : > { %v14533_v21 = vor.u32 %v18389_v12, %v14532_v9  ;;  %v13865_v9 = vor.u32 %v18219_v0, %v13862_v1  ;;  %v18433_v12 = vld [vmem:[#allocation12 + $0xbcc] sm:$0xf0] }
 0x264   : > { %v2435_v32 = vpop.f32.mrf.mxu0  ;;  %v18421_v0 = vld [vmem:[#allocation12 + $0xb6c] sm:$0xf0] }
 0x265   : > { %v20322_v11 = vpack.c.bf16 %v2435_v32, %v2435_v32 }
 0x266   : > { %5164 = vmatpush.bf16.msra.mxu2 %v13801_v24  ;;  %5128 = vmatpush.bf16.msrb.mxu3 %v13369_v33  ;;  %v14516_v24 = vld [vmem:[#allocation12 + $0xa40] sm:$0xf] }
 0x267   : > { %4988 = vmatmul.bf16.vlgmr.msrb.gmra.mxu0 %v20322_v11  ;;  %v14517_v32 = vor.u32 %v18385_v25, %v14516_v24  ;;  %v14500_v33 = vld [vmem:[#allocation12 + $0xa20] sm:$0xf]  ;;  %v14470_v24 = vld [vmem:[#allocation12 + $0x9f0] sm:$0xf0]  ;;  %v13545_v25 = vor.u32 %v18139_v13, %v13542_v14  ;;  %v14425_v14 = vor.u32 %v18359_v17, %v14422_v18 }
 0x268   : > { %5084 = vmatpush.bf16.msrb.mxu0 %v14597_v38  ;;  %v13913_v38 = vor.u32 %v18231_v10, %v13910_v29  ;;  %v14501_v43 = vor.u32 %v18381_v34, %v14500_v33  ;;  %v13849_v10 = vor.u32 %v18215_v16, %v13846_v20  ;;  %v18135_v29 = vld [vmem:[#allocation12 + $0x284] sm:$0xf]  ;;  %v18429_v33 = vld [vmem:[#allocation12 + $0xbac] sm:$0xf0]  ;;  %v13478_v13 = vld [vmem:[#allocation12 + $0x230] sm:$0xf0] }
 0x269   : > { %v18315_v34 = vld [vmem:[#allocation12 + $0x824] sm:$0xf]  ;;  %v18417_v16 = vld [vmem:[#allocation12 + $0xb4c] sm:$0xf0]  ;;  %v14054_v17 = vld [vmem:[#allocation12 + $0x6b0] sm:$0xf0] }
 0x26a   : > { %5165 = vmatpush.bf16.msra.mxu2 %v13785_v36  ;;  %5129 = vmatpush.bf16.msrb.mxu3 %v13353_v50  ;;  %v18227_v36 = vld [vmem:[#allocation12 + $0x564] sm:$0xf]  ;;  %v14313_v50 = vor.u32 %v18331_v41, %v14310_v42  ;;  %v13529_v41 = vor.u32 %v18135_v29, %v13526_v30  ;;  %v13462_v30 = vld [vmem:[#allocation12 + $0x210] sm:$0xf0] }
 0x26b   : > { %v13897_v44 = vor.u32 %v18227_v36, %v13894_v37  ;;  %v18367_v36 = vld [vmem:[#allocation12 + $0x9c4] sm:$0xf]  ;;  %v14454_v37 = vld [vmem:[#allocation12 + $0x9d0] sm:$0xf0] }
 0x26c   : > { %5085 = vmatpush.bf16.msrb.mxu0 %v14581_v49  ;;  %v2520_v6 = vpop.f32.mrf.mxu0  ;;  %v18147_v49 = vld [vmem:[#allocation12 + $0x2e4] sm:$0xf]  ;;  %v14457_v46 = vor.u32 %v18367_v36, %v14454_v37  ;;  %v14390_v36 = vld [vmem:[#allocation12 + $0x950] sm:$0xf0] }
 0x26d   : > { %v20326_v27 = vpack.c.bf16 %v2520_v6, %v2520_v6  ;;  %v13577_v2 = vor.u32 %v18147_v49, %v13574_v51  ;;  %v14708_v6 = vld [vmem:[#allocation12 + $0xbc0] sm:$0xf]  ;;  %v18311_v51 = vld [vmem:[#allocation12 + $0x804] sm:$0xf] }
 0x26e   : > { %5166 = vmatpush.bf16.msra.mxu2 %v13769_v54  ;;  %5130 = vmatpush.bf16.msrb.mxu3 %v13337_v61  ;;  %v13878_v54 = vld [vmem:[#allocation12 + $0x550] sm:$0xf0]  ;;  %v14724_v61 = vld [vmem:[#allocation12 + $0xbe0] sm:$0xf]  ;;  %v18119_v29 = vld [vmem:[#allocation12 + $0x204] sm:$0xf] }
 0x26f   : > { %v13881_v60 = vor.u32 %v18223_v53, %v13878_v54  ;;  %v14676_v49 = vld [vmem:[#allocation12 + $0xb80] sm:$0xf]  ;;  %v14230_v53 = vld [vmem:[#allocation12 + $0x810] sm:$0xf0]  ;;  %v18363_v54 = vld [vmem:[#allocation12 + $0x9a4] sm:$0xf]  ;;  %v13465_v37 = vor.u32 %v18119_v29, %v13462_v30 }
 0x270   : > { %5086 = vmatpush.bf16.msrb.mxu0 %v14565_v39  ;;  %v14297_v39 = vor.u32 %v18327_v55, %v14294_v56  ;;  %v14438_v55 = vld [vmem:[#allocation12 + $0x9b0] sm:$0xf0]  ;;  %v18062_v30 = vld [vmem:[#allocation12 + $0x34] sm:$0xf0] }
 0x271   : > { %5131 = vmatmul.bf16.vlgmr.msrb.gmra.mxu3 %v20309_v8 }
 0x272   : > { %5167 = vmatpush.bf16.msra.mxu2 %v13753_v40  ;;  %5175 = vmatpush.bf16.msra.mxu3 %v13961_v62  ;;  %v18143_v40 = vld [vmem:[#allocation12 + $0x2c4] sm:$0xf]  ;;  %v13558_v62 = vld [vmem:[#allocation12 + $0x2d0] sm:$0xf0] }
 0x274   : > { %5087 = vmatpush.bf16.msrb.mxu0 %v14549_v4  ;;  %v2605_v58 = vpop.f32.mrf.mxu0  ;;  %v13561_v4 = vor.u32 %v18143_v40, %v13558_v62  ;;  %v14233_v40 = vor.u32 %v18311_v51, %v14230_v53  ;;  %v14441_v62 = vor.u32 %v18363_v54, %v14438_v55  ;;  %v18271_v51 = vld [vmem:[#allocation12 + $0x6c4] sm:$0xf]  ;;  %v14070_v53 = vld [vmem:[#allocation12 + $0x6d0] sm:$0xf0] }
 0x275   : > { %v20330_v3 = vpack.c.bf16 %v2605_v58, %v2605_v58  ;;  %v18086_v58 = vld [vmem:[#allocation12 + $0xf4] sm:$0xf0]  ;;  %v13702_v55 = vld [vmem:[#allocation12 + $0x3f0] sm:$0xf0] }
 0x276   : > { %5168 = vmatpush.bf16.msra.mxu2 %v13737_v7  ;;  %5176 = vmatpush.bf16.msra.mxu3 %v13945_v19  ;;  %v14725_v19 = vor.u32 %v18437_v63, %v14724_v61  ;;  %v13494_v61 = vld [vmem:[#allocation12 + $0x250] sm:$0xf0]  ;;  %v14660_v63 = vld [vmem:[#allocation12 + $0xb60] sm:$0xf] }
 0x277   : > { %5040 = vmatmul.bf16.vlgmr.msra.gmra.mxu0 %v20326_v27 }
 0x278   : > { %5088 = vmatpush.bf16.msrb.mxu0 %v14533_v21  ;;  %v18319_v21 = vld [vmem:[#allocation12 + $0x844] sm:$0xf] }
 0x27a   : > { %5169 = vmatpush.bf16.msra.mxu2 %v13721_v22  ;;  %5177 = vmatpush.bf16.msra.mxu3 %v13929_v23  ;;  %v14262_v22 = vld [vmem:[#allocation12 + $0x850] sm:$0xf0]  ;;  %v18371_v23 = vld [vmem:[#allocation12 + $0x9e4] sm:$0xf] }
 0x27b   : > { %v14265_v31 = vor.u32 %v18319_v21, %v14262_v22  ;;  %v18355_v21 = vld [vmem:[#allocation12 + $0x964] sm:$0xf]  ;;  %v14406_v22 = vld [vmem:[#allocation12 + $0x970] sm:$0xf0] }
 0x27c   : > { %5089 = vmatpush.bf16.msrb.mxu0 %v14517_v32  ;;  %v14473_v32 = vor.u32 %v18371_v23, %v14470_v24  ;;  %v13292_v24 = vld [vmem:[#allocation12 + $0xa8] sm:$0xf] }
 0x27d   : > { %5170 = vmatmul.bf16.vlgmr.msra.gmra.mxu2 %v20306_v59 }
 0x27e   : > { %5214 = vmatpush.bf16.msrb.mxu2 %v14345_v26  ;;  %5178 = vmatpush.bf16.msra.mxu3 %v13913_v38  ;;  %v14709_v26 = vor.u32 %v18433_v12, %v14708_v6  ;;  %v14692_v38 = vld [vmem:[#allocation12 + $0xba0] sm:$0xf]  ;;  %v18123_v12 = vld [vmem:[#allocation12 + $0x224] sm:$0xf] }
 0x27f   : > { %v14693_v42 = vor.u32 %v18429_v33, %v14692_v38  ;;  %v13481_v23 = vor.u32 %v18123_v12, %v13478_v13  ;;  %v18275_v38 = vld [vmem:[#allocation12 + $0x6e4] sm:$0xf]  ;;  %v14086_v33 = vld [vmem:[#allocation12 + $0x6f0] sm:$0xf0]  ;;  %v18066_v12 = vld [vmem:[#allocation12 + $0x54] sm:$0xf0] }
 0x280   : > { %5090 = vmatpush.bf16.msrb.mxu0 %v14501_v43  ;;  %v18131_v43 = vld [vmem:[#allocation12 + $0x264] sm:$0xf]  ;;  %v13452_v13 = vld [vmem:[#allocation12 + $0x1e8] sm:$0xf] }
 0x282   : > { %5215 = vmatpush.bf16.msrb.mxu2 %v14329_v35  ;;  %5179 = vmatpush.bf16.msra.mxu3 %v13897_v44  ;;  %v14246_v35 = vld [vmem:[#allocation12 + $0x830] sm:$0xf0] }
 0x283   : > { %v13510_v44 = vld [vmem:[#allocation12 + $0x270] sm:$0xf0]  ;;  %v14249_v45 = vor.u32 %v18315_v34, %v14246_v35  ;;  %v18351_v35 = vld [vmem:[#allocation12 + $0x944] sm:$0xf] }
 0x284   : > { %5091 = vmatpush.bf16.msrb.mxu0 %v14485_v57  ;;  %v13513_v56 = vor.u32 %v18131_v43, %v13510_v44  ;;  %v13324_v57 = vld [vmem:[#allocation12 + $0xe8] sm:$0xf]  ;;  %v14089_v44 = vor.u32 %v18275_v38, %v14086_v33 }
 0x285   : > { %v13325_v1 = vor.u32 %v18086_v58, %v13324_v57  ;;  %v14374_v57 = vld [vmem:[#allocation12 + $0x930] sm:$0xf0]  ;;  %v13260_v58 = vld [vmem:[#allocation12 + $0x68] sm:$0xf] }
 0x286   : > { %5216 = vmatpush.bf16.msrb.mxu2 %v14313_v50  ;;  %5180 = vmatpush.bf16.msra.mxu3 %v13881_v60  ;;  %v18425_v50 = vld [vmem:[#allocation12 + $0xb8c] sm:$0xf0] }
 0x287   : > { %5092 = vmatmul.bf16.vlgmr.msrb.gmra.mxu0 %v20330_v3 }
 0x288   : > { %5136 = vmatpush.bf16.msra.mxu0 %v13577_v2  ;;  %v14677_v2 = vor.u32 %v18425_v50, %v14676_v49  ;;  %v14393_v49 = vor.u32 %v18351_v35, %v14390_v36  ;;  %v18179_v50 = vld [vmem:[#allocation12 + $0x3e4] sm:$0xf]  ;;  %v14022_v35 = vld [vmem:[#allocation12 + $0x670] sm:$0xf0] }
 0x289   : > { %v2455_v7 = vpop.f32.mrf.mxu1 }
 0x28a   : > { %5217 = vmatpush.bf16.msrb.mxu2 %v14297_v39  ;;  %v20332_v15 = vpack.c.bf16 %v2455_v7, %v2455_v7  ;;  %5181 = vmatpush.bf16.msra.mxu3 %v13865_v9  ;;  %v18127_v39 = vld [vmem:[#allocation12 + $0x244] sm:$0xf]  ;;  %v13308_v7 = vld [vmem:[#allocation12 + $0xc8] sm:$0xf]  ;;  %v14661_v9 = vor.u32 %v18421_v0, %v14660_v63  ;;  %v13686_v0 = vld [vmem:[#allocation12 + $0x3d0] sm:$0xf0] }
 0x28b   : > { %v13497_v6 = vor.u32 %v18127_v39, %v13494_v61  ;;  %v14073_v61 = vor.u32 %v18271_v51, %v14070_v53  ;;  %v18214_v51 = vld [vmem:[#allocation12 + $0x4f4] sm:$0xf0] }
 0x28c   : > { %5001 = vmatmul.bf16.vlgmr.msrb.gmra.mxu1 %v20332_v15  ;;  %5137 = vmatpush.bf16.msra.mxu0 %v13561_v4 }
 0x28d   : > { %5097 = vmatpush.bf16.msrb.mxu1 %v14725_v19  ;;  %v18082_v19 = vld [vmem:[#allocation12 + $0xd4] sm:$0xf0] }
 0x28e   : > { %5218 = vmatpush.bf16.msrb.mxu2 %v14281_v52  ;;  %5182 = vmatpush.bf16.msra.mxu3 %v13849_v10  ;;  %v14644_v52 = vld [vmem:[#allocation12 + $0xb40] sm:$0xf]  ;;  %v13309_v20 = vor.u32 %v18082_v19, %v13308_v7  ;;  %v14358_v7 = vld [vmem:[#allocation12 + $0x910] sm:$0xf0]  ;;  %v13244_v19 = vld [vmem:[#allocation12 + $0x48] sm:$0xf] }
 0x28f   : > { %v14628_v10 = vld [vmem:[#allocation12 + $0xb20] sm:$0xf] }
 0x290   : > { %5138 = vmatpush.bf16.msra.mxu0 %v13545_v25  ;;  %v18078_v25 = vld [vmem:[#allocation12 + $0xb4] sm:$0xf0] }
 0x291   : > { %5098 = vmatpush.bf16.msrb.mxu1 %v14709_v26  ;;  %5183 = vmatmul.bf16.vlgmr.msra.gmra.mxu3 %v20314_v5  ;;  %v2540_v60 = vpop.f32.mrf.mxu1  ;;  %v14645_v26 = vor.u32 %v18417_v16, %v14644_v52  ;;  %v13293_v34 = vor.u32 %v18078_v25, %v13292_v24  ;;  %v18171_v25 = vld [vmem:[#allocation12 + $0x3a4] sm:$0xf] }
 0x292   : > { %5219 = vmatpush.bf16.msrb.mxu2 %v14265_v31  ;;  %5227 = vmatpush.bf16.msrb.mxu3 %v14473_v32  ;;  %v20337_v4 = vpack.c.bf16 %v2540_v60, %v2540_v60  ;;  %v14409_v31 = vor.u32 %v18355_v21, %v14406_v22  ;;  %v18413_v32 = vld [vmem:[#allocation12 + $0xb2c] sm:$0xf0]  ;;  %v18263_v21 = vld [vmem:[#allocation12 + $0x684] sm:$0xf]  ;;  %v14038_v22 = vld [vmem:[#allocation12 + $0x690] sm:$0xf0] }
 0x293   : > { %v14629_v43 = vor.u32 %v18413_v32, %v14628_v10  ;;  %v13228_v10 = vld [vmem:[#allocation12 + $0x28] sm:$0xf]  ;;  %v18114_v32 = vld [vmem:[#allocation12 + $0x1d4] sm:$0xf0]  ;;  %v14041_v38 = vor.u32 %v18263_v21, %v14038_v22  ;;  %v18155_v22 = vld [vmem:[#allocation12 + $0x324] sm:$0xf] }
 0x294   : > { %5139 = vmatpush.bf16.msra.mxu0 %v13529_v41  ;;  %v13276_v41 = vld [vmem:[#allocation12 + $0x88] sm:$0xf]  ;;  %v13229_v36 = vor.u32 %v18062_v30, %v13228_v10  ;;  %v18403_v10 = vld [vmem:[#allocation12 + $0xae4] sm:$0xf]  ;;  %v14598_v30 = vld [vmem:[#allocation12 + $0xaf0] sm:$0xf0] }
 0x295   : > { %5099 = vmatpush.bf16.msrb.mxu1 %v14693_v42  ;;  %v18074_v42 = vld [vmem:[#allocation12 + $0x94] sm:$0xf0] }
 0x296   : > { %5220 = vmatpush.bf16.msrb.mxu2 %v14249_v45  ;;  %5228 = vmatpush.bf16.msrb.mxu3 %v14457_v46  ;;  %v14612_v45 = vld [vmem:[#allocation12 + $0xb00] sm:$0xf]  ;;  %v18409_v46 = vld [vmem:[#allocation12 + $0xb0c] sm:$0xf0]  ;;  %v13277_v54 = vor.u32 %v18074_v42, %v13276_v41  ;;  %v18167_v41 = vld [vmem:[#allocation12 + $0x384] sm:$0xf] }
 0x297   : > { %v14613_v60 = vor.u32 %v18409_v46, %v14612_v45  ;;  %v13654_v42 = vld [vmem:[#allocation12 + $0x390] sm:$0xf0]  ;;  %v13420_v45 = vld [vmem:[#allocation12 + $0x1a8] sm:$0xf]  ;;  %v18110_v46 = vld [vmem:[#allocation12 + $0x1b4] sm:$0xf0] }
 0x298   : > { %5140 = vmatpush.bf16.msra.mxu0 %v13513_v56  ;;  %v18347_v56 = vld [vmem:[#allocation12 + $0x924] sm:$0xf]  ;;  %v13657_v53 = vor.u32 %v18167_v41, %v13654_v42  ;;  %v14601_v42 = vor.u32 %v18403_v10, %v14598_v30  ;;  %v18190_v10 = vld [vmem:[#allocation12 + $0x434] sm:$0xf0]  ;;  %v13948_v30 = vld [vmem:[#allocation12 + $0x5c8] sm:$0xf] }
 0x299   : > { %5100 = vmatpush.bf16.msrb.mxu1 %v14677_v2  ;;  %v18070_v2 = vld [vmem:[#allocation12 + $0x74] sm:$0xf0]  ;;  %v2625_v39 = vpop.f32.mrf.mxu1  ;;  %v14377_v63 = vor.u32 %v18347_v56, %v14374_v57  ;;  %v13421_v57 = vor.u32 %v18110_v46, %v13420_v45  ;;  %v18307_v46 = vld [vmem:[#allocation12 + $0x7e4] sm:$0xf] }
 0x29a   : > { %5221 = vmatpush.bf16.msrb.mxu2 %v14233_v40  ;;  %5229 = vmatpush.bf16.msrb.mxu3 %v14441_v62  ;;  %v18175_v40 = vld [vmem:[#allocation12 + $0x3c4] sm:$0xf]  ;;  %v13705_v62 = vor.u32 %v18179_v50, %v13702_v55  ;;  %v13261_v18 = vor.u32 %v18070_v2, %v13260_v58  ;;  %v13836_v50 = vld [vmem:[#allocation12 + $0x4e8] sm:$0xf]  ;;  %v14006_v55 = vld [vmem:[#allocation12 + $0x650] sm:$0xf0] }
 0x29b   : > { %v13689_v16 = vor.u32 %v18175_v40, %v13686_v0  ;;  %v18163_v58 = vld [vmem:[#allocation12 + $0x364] sm:$0xf]  ;;  %v13638_v2 = vld [vmem:[#allocation12 + $0x370] sm:$0xf0]  ;;  %v18106_v40 = vld [vmem:[#allocation12 + $0x194] sm:$0xf0] }
 0x29c   : > { %5053 = vmatmul.bf16.vlgmr.msra.gmra.mxu1 %v20337_v4  ;;  %5141 = vmatpush.bf16.msra.mxu0 %v13497_v6  ;;  %v18343_v6 = vld [vmem:[#allocation12 + $0x904] sm:$0xf]  ;;  %v18210_v0 = vld [vmem:[#allocation12 + $0x4d4] sm:$0xf0] }
 0x29d   : > { %5101 = vmatpush.bf16.msrb.mxu1 %v14661_v9  ;;  %5222 = vmatmul.bf16.vlgmr.msrb.gmra.mxu2 %v20312_v48  ;;  %v20342_v9 = vpack.c.bf16 %v2625_v39, %v2625_v39  ;;  %v13837_v39 = vor.u32 %v18214_v51, %v13836_v50  ;;  %v14582_v50 = vld [vmem:[#allocation12 + $0xad0] sm:$0xf0] }
 0x29e   : > { %5266 = vmatpush.bf16.msra.mxu2 %v13325_v1  ;;  %5230 = vmatpush.bf16.msrb.mxu3 %v14425_v14  ;;  %v18267_v1 = vld [vmem:[#allocation12 + $0x6a4] sm:$0xf]  ;;  %v18118_v14 = vld [vmem:[#allocation12 + $0x1f4] sm:$0xf0] }
 0x29f   : > { %v14057_v52 = vor.u32 %v18267_v1, %v14054_v17  ;;  %v13453_v24 = vor.u32 %v18118_v14, %v13452_v13  ;;  %v13641_v1 = vor.u32 %v18163_v58, %v13638_v2  ;;  %v18251_v17 = vld [vmem:[#allocation12 + $0x624] sm:$0xf]  ;;  %v13388_v13 = vld [vmem:[#allocation12 + $0x168] sm:$0xf]  ;;  %v18102_v14 = vld [vmem:[#allocation12 + $0x174] sm:$0xf0] }
 0x2a0   : > { %5142 = vmatpush.bf16.msra.mxu0 %v13481_v23  ;;  %v13245_v23 = vor.u32 %v18066_v12, %v13244_v19  ;;  %v20344_v29 = vpop.f32.mrf.mxu2  ;;  %v13622_v19 = vld [vmem:[#allocation12 + $0x350] sm:$0xf0] }
 0x2a1   : > { %5102 = vmatpush.bf16.msrb.mxu1 %v14645_v26  ;;  %v13670_v26 = vld [vmem:[#allocation12 + $0x3b0] sm:$0xf0] }
 0x2a2   : > { %5267 = vmatpush.bf16.msra.mxu2 %v13309_v20  ;;  %5231 = vmatpush.bf16.msrb.mxu3 %v14409_v31  ;;  %v14361_v20 = vor.u32 %v18343_v6, %v14358_v7  ;;  %v13436_v31 = vld [vmem:[#allocation12 + $0x1c8] sm:$0xf]  ;;  %v13673_v33 = vor.u32 %v18171_v25, %v13670_v26  ;;  %v18159_v7 = vld [vmem:[#allocation12 + $0x344] sm:$0xf]  ;;  %v13389_v25 = vor.u32 %v18102_v14, %v13388_v13  ;;  %v13606_v26 = vld [vmem:[#allocation12 + $0x330] sm:$0xf0] }
 0x2a3   : > { %v13625_v21 = vor.u32 %v18159_v7, %v13622_v19  ;;  %v13609_v41 = vor.u32 %v18155_v22, %v13606_v26  ;;  %v18194_v19 = vld [vmem:[#allocation12 + $0x454] sm:$0xf0]  ;;  %v13740_v26 = vld [vmem:[#allocation12 + $0x428] sm:$0xf] }
 0x2a4   : > { %5143 = vmatpush.bf16.msra.mxu0 %v13465_v37  ;;  %v13437_v37 = vor.u32 %v18114_v32, %v13436_v31  ;;  %v18246_v13 = vld [vmem:[#allocation12 + $0x5f4] sm:$0xf0] }
 0x2a5   : > { %5103 = vmatpush.bf16.msrb.mxu1 %v14629_v43  ;;  %v13212_v43 = vld [vmem:[#allocation12 + $0x8] sm:$0xf] }
 0x2a6   : > { %5268 = vmatpush.bf16.msra.mxu2 %v13293_v34  ;;  %5232 = vmatpush.bf16.msrb.mxu3 %v14393_v49  ;;  %v18259_v34 = vld [vmem:[#allocation12 + $0x664] sm:$0xf] }
 0x2a7   : > { %5144 = vmatmul.bf16.vlgmr.msra.gmra.mxu0 %v20322_v11  ;;  %v14025_v49 = vor.u32 %v18259_v34, %v14022_v35 }
 0x2a8   : > { %5188 = vmatpush.bf16.msrb.mxu0 %v14089_v44  ;;  %v18058_v44 = vld [vmem:[#allocation12 + $0x14] sm:$0xf0] }
 0x2a9   : > { %5104 = vmatpush.bf16.msrb.mxu1 %v14613_v60  ;;  %v13213_v56 = vor.u32 %v18058_v44, %v13212_v43  ;;  %v4965_v60 = vpop.f32.mrf.mxu2  ;;  %v18151_v43 = vld [vmem:[#allocation12 + $0x304] sm:$0xf]  ;;  %v13590_v44 = vld [vmem:[#allocation12 + $0x310] sm:$0xf0] }
 0x2aa   : > { %5269 = vmatpush.bf16.msra.mxu2 %v13277_v54  ;;  %5233 = vmatpush.bf16.msrb.mxu3 %v14377_v63  ;;  %v18255_v54 = vld [vmem:[#allocation12 + $0x644] sm:$0xf]  ;;  %v13820_v63 = vld [vmem:[#allocation12 + $0x4c8] sm:$0xf]  ;;  %v13593_v58 = vor.u32 %v18151_v43, %v13590_v44  ;;  %v14166_v44 = vld [vmem:[#allocation12 + $0x790] sm:$0xf0] }
 0x2ab   : > { %v13821_v12 = vor.u32 %v18210_v0, %v13820_v63  ;;  %v18303_v60 = vld [vmem:[#allocation12 + $0x7c4] sm:$0xf]  ;;  %v14566_v63 = vld [vmem:[#allocation12 + $0xab0] sm:$0xf0] }
 0x2ac   : > { %5189 = vmatpush.bf16.msrb.mxu0 %v14073_v61  ;;  %5105 = vmatmul.bf16.vlgmr.msrb.gmra.mxu1 %v20342_v9  ;;  %v13404_v61 = vld [vmem:[#allocation12 + $0x188] sm:$0xf]  ;;  %v18295_v43 = vld [vmem:[#allocation12 + $0x784] sm:$0xf] }
 0x2ad   : > { %5149 = vmatpush.bf16.msra.mxu1 %v13705_v62  ;;  %v14009_v62 = vor.u32 %v18255_v54, %v14006_v55  ;;  %v13405_v6 = vor.u32 %v18106_v40, %v13404_v61  ;;  %v13356_v54 = vld [vmem:[#allocation12 + $0x128] sm:$0xf]  ;;  %v18094_v55 = vld [vmem:[#allocation12 + $0x134] sm:$0xf0]  ;;  %v14198_v40 = vld [vmem:[#allocation12 + $0x7d0] sm:$0xf0] }
 0x2ae   : > { %5270 = vmatpush.bf16.msra.mxu2 %v13261_v18  ;;  %5234 = vmatpush.bf16.msrb.mxu3 %v14361_v20  ;;  %v13990_v18 = vld [vmem:[#allocation12 + $0x630] sm:$0xf0]  ;;  %v18206_v20 = vld [vmem:[#allocation12 + $0x4b4] sm:$0xf0]  ;;  %v13357_v61 = vor.u32 %v18094_v55, %v13356_v54  ;;  %v14348_v54 = vld [vmem:[#allocation12 + $0x8e8] sm:$0xf] }
 0x2af   : > { %v18342_v55 = vld [vmem:[#allocation12 + $0x8f4] sm:$0xf0] }
 0x2b0   : > { %5190 = vmatpush.bf16.msrb.mxu0 %v14057_v52  ;;  %v13993_v52 = vor.u32 %v18251_v17, %v13990_v18  ;;  %v13340_v17 = vld [vmem:[#allocation12 + $0x108] sm:$0xf]  ;;  %v18090_v18 = vld [vmem:[#allocation12 + $0x114] sm:$0xf0] }
 0x2b1   : > { %5150 = vmatpush.bf16.msra.mxu1 %v13689_v16  ;;  %5235 = vmatmul.bf16.vlgmr.msrb.gmra.mxu3 %v20318_v47  ;;  %v13804_v16 = vld [vmem:[#allocation12 + $0x4a8] sm:$0xf]  ;;  %v20349_v31 = vpop.f32.mrf.mxu2 }
 0x2b2   : > { %5271 = vmatpush.bf16.msra.mxu2 %v13245_v23  ;;  %5279 = vmatpush.bf16.msra.mxu3 %v13453_v24  ;;  %v18247_v23 = vld [vmem:[#allocation12 + $0x604] sm:$0xf]  ;;  %v13974_v24 = vld [vmem:[#allocation12 + $0x610] sm:$0xf0]  ;;  %v13805_v32 = vor.u32 %v18206_v20, %v13804_v16  ;;  %v13341_v16 = vor.u32 %v18090_v18, %v13340_v17  ;;  %v18338_v17 = vld [vmem:[#allocation12 + $0x8d4] sm:$0xf0] }
 0x2b3   : > { %v13977_v35 = vor.u32 %v18247_v23, %v13974_v24  ;;  %v18391_v20 = vld [vmem:[#allocation12 + $0xa84] sm:$0xf] }
 0x2b4   : > { %5191 = vmatpush.bf16.msrb.mxu0 %v14041_v38  ;;  %v13372_v38 = vld [vmem:[#allocation12 + $0x148] sm:$0xf]  ;;  %v20351_v34 = vpop.f32.mrf.mxu3  ;;  %v18299_v24 = vld [vmem:[#allocation12 + $0x7a4] sm:$0xf] }
 0x2b5   : > { %5151 = vmatpush.bf16.msra.mxu1 %v13673_v33  ;;  %v18098_v33 = vld [vmem:[#allocation12 + $0x154] sm:$0xf0] }
 0x2b6   : > { %5272 = vmatpush.bf16.msra.mxu2 %v13229_v36  ;;  %5280 = vmatpush.bf16.msra.mxu3 %v13437_v37  ;;  %v13788_v36 = vld [vmem:[#allocation12 + $0x488] sm:$0xf]  ;;  %v18202_v37 = vld [vmem:[#allocation12 + $0x494] sm:$0xf0]  ;;  %v13373_v45 = vor.u32 %v18098_v33, %v13372_v38 }
 0x2b7   : > { %v13789_v51 = vor.u32 %v18202_v37, %v13788_v36  ;;  %v14534_v36 = vld [vmem:[#allocation12 + $0xa70] sm:$0xf0] }
 0x2b8   : > { %5192 = vmatpush.bf16.msrb.mxu0 %v14025_v49  ;;  %v18399_v49 = vld [vmem:[#allocation12 + $0xac4] sm:$0xf] }
 0x2b9   : > { %5152 = vmatpush.bf16.msra.mxu1 %v13657_v53  ;;  %v14214_v53 = vld [vmem:[#allocation12 + $0x7f0] sm:$0xf0]  ;;  %v14585_v2 = vor.u32 %v18399_v49, %v14582_v50  ;;  %v5017_v0 = vpop.f32.mrf.mxu2  ;;  %v18186_v49 = vld [vmem:[#allocation12 + $0x414] sm:$0xf0]  ;;  %v13932_v50 = vld [vmem:[#allocation12 + $0x5a8] sm:$0xf] }
 0x2ba   : > { %5273 = vmatpush.bf16.msra.mxu2 %v13213_v56  ;;  %5281 = vmatpush.bf16.msra.mxu3 %v13421_v57  ;;  %v13772_v56 = vld [vmem:[#allocation12 + $0x468] sm:$0xf]  ;;  %v18198_v57 = vld [vmem:[#allocation12 + $0x474] sm:$0xf0] }
 0x2bc   : > { %5193 = vmatpush.bf16.msrb.mxu0 %v14009_v62  ;;  %v18395_v62 = vld [vmem:[#allocation12 + $0xaa4] sm:$0xf]  ;;  %v4978_v7 = vpop.f32.mrf.mxu3 }
 0x2bd   : > { %5153 = vmatpush.bf16.msra.mxu1 %v13641_v1  ;;  %5274 = vmatmul.bf16.vlgmr.msra.gmra.mxu2 %v20303_v28  ;;  %v13773_v1 = vor.u32 %v18198_v57, %v13772_v56  ;;  %v14569_v14 = vor.u32 %v18395_v62, %v14566_v63  ;;  %v14169_v56 = vor.u32 %v18295_v43, %v14166_v44  ;;  %v18383_v57 = vld [vmem:[#allocation12 + $0xa44] sm:$0xf]  ;;  %v13916_v62 = vld [vmem:[#allocation12 + $0x588] sm:$0xf]  ;;  %v18234_v63 = vld [vmem:[#allocation12 + $0x594] sm:$0xf0] }
 0x2be   : > { %5318 = vmatpush.bf16.msrb.mxu2 %v13837_v39  ;;  %5282 = vmatpush.bf16.msra.mxu3 %v13405_v6  ;;  %v14217_v39 = vor.u32 %v18307_v46, %v14214_v53  ;;  %v13756_v6 = vld [vmem:[#allocation12 + $0x448] sm:$0xf]  ;;  %v14502_v7 = vld [vmem:[#allocation12 + $0xa30] sm:$0xf0] }
 0x2bf   : > { %v13757_v22 = vor.u32 %v18194_v19, %v13756_v6  ;;  %v18379_v6 = vld [vmem:[#allocation12 + $0xa24] sm:$0xf]  ;;  %v14300_v44 = vld [vmem:[#allocation12 + $0x888] sm:$0xf] }
 0x2c0   : > { %5194 = vmatpush.bf16.msrb.mxu0 %v13993_v52  ;;  %v14201_v52 = vor.u32 %v18303_v60, %v14198_v40  ;;  %v14349_v40 = vor.u32 %v18342_v55, %v14348_v54  ;;  %v18435_v55 = vld [vmem:[#allocation12 + $0xbe4] sm:$0xf] }
 0x2c1   : > { %5154 = vmatpush.bf16.msra.mxu1 %v13625_v21  ;;  %v14550_v21 = vld [vmem:[#allocation12 + $0xa90] sm:$0xf0]  ;;  %v20355_v37 = vpop.f32.mrf.mxu2 }
 0x2c2   : > { %5319 = vmatpush.bf16.msrb.mxu2 %v13821_v12  ;;  %5283 = vmatpush.bf16.msra.mxu3 %v13389_v25  ;;  %v13964_v12 = vld [vmem:[#allocation12 + $0x5e8] sm:$0xf]  ;;  %v14182_v25 = vld [vmem:[#allocation12 + $0x7b0] sm:$0xf0]  ;;  %v14553_v38 = vor.u32 %v18391_v20, %v14550_v21  ;;  %v18230_v21 = vld [vmem:[#allocation12 + $0x574] sm:$0xf0] }
 0x2c3   : > { %v13965_v23 = vor.u32 %v18246_v13, %v13964_v12  ;;  %v14185_v33 = vor.u32 %v18299_v24, %v14182_v25  ;;  %v13917_v12 = vor.u32 %v18234_v63, %v13916_v62  ;;  %v18287_v13 = vld [vmem:[#allocation12 + $0x744] sm:$0xf]  ;;  %v13900_v20 = vld [vmem:[#allocation12 + $0x568] sm:$0xf]  ;;  %v18334_v24 = vld [vmem:[#allocation12 + $0x8b4] sm:$0xf0] }
 0x2c4   : > { %5195 = vmatpush.bf16.msrb.mxu0 %v13977_v35  ;;  %v18387_v35 = vld [vmem:[#allocation12 + $0xa64] sm:$0xf]  ;;  %v20357_v46 = vpop.f32.mrf.mxu3  ;;  %v18326_v62 = vld [vmem:[#allocation12 + $0x874] sm:$0xf0] }
 0x2c5   : > { %5155 = vmatpush.bf16.msra.mxu1 %v13609_v41  ;;  %v13741_v41 = vor.u32 %v18190_v10, %v13740_v26  ;;  %v14537_v53 = vor.u32 %v18387_v35, %v14534_v36  ;;  %v18283_v26 = vld [vmem:[#allocation12 + $0x724] sm:$0xf]  ;;  %v18150_v35 = vld [vmem:[#allocation12 + $0x2f4] sm:$0xf0] }
 0x2c6   : > { %5320 = vmatpush.bf16.msrb.mxu2 %v13805_v32  ;;  %5284 = vmatpush.bf16.msra.mxu3 %v13373_v45  ;;  %v18242_v32 = vld [vmem:[#allocation12 + $0x5d4] sm:$0xf0]  ;;  %v13724_v45 = vld [vmem:[#allocation12 + $0x408] sm:$0xf]  ;;  %v18375_v10 = vld [vmem:[#allocation12 + $0xa04] sm:$0xf] }
 0x2c7   : > { %5196 = vmatmul.bf16.vlgmr.msrb.gmra.mxu0 %v20326_v27 }
 0x2c8   : > { %5240 = vmatpush.bf16.msra.mxu0 %v14601_v42  ;;  %v13949_v42 = vor.u32 %v18242_v32, %v13948_v30  ;;  %v14486_v30 = vld [vmem:[#allocation12 + $0xa10] sm:$0xf0]  ;;  %v13901_v32 = vor.u32 %v18230_v21, %v13900_v20  ;;  %v14476_v20 = vld [vmem:[#allocation12 + $0x9e8] sm:$0xf]  ;;  %v18374_v21 = vld [vmem:[#allocation12 + $0x9f4] sm:$0xf0] }
 0x2c9   : > { %5156 = vmatpush.bf16.msra.mxu1 %v13593_v58  ;;  %v14518_v58 = vld [vmem:[#allocation12 + $0xa50] sm:$0xf0]  ;;  %v5069_v19 = vpop.f32.mrf.mxu2  ;;  %v14489_v43 = vor.u32 %v18375_v10, %v14486_v30 }
 0x2ca   : > { %5321 = vmatpush.bf16.msrb.mxu2 %v13789_v51  ;;  %5285 = vmatpush.bf16.msra.mxu3 %v13357_v61  ;;  %v18238_v51 = vld [vmem:[#allocation12 + $0x5b4] sm:$0xf0]  ;;  %v14150_v61 = vld [vmem:[#allocation12 + $0x770] sm:$0xf0]  ;;  %v14521_v0 = vor.u32 %v18383_v57, %v14518_v58 }
 0x2cb   : > { %v13933_v60 = vor.u32 %v18238_v51, %v13932_v50  ;;  %v18279_v51 = vld [vmem:[#allocation12 + $0x704] sm:$0xf]  ;;  %v18146_v57 = vld [vmem:[#allocation12 + $0x2d4] sm:$0xf0] }
 0x2cc   : > { %5241 = vmatpush.bf16.msra.mxu0 %v14585_v2  ;;  %5157 = vmatmul.bf16.vlgmr.msra.gmra.mxu1 %v20332_v15  ;;  %v13725_v2 = vor.u32 %v18186_v49, %v13724_v45  ;;  %v18330_v45 = vld [vmem:[#allocation12 + $0x894] sm:$0xf0] }
 0x2cd   : > { %5201 = vmatpush.bf16.msrb.mxu1 %v14217_v39  ;;  %v18291_v39 = vld [vmem:[#allocation12 + $0x764] sm:$0xf]  ;;  %v18142_v19 = vld [vmem:[#allocation12 + $0x2b4] sm:$0xf0] }
 0x2ce   : > { %5322 = vmatpush.bf16.msrb.mxu2 %v13773_v1  ;;  %5286 = vmatpush.bf16.msra.mxu3 %v13341_v16  ;;  %v14332_v1 = vld [vmem:[#allocation12 + $0x8c8] sm:$0xf]  ;;  %v14153_v18 = vor.u32 %v18291_v39, %v14150_v61  ;;  %v18222_v61 = vld [vmem:[#allocation12 + $0x534] sm:$0xf0] }
 0x2cf   : > { %v14333_v16 = vor.u32 %v18338_v17, %v14332_v1  ;;  %v13868_v39 = vld [vmem:[#allocation12 + $0x528] sm:$0xf]  ;;  %v18431_v1 = vld [vmem:[#allocation12 + $0xbc4] sm:$0xf] }
 0x2d0   : > { %5242 = vmatpush.bf16.msra.mxu0 %v14569_v14  ;;  %v14134_v14 = vld [vmem:[#allocation12 + $0x750] sm:$0xf0] }
 0x2d1   : > { %5202 = vmatpush.bf16.msrb.mxu1 %v14201_v52  ;;  %5287 = vmatmul.bf16.vlgmr.msra.gmra.mxu3 %v20309_v8  ;;  %v5030_v52 = vpop.f32.mrf.mxu3  ;;  %v14137_v25 = vor.u32 %v18287_v13, %v14134_v14  ;;  %v13852_v13 = vld [vmem:[#allocation12 + $0x508] sm:$0xf]  ;;  %v18218_v14 = vld [vmem:[#allocation12 + $0x514] sm:$0xf0] }
 0x2d2   : > { %5323 = vmatpush.bf16.msrb.mxu2 %v13757_v22  ;;  %5331 = vmatpush.bf16.msrb.mxu3 %v13965_v23  ;;  %v14505_v22 = vor.u32 %v18379_v6, %v14502_v7  ;;  %v14316_v23 = vld [vmem:[#allocation12 + $0x8a8] sm:$0xf]  ;;  %v14710_v6 = vld [vmem:[#allocation12 + $0xbd0] sm:$0xf0] }
 0x2d3   : > { %v14317_v36 = vor.u32 %v18334_v24, %v14316_v23  ;;  %v13548_v7 = vld [vmem:[#allocation12 + $0x2a8] sm:$0xf]  ;;  %v14713_v23 = vor.u32 %v18431_v1, %v14710_v6  ;;  %v13853_v24 = vor.u32 %v18218_v14, %v13852_v13  ;;  %v18130_v1 = vld [vmem:[#allocation12 + $0x254] sm:$0xf0]  ;;  %v18419_v6 = vld [vmem:[#allocation12 + $0xb64] sm:$0xf] }
 0x2d4   : > { %5243 = vmatpush.bf16.msra.mxu0 %v14553_v38  ;;  %v14118_v38 = vld [vmem:[#allocation12 + $0x730] sm:$0xf0]  ;;  %v14268_v52 = vld [vmem:[#allocation12 + $0x848] sm:$0xf]  ;;  %v18362_v14 = vld [vmem:[#allocation12 + $0x994] sm:$0xf0] }
 0x2d5   : > { %5203 = vmatpush.bf16.msrb.mxu1 %v14185_v33  ;;  %v13580_v33 = vld [vmem:[#allocation12 + $0x2e8] sm:$0xf]  ;;  %v14121_v49 = vor.u32 %v18283_v26, %v14118_v38  ;;  %v18138_v26 = vld [vmem:[#allocation12 + $0x294] sm:$0xf0]  ;;  %v18427_v38 = vld [vmem:[#allocation12 + $0xba4] sm:$0xf] }
 0x2d6   : > { %5324 = vmatpush.bf16.msrb.mxu2 %v13741_v41  ;;  %5332 = vmatpush.bf16.msrb.mxu3 %v13949_v42  ;;  %v13884_v41 = vld [vmem:[#allocation12 + $0x548] sm:$0xf]  ;;  %v18226_v42 = vld [vmem:[#allocation12 + $0x554] sm:$0xf0]  ;;  %v13581_v50 = vor.u32 %v18150_v35, %v13580_v33  ;;  %v14694_v33 = vld [vmem:[#allocation12 + $0xbb0] sm:$0xf0] }
 0x2d7   : > { %v13885_v54 = vor.u32 %v18226_v42, %v13884_v41  ;;  %v14252_v35 = vld [vmem:[#allocation12 + $0x828] sm:$0xf]  ;;  %v18318_v41 = vld [vmem:[#allocation12 + $0x834] sm:$0xf0] }
 0x2d8   : > { %5244 = vmatpush.bf16.msra.mxu0 %v14537_v53  ;;  %v14102_v53 = vld [vmem:[#allocation12 + $0x710] sm:$0xf0]  ;;  %v14460_v42 = vld [vmem:[#allocation12 + $0x9c8] sm:$0xf] }
 0x2d9   : > { %5204 = vmatpush.bf16.msrb.mxu1 %v14169_v56  ;;  %v13564_v56 = vld [vmem:[#allocation12 + $0x2c8] sm:$0xf]  ;;  %v20361_v58 = vpop.f32.mrf.mxu3  ;;  %v14105_v63 = vor.u32 %v18279_v51, %v14102_v53  ;;  %v18134_v51 = vld [vmem:[#allocation12 + $0x274] sm:$0xf0]  ;;  %v14253_v53 = vor.u32 %v18318_v41, %v14252_v35  ;;  %v18076_v35 = vld [vmem:[#allocation12 + $0xac] sm:$0xf] }
 0x2da   : > { %5325 = vmatpush.bf16.msrb.mxu2 %v13725_v2  ;;  %5333 = vmatpush.bf16.msrb.mxu3 %v13933_v60  ;;  %v14301_v2 = vor.u32 %v18330_v45, %v14300_v44  ;;  %v14726_v60 = vld [vmem:[#allocation12 + $0xbf0] sm:$0xf0]  ;;  %v14428_v13 = vld [vmem:[#allocation12 + $0x988] sm:$0xf]  ;;  %v13294_v41 = vld [vmem:[#allocation12 + $0xb8] sm:$0xf0] }
 0x2db   : > { %v14729_v17 = vor.u32 %v18435_v55, %v14726_v60  ;;  %v18423_v55 = vld [vmem:[#allocation12 + $0xb84] sm:$0xf]  ;;  %v14444_v60 = vld [vmem:[#allocation12 + $0x9a8] sm:$0xf] }
 0x2dc   : > { %5245 = vmatpush.bf16.msra.mxu0 %v14521_v0  ;;  %v13565_v0 = vor.u32 %v18146_v57, %v13564_v56  ;;  %v14678_v56 = vld [vmem:[#allocation12 + $0xb90] sm:$0xf0]  ;;  %v14236_v57 = vld [vmem:[#allocation12 + $0x808] sm:$0xf] }
 0x2dd   : > { %5205 = vmatpush.bf16.msrb.mxu1 %v14153_v18  ;;  %5326 = vmatmul.bf16.vlgmr.msrb.gmra.mxu2 %v20306_v59  ;;  %v13869_v18 = vor.u32 %v18222_v61, %v13868_v39  ;;  %v18366_v39 = vld [vmem:[#allocation12 + $0x9b4] sm:$0xf0] }
 0x2de   : > { %5370 = vmatpush.bf16.msra.mxu2 %v14349_v40  ;;  %5334 = vmatpush.bf16.msrb.mxu3 %v13917_v12  ;;  %v14284_v40 = vld [vmem:[#allocation12 + $0x868] sm:$0xf] }
 0x2df   : > { %v14285_v12 = vor.u32 %v18326_v62, %v14284_v40  ;;  %v18084_v40 = vld [vmem:[#allocation12 + $0xec] sm:$0xf]  ;;  %v13326_v62 = vld [vmem:[#allocation12 + $0xf8] sm:$0xf0] }
 0x2e0   : > { %5246 = vmatpush.bf16.msra.mxu0 %v14505_v22  ;;  %v13549_v22 = vor.u32 %v18142_v19, %v13548_v7  ;;  %v14662_v7 = vld [vmem:[#allocation12 + $0xb70] sm:$0xf0] }
 0x2e1   : > { %5206 = vmatpush.bf16.msrb.mxu1 %v14137_v25  ;;  %v13532_v25 = vld [vmem:[#allocation12 + $0x288] sm:$0xf]  ;;  %v5082_v10 = vpop.f32.mrf.mxu3 }
 0x2e2   : > { %5371 = vmatpush.bf16.msra.mxu2 %v14333_v16  ;;  %5335 = vmatpush.bf16.msrb.mxu3 %v13901_v32  ;;  %v18322_v16 = vld [vmem:[#allocation12 + $0x854] sm:$0xf0]  ;;  %v14477_v32 = vor.u32 %v18374_v21, %v14476_v20  ;;  %v13533_v44 = vor.u32 %v18138_v26, %v13532_v25  ;;  %v13310_v20 = vld [vmem:[#allocation12 + $0xd8] sm:$0xf0]  ;;  %v14429_v25 = vor.u32 %v18362_v14, %v14428_v13  ;;  %v18415_v26 = vld [vmem:[#allocation12 + $0xb44] sm:$0xf] }
 0x2e3   : > { %v14269_v30 = vor.u32 %v18322_v16, %v14268_v52  ;;  %v18080_v16 = vld [vmem:[#allocation12 + $0xcc] sm:$0xf]  ;;  %v14646_v10 = vld [vmem:[#allocation12 + $0xb50] sm:$0xf0]  ;;  %v14380_v13 = vld [vmem:[#allocation12 + $0x928] sm:$0xf] }
 0x2e4   : > { %5247 = vmatpush.bf16.msra.mxu0 %v14489_v43  ;;  %v18370_v43 = vld [vmem:[#allocation12 + $0x9d4] sm:$0xf0]  ;;  %v20367_v45 = vpop.f32.mrf.mxu0 }
 0x2e5   : > { %5207 = vmatpush.bf16.msrb.mxu1 %v14121_v49  ;;  %v14697_v49 = vor.u32 %v18427_v38, %v14694_v33  ;;  %v18358_v38 = vld [vmem:[#allocation12 + $0x974] sm:$0xf0] }
 0x2e6   : > { %5372 = vmatpush.bf16.msra.mxu2 %v14317_v36  ;;  %5336 = vmatpush.bf16.msrb.mxu3 %v13885_v54  ;;  %v20364_v36 = vpop.f32.mrf.mxu2  ;;  %v14461_v54 = vor.u32 %v18370_v43, %v14460_v42  ;;  %v14649_v42 = vor.u32 %v18415_v26, %v14646_v10  ;;  %v18411_v43 = vld [vmem:[#allocation12 + $0xb24] sm:$0xf]  ;;  %v18350_v14 = vld [vmem:[#allocation12 + $0x934] sm:$0xf0]  ;;  %v14060_v26 = vld [vmem:[#allocation12 + $0x6a8] sm:$0xf] }
 0x2e7   : > { %5248 = vmatmul.bf16.vlgmr.msra.gmra.mxu0 %v20330_v3  ;;  %v18270_v10 = vld [vmem:[#allocation12 + $0x6b4] sm:$0xf0] }
 0x2e8   : > { %5292 = vmatpush.bf16.msrb.mxu0 %v13581_v50  ;;  %v13516_v50 = vld [vmem:[#allocation12 + $0x268] sm:$0xf] }
 0x2e9   : > { %5208 = vmatpush.bf16.msrb.mxu1 %v14105_v63  ;;  %v13517_v61 = vor.u32 %v18134_v51, %v13516_v50  ;;  %v14681_v63 = vor.u32 %v18423_v55, %v14678_v56  ;;  %v14630_v51 = vld [vmem:[#allocation12 + $0xb30] sm:$0xf0]  ;;  %v13297_v55 = vor.u32 %v18076_v35, %v13294_v41  ;;  %v14396_v56 = vld [vmem:[#allocation12 + $0x948] sm:$0xf]  ;;  %v13246_v35 = vld [vmem:[#allocation12 + $0x58] sm:$0xf0] }
 0x2ea   : > { %5373 = vmatpush.bf16.msra.mxu2 %v14301_v2  ;;  %5337 = vmatpush.bf16.msrb.mxu3 %v13869_v18  ;;  %v18314_v2 = vld [vmem:[#allocation12 + $0x814] sm:$0xf0]  ;;  %v14445_v18 = vor.u32 %v18366_v39, %v14444_v60  ;;  %v18072_v60 = vld [vmem:[#allocation12 + $0x8c] sm:$0xf]  ;;  %v13278_v39 = vld [vmem:[#allocation12 + $0x98] sm:$0xf0] }
 0x2eb   : > { %v18116_v41 = vld [vmem:[#allocation12 + $0x1ec] sm:$0xf] }
 0x2ec   : > { %5293 = vmatpush.bf16.msrb.mxu0 %v13565_v0  ;;  %5209 = vmatmul.bf16.vlgmr.msrb.gmra.mxu1 %v20337_v4  ;;  %v13500_v0 = vld [vmem:[#allocation12 + $0x248] sm:$0xf]  ;;  %v4991_v21 = vpop.f32.mrf.mxu0 }
 0x2ed   : > { %5253 = vmatpush.bf16.msra.mxu1 %v14729_v17  ;;  %v14237_v17 = vor.u32 %v18314_v2, %v14236_v57  ;;  %v13501_v52 = vor.u32 %v18130_v1, %v13500_v0  ;;  %v18354_v57 = vld [vmem:[#allocation12 + $0x954] sm:$0xf0]  ;;  %v14614_v0 = vld [vmem:[#allocation12 + $0xb10] sm:$0xf0] }
 0x2ee   : > { %5374 = vmatpush.bf16.msra.mxu2 %v14285_v12  ;;  %5338 = vmatpush.bf16.msrb.mxu3 %v13853_v24  ;;  %v5121_v19 = vpop.f32.mrf.mxu2  ;;  %v13329_v12 = vor.u32 %v18084_v40, %v13326_v62  ;;  %v18126_v24 = vld [vmem:[#allocation12 + $0x234] sm:$0xf0]  ;;  %v14633_v40 = vor.u32 %v18411_v43, %v14630_v51 }
 0x2ef   : > { %v13281_v19 = vor.u32 %v18072_v60, %v13278_v39  ;;  %v18060_v60 = vld [vmem:[#allocation12 + $0x2c] sm:$0xf] }
 0x2f0   : > { %5294 = vmatpush.bf16.msrb.mxu0 %v13549_v22  ;;  %v14665_v22 = vor.u32 %v18419_v6, %v14662_v7  ;;  %v14076_v6 = vld [vmem:[#allocation12 + $0x6c8] sm:$0xf]  ;;  %v18274_v7 = vld [vmem:[#allocation12 + $0x6d4] sm:$0xf0] }
 0x2f1   : > { %5254 = vmatpush.bf16.msra.mxu1 %v14713_v23  ;;  %5339 = vmatmul.bf16.vlgmr.msrb.gmra.mxu3 %v20314_v5  ;;  %v13484_v23 = vld [vmem:[#allocation12 + $0x228] sm:$0xf]  ;;  %v14077_v21 = vor.u32 %v18274_v7, %v14076_v6  ;;  %v18262_v6 = vld [vmem:[#allocation12 + $0x674] sm:$0xf0] }
 0x2f2   : > { %5375 = vmatpush.bf16.msra.mxu2 %v14269_v30  ;;  %5383 = vmatpush.bf16.msra.mxu3 %v14477_v32  ;;  %v13313_v30 = vor.u32 %v18080_v16, %v13310_v20  ;;  %v14412_v32 = vld [vmem:[#allocation12 + $0x968] sm:$0xf]  ;;  %v13485_v33 = vor.u32 %v18126_v24, %v13484_v23  ;;  %v13262_v16 = vld [vmem:[#allocation12 + $0x78] sm:$0xf0]  ;;  %v14381_v24 = vor.u32 %v18350_v14, %v14380_v13  ;;  %v18170_v13 = vld [vmem:[#allocation12 + $0x394] sm:$0xf0] }
 0x2f3   : > { %v14413_v50 = vor.u32 %v18358_v38, %v14412_v32  ;;  %v14364_v32 = vld [vmem:[#allocation12 + $0x908] sm:$0xf]  ;;  %v18346_v38 = vld [vmem:[#allocation12 + $0x914] sm:$0xf0]  ;;  %v18056_v14 = vld [vmem:[#allocation12 + $0xc] sm:$0xf] }
 0x2f4   : > { %5295 = vmatpush.bf16.msrb.mxu0 %v13533_v44  ;;  %v13468_v44 = vld [vmem:[#allocation12 + $0x208] sm:$0xf]  ;;  %v20373_v1 = vpop.f32.mrf.mxu3  ;;  %v14365_v51 = vor.u32 %v18346_v38, %v14364_v32  ;;  %v18258_v32 = vld [vmem:[#allocation12 + $0x654] sm:$0xf0] }
 0x2f5   : > { %5255 = vmatpush.bf16.msra.mxu1 %v14697_v49  ;;  %v18122_v49 = vld [vmem:[#allocation12 + $0x214] sm:$0xf0] }
 0x2f6   : > { %5376 = vmatpush.bf16.msra.mxu2 %v14253_v53  ;;  %5384 = vmatpush.bf16.msra.mxu3 %v14461_v54  ;;  %v14092_v53 = vld [vmem:[#allocation12 + $0x6e8] sm:$0xf]  ;;  %v18278_v54 = vld [vmem:[#allocation12 + $0x6f4] sm:$0xf0]  ;;  %v13469_v2 = vor.u32 %v18122_v49, %v13468_v44  ;;  %v14061_v44 = vor.u32 %v18270_v10, %v14060_v26 }
 0x2f7   : > { %v14093_v62 = vor.u32 %v18278_v54, %v14092_v53  ;;  %v14044_v53 = vld [vmem:[#allocation12 + $0x688] sm:$0xf]  ;;  %v18266_v54 = vld [vmem:[#allocation12 + $0x694] sm:$0xf0] }
 0x2f8   : > { %5296 = vmatpush.bf16.msrb.mxu0 %v13517_v61  ;;  %v20371_v61 = vpop.f32.mrf.mxu0 }
 0x2f9   : > { %5256 = vmatpush.bf16.msra.mxu1 %v14681_v63  ;;  %v18407_v63 = vld [vmem:[#allocation12 + $0xb04] sm:$0xf] }
 0x2fa   : > { %5377 = vmatpush.bf16.msra.mxu2 %v14237_v17  ;;  %5385 = vmatpush.bf16.msra.mxu3 %v14445_v18  ;;  %v14397_v17 = vor.u32 %v18354_v57, %v14396_v56  ;;  %v13708_v18 = vld [vmem:[#allocation12 + $0x3e8] sm:$0xf]  ;;  %v14617_v20 = vor.u32 %v18407_v63, %v14614_v0  ;;  %v13438_v63 = vld [vmem:[#allocation12 + $0x1d8] sm:$0xf0]  ;;  %v14045_v0 = vor.u32 %v18266_v54, %v14044_v53  ;;  %v18208_v53 = vld [vmem:[#allocation12 + $0x4cc] sm:$0xf] }
 0x2fb   : > { %v13676_v57 = vld [vmem:[#allocation12 + $0x3a8] sm:$0xf]  ;;  %v13822_v54 = vld [vmem:[#allocation12 + $0x4d8] sm:$0xf0] }
 0x2fc   : > { %5297 = vmatpush.bf16.msrb.mxu0 %v13501_v52  ;;  %v18068_v52 = vld [vmem:[#allocation12 + $0x6c] sm:$0xf] }
 0x2fd   : > { %5257 = vmatpush.bf16.msra.mxu1 %v14665_v22  ;;  %5378 = vmatmul.bf16.vlgmr.msra.gmra.mxu2 %v20312_v48  ;;  %v13692_v22 = vld [vmem:[#allocation12 + $0x3c8] sm:$0xf] }
 0x2fe   : > { %5422 = vmatpush.bf16.msrb.mxu2 %v13329_v12  ;;  %5386 = vmatpush.bf16.msra.mxu3 %v14429_v25  ;;  %v18182_v12 = vld [vmem:[#allocation12 + $0x3f4] sm:$0xf0] }
 0x2ff   : > { %v13709_v23 = vor.u32 %v18182_v12, %v13708_v18  ;;  %v18178_v25 = vld [vmem:[#allocation12 + $0x3d4] sm:$0xf0]  ;;  %v14028_v18 = vld [vmem:[#allocation12 + $0x668] sm:$0xf] }
 0x300   : > { %5298 = vmatpush.bf16.msrb.mxu0 %v13485_v33  ;;  %v18064_v33 = vld [vmem:[#allocation12 + $0x4c] sm:$0xf]  ;;  %v5043_v43 = vpop.f32.mrf.mxu0  ;;  %v13693_v49 = vor.u32 %v18178_v25, %v13692_v22  ;;  %v20376_v39 = vpop.f32.mrf.mxu2  ;;  %v13660_v12 = vld [vmem:[#allocation12 + $0x388] sm:$0xf]  ;;  %v14029_v22 = vor.u32 %v18262_v6, %v14028_v18  ;;  %v20382_v25 = vld [vmem:[#allocation14] sm:$0xf] }
 0x301   : > { %5258 = vmatpush.bf16.msra.mxu1 %v14649_v42  ;;  %v13454_v42 = vld [vmem:[#allocation12 + $0x1f8] sm:$0xf0]  ;;  %v13661_v10 = vor.u32 %v18170_v13, %v13660_v12 }
 0x302   : > { %5423 = vmatpush.bf16.msrb.mxu2 %v13313_v30  ;;  %5387 = vmatpush.bf16.msra.mxu3 %v14413_v50  ;;  %v13265_v30 = vor.u32 %v18068_v52, %v13262_v16  ;;  %v5134_v50 = vpop.f32.mrf.mxu3  ;;  %v13457_v56 = vor.u32 %v18116_v41, %v13454_v42  ;;  %v13214_v52 = vld [vmem:[#allocation12 + $0x18] sm:$0xf0]  ;;  %v18108_v16 = vld [vmem:[#allocation12 + $0x1ac] sm:$0xf]  ;;  %v18166_v41 = vld [vmem:[#allocation12 + $0x374] sm:$0xf0] }
 0x303   : > { %v13217_v38 = vor.u32 %v18056_v14, %v13214_v52  ;;  %v3026_v50 = vperm.slane %v20382_v25, 0  ;;  %v13612_v14 = vld [vmem:[#allocation12 + $0x328] sm:$0xf] }
 0x304   : > { %5299 = vmatpush.bf16.msrb.mxu0 %v13469_v2  ;;  %v18174_v2 = vld [vmem:[#allocation12 + $0x3b4] sm:$0xf0]  ;;  %v13980_v52 = vld [vmem:[#allocation12 + $0x608] sm:$0xf] }
 0x305   : > { %5259 = vmatpush.bf16.msra.mxu1 %v14633_v40  ;;  %v13230_v40 = vld [vmem:[#allocation12 + $0x38] sm:$0xf0]  ;;  %v4964_v18 = vadd.f32 %v20344_v29, %v3026_v50  ;;  %v18096_v29 = vld [vmem:[#allocation12 + $0x14c] sm:$0xf]  ;;  %v14588_v50 = vld [vmem:[#allocation12 + $0xac8] sm:$0xf] }
 0x306   : > { %5424 = vmatpush.bf16.msrb.mxu2 %v13297_v55  ;;  %5388 = vmatpush.bf16.msra.mxu3 %v14397_v17  ;;  %v13249_v55 = vor.u32 %v18064_v33, %v13246_v35  ;;  %v13677_v17 = vor.u32 %v18174_v2, %v13676_v57  ;;  %v13233_v7 = vor.u32 %v18060_v60, %v13230_v40  ;;  %v13644_v35 = vld [vmem:[#allocation12 + $0x368] sm:$0xf]  ;;  %v18254_v57 = vld [vmem:[#allocation12 + $0x634] sm:$0xf0] }
 0x307   : > { %5300 = vmatmul.bf16.vlgmr.msrb.gmra.mxu0 %v20322_v11  ;;  %v13628_v60 = vld [vmem:[#allocation12 + $0x348] sm:$0xf]  ;;  %v18162_v40 = vld [vmem:[#allocation12 + $0x354] sm:$0xf0] }
 0x308   : > { %5344 = vmatpush.bf16.msra.mxu0 %v14093_v62  ;;  %v18112_v62 = vld [vmem:[#allocation12 + $0x1cc] sm:$0xf]  ;;  %v5173_v42 = vpop.f32.mrf.mxu2  ;;  %v13629_v13 = vor.u32 %v18162_v40, %v13628_v60  ;;  %v13774_v60 = vld [vmem:[#allocation12 + $0x478] sm:$0xf0] }
 0x309   : > { %5260 = vmatpush.bf16.msra.mxu1 %v14617_v20  ;;  %v13422_v20 = vld [vmem:[#allocation12 + $0x1b8] sm:$0xf0]  ;;  %v20384_v26 = vpop.f32.mrf.mxu1  ;;  %v13596_v42 = vld [vmem:[#allocation12 + $0x308] sm:$0xf] }
 0x30a   : > { %5425 = vmatpush.bf16.msrb.mxu2 %v13281_v19  ;;  %5389 = vmatpush.bf16.msra.mxu3 %v14381_v24  ;;  %v13441_v19 = vor.u32 %v18112_v62, %v13438_v63  ;;  %v13838_v24 = vld [vmem:[#allocation12 + $0x4f8] sm:$0xf0]  ;;  %v13425_v33 = vor.u32 %v18108_v16, %v13422_v20  ;;  %v13825_v62 = vor.u32 %v18208_v53, %v13822_v54  ;;  %v18100_v63 = vld [vmem:[#allocation12 + $0x16c] sm:$0xf]  ;;  %v18250_v16 = vld [vmem:[#allocation12 + $0x614] sm:$0xf0] }
 0x30c   : > { %5345 = vmatpush.bf16.msra.mxu0 %v14077_v21  ;;  %5261 = vmatmul.bf16.vlgmr.msra.gmra.mxu1 %v20342_v9  ;;  %v20379_v21 = vpop.f32.mrf.mxu0 }
 0x30d   : > { %5305 = vmatpush.bf16.msrb.mxu1 %v13709_v23  ;;  %v18212_v23 = vld [vmem:[#allocation12 + $0x4ec] sm:$0xf] }
 0x30e   : > { %5426 = vmatpush.bf16.msrb.mxu2 %v13265_v30  ;;  %5390 = vmatpush.bf16.msra.mxu3 %v14365_v51  ;;  %v14012_v30 = vld [vmem:[#allocation12 + $0x648] sm:$0xf]  ;;  %v13841_v43 = vor.u32 %v18212_v23, %v13838_v24  ;;  %v18406_v24 = vld [vmem:[#allocation12 + $0xaf4] sm:$0xf0] }
 0x30f   : > { %v14013_v51 = vor.u32 %v18258_v32, %v14012_v30  ;;  %v14604_v23 = vld [vmem:[#allocation12 + $0xae8] sm:$0xf]  ;;  %v13374_v30 = vld [vmem:[#allocation12 + $0x158] sm:$0xf0]  ;;  %v4977_v32 = vadd.f32 %v20351_v34, %v4964_v18  ;;  %v18092_v34 = vld [vmem:[#allocation12 + $0x12c] sm:$0xf] }
 0x310   : > { %5346 = vmatpush.bf16.msra.mxu0 %v14061_v44  ;;  %v18104_v44 = vld [vmem:[#allocation12 + $0x18c] sm:$0xf] }
 0x311   : > { %5306 = vmatpush.bf16.msrb.mxu1 %v13693_v49  ;;  %5391 = vmatmul.bf16.vlgmr.msra.gmra.mxu3 %v20318_v47  ;;  %v13406_v49 = vld [vmem:[#allocation12 + $0x198] sm:$0xf0]  ;;  %v5004_v12 = vpop.f32.mrf.mxu1 }
 0x312   : > { %5427 = vmatpush.bf16.msrb.mxu2 %v13249_v55  ;;  %5435 = vmatpush.bf16.msrb.mxu3 %v13457_v56  ;;  %v13645_v55 = vor.u32 %v18166_v41, %v13644_v35  ;;  %v13996_v56 = vld [vmem:[#allocation12 + $0x628] sm:$0xf]  ;;  %v13409_v2 = vor.u32 %v18104_v44, %v13406_v49  ;;  %v13790_v35 = vld [vmem:[#allocation12 + $0x498] sm:$0xf0]  ;;  %v14605_v41 = vor.u32 %v18406_v24, %v14604_v23  ;;  %v18088_v12 = vld [vmem:[#allocation12 + $0x10c] sm:$0xf] }
 0x313   : > { %v13997_v6 = vor.u32 %v18254_v57, %v13996_v56  ;;  %v13377_v44 = vor.u32 %v18096_v29, %v13374_v30  ;;  %v14220_v49 = vld [vmem:[#allocation12 + $0x7e8] sm:$0xf]  ;;  %v13358_v56 = vld [vmem:[#allocation12 + $0x138] sm:$0xf0]  ;;  %v4990_v57 = vadd.f32 %v20367_v45, %v4977_v32  ;;  %v18394_v30 = vld [vmem:[#allocation12 + $0xa94] sm:$0xf0] }
 0x314   : > { %5347 = vmatpush.bf16.msra.mxu0 %v14045_v0  ;;  %v13390_v0 = vld [vmem:[#allocation12 + $0x178] sm:$0xf0]  ;;  %v20390_v53 = vpop.f32.mrf.mxu3  ;;  %v13361_v18 = vor.u32 %v18092_v34, %v13358_v56  ;;  %v14556_v29 = vld [vmem:[#allocation12 + $0xa88] sm:$0xf]  ;;  %v18390_v34 = vld [vmem:[#allocation12 + $0xa74] sm:$0xf0] }
 0x315   : > { %5307 = vmatpush.bf16.msrb.mxu1 %v13677_v17  ;;  %v5095_v17 = vpop.f32.mrf.mxu0  ;;  %v13393_v20 = vor.u32 %v18100_v63, %v13390_v0  ;;  %v14204_v0 = vld [vmem:[#allocation12 + $0x7c8] sm:$0xf] }
 0x316   : > { %5428 = vmatpush.bf16.msrb.mxu2 %v13233_v7  ;;  %5436 = vmatpush.bf16.msrb.mxu3 %v13441_v19  ;;  %v18204_v7 = vld [vmem:[#allocation12 + $0x4ac] sm:$0xf]  ;;  %v13806_v19 = vld [vmem:[#allocation12 + $0x4b8] sm:$0xf0] }
 0x318   : > { %5348 = vmatpush.bf16.msra.mxu0 %v14029_v22  ;;  %v18158_v22 = vld [vmem:[#allocation12 + $0x334] sm:$0xf0] }
 0x319   : > { %5308 = vmatpush.bf16.msrb.mxu1 %v13661_v10  ;;  %v13809_v10 = vor.u32 %v18204_v7, %v13806_v19  ;;  %v20393_v40 = vpop.f32.mrf.mxu1  ;;  %v14572_v7 = vld [vmem:[#allocation12 + $0xaa8] sm:$0xf]  ;;  %v18398_v19 = vld [vmem:[#allocation12 + $0xab4] sm:$0xf0] }
 0x31a   : > { %5429 = vmatpush.bf16.msrb.mxu2 %v13217_v38  ;;  %5437 = vmatpush.bf16.msrb.mxu3 %v13425_v33  ;;  %v13981_v38 = vor.u32 %v18250_v16, %v13980_v52  ;;  %v18200_v33 = vld [vmem:[#allocation12 + $0x48c] sm:$0xf]  ;;  %v5003_v52 = vadd.f32 %v20384_v26, %v4990_v57  ;;  %v13758_v16 = vld [vmem:[#allocation12 + $0x458] sm:$0xf0]  ;;  %v14573_v23 = vor.u32 %v18398_v19, %v14572_v7 }
 0x31b   : > { %v13793_v54 = vor.u32 %v18200_v33, %v13790_v35  ;;  %v14188_v35 = vld [vmem:[#allocation12 + $0x7a8] sm:$0xf]  ;;  %v18340_v7 = vld [vmem:[#allocation12 + $0x8ec] sm:$0xf]  ;;  %v14350_v19 = vld [vmem:[#allocation12 + $0x8f8] sm:$0xf0] }
 0x31c   : > { %5349 = vmatpush.bf16.msra.mxu0 %v14013_v51  ;;  %v18402_v51 = vld [vmem:[#allocation12 + $0xad4] sm:$0xf0]  ;;  %v5186_v32 = vpop.f32.mrf.mxu3  ;;  %v5016_v26 = vadd.f32 %v20349_v31, %v5003_v52  ;;  %v14172_v31 = vld [vmem:[#allocation12 + $0x788] sm:$0xf] }
 0x31d   : > { %5309 = vmatpush.bf16.msrb.mxu1 %v13645_v55  ;;  %5430 = vmatmul.bf16.vlgmr.msrb.gmra.mxu2 %v20303_v28  ;;  %v13613_v28 = vor.u32 %v18158_v22, %v13612_v14  ;;  %v18310_v55 = vld [vmem:[#allocation12 + $0x7f4] sm:$0xf0]  ;;  %v14589_v63 = vor.u32 %v18402_v51, %v14588_v50  ;;  %v18192_v14 = vld [vmem:[#allocation12 + $0x44c] sm:$0xf]  ;;  %v13966_v22 = vld [vmem:[#allocation12 + $0x5f8] sm:$0xf0]  ;;  %v14557_v51 = vor.u32 %v18394_v30, %v14556_v29 }
 0x31e   : > { %5474 = vmatpush.bf16.msra.mxu2 %v13841_v43  ;;  %5438 = vmatpush.bf16.msrb.mxu3 %v13409_v2  ;;  %v18154_v43 = vld [vmem:[#allocation12 + $0x314] sm:$0xf0]  ;;  %v18196_v2 = vld [vmem:[#allocation12 + $0x46c] sm:$0xf]  ;;  %v14221_v17 = vor.u32 %v18310_v55, %v14220_v49  ;;  %v14540_v55 = vld [vmem:[#allocation12 + $0xa68] sm:$0xf] }
 0x31f   : > { %v13777_v45 = vor.u32 %v18196_v2, %v13774_v60  ;;  %v18298_v2 = vld [vmem:[#allocation12 + $0x794] sm:$0xf0]  ;;  %v18184_v60 = vld [vmem:[#allocation12 + $0x40c] sm:$0xf]  ;;  %v14334_v32 = vld [vmem:[#allocation12 + $0x8d8] sm:$0xf0] }
 0x320   : > { %5350 = vmatpush.bf16.msra.mxu0 %v13997_v6  ;;  %v18306_v6 = vld [vmem:[#allocation12 + $0x7d4] sm:$0xf0]  ;;  %v20399_v49 = vpop.f32.mrf.mxu2  ;;  %v18336_v30 = vld [vmem:[#allocation12 + $0x8cc] sm:$0xf] }
 0x321   : > { %5310 = vmatpush.bf16.msrb.mxu1 %v13629_v13  ;;  %v13342_v13 = vld [vmem:[#allocation12 + $0x118] sm:$0xf0]  ;;  %v14205_v24 = vor.u32 %v18306_v6, %v14204_v0  ;;  %v5056_v50 = vpop.f32.mrf.mxu1  ;;  %v14541_v6 = vor.u32 %v18390_v34, %v14540_v55 }
 0x322   : > { %5475 = vmatpush.bf16.msra.mxu2 %v13825_v62  ;;  %5439 = vmatpush.bf16.msrb.mxu3 %v13393_v20  ;;  %v13597_v62 = vor.u32 %v18154_v43, %v13596_v42  ;;  %v18244_v20 = vld [vmem:[#allocation12 + $0x5ec] sm:$0xf]  ;;  %v13742_v42 = vld [vmem:[#allocation12 + $0x438] sm:$0xf0] }
 0x323   : > { %v13969_v33 = vor.u32 %v18244_v20, %v13966_v22  ;;  %v18240_v43 = vld [vmem:[#allocation12 + $0x5cc] sm:$0xf]  ;;  %v13726_v0 = vld [vmem:[#allocation12 + $0x418] sm:$0xf0]  ;;  %v14353_v22 = vor.u32 %v18340_v7, %v14350_v19 }
 0x324   : > { %5351 = vmatpush.bf16.msra.mxu0 %v13981_v38  ;;  %v13761_v38 = vor.u32 %v18192_v14, %v13758_v16  ;;  %v13729_v14 = vor.u32 %v18184_v60, %v13726_v0  ;;  %v18294_v16 = vld [vmem:[#allocation12 + $0x774] sm:$0xf0]  ;;  %v13902_v50 = vld [vmem:[#allocation12 + $0x578] sm:$0xf0]  ;;  %v18328_v19 = vld [vmem:[#allocation12 + $0x88c] sm:$0xf] }
 0x325   : > { %5311 = vmatpush.bf16.msrb.mxu1 %v13613_v28  ;;  %v18302_v28 = vld [vmem:[#allocation12 + $0x7b4] sm:$0xf0]  ;;  %v14318_v55 = vld [vmem:[#allocation12 + $0x8b8] sm:$0xf0] }
 0x326   : > { %5476 = vmatpush.bf16.msra.mxu2 %v13809_v10  ;;  %5440 = vmatpush.bf16.msrb.mxu3 %v13377_v44  ;;  %v13345_v10 = vor.u32 %v18088_v12, %v13342_v13  ;;  %v13950_v44 = vld [vmem:[#allocation12 + $0x5d8] sm:$0xf0]  ;;  %v14524_v12 = vld [vmem:[#allocation12 + $0xa48] sm:$0xf]  ;;  %v18386_v13 = vld [vmem:[#allocation12 + $0xa54] sm:$0xf0] }
 0x327   : > { %5352 = vmatmul.bf16.vlgmr.msra.gmra.mxu0 %v20326_v27  ;;  %v13953_v57 = vor.u32 %v18240_v43, %v13950_v44  ;;  %v14525_v29 = vor.u32 %v18386_v13, %v14524_v12  ;;  %v14337_v43 = vor.u32 %v18336_v30, %v14334_v32  ;;  %v18228_v44 = vld [vmem:[#allocation12 + $0x56c] sm:$0xf]  ;;  %v18286_v60 = vld [vmem:[#allocation12 + $0x734] sm:$0xf0]  ;;  %v13582_v0 = vld [vmem:[#allocation12 + $0x2f8] sm:$0xf0] }
 0x328   : > { %5396 = vmatpush.bf16.msrb.mxu0 %v14605_v41  ;;  %v18188_v41 = vld [vmem:[#allocation12 + $0x42c] sm:$0xf]  ;;  %v13870_v30 = vld [vmem:[#allocation12 + $0x538] sm:$0xf0] }
 0x329   : > { %5312 = vmatpush.bf16.msrb.mxu1 %v13597_v62  ;;  %v13745_v56 = vor.u32 %v18188_v41, %v13742_v42  ;;  %v5029_v62 = vadd.f32 %v20357_v46, %v5016_v26  ;;  %v14156_v46 = vld [vmem:[#allocation12 + $0x768] sm:$0xf]  ;;  %v18290_v26 = vld [vmem:[#allocation12 + $0x754] sm:$0xf0]  ;;  %v18324_v32 = vld [vmem:[#allocation12 + $0x86c] sm:$0xf] }
 0x32a   : > { %5477 = vmatpush.bf16.msra.mxu2 %v13793_v54  ;;  %5441 = vmatpush.bf16.msrb.mxu3 %v13361_v18  ;;  %v14189_v54 = vor.u32 %v18302_v28, %v14188_v35  ;;  %v13934_v18 = vld [vmem:[#allocation12 + $0x5b8] sm:$0xf0]  ;;  %v14508_v35 = vld [vmem:[#allocation12 + $0xa28] sm:$0xf]  ;;  %v18382_v28 = vld [vmem:[#allocation12 + $0xa34] sm:$0xf0] }
 0x32b   : > { %v5042_v20 = vadd.f32 %v20371_v61, %v5029_v62  ;;  %v14140_v61 = vld [vmem:[#allocation12 + $0x748] sm:$0xf]  ;;  %v18148_v62 = vld [vmem:[#allocation12 + $0x2ec] sm:$0xf] }
 0x32c   : > { %5397 = vmatpush.bf16.msrb.mxu0 %v14589_v63  ;;  %5313 = vmatmul.bf16.vlgmr.msrb.gmra.mxu1 %v20332_v15  ;;  %v20402_v63 = vpop.f32.mrf.mxu0  ;;  %v14141_v34 = vor.u32 %v18290_v26, %v14140_v61  ;;  %v13585_v13 = vor.u32 %v18148_v62, %v13582_v0  ;;  %v18434_v26 = vld [vmem:[#allocation12 + $0xbd4] sm:$0xf0]  ;;  %v18136_v62 = vld [vmem:[#allocation12 + $0x28c] sm:$0xf]  ;;  %v13534_v0 = vld [vmem:[#allocation12 + $0x298] sm:$0xf0] }
 0x32d   : > { %5357 = vmatpush.bf16.msra.mxu1 %v14221_v17  ;;  %v18236_v17 = vld [vmem:[#allocation12 + $0x5ac] sm:$0xf] }
 0x32e   : > { %5478 = vmatpush.bf16.msra.mxu2 %v13777_v45  ;;  %5442 = vmatpush.bf16.msrb.mxu3 %v13345_v10  ;;  %v14173_v45 = vor.u32 %v18298_v2, %v14172_v31  ;;  %v13937_v52 = vor.u32 %v18236_v17, %v13934_v18  ;;  %v5225_v10 = vpop.f32.mrf.mxu2  ;;  %v18378_v31 = vld [vmem:[#allocation12 + $0xa14] sm:$0xf0]  ;;  %v13905_v2 = vor.u32 %v18228_v44, %v13902_v50  ;;  %v18224_v18 = vld [vmem:[#allocation12 + $0x54c] sm:$0xf] }
 0x32f   : > { %v18438_v10 = vld [vmem:[#allocation12 + $0xbf4] sm:$0xf0] }
 0x330   : > { %5398 = vmatpush.bf16.msrb.mxu0 %v14573_v23  ;;  %v18232_v23 = vld [vmem:[#allocation12 + $0x58c] sm:$0xf] }
 0x331   : > { %5358 = vmatpush.bf16.msra.mxu1 %v14205_v24  ;;  %5443 = vmatmul.bf16.vlgmr.msrb.gmra.mxu3 %v20309_v8  ;;  %v13918_v24 = vld [vmem:[#allocation12 + $0x598] sm:$0xf0]  ;;  %v20406_v8 = vpop.f32.mrf.mxu1 }
 0x332   : > { %5479 = vmatpush.bf16.msra.mxu2 %v13761_v38  ;;  %5487 = vmatpush.bf16.msra.mxu3 %v13969_v33  ;;  %v5055_v38 = vadd.f32 %v20393_v40, %v5042_v20  ;;  %v14157_v33 = vor.u32 %v18294_v16, %v14156_v46  ;;  %v13921_v41 = vor.u32 %v18232_v23, %v13918_v24  ;;  %v14732_v16 = vld [vmem:[#allocation12 + $0xbe8] sm:$0xf]  ;;  %v18144_v20 = vld [vmem:[#allocation12 + $0x2cc] sm:$0xf] }
 0x334   : > { %5399 = vmatpush.bf16.msrb.mxu0 %v14557_v51  ;;  %v5147_v42 = vpop.f32.mrf.mxu0  ;;  %v14509_v51 = vor.u32 %v18382_v28, %v14508_v35  ;;  %v5068_v40 = vadd.f32 %v20355_v37, %v5055_v38  ;;  %v14302_v37 = vld [vmem:[#allocation12 + $0x898] sm:$0xf0]  ;;  %v20412_v23 = vpop.f32.mrf.mxu3  ;;  %v14716_v28 = vld [vmem:[#allocation12 + $0xbc8] sm:$0xf] }
 0x335   : > { %5359 = vmatpush.bf16.msra.mxu1 %v14189_v54  ;;  %v18332_v54 = vld [vmem:[#allocation12 + $0x8ac] sm:$0xf]  ;;  %v14305_v24 = vor.u32 %v18328_v19, %v14302_v37  ;;  %v14254_v37 = vld [vmem:[#allocation12 + $0x838] sm:$0xf0] }
 0x336   : > { %5480 = vmatpush.bf16.msra.mxu2 %v13745_v56  ;;  %5488 = vmatpush.bf16.msra.mxu3 %v13953_v57  ;;  %v14124_v56 = vld [vmem:[#allocation12 + $0x728] sm:$0xf]  ;;  %v14321_v17 = vor.u32 %v18332_v54, %v14318_v55  ;;  %v18140_v42 = vld [vmem:[#allocation12 + $0x2ac] sm:$0xf]  ;;  %v13854_v54 = vld [vmem:[#allocation12 + $0x518] sm:$0xf0] }
 0x337   : > { %v14492_v57 = vld [vmem:[#allocation12 + $0xa08] sm:$0xf]  ;;  %v14125_v12 = vor.u32 %v18286_v60, %v14124_v56  ;;  %v14270_v55 = vld [vmem:[#allocation12 + $0x858] sm:$0xf0]  ;;  %v20417_v56 = vld [vmem:[#allocation14 + $0x4] sm:$0xf] }
 0x338   : > { %5400 = vmatpush.bf16.msrb.mxu0 %v14541_v6  ;;  %v13886_v6 = vld [vmem:[#allocation12 + $0x558] sm:$0xf0]  ;;  %v14493_v7 = vor.u32 %v18378_v31, %v14492_v57  ;;  %v14700_v31 = vld [vmem:[#allocation12 + $0xba8] sm:$0xf]  ;;  %v18430_v60 = vld [vmem:[#allocation12 + $0xbb4] sm:$0xf0] }
 0x339   : > { %5360 = vmatpush.bf16.msra.mxu1 %v14173_v45  ;;  %v5108_v45 = vpop.f32.mrf.mxu1  ;;  %v13889_v46 = vor.u32 %v18224_v18, %v13886_v6  ;;  %v18316_v19 = vld [vmem:[#allocation12 + $0x82c] sm:$0xf] }
 0x33a   : > { %5481 = vmatpush.bf16.msra.mxu2 %v13729_v14  ;;  %5489 = vmatpush.bf16.msra.mxu3 %v13937_v52  ;;  %v14108_v14 = vld [vmem:[#allocation12 + $0x708] sm:$0xf]  ;;  %v18282_v52 = vld [vmem:[#allocation12 + $0x714] sm:$0xf0] }
 0x33c   : > { %5401 = vmatpush.bf16.msrb.mxu0 %v14525_v29  ;;  %v18220_v29 = vld [vmem:[#allocation12 + $0x52c] sm:$0xf]  ;;  %v5238_v18 = vpop.f32.mrf.mxu3 }
 0x33d   : > { %5361 = vmatpush.bf16.msra.mxu1 %v14157_v33  ;;  %5482 = vmatmul.bf16.vlgmr.msra.gmra.mxu2 %v20306_v59  ;;  %v5081_v59 = vadd.f32 %v20361_v58, %v5068_v40  ;;  %v14286_v58 = vld [vmem:[#allocation12 + $0x878] sm:$0xf0]  ;;  %v14109_v33 = vor.u32 %v18282_v52, %v14108_v14  ;;  %v13873_v61 = vor.u32 %v18220_v29, %v13870_v30  ;;  %v18372_v40 = vld [vmem:[#allocation12 + $0x9ec] sm:$0xf]  ;;  %v20423_v52 = vld [vmem:[#allocation14 + $0x8] sm:$0xf] }
 0x33e   : > { %5526 = vmatpush.bf16.msrb.mxu2 %v14353_v22  ;;  %5490 = vmatpush.bf16.msra.mxu3 %v13921_v41  ;;  %v13566_v22 = vld [vmem:[#allocation12 + $0x2d8] sm:$0xf0]  ;;  %v14733_v41 = vor.u32 %v18438_v10, %v14732_v16  ;;  %v14289_v50 = vor.u32 %v18324_v32, %v14286_v58  ;;  %v13537_v14 = vor.u32 %v18136_v62, %v13534_v0  ;;  %v18132_v16 = vld [vmem:[#allocation12 + $0x26c] sm:$0xf]  ;;  %v14684_v29 = vld [vmem:[#allocation12 + $0xb88] sm:$0xf] }
 0x33f   : > { %v5094_v38 = vadd.f32 %v20379_v21, %v5081_v59  ;;  %v13569_v35 = vor.u32 %v18144_v20, %v13566_v22  ;;  %v18320_v21 = vld [vmem:[#allocation12 + $0x84c] sm:$0xf]  ;;  %v13518_v20 = vld [vmem:[#allocation12 + $0x278] sm:$0xf0]  ;;  %v18426_v30 = vld [vmem:[#allocation12 + $0xb94] sm:$0xf0] }
 0x340   : > { %5402 = vmatpush.bf16.msrb.mxu0 %v14509_v51  ;;  %v18216_v51 = vld [vmem:[#allocation12 + $0x50c] sm:$0xf]  ;;  %v14273_v6 = vor.u32 %v18320_v21, %v14270_v55  ;;  %v20420_v45 = vpop.f32.mrf.mxu2  ;;  %v14652_v62 = vld [vmem:[#allocation12 + $0xb48] sm:$0xf]  ;;  %v18418_v0 = vld [vmem:[#allocation12 + $0xb54] sm:$0xf0] }
 0x341   : > { %5362 = vmatpush.bf16.msra.mxu1 %v14141_v34  ;;  %v5107_v44 = vadd.f32 %v20406_v8, %v5094_v38  ;;  %v14478_v34 = vld [vmem:[#allocation12 + $0x9f8] sm:$0xf0]  ;;  %v13857_v8 = vor.u32 %v18216_v51, %v13854_v54  ;;  %v18368_v59 = vld [vmem:[#allocation12 + $0x9cc] sm:$0xf]  ;;  %v14668_v51 = vld [vmem:[#allocation12 + $0xb68] sm:$0xf] }
 0x342   : > { %5527 = vmatpush.bf16.msrb.mxu2 %v14337_v43  ;;  %5491 = vmatpush.bf16.msra.mxu3 %v13905_v2  ;;  %v13550_v43 = vld [vmem:[#allocation12 + $0x2b8] sm:$0xf0]  ;;  %v14717_v2 = vor.u32 %v18434_v26, %v14716_v28  ;;  %v18312_v32 = vld [vmem:[#allocation12 + $0x80c] sm:$0xf]  ;;  %v13521_v28 = vor.u32 %v18132_v16, %v13518_v20  ;;  %v14685_v26 = vor.u32 %v18426_v30, %v14684_v29  ;;  %v18422_v54 = vld [vmem:[#allocation12 + $0xb74] sm:$0xf0] }
 0x343   : > { %v13553_v57 = vor.u32 %v18140_v42, %v13550_v43  ;;  %vm5578_vm6 = vcmp.gt.f32.partialorder %v5107_v44, 0.0  ;;  %v14238_v38 = vld [vmem:[#allocation12 + $0x818] sm:$0xf0]  ;;  %v18128_v42 = vld [vmem:[#allocation12 + $0x24c] sm:$0xf] }
 0x344   : > { %5403 = vmatpush.bf16.msrb.mxu0 %v14493_v7  ;;  %v14481_v7 = vor.u32 %v18372_v40, %v14478_v34  ;;  %v20425_v58 = vpop.f32.mrf.mxu0  ;;  %v13502_v43 = vld [vmem:[#allocation12 + $0x258] sm:$0xf0]  ;;  %v18360_v55 = vld [vmem:[#allocation12 + $0x98c] sm:$0xf]  ;;  %v14620_v30 = vld [vmem:[#allocation12 + $0xb08] sm:$0xf] }
 0x345   : > { %5363 = vmatpush.bf16.msra.mxu1 %v14125_v12  ;;  %v14462_v12 = vld [vmem:[#allocation12 + $0x9d8] sm:$0xf0]  ;;  %v18356_v18 = vld [vmem:[#allocation12 + $0x96c] sm:$0xf] }
 0x346   : > { %5528 = vmatpush.bf16.msrb.mxu2 %v14321_v17  ;;  %5492 = vmatpush.bf16.msra.mxu3 %v13889_v46  ;;  %v5582_v17 = vmul.f32 0.2, %v5107_v44  ;;  %v14701_v46 = vor.u32 %v18430_v60, %v14700_v31  ;;  %v14465_v10 = vor.u32 %v18368_v59, %v14462_v12  ;;  %v14430_v40 = vld [vmem:[#allocation12 + $0x998] sm:$0xf0]  ;;  %v14669_v31 = vor.u32 %v18422_v54, %v14668_v51  ;;  %v18120_v59 = vld [vmem:[#allocation12 + $0x20c] sm:$0xf] }
 0x347   : > { %5404 = vmatmul.bf16.vlgmr.msrb.gmra.mxu0 %v20330_v3  ;;  %v14433_v60 = vor.u32 %v18360_v55, %v14430_v40  ;;  %v13470_v12 = vld [vmem:[#allocation12 + $0x218] sm:$0xf0]  ;;  %v18352_v20 = vld [vmem:[#allocation12 + $0x94c] sm:$0xf] }
 0x348   : > { %5448 = vmatpush.bf16.msra.mxu0 %v13585_v13  ;;  %v5593_v13 = vperm.slane %v20417_v56, 0  ;;  %v5586_v22 = vsel %vm5578_vm6, %v5107_v44, %v5582_v17  ;;  %v14241_v44 = vor.u32 %v18312_v32, %v14238_v38  ;;  %v5277_v21 = vpop.f32.mrf.mxu2  ;;  %v14094_v16 = vld [vmem:[#allocation12 + $0x6f8] sm:$0xf0]  ;;  %v18410_v32 = vld [vmem:[#allocation12 + $0xb14] sm:$0xf0] }
 0x349   : > { %5364 = vmatpush.bf16.msra.mxu1 %v14109_v33  ;;  %v18364_v33 = vld [vmem:[#allocation12 + $0x9ac] sm:$0xf]  ;;  %v20429_v34 = vpop.f32.mrf.mxu1  ;;  %v14062_v21 = vld [vmem:[#allocation12 + $0x6b8] sm:$0xf0] }
 0x34a   : > { %5529 = vmatpush.bf16.msrb.mxu2 %v14305_v24  ;;  %5493 = vmatpush.bf16.msra.mxu3 %v13873_v61  ;;  %v14257_v24 = vor.u32 %v18316_v19, %v14254_v37  ;;  %v5608_v61 = vperm.slane %v20423_v52, 0  ;;  %v14653_v19 = vor.u32 %v18418_v0, %v14652_v62  ;;  %v14636_v37 = vld [vmem:[#allocation12 + $0xb28] sm:$0xf]  ;;  %v18268_v54 = vld [vmem:[#allocation12 + $0x6ac] sm:$0xf] }
 0x34b   : > { %v18176_v55 = vld [vmem:[#allocation12 + $0x3cc] sm:$0xf]  ;;  %v13694_v40 = vld [vmem:[#allocation12 + $0x3d8] sm:$0xf0] }
 0x34c   : > { %5449 = vmatpush.bf16.msra.mxu0 %v13569_v35  ;;  %5365 = vmatmul.bf16.vlgmr.msra.gmra.mxu1 %v20337_v4  ;;  %v14446_v35 = vld [vmem:[#allocation12 + $0x9b8] sm:$0xf0]  ;;  %v5199_v17 = vpop.f32.mrf.mxu0  ;;  %v18264_v62 = vld [vmem:[#allocation12 + $0x68c] sm:$0xf] }
 0x34d   : > { %5409 = vmatpush.bf16.msrb.mxu1 %v14733_v41  ;;  %v5601_v41 = vmul.f32 %v5593_v13, %v5586_v22  ;;  %v14398_v22 = vld [vmem:[#allocation12 + $0x958] sm:$0xf0]  ;;  %v3027_v17 = vperm.slane %v20382_v25, 1 }
 0x34e   : > { %5530 = vmatpush.bf16.msrb.mxu2 %v14289_v50  ;;  %5494 = vmatpush.bf16.msra.mxu3 %v13857_v8  ;;  %v14449_v50 = vor.u32 %v18364_v33, %v14446_v35  ;;  %v13486_v8 = vld [vmem:[#allocation12 + $0x238] sm:$0xf0]  ;;  %v14401_v38 = vor.u32 %v18352_v20, %v14398_v22  ;;  %v18180_v33 = vld [vmem:[#allocation12 + $0x3ec] sm:$0xf] }
 0x34f   : > { %v18272_v35 = vld [vmem:[#allocation12 + $0x6cc] sm:$0xf]  ;;  %v14046_v0 = vld [vmem:[#allocation12 + $0x698] sm:$0xf0] }
 0x350   : > { %5450 = vmatpush.bf16.msra.mxu0 %v13553_v57  ;;  %v20431_v57 = vadd.f32 %v5608_v61, %v5601_v41  ;;  %v13710_v61 = vld [vmem:[#allocation12 + $0x3f8] sm:$0xf0] }
 0x351   : > { %5410 = vmatpush.bf16.msrb.mxu1 %v14717_v2  ;;  %5495 = vmatmul.bf16.vlgmr.msra.gmra.mxu3 %v20314_v5  ;;  %v13505_v5 = vor.u32 %v18128_v42, %v13502_v43  ;;  %v18124_v2 = vld [vmem:[#allocation12 + $0x22c] sm:$0xf]  ;;  %v14382_v42 = vld [vmem:[#allocation12 + $0x938] sm:$0xf0]  ;;  %v14621_v43 = vor.u32 %v18410_v32, %v14620_v30 }
 0x352   : > { %5531 = vmatpush.bf16.msrb.mxu2 %v14273_v6  ;;  %5539 = vmatpush.bf16.msrb.mxu3 %v14481_v7  ;;  %v14414_v6 = vld [vmem:[#allocation12 + $0x978] sm:$0xf0]  ;;  %v13489_v7 = vor.u32 %v18124_v2, %v13486_v8  ;;  %v14065_v2 = vor.u32 %v18268_v54, %v14062_v21  ;;  %v20441_v8 = vld [vmem:[#allocation15] sm:$0x3] }
 0x353   : > { %v14417_v13 = vor.u32 %v18356_v18, %v14414_v6  ;;  %v14030_v25 = vld [vmem:[#allocation12 + $0x678] sm:$0xf0] }
 0x354   : > { %5451 = vmatpush.bf16.msra.mxu0 %v13537_v14  ;;  %v18414_v14 = vld [vmem:[#allocation12 + $0xb34] sm:$0xf0]  ;;  %v20438_v41 = vpop.f32.mrf.mxu3  ;;  %v13646_v30 = vld [vmem:[#allocation12 + $0x378] sm:$0xf0] }
 0x355   : > { %5411 = vmatpush.bf16.msrb.mxu1 %v14701_v46  ;;  %v18276_v46 = vld [vmem:[#allocation12 + $0x6ec] sm:$0xf]  ;;  %v14637_v29 = vor.u32 %v18414_v14, %v14636_v37  ;;  %v14049_v37 = vor.u32 %v18264_v62, %v14046_v0  ;;  %v13614_v21 = vld [vmem:[#allocation12 + $0x338] sm:$0xf0] }
 0x356   : > { %5532 = vmatpush.bf16.msrb.mxu2 %v14257_v24  ;;  %5540 = vmatpush.bf16.msrb.mxu3 %v14465_v10  ;;  %v5160_v24 = vpop.f32.mrf.mxu1  ;;  %v13473_v10 = vor.u32 %v18120_v59, %v13470_v12  ;;  %v18260_v12 = vld [vmem:[#allocation12 + $0x66c] sm:$0xf]  ;;  %v13598_v0 = vld [vmem:[#allocation12 + $0x318] sm:$0xf0] }
 0x357   : > { %v18168_v14 = vld [vmem:[#allocation12 + $0x38c] sm:$0xf]  ;;  %v14033_v20 = vor.u32 %v18260_v12, %v14030_v25 }
 0x358   : > { %5452 = vmatpush.bf16.msra.mxu0 %v13521_v28  ;;  %v14078_v28 = vld [vmem:[#allocation12 + $0x6d8] sm:$0xf0]  ;;  %v18256_v24 = vld [vmem:[#allocation12 + $0x64c] sm:$0xf] }
 0x359   : > { %5412 = vmatpush.bf16.msrb.mxu1 %v14685_v26  ;;  %v18348_v26 = vld [vmem:[#allocation12 + $0x92c] sm:$0xf] }
 0x35a   : > { %5533 = vmatpush.bf16.msrb.mxu2 %v14241_v44  ;;  %5541 = vmatpush.bf16.msrb.mxu3 %v14449_v50  ;;  %v14081_v44 = vor.u32 %v18272_v35, %v14078_v28  ;;  %v13713_v50 = vor.u32 %v18180_v33, %v13710_v61  ;;  %v14385_v51 = vor.u32 %v18348_v26, %v14382_v42  ;;  %v18252_v35 = vld [vmem:[#allocation12 + $0x62c] sm:$0xf]  ;;  %v13998_v28 = vld [vmem:[#allocation12 + $0x638] sm:$0xf0] }
 0x35b   : > { %v18160_v26 = vld [vmem:[#allocation12 + $0x34c] sm:$0xf]  ;;  %v13630_v42 = vld [vmem:[#allocation12 + $0x358] sm:$0xf0] }
 0x35c   : > { %5453 = vmatpush.bf16.msra.mxu0 %v13505_v5  ;;  %v18344_v5 = vld [vmem:[#allocation12 + $0x90c] sm:$0xf]  ;;  %v5290_v18 = vpop.f32.mrf.mxu3 }
 0x35d   : > { %5413 = vmatpush.bf16.msrb.mxu1 %v14669_v31  ;;  %5534 = vmatmul.bf16.vlgmr.msrb.gmra.mxu2 %v20312_v48  ;;  %v14097_v48 = vor.u32 %v18276_v46, %v14094_v16  ;;  %v14366_v31 = vld [vmem:[#allocation12 + $0x918] sm:$0xf0]  ;;  %v18396_v25 = vld [vmem:[#allocation12 + $0xaac] sm:$0xf] }
 0x35e   : > { %14738 = vmatpush.msk.msra.mxu2 %vm5625_vm7, %v20431_v57  ;;  %5542 = vmatpush.bf16.msrb.mxu3 %v14433_v60  ;;  %v13697_v60 = vor.u32 %v18176_v55, %v13694_v40  ;;  %v14369_v6 = vor.u32 %v18344_v5, %v14366_v31  ;;  %v13662_v46 = vld [vmem:[#allocation12 + $0x398] sm:$0xf0]  ;;  %v18404_v55 = vld [vmem:[#allocation12 + $0xaec] sm:$0xf] }
 0x35f   : > { %v13665_v22 = vor.u32 %v18168_v14, %v13662_v46  ;;  %v14606_v40 = vld [vmem:[#allocation12 + $0xaf8] sm:$0xf0] }
 0x360   : > { %14746 = vmatpush.msk.msrb.mxu2 %vm5625_vm7, %v20431_v57  ;;  %5454 = vmatpush.bf16.msra.mxu0 %v13489_v7  ;;  %v13678_v7 = vld [vmem:[#allocation12 + $0x3b8] sm:$0xf0] }
 0x361   : > { %5414 = vmatpush.bf16.msrb.mxu1 %v14653_v19  ;;  %v20445_v19 = vpop.f32.mrf.mxu2  ;;  %v14590_v18 = vld [vmem:[#allocation12 + $0xad8] sm:$0xf0] }
 0x362   : > { %5543 = vmatpush.bf16.msrb.mxu3 %v14417_v13  ;;  %v5120_v13 = vadd.f32 %v20364_v36, %v3027_v17  ;;  %v18400_v17 = vld [vmem:[#allocation12 + $0xacc] sm:$0xf]  ;;  %v14206_v14 = vld [vmem:[#allocation12 + $0x7d8] sm:$0xf0] }
 0x364   : > { %5455 = vmatpush.bf16.msra.mxu0 %v13473_v10  ;;  %v20452_v16 = vpop.f32.mrf.mxu0  ;;  %v14014_v10 = vld [vmem:[#allocation12 + $0x658] sm:$0xf0] }
 0x365   : > { %5415 = vmatpush.bf16.msrb.mxu1 %v14637_v29  ;;  %v20455_v29 = vld [vmem:[#allocation15 + $0x2] sm:$0x3]  ;;  %v14017_v33 = vor.u32 %v18256_v24, %v14014_v10  ;;  %v14558_v10 = vld [vmem:[#allocation12 + $0xa98] sm:$0xf0] }
 0x366   : > { %5544 = vmatpush.bf16.msrb.mxu3 %v14401_v38  ;;  %v18392_v24 = vld [vmem:[#allocation12 + $0xa8c] sm:$0xf] }
 0x367   : > { %5456 = vmatmul.bf16.vlgmr.msra.gmra.mxu0 %v20322_v11  ;;  %v18172_v11 = vld [vmem:[#allocation12 + $0x3ac] sm:$0xf] }
 0x368   : > { %5500 = vmatpush.bf16.msrb.mxu0 %v14097_v48  ;;  %v13681_v59 = vor.u32 %v18172_v11, %v13678_v7  ;;  %v18164_v48 = vld [vmem:[#allocation12 + $0x36c] sm:$0xf]  ;;  %v14222_v7 = vld [vmem:[#allocation12 + $0x7f8] sm:$0xf0] }
 0x369   : > { %5416 = vmatpush.bf16.msrb.mxu1 %v14621_v43  ;;  %v5329_v36 = vpop.f32.mrf.mxu2  ;;  %v5210_v38 = vpop.f32.mrf.mxu1  ;;  %v14001_v43 = vor.u32 %v18252_v35, %v13998_v28  ;;  %v18308_v11 = vld [vmem:[#allocation12 + $0x7ec] sm:$0xf]  ;;  %v14174_v28 = vld [vmem:[#allocation12 + $0x798] sm:$0xf0] }
 0x36a   : > { %5545 = vmatpush.bf16.msrb.mxu3 %v14385_v51  ;;  %v13982_v51 = vld [vmem:[#allocation12 + $0x618] sm:$0xf0]  ;;  %v14225_v12 = vor.u32 %v18308_v11, %v14222_v7  ;;  %v20468_v36 = vld [vmem:[#allocation15 + $0x4] sm:$0x3]  ;;  %v18296_v35 = vld [vmem:[#allocation12 + $0x78c] sm:$0xf] }
 0x36b   : > { %v18376_v11 = vld [vmem:[#allocation12 + $0xa0c] sm:$0xf]  ;;  %v14494_v7 = vld [vmem:[#allocation12 + $0xa18] sm:$0xf0] }
 0x36c   : > { %5501 = vmatpush.bf16.msrb.mxu0 %v14081_v44  ;;  %5417 = vmatmul.bf16.vlgmr.msrb.gmra.mxu1 %v20342_v9  ;;  %v13633_v44 = vor.u32 %v18160_v26, %v13630_v42  ;;  %v18384_v42 = vld [vmem:[#allocation12 + $0xa4c] sm:$0xf] }
 0x36d   : > { %5461 = vmatpush.bf16.msra.mxu1 %v13713_v50  ;;  %14739 = vmatmul.msk.f32.vlgmr.msra.gmra.mxu2 %vm5621_vm8, %v20441_v8  ;;  %v18248_v50 = vld [vmem:[#allocation12 + $0x60c] sm:$0xf] }
 0x36e   : > { %14754 = vmatpush.msk.msra.mxu2 %vm5625_vm7, %v20431_v57  ;;  %5546 = vmatpush.bf16.msrb.mxu3 %v14369_v6  ;;  %v5133_v57 = vadd.f32 %v20373_v1, %v5120_v13  ;;  %v5251_v1 = vpop.f32.mrf.mxu0  ;;  %v13985_v31 = vor.u32 %v18248_v50, %v13982_v51  ;;  %v14574_v13 = vld [vmem:[#allocation12 + $0xab8] sm:$0xf0] }
 0x36f   : > { %v14526_v1 = vld [vmem:[#allocation12 + $0xa58] sm:$0xf0] }
 0x370   : > { %5502 = vmatpush.bf16.msrb.mxu0 %v14065_v2  ;;  %v5146_v32 = vadd.f32 %v20402_v63, %v5133_v57  ;;  %v18156_v63 = vld [vmem:[#allocation12 + $0x32c] sm:$0xf]  ;;  %v14609_v2 = vor.u32 %v18404_v55, %v14606_v40 }
 0x371   : > { %5462 = vmatpush.bf16.msra.mxu1 %v13697_v60  ;;  %5547 = vmatmul.bf16.vlgmr.msrb.gmra.mxu3 %v20318_v47  ;;  %v13649_v47 = vor.u32 %v18164_v48, %v13646_v30  ;;  %v5212_v5 = vpop.f32.mrf.mxu1  ;;  %v18152_v60 = vld [vmem:[#allocation12 + $0x30c] sm:$0xf]  ;;  %v14190_v30 = vld [vmem:[#allocation12 + $0x7b8] sm:$0xf0] }
 0x372   : > { %v5159_v61 = vadd.f32 %v20429_v34, %v5146_v32  ;;  %v13617_v34 = vor.u32 %v18156_v63, %v13614_v21  ;;  %v18300_v48 = vld [vmem:[#allocation12 + $0x7ac] sm:$0xf]  ;;  %v14561_v32 = vor.u32 %v18392_v24, %v14558_v10  ;;  %v14510_v5 = vld [vmem:[#allocation12 + $0xa38] sm:$0xf0]  ;;  %v14860_v24 = vld [vmem:[#allocation17 + $0xc0] sm:$0xf] }
 0x373   : > { %v18380_v40 = vld [vmem:[#allocation12 + $0xa2c] sm:$0xf]  ;;  %v18465_v10 = vld [vmem:[#allocation17 + $0xcc] sm:$0xf0] }
 0x374   : > { %5503 = vmatpush.bf16.msrb.mxu0 %v14049_v37  ;;  %v5172_v54 = vadd.f32 %v20376_v39, %v5159_v61  ;;  %v20464_v6 = vpop.f32.mrf.mxu3  ;;  %v13601_v39 = vor.u32 %v18152_v60, %v13598_v0  ;;  %v14593_v37 = vor.u32 %v18400_v17, %v14590_v18  ;;  %v18284_v18 = vld [vmem:[#allocation12 + $0x72c] sm:$0xf] }
 0x375   : > { %5463 = vmatpush.bf16.msra.mxu1 %v13681_v59  ;;  %14747 = vmatmul.msk.f32.vlgmr.msrb.gmra.mxu2 %vm5621_vm8, %v20455_v29 }
 0x376   : > { %v5185_v62 = vadd.f32 %v20390_v53, %v5172_v54  ;;  %v18304_v53 = vld [vmem:[#allocation12 + $0x7cc] sm:$0xf]  ;;  %v14529_v54 = vor.u32 %v18384_v42, %v14526_v1 }
 0x378   : > { %5504 = vmatpush.bf16.msrb.mxu0 %v14033_v20  ;;  %v5198_v59 = vadd.f32 %v20425_v58, %v5185_v62  ;;  %v14577_v20 = vor.u32 %v18396_v25, %v14574_v13  ;;  %v5609_v62 = vperm.slane %v20423_v52, 1 }
 0x379   : > { %5464 = vmatpush.bf16.msra.mxu1 %v13665_v22  ;;  %v14209_v22 = vor.u32 %v18304_v53, %v14206_v14  ;;  %v14497_v14 = vor.u32 %v18376_v11, %v14494_v7  ;;  %v18416_v7 = vld [vmem:[#allocation12 + $0xb4c] sm:$0xf] }
 0x37a   : > { %v5211_v46 = vadd.f32 %v5210_v38, %v5198_v59  ;;  %v14193_v38 = vor.u32 %v18300_v48, %v14190_v30  ;;  %v14876_v59 = vld [vmem:[#allocation17 + $0xe0] sm:$0xf]  ;;  %v18436_v48 = vld [vmem:[#allocation12 + $0xbec] sm:$0xf]  ;;  %v14734_v30 = vld [vmem:[#allocation12 + $0xbf8] sm:$0xf0] }
 0x37c   : > { %5505 = vmatpush.bf16.msrb.mxu0 %v14017_v33  ;;  %v5342_v57 = vpop.f32.mrf.mxu3  ;;  %v5224_v58 = vadd.f32 %v20399_v49, %v5211_v46  ;;  %v18388_v33 = vld [vmem:[#allocation12 + $0xa6c] sm:$0xf] }
 0x37d   : > { %5465 = vmatpush.bf16.msra.mxu1 %v13649_v47  ;;  %14755 = vmatmul.msk.f32.vlgmr.msra.gmra.mxu2 %vm5621_vm8, %v20468_v36  ;;  %v14542_v47 = vld [vmem:[#allocation12 + $0xa78] sm:$0xf0] }
 0x37e   : > { %v5237_v26 = vadd.f32 %v20412_v23, %v5224_v58  ;;  %v14545_v49 = vor.u32 %v18388_v33, %v14542_v47  ;;  %v5594_v23 = vperm.slane %v20417_v56, 1  ;;  %v14861_v58 = vor.u32 %v18465_v10, %v14860_v24  ;;  %v18432_v33 = vld [vmem:[#allocation12 + $0xbcc] sm:$0xf]  ;;  %v14718_v47 = vld [vmem:[#allocation12 + $0xbd8] sm:$0xf0] }
 0x37f   : > { %v14721_v42 = vor.u32 %v18432_v33, %v14718_v47  ;;  %v15372_v10 = vld [vmem:[#allocation17 + $0x4c0] sm:$0xf] }
 0x380   : > { %5506 = vmatpush.bf16.msrb.mxu0 %v14001_v43  ;;  %v18292_v43 = vld [vmem:[#allocation12 + $0x76c] sm:$0xf]  ;;  %v5250_v63 = vadd.f32 %v20452_v16, %v5237_v26  ;;  %v14513_v16 = vor.u32 %v18380_v40, %v14510_v5  ;;  %v14686_v40 = vld [vmem:[#allocation12 + $0xb98] sm:$0xf0]  ;;  %v15356_v47 = vld [vmem:[#allocation17 + $0x4a0] sm:$0xf] }
 0x381   : > { %5466 = vmatpush.bf16.msra.mxu1 %v13633_v44  ;;  %v14158_v44 = vld [vmem:[#allocation12 + $0x778] sm:$0xf0] }
 0x382   : > { %v14161_v55 = vor.u32 %v18292_v43, %v14158_v44  ;;  %v18428_v44 = vld [vmem:[#allocation12 + $0xbac] sm:$0xf] }
 0x384   : > { %5507 = vmatpush.bf16.msrb.mxu0 %v13985_v31  ;;  %v20476_v61 = vpop.f32.mrf.mxu0  ;;  %v18288_v31 = vld [vmem:[#allocation12 + $0x74c] sm:$0xf] }
 0x385   : > { %5467 = vmatpush.bf16.msra.mxu1 %v13617_v34  ;;  %v14142_v34 = vld [vmem:[#allocation12 + $0x758] sm:$0xf0] }
 0x386   : > { %v14145_v17 = vor.u32 %v18288_v31, %v14142_v34  ;;  %v18420_v31 = vld [vmem:[#allocation12 + $0xb6c] sm:$0xf]  ;;  %v14670_v34 = vld [vmem:[#allocation12 + $0xb78] sm:$0xf0] }
 0x387   : > { %5508 = vmatmul.bf16.vlgmr.msrb.gmra.mxu0 %v20326_v27  ;;  %v20472_v27 = vpop.f32.mrf.mxu2 }
 0x388   : > { %5552 = vmatpush.bf16.msra.mxu0 %v14609_v2 }
 0x389   : > { %5468 = vmatpush.bf16.msra.mxu1 %v13601_v39  ;;  %v5262_v51 = vpop.f32.mrf.mxu1 }
 0x38a   : > { %v5263_v21 = vadd.f32 %v5262_v51, %v5250_v63  ;;  %v14702_v63 = vld [vmem:[#allocation12 + $0xbb8] sm:$0xf0]  ;;  %v18453_v51 = vld [vmem:[#allocation17 + $0x6c] sm:$0xf0] }
 0x38c   : > { %5553 = vmatpush.bf16.msra.mxu0 %v14593_v37  ;;  %5469 = vmatmul.bf16.vlgmr.msra.gmra.mxu1 %v20332_v15  ;;  %v14177_v15 = vor.u32 %v18296_v35, %v14174_v28  ;;  %vm5579_vm9 = vcmp.gt.f32.partialorder %v5263_v21, 0.0  ;;  %v5583_v2 = vmul.f32 0.2, %v5263_v21  ;;  %v5303_v60 = vpop.f32.mrf.mxu0  ;;  %v14126_v37 = vld [vmem:[#allocation12 + $0x738] sm:$0xf0] }
 0x38d   : > { %5513 = vmatpush.bf16.msrb.mxu1 %v14225_v12  ;;  %v18469_v12 = vld [vmem:[#allocation17 + $0xec] sm:$0xf0]  ;;  %v14129_v46 = vor.u32 %v18284_v18, %v14126_v37  ;;  %v14844_v35 = vld [vmem:[#allocation17 + $0xa0] sm:$0xf]  ;;  %v14673_v18 = vor.u32 %v18420_v31, %v14670_v34 }
 0x38e   : > { %v5587_v0 = vsel %vm5579_vm9, %v5263_v21, %v5583_v2  ;;  %v14877_v25 = vor.u32 %v18469_v12, %v14876_v59  ;;  %v18461_v28 = vld [vmem:[#allocation17 + $0xac] sm:$0xf0]  ;;  %v14796_v2 = vld [vmem:[#allocation17 + $0x40] sm:$0xf] }
 0x38f   : > { %v5381_v50 = vpop.f32.mrf.mxu2  ;;  %v5602_v39 = vmul.f32 %v5594_v23, %v5587_v0  ;;  %v14845_v26 = vor.u32 %v18461_v28, %v14844_v35  ;;  %v18449_v60 = vld [vmem:[#allocation17 + $0x4c] sm:$0xf0]  ;;  %v14780_v0 = vld [vmem:[#allocation17 + $0x20] sm:$0xf] }
 0x390   : > { %5554 = vmatpush.bf16.msra.mxu0 %v14577_v20  ;;  %v18280_v20 = vld [vmem:[#allocation12 + $0x70c] sm:$0xf]  ;;  %8214 = vmatpush.bf16.msrb.mxu2 %v14877_v25  ;;  %v14812_v50 = vld [vmem:[#allocation17 + $0x60] sm:$0xf]  ;;  %v18441_v25 = vld [vmem:[#allocation17 + $0xc] sm:$0xf0] }
 0x391   : > { %5514 = vmatpush.bf16.msrb.mxu1 %v14209_v22  ;;  %v5617_v13 = vadd.f32 %v5609_v62, %v5602_v39  ;;  %v5264_v53 = vpop.f32.mrf.mxu1  ;;  %v14110_v22 = vld [vmem:[#allocation12 + $0x718] sm:$0xf0]  ;;  %v14813_v21 = vor.u32 %v18453_v51, %v14812_v50  ;;  %v14797_v62 = vor.u32 %v18449_v60, %v14796_v2  ;;  %v14764_v12 = vld [vmem:[#allocation17] sm:$0xf]  ;;  %v18589_v35 = vld [vmem:[#allocation17 + $0x4ac] sm:$0xf0] }
 0x392   : > { %v14654_v39 = vld [vmem:[#allocation12 + $0xb58] sm:$0xf0]  ;;  %v18412_v53 = vld [vmem:[#allocation12 + $0xb2c] sm:$0xf]  ;;  %v15324_v50 = vld [vmem:[#allocation17 + $0x460] sm:$0xf] }
 0x393   : > { %14740 = vmatpush.msk.msra.mxu3 %vm5625_vm7, %v5617_v13  ;;  %v14657_v59 = vor.u32 %v18416_v7, %v14654_v39  ;;  %v18581_v51 = vld [vmem:[#allocation17 + $0x46c] sm:$0xf0]  ;;  %v15308_v34 = vld [vmem:[#allocation17 + $0x440] sm:$0xf] }
 0x394   : > { %5555 = vmatpush.bf16.msra.mxu0 %v14561_v32  ;;  %14741 = vmatmul.msk.f32.vlgmr.msra.gmra.mxu3 %vm5621_vm8, %v20441_v8  ;;  %v20485_v57 = vpop.f32.mrf.mxu3  ;;  %v14113_v32 = vor.u32 %v18280_v20, %v14110_v22  ;;  %v18597_v20 = vld [vmem:[#allocation17 + $0x4ec] sm:$0xf0] }
 0x395   : > { %5515 = vmatpush.bf16.msrb.mxu1 %v14193_v38  ;;  %14748 = vmatpush.msk.msrb.mxu3 %vm5625_vm7, %v5617_v13  ;;  %v14737_v38 = vor.u32 %v18436_v48, %v14734_v30  ;;  %v18593_v48 = vld [vmem:[#allocation17 + $0x4cc] sm:$0xf0] }
 0x396   : > { %8215 = vmatpush.bf16.msrb.mxu2 %v14861_v58  ;;  %v18408_v58 = vld [vmem:[#allocation12 + $0xb0c] sm:$0xf]  ;;  %v18577_v2 = vld [vmem:[#allocation17 + $0x44c] sm:$0xf0] }
 0x397   : > { %14756 = vmatpush.msk.msra.mxu3 %vm5625_vm7, %v5617_v13  ;;  %v15388_v13 = vld [vmem:[#allocation17 + $0x4e0] sm:$0xf]  ;;  %v18573_v39 = vld [vmem:[#allocation17 + $0x42c] sm:$0xf0] }
 0x398   : > { %5556 = vmatpush.bf16.msra.mxu0 %v14545_v49  ;;  %v14828_v49 = vld [vmem:[#allocation17 + $0x80] sm:$0xf]  ;;  %v15389_v22 = vor.u32 %v18597_v20, %v15388_v13  ;;  %v18489_v20 = vld [vmem:[#allocation17 + $0x18c] sm:$0xf0] }
 0x399   : > { %5516 = vmatpush.bf16.msrb.mxu1 %v14177_v15  ;;  %v18457_v15 = vld [vmem:[#allocation17 + $0x8c] sm:$0xf0] }
 0x39a   : > { %8216 = vmatpush.bf16.msrb.mxu2 %v14845_v26  ;;  %v14829_v1 = vor.u32 %v18457_v15, %v14828_v49  ;;  %v15357_v26 = vor.u32 %v18589_v35, %v15356_v47  ;;  %v15340_v49 = vld [vmem:[#allocation17 + $0x480] sm:$0xf]  ;;  %v18585_v15 = vld [vmem:[#allocation17 + $0x48c] sm:$0xf0] }
 0x39c   : > { %5557 = vmatpush.bf16.msra.mxu0 %v14529_v54  ;;  %v5394_v43 = vpop.f32.mrf.mxu3  ;;  %14749 = vmatmul.msk.f32.vlgmr.msrb.gmra.mxu3 %vm5621_vm8, %v20455_v29  ;;  %v14705_v54 = vor.u32 %v18428_v44, %v14702_v63  ;;  %v20506_v44 = vld [vmem:[#allocation14] sm:$0xf] }
 0x39d   : > { %5517 = vmatpush.bf16.msrb.mxu1 %v14161_v55  ;;  %v18424_v55 = vld [vmem:[#allocation12 + $0xb8c] sm:$0xf]  ;;  %v3028_v63 = vperm.slane %v20506_v44, 2 }
 0x39e   : > { %8217 = vmatpush.bf16.msrb.mxu2 %v14829_v1  ;;  %v14689_v23 = vor.u32 %v18424_v55, %v14686_v40  ;;  %v15004_v55 = vld [vmem:[#allocation17 + $0x1e0] sm:$0xf]  ;;  %v18501_v40 = vld [vmem:[#allocation17 + $0x1ec] sm:$0xf0] }
 0x39f   : > { %v15005_v31 = vor.u32 %v18501_v40, %v15004_v55  ;;  %v18629_v55 = vld [vmem:[#allocation17 + $0x5ec] sm:$0xf0] }
 0x3a0   : > { %5558 = vmatpush.bf16.msra.mxu0 %v14513_v16 }
 0x3a1   : > { %5518 = vmatpush.bf16.msrb.mxu1 %v14145_v17  ;;  %v18445_v17 = vld [vmem:[#allocation17 + $0x2c] sm:$0xf0]  ;;  %8227 = vmatpush.bf16.msrb.mxu3 %v15005_v31 }
 0x3a2   : > { %8218 = vmatpush.bf16.msrb.mxu2 %v14813_v21  ;;  %v14781_v11 = vor.u32 %v18445_v17, %v14780_v0  ;;  %v18497_v0 = vld [vmem:[#allocation17 + $0x1cc] sm:$0xf0] }
 0x3a4   : > { %5559 = vmatpush.bf16.msra.mxu0 %v14497_v14  ;;  %v20495_v5 = vpop.f32.mrf.mxu0  ;;  %14757 = vmatmul.msk.f32.vlgmr.msra.gmra.mxu3 %vm5621_vm8, %v20468_v36  ;;  %v14638_v14 = vld [vmem:[#allocation12 + $0xb38] sm:$0xf0] }
 0x3a5   : > { %5519 = vmatpush.bf16.msrb.mxu1 %v14129_v46  ;;  %v14765_v46 = vor.u32 %v18441_v25, %v14764_v12  ;;  %v14641_v30 = vor.u32 %v18412_v53, %v14638_v14  ;;  %v18493_v12 = vld [vmem:[#allocation17 + $0x1ac] sm:$0xf0]  ;;  %v15276_v53 = vld [vmem:[#allocation17 + $0x400] sm:$0xf] }
 0x3a6   : > { %8219 = vmatpush.bf16.msrb.mxu2 %v14797_v62  ;;  %v14988_v62 = vld [vmem:[#allocation17 + $0x1c0] sm:$0xf]  ;;  %v18569_v14 = vld [vmem:[#allocation17 + $0x40c] sm:$0xf0] }
 0x3a7   : > { %5560 = vmatmul.bf16.vlgmr.msra.gmra.mxu0 %v20330_v3  ;;  %v20493_v3 = vpop.f32.mrf.mxu2 }
 0x3a9   : > { %5520 = vmatpush.bf16.msrb.mxu1 %v14113_v32  ;;  %v20499_v16 = vpop.f32.mrf.mxu1  ;;  %v14622_v32 = vld [vmem:[#allocation12 + $0xb18] sm:$0xf0] }
 0x3aa   : > { %8220 = vmatpush.bf16.msrb.mxu2 %v14781_v11  ;;  %v14625_v28 = vor.u32 %v18408_v58, %v14622_v32  ;;  %v14989_v11 = vor.u32 %v18497_v0, %v14988_v62  ;;  %v14924_v32 = vld [vmem:[#allocation17 + $0x140] sm:$0xf] }
 0x3ac   : > { %5521 = vmatmul.bf16.vlgmr.msrb.gmra.mxu1 %v20337_v4  ;;  %v5355_v37 = vpop.f32.mrf.mxu0  ;;  %8228 = vmatpush.bf16.msrb.mxu3 %v14989_v11  ;;  %v18725_v11 = vld [vmem:[#allocation17 + $0x8ec] sm:$0xf0] }
 0x3ad   : > { %5565 = vmatpush.bf16.msra.mxu1 %v14737_v38  ;;  %v15373_v38 = vor.u32 %v18593_v48, %v15372_v10  ;;  %v14940_v10 = vld [vmem:[#allocation17 + $0x160] sm:$0xf]  ;;  %v18485_v48 = vld [vmem:[#allocation17 + $0x16c] sm:$0xf0] }
 0x3ae   : > { %8221 = vmatpush.bf16.msrb.mxu2 %v14765_v46  ;;  %v14956_v46 = vld [vmem:[#allocation17 + $0x180] sm:$0xf]  ;;  %v14941_v58 = vor.u32 %v18485_v48, %v14940_v10 }
 0x3af   : > { %v5433_v4 = vpop.f32.mrf.mxu2  ;;  %v15436_v48 = vld [vmem:[#allocation17 + $0x540] sm:$0xf] }
 0x3b0   : > { %v15309_v4 = vor.u32 %v18577_v2, %v15308_v34 }
 0x3b1   : > { %5566 = vmatpush.bf16.msra.mxu1 %v14721_v42  ;;  %v5316_v24 = vpop.f32.mrf.mxu1  ;;  %v15341_v42 = vor.u32 %v18585_v15, %v15340_v49 }
 0x3b2   : > { %8266 = vmatpush.bf16.msra.mxu2 %v15389_v22  ;;  %v14957_v24 = vor.u32 %v18489_v20, %v14956_v46  ;;  %v18613_v46 = vld [vmem:[#allocation17 + $0x56c] sm:$0xf0] }
 0x3b4   : > { %v20501_v33 = vpop.f32.mrf.mxu3 }
 0x3b5   : > { %5567 = vmatpush.bf16.msra.mxu1 %v14705_v54  ;;  %v15325_v54 = vor.u32 %v18581_v51, %v15324_v50 }
 0x3b6   : > { %8267 = vmatpush.bf16.msra.mxu2 %v15373_v38  ;;  %v18481_v38 = vld [vmem:[#allocation17 + $0x14c] sm:$0xf0] }
 0x3b7   : > { %v14925_v47 = vor.u32 %v18481_v38, %v14924_v32  ;;  %v15852_v38 = vld [vmem:[#allocation17 + $0x880] sm:$0xf] }
 0x3b9   : > { %5568 = vmatpush.bf16.msra.mxu1 %v14689_v23  ;;  %v5276_v23 = vadd.f32 %v20420_v45, %v3028_v63  ;;  %v15292_v45 = vld [vmem:[#allocation17 + $0x420] sm:$0xf]  ;;  %v18473_v63 = vld [vmem:[#allocation17 + $0x10c] sm:$0xf0] }
 0x3ba   : > { %8268 = vmatpush.bf16.msra.mxu2 %v15357_v26  ;;  %v18477_v26 = vld [vmem:[#allocation17 + $0x12c] sm:$0xf0] }
 0x3bc   : > { %v5446_v1 = vpop.f32.mrf.mxu3 }
 0x3bd   : > { %5569 = vmatpush.bf16.msra.mxu1 %v14673_v18  ;;  %v14892_v1 = vld [vmem:[#allocation17 + $0x100] sm:$0xf] }
 0x3be   : > { %8269 = vmatpush.bf16.msra.mxu2 %v15341_v42  ;;  %v14893_v50 = vor.u32 %v18473_v63, %v14892_v1 }
 0x3c0   : > { %v20504_v43 = vpop.f32.mrf.mxu2 }
 0x3c1   : > { %5570 = vmatpush.bf16.msra.mxu1 %v14657_v59  ;;  %v15293_v59 = vor.u32 %v18573_v39, %v15292_v45 }
 0x3c2   : > { %8270 = vmatpush.bf16.msra.mxu2 %v15325_v54  ;;  %v15516_v54 = vld [vmem:[#allocation17 + $0x5e0] sm:$0xf] }
 0x3c3   : > { %v15517_v40 = vor.u32 %v18629_v55, %v15516_v54  ;;  %v18601_v54 = vld [vmem:[#allocation17 + $0x50c] sm:$0xf0] }
 0x3c4   : > { %v20509_v21 = vpop.f32.mrf.mxu0 }
 0x3c5   : > { %5571 = vmatpush.bf16.msra.mxu1 %v14641_v30 }
 0x3c6   : > { %8271 = vmatpush.bf16.msra.mxu2 %v15309_v4  ;;  %v5595_v4 = vperm.slane %v20417_v56, 2 }
 0x3c8   : > { %v5485_v60 = vpop.f32.mrf.mxu2 }
 0x3c9   : > { %5572 = vmatpush.bf16.msra.mxu1 %v14625_v28  ;;  %v5366_v18 = vpop.f32.mrf.mxu1  ;;  %v14908_v28 = vld [vmem:[#allocation17 + $0x120] sm:$0xf] }
 0x3ca   : > { %8272 = vmatpush.bf16.msra.mxu2 %v15293_v59  ;;  %v14909_v49 = vor.u32 %v18477_v26, %v14908_v28 }
 0x3cc   : > { %5573 = vmatmul.bf16.vlgmr.msra.gmra.mxu1 %v20342_v9  ;;  %v5289_v9 = vadd.f32 %v20438_v41, %v5276_v23  ;;  %v5407_v37 = vpop.f32.mrf.mxu0  ;;  %v14972_v41 = vld [vmem:[#allocation17 + $0x1a0] sm:$0xf] }
 0x3cd   : > { %v14973_v25 = vor.u32 %v18493_v12, %v14972_v41  ;;  %v15468_v41 = vld [vmem:[#allocation17 + $0x580] sm:$0xf]  ;;  %v18617_v12 = vld [vmem:[#allocation17 + $0x58c] sm:$0xf0] }
 0x3ce   : > { %v5302_v17 = vadd.f32 %v20476_v61, %v5289_v9  ;;  %v15277_v61 = vor.u32 %v18569_v14, %v15276_v53  ;;  %v15500_v9 = vld [vmem:[#allocation17 + $0x5c0] sm:$0xf]  ;;  %v18721_v14 = vld [vmem:[#allocation17 + $0x8cc] sm:$0xf0] }
 0x3cf   : > { %8229 = vmatpush.bf16.msrb.mxu3 %v14973_v25  ;;  %v15884_v53 = vld [vmem:[#allocation17 + $0x8c0] sm:$0xf] }
 0x3d0   : > { %v5315_v7 = vadd.f32 %v20499_v16, %v5302_v17  ;;  %8273 = vmatpush.bf16.msra.mxu2 %v15277_v61  ;;  %v15484_v17 = vld [vmem:[#allocation17 + $0x5a0] sm:$0xf]  ;;  %v15885_v20 = vor.u32 %v18721_v14, %v15884_v53  ;;  %v18533_v53 = vld [vmem:[#allocation17 + $0x2ec] sm:$0xf0] }
 0x3d1   : > { %v5368_v22 = vpop.f32.mrf.mxu1  ;;  %v15452_v61 = vld [vmem:[#allocation17 + $0x560] sm:$0xf] }
 0x3d2   : > { %v5328_v13 = vadd.f32 %v20445_v19, %v5315_v7  ;;  %v18621_v7 = vld [vmem:[#allocation17 + $0x5ac] sm:$0xf0]  ;;  %v15453_v10 = vor.u32 %v18613_v46, %v15452_v61  ;;  %v18451_v61 = vld [vmem:[#allocation17 + $0x64] sm:$0xf]  ;;  %v14814_v46 = vld [vmem:[#allocation17 + $0x70] sm:$0xf0] }
 0x3d3   : > { %8230 = vmatpush.bf16.msrb.mxu3 %v14957_v24  ;;  %v15868_v24 = vld [vmem:[#allocation17 + $0x8a0] sm:$0xf] }
 0x3d4   : > { %v5341_v16 = vadd.f32 %v20464_v6, %v5328_v13  ;;  %v20517_v30 = vpop.f32.mrf.mxu3 }
 0x3d6   : > { %v5354_v19 = vadd.f32 %v20495_v5, %v5341_v16  ;;  %v18717_v16 = vld [vmem:[#allocation17 + $0x8ac] sm:$0xf0] }
 0x3d7   : > { %8231 = vmatpush.bf16.msrb.mxu3 %v14941_v58  ;;  %v18609_v58 = vld [vmem:[#allocation17 + $0x54c] sm:$0xf0]  ;;  %v15869_v32 = vor.u32 %v18717_v16, %v15868_v24  ;;  %v15116_v24 = vld [vmem:[#allocation17 + $0x2c0] sm:$0xf] }
 0x3d8   : > { %v5367_v35 = vadd.f32 %v5366_v18, %v5354_v19  ;;  %v15900_v18 = vld [vmem:[#allocation17 + $0x8e0] sm:$0xf]  ;;  %v18713_v19 = vld [vmem:[#allocation17 + $0x88c] sm:$0xf0] }
 0x3d9   : > { %v15901_v59 = vor.u32 %v18725_v11, %v15900_v18  ;;  %v15853_v28 = vor.u32 %v18713_v19, %v15852_v38  ;;  %v18529_v16 = vld [vmem:[#allocation17 + $0x2cc] sm:$0xf0]  ;;  %v18447_v19 = vld [vmem:[#allocation17 + $0x44] sm:$0xf] }
 0x3da   : > { %v5380_v6 = vadd.f32 %v20472_v27, %v5367_v35  ;;  %v18625_v27 = vld [vmem:[#allocation17 + $0x5cc] sm:$0xf0] }
 0x3db   : > { %8232 = vmatpush.bf16.msrb.mxu3 %v14925_v47  ;;  %v15501_v2 = vor.u32 %v18625_v27, %v15500_v9  ;;  %v15420_v47 = vld [vmem:[#allocation17 + $0x520] sm:$0xf]  ;;  %v18605_v35 = vld [vmem:[#allocation17 + $0x52c] sm:$0xf0] }
 0x3dc   : > { %v5498_v15 = vpop.f32.mrf.mxu3  ;;  %v5393_v5 = vadd.f32 %v20485_v57, %v5380_v6  ;;  %v5610_v57 = vperm.slane %v20423_v52, 2  ;;  %v15469_v52 = vor.u32 %v18617_v12, %v15468_v41  ;;  %v18709_v6 = vld [vmem:[#allocation17 + $0x86c] sm:$0xf0]  ;;  %v15421_v1 = vor.u32 %v18605_v35, %v15420_v47  ;;  %v15804_v9 = vld [vmem:[#allocation17 + $0x820] sm:$0xf] }
 0x3dd   : > { %v15836_v15 = vld [vmem:[#allocation17 + $0x860] sm:$0xf]  ;;  %v18701_v27 = vld [vmem:[#allocation17 + $0x82c] sm:$0xf0]  ;;  %v18455_v12 = vld [vmem:[#allocation17 + $0x84] sm:$0xf] }
 0x3de   : > { %v5406_v23 = vadd.f32 %v20509_v21, %v5393_v5  ;;  %v15485_v21 = vor.u32 %v18621_v7, %v15484_v17  ;;  %v15404_v5 = vld [vmem:[#allocation17 + $0x500] sm:$0xf] }
 0x3df   : > { %8233 = vmatpush.bf16.msrb.mxu3 %v14909_v49 }
 0x3e0   : > { %v20521_v42 = vpop.f32.mrf.mxu2 }
 0x3e3   : > { %8234 = vmatpush.bf16.msrb.mxu3 %v14893_v50  ;;  %v15837_v50 = vor.u32 %v18709_v6, %v15836_v15 }
 0x3e4   : > { %v20523_v51 = vpop.f32.mrf.mxu0 }
 0x3e7   : > { %8279 = vmatpush.bf16.msra.mxu3 %v15517_v40  ;;  %v15820_v40 = vld [vmem:[#allocation17 + $0x840] sm:$0xf] }
 0x3e8   : > { %v5537_v31 = vpop.f32.mrf.mxu2 }
 0x3e9   : > { %v5418_v34 = vpop.f32.mrf.mxu1  ;;  %v15405_v31 = vor.u32 %v18601_v54, %v15404_v5  ;;  %v18443_v54 = vld [vmem:[#allocation17 + $0x24] sm:$0xf] }
 0x3ea   : > { %v5419_v60 = vadd.f32 %v5418_v34, %v5406_v23  ;;  %v18705_v23 = vld [vmem:[#allocation17 + $0x84c] sm:$0xf0] }
 0x3eb   : > { %8280 = vmatpush.bf16.msra.mxu3 %v15501_v2  ;;  %v15805_v2 = vor.u32 %v18701_v27, %v15804_v9  ;;  %v18521_v9 = vld [vmem:[#allocation17 + $0x28c] sm:$0xf0] }
 0x3ec   : > { %vm5580_vm10 = vcmp.gt.f32.partialorder %v5419_v60, 0.0  ;;  %v5584_v62 = vmul.f32 0.2, %v5419_v60  ;;  %v5459_v0 = vpop.f32.mrf.mxu0 }
 0x3ed   : > { %v14878_v0 = vld [vmem:[#allocation17 + $0xf0] sm:$0xf0] }
 0x3ee   : > { %v5588_v45 = vsel %vm5580_vm10, %v5419_v60, %v5584_v62  ;;  %v18697_v62 = vld [vmem:[#allocation17 + $0x80c] sm:$0xf0] }
 0x3ef   : > { %v5603_v39 = vmul.f32 %v5595_v4, %v5588_v45  ;;  %8281 = vmatpush.bf16.msra.mxu3 %v15485_v21  ;;  %v15788_v4 = vld [vmem:[#allocation17 + $0x800] sm:$0xf]  ;;  %v18463_v45 = vld [vmem:[#allocation17 + $0xc4] sm:$0xf]  ;;  %v14862_v21 = vld [vmem:[#allocation17 + $0xd0] sm:$0xf0] }
 0x3f0   : > { %v5655_v37 = vpop.f32.mrf.mxu2  ;;  %v15789_v17 = vor.u32 %v18697_v62, %v15788_v4 }
 0x3f1   : > { %v5618_v25 = vadd.f32 %v5610_v57, %v5603_v39  ;;  %v5420_v56 = vpop.f32.mrf.mxu1  ;;  %v20529_v13 = vpack.c.bf16 %v5655_v37, %v5655_v37  ;;  %v18467_v57 = vld [vmem:[#allocation17 + $0xe4] sm:$0xf]  ;;  %v14865_v39 = vor.u32 %v18463_v45, %v14862_v21 }
 0x3f2   : > { %v14881_v11 = vor.u32 %v18467_v57, %v14878_v0  ;;  %v18459_v37 = vld [vmem:[#allocation17 + $0xa4] sm:$0xf]  ;;  %v15132_v56 = vld [vmem:[#allocation17 + $0x2e0] sm:$0xf]  ;;  %v14766_v0 = vld [vmem:[#allocation17 + $0x10] sm:$0xf0] }
 0x3f3   : > { %14742 = vmatpush.msk.msrb.mxu0 %vm5625_vm7, %v5618_v25  ;;  %8222 = vmatmul.bf16.vlgmr.msrb.gmra.mxu2 %v20529_v13  ;;  %v18439_v57 = vld [vmem:[#allocation17 + $0x4] sm:$0xf] }
 0x3f4   : > { %14743 = vmatmul.msk.f32.vlgmr.msrb.gmra.mxu0 %vm5621_vm8, %v20441_v8  ;;  %8318 = vmatpush.bf16.msrb.mxu2 %v15901_v59  ;;  %v20536_v22 = vpop.f32.mrf.mxu3  ;;  %v15437_v8 = vor.u32 %v18609_v58, %v15436_v48  ;;  %v14846_v59 = vld [vmem:[#allocation17 + $0xb0] sm:$0xf0]  ;;  %v16028_v48 = vld [vmem:[#allocation17 + $0x9e0] sm:$0xf]  ;;  %v18757_v58 = vld [vmem:[#allocation17 + $0x9ec] sm:$0xf0]  ;;  %v14769_v21 = vor.u32 %v18439_v57, %v14766_v0 }
 0x3f5   : > { %14750 = vmatpush.msk.msra.mxu0 %vm5625_vm7, %v5618_v25  ;;  %8282 = vmatpush.bf16.msra.mxu3 %v15469_v52  ;;  %v14849_v41 = vor.u32 %v18459_v37, %v14846_v59  ;;  %v15133_v52 = vor.u32 %v18533_v53, %v15132_v56  ;;  %v18499_v0 = vld [vmem:[#allocation17 + $0x1e4] sm:$0xf] }
 0x3f7   : > { %14758 = vmatpush.msk.msrb.mxu0 %vm5625_vm7, %v5618_v25  ;;  %v14830_v25 = vld [vmem:[#allocation17 + $0x90] sm:$0xf0] }
 0x3f8   : > { %8319 = vmatpush.bf16.msrb.mxu2 %v15885_v20  ;;  %v5740_v26 = vpop.f32.mrf.mxu2  ;;  %v14833_v14 = vor.u32 %v18455_v12, %v14830_v25  ;;  %v3029_v20 = vperm.slane %v20506_v44, 3  ;;  %v18591_v12 = vld [vmem:[#allocation17 + $0x4c4] sm:$0xf]  ;;  %v15374_v25 = vld [vmem:[#allocation17 + $0x4d0] sm:$0xf0] }
 0x3f9   : > { %8283 = vmatpush.bf16.msra.mxu3 %v15453_v10  ;;  %v20541_v63 = vpack.c.bf16 %v5740_v26, %v5740_v26  ;;  %v14817_v10 = vor.u32 %v18451_v61, %v14814_v46  ;;  %v15100_v26 = vld [vmem:[#allocation17 + $0x2a0] sm:$0xf] }
 0x3fa   : > { %v5432_v47 = vadd.f32 %v20493_v3, %v3029_v20  ;;  %v15964_v46 = vld [vmem:[#allocation17 + $0x960] sm:$0xf] }
 0x3fc   : > { %8320 = vmatpush.bf16.msrb.mxu2 %v15869_v32  ;;  %14751 = vmatmul.msk.f32.vlgmr.msra.gmra.mxu0 %vm5621_vm8, %v20455_v29  ;;  %v5550_v49 = vpop.f32.mrf.mxu3  ;;  %v15821_v29 = vor.u32 %v18705_v23, %v15820_v40  ;;  %v15117_v32 = vor.u32 %v18529_v16, %v15116_v24  ;;  %v5445_v44 = vadd.f32 %v20501_v33, %v5432_v47  ;;  %v14782_v40 = vld [vmem:[#allocation17 + $0x30] sm:$0xf0]  ;;  %v18587_v16 = vld [vmem:[#allocation17 + $0x4a4] sm:$0xf]  ;;  %v18737_v47 = vld [vmem:[#allocation17 + $0x94c] sm:$0xf0] }
 0x3fd   : > { %8284 = vmatpush.bf16.msra.mxu3 %v15437_v8  ;;  %8240 = vmatpush.bf16.msra.mxu0 %v15133_v52  ;;  %v14798_v8 = vld [vmem:[#allocation17 + $0x50] sm:$0xf0]  ;;  %v18525_v49 = vld [vmem:[#allocation17 + $0x2ac] sm:$0xf0]  ;;  %v14785_v27 = vor.u32 %v18443_v54, %v14782_v40  ;;  %v15377_v24 = vor.u32 %v18591_v12, %v15374_v25 }
 0x3fe   : > { %v14801_v6 = vor.u32 %v18447_v19, %v14798_v8  ;;  %v15101_v5 = vor.u32 %v18525_v49, %v15100_v26  ;;  %v5458_v23 = vadd.f32 %v20523_v51, %v5445_v44  ;;  %v15390_v51 = vld [vmem:[#allocation17 + $0x4f0] sm:$0xf0]  ;;  %v18513_v52 = vld [vmem:[#allocation17 + $0x24c] sm:$0xf0]  ;;  %v18583_v49 = vld [vmem:[#allocation17 + $0x484] sm:$0xf] }
 0x3ff   : > { %v18509_v19 = vld [vmem:[#allocation17 + $0x22c] sm:$0xf0]  ;;  %v15342_v44 = vld [vmem:[#allocation17 + $0x490] sm:$0xf0] }
 0x400   : > { %8321 = vmatpush.bf16.msrb.mxu2 %v15853_v28  ;;  %v5825_v18 = vpop.f32.mrf.mxu2  ;;  %v16029_v28 = vor.u32 %v18757_v58, %v16028_v48  ;;  %v18733_v54 = vld [vmem:[#allocation17 + $0x92c] sm:$0xf0] }
 0x401   : > { %8285 = vmatpush.bf16.msra.mxu3 %v15421_v1  ;;  %8241 = vmatpush.bf16.msra.mxu0 %v15117_v32  ;;  %v16012_v1 = vld [vmem:[#allocation17 + $0x9c0] sm:$0xf] }
 0x402   : > { %v15036_v32 = vld [vmem:[#allocation17 + $0x220] sm:$0xf] }
 0x403   : > { %8274 = vmatmul.bf16.vlgmr.msra.gmra.mxu2 %v20541_v63 }
 0x404   : > { %v20543_v55 = vpop.f32.mrf.mxu0  ;;  %8322 = vmatpush.bf16.msrb.mxu2 %v15837_v50  ;;  %14759 = vmatmul.msk.f32.vlgmr.msrb.gmra.mxu0 %vm5621_vm8, %v20468_v36  ;;  %v20550_v36 = vpack.c.bf16 %v5825_v18, %v5825_v18  ;;  %v18753_v50 = vld [vmem:[#allocation17 + $0x9cc] sm:$0xf0] }
 0x405   : > { %8286 = vmatpush.bf16.msra.mxu3 %v15405_v31  ;;  %8242 = vmatpush.bf16.msra.mxu0 %v15101_v5  ;;  %v16013_v3 = vor.u32 %v18753_v50, %v16012_v1  ;;  %v15932_v1 = vld [vmem:[#allocation17 + $0x920] sm:$0xf]  ;;  %v18505_v5 = vld [vmem:[#allocation17 + $0x20c] sm:$0xf0] }
 0x406   : > { %v15020_v50 = vld [vmem:[#allocation17 + $0x200] sm:$0xf] }
 0x407   : > { %v15021_v40 = vor.u32 %v18505_v5, %v15020_v50  ;;  %v18487_v5 = vld [vmem:[#allocation17 + $0x184] sm:$0xf] }
 0x408   : > { %8323 = vmatpush.bf16.msrb.mxu2 %v15821_v29  ;;  %v15084_v29 = vld [vmem:[#allocation17 + $0x280] sm:$0xf] }
 0x409   : > { %v20548_v34 = vpop.f32.mrf.mxu1  ;;  %v15085_v4 = vor.u32 %v18521_v9, %v15084_v29 }
 0x40a   : > { %v5471_v33 = vadd.f32 %v20548_v34, %v5458_v23  ;;  %v15980_v34 = vld [vmem:[#allocation17 + $0x980] sm:$0xf] }
 0x40b   : > { %8243 = vmatpush.bf16.msra.mxu0 %v15085_v4  ;;  %v15644_v23 = vld [vmem:[#allocation17 + $0x6e0] sm:$0xf] }
 0x40c   : > { %v5511_v60 = vpop.f32.mrf.mxu0  ;;  %8324 = vmatpush.bf16.msrb.mxu2 %v15805_v2  ;;  %v15996_v2 = vld [vmem:[#allocation17 + $0x9a0] sm:$0xf]  ;;  %v5484_v45 = vadd.f32 %v20504_v43, %v5471_v33  ;;  %v18741_v43 = vld [vmem:[#allocation17 + $0x96c] sm:$0xf0]  ;;  %v15326_v33 = vld [vmem:[#allocation17 + $0x470] sm:$0xf0] }
 0x40d   : > { %v18749_v60 = vld [vmem:[#allocation17 + $0x9ac] sm:$0xf0]  ;;  %v15965_v58 = vor.u32 %v18741_v43, %v15964_v46  ;;  %v15628_v4 = vld [vmem:[#allocation17 + $0x6c0] sm:$0xf] }
 0x40e   : > { %v15997_v18 = vor.u32 %v18749_v60, %v15996_v2  ;;  %v5497_v61 = vadd.f32 %v20517_v30, %v5484_v45  ;;  %v15948_v30 = vld [vmem:[#allocation17 + $0x940] sm:$0xf]  ;;  %v18729_v60 = vld [vmem:[#allocation17 + $0x90c] sm:$0xf0] }
 0x40f   : > { %v15916_v2 = vld [vmem:[#allocation17 + $0x900] sm:$0xf] }
 0x410   : > { %8325 = vmatpush.bf16.msrb.mxu2 %v15789_v17  ;;  %v18595_v17 = vld [vmem:[#allocation17 + $0x4e4] sm:$0xf]  ;;  %v5510_v8 = vadd.f32 %v20543_v55, %v5497_v61  ;;  %v18661_v55 = vld [vmem:[#allocation17 + $0x6ec] sm:$0xf0] }
 0x411   : > { %v5472_v7 = vpop.f32.mrf.mxu1  ;;  %v15393_v59 = vor.u32 %v18595_v17, %v15390_v51  ;;  %v15645_v29 = vor.u32 %v18661_v55, %v15644_v23  ;;  %v15006_v17 = vld [vmem:[#allocation17 + $0x1f0] sm:$0xf0] }
 0x412   : > { %v18517_v7 = vld [vmem:[#allocation17 + $0x26c] sm:$0xf0] }
 0x413   : > { %8326 = vmatmul.bf16.vlgmr.msrb.gmra.mxu2 %v20550_v36  ;;  %v19389_v61 = vld [vmem:[#allocation14 + $0x4] sm:$0xf] }
 0x414   : > { %8370 = vmatpush.bf16.msra.mxu2 %v14881_v11  ;;  %v15068_v11 = vld [vmem:[#allocation17 + $0x260] sm:$0xf]  ;;  %v5596_v46 = vperm.slane %v19389_v61, 3  ;;  %v15838_v61 = vld [vmem:[#allocation17 + $0x870] sm:$0xf0] }
 0x415   : > { %v15069_v37 = vor.u32 %v18517_v7, %v15068_v11  ;;  %v18575_v11 = vld [vmem:[#allocation17 + $0x444] sm:$0xf]  ;;  %v15310_v7 = vld [vmem:[#allocation17 + $0x450] sm:$0xf0] }
 0x417   : > { %v5675_v35 = vpop.f32.mrf.mxu3  ;;  %8244 = vmatpush.bf16.msra.mxu0 %v15069_v37  ;;  %v15313_v37 = vor.u32 %v18575_v11, %v15310_v7  ;;  %v18637_v11 = vld [vmem:[#allocation17 + $0x62c] sm:$0xf0]  ;;  %v18479_v7 = vld [vmem:[#allocation17 + $0x144] sm:$0xf] }
 0x418   : > { %8371 = vmatpush.bf16.msra.mxu2 %v14865_v39  ;;  %v20558_v15 = vpack.c.bf16 %v5675_v35, %v5675_v35  ;;  %v18745_v39 = vld [vmem:[#allocation17 + $0x98c] sm:$0xf0]  ;;  %v15037_v35 = vor.u32 %v18509_v19, %v15036_v32  ;;  %v18567_v32 = vld [vmem:[#allocation17 + $0x404] sm:$0xf] }
 0x419   : > { %v15981_v56 = vor.u32 %v18745_v39, %v15980_v34  ;;  %v15612_v34 = vld [vmem:[#allocation17 + $0x6a0] sm:$0xf]  ;;  %v18653_v39 = vld [vmem:[#allocation17 + $0x6ac] sm:$0xf0] }
 0x41a   : > { %8235 = vmatmul.bf16.vlgmr.msrb.gmra.mxu3 %v20558_v15  ;;  %v15613_v12 = vor.u32 %v18653_v39, %v15612_v34  ;;  %v18711_v34 = vld [vmem:[#allocation17 + $0x884] sm:$0xf]  ;;  %v15854_v39 = vld [vmem:[#allocation17 + $0x890] sm:$0xf0] }
 0x41b   : > { %8331 = vmatpush.bf16.msrb.mxu3 %v16029_v28 }
 0x41c   : > { %8372 = vmatpush.bf16.msra.mxu2 %v14849_v41 }
 0x41f   : > { %8332 = vmatpush.bf16.msrb.mxu3 %v16013_v3  ;;  %v5760_v53 = vpop.f32.mrf.mxu3  ;;  %v15345_v3 = vor.u32 %v18583_v49, %v15342_v44  ;;  %v15580_v44 = vld [vmem:[#allocation17 + $0x660] sm:$0xf] }
 0x420   : > { %8373 = vmatpush.bf16.msra.mxu2 %v14833_v14  ;;  %v15052_v14 = vld [vmem:[#allocation17 + $0x240] sm:$0xf]  ;;  %v20565_v48 = vpack.c.bf16 %v5760_v53, %v5760_v53  ;;  %v15294_v53 = vld [vmem:[#allocation17 + $0x430] sm:$0xf0] }
 0x421   : > { %v15053_v20 = vor.u32 %v18513_v52, %v15052_v14 }
 0x423   : > { %8333 = vmatpush.bf16.msrb.mxu3 %v15997_v18  ;;  %8245 = vmatpush.bf16.msra.mxu0 %v15053_v20  ;;  %v15596_v20 = vld [vmem:[#allocation17 + $0x680] sm:$0xf] }
 0x424   : > { %v20554_v38 = vpop.f32.mrf.mxu0  ;;  %8374 = vmatpush.bf16.msra.mxu2 %v14817_v10  ;;  %v15358_v10 = vld [vmem:[#allocation17 + $0x4b0] sm:$0xf0] }
 0x425   : > { %v15361_v28 = vor.u32 %v18587_v16, %v15358_v10  ;;  %v18491_v10 = vld [vmem:[#allocation17 + $0x1a4] sm:$0xf] }
 0x427   : > { %8334 = vmatpush.bf16.msrb.mxu3 %v15981_v56  ;;  %8246 = vmatpush.bf16.msra.mxu0 %v15037_v35  ;;  %v5845_v45 = vpop.f32.mrf.mxu3  ;;  %v18571_v56 = vld [vmem:[#allocation17 + $0x424] sm:$0xf] }
 0x428   : > { %8375 = vmatpush.bf16.msra.mxu2 %v14801_v6  ;;  %v15949_v6 = vor.u32 %v18737_v47, %v15948_v30  ;;  %v20573_v14 = vpack.c.bf16 %v5845_v45, %v5845_v45  ;;  %v15297_v16 = vor.u32 %v18571_v56, %v15294_v53  ;;  %v19390_v30 = vld [vmem:[#allocation14 + $0x8] sm:$0xf]  ;;  %v18723_v35 = vld [vmem:[#allocation17 + $0x8e4] sm:$0xf]  ;;  %v15857_v53 = vor.u32 %v18711_v34, %v15854_v39 }
 0x429   : > { %v5522_v31 = vpop.f32.mrf.mxu1  ;;  %v5611_v47 = vperm.slane %v19390_v30, 3  ;;  %v18623_v30 = vld [vmem:[#allocation17 + $0x5c4] sm:$0xf]  ;;  %v15422_v39 = vld [vmem:[#allocation17 + $0x530] sm:$0xf0] }
 0x42a   : > { %v5523_v26 = vadd.f32 %v5522_v31, %v5510_v8  ;;  %8287 = vmatmul.bf16.vlgmr.msra.gmra.mxu3 %v20565_v48  ;;  %v18579_v31 = vld [vmem:[#allocation17 + $0x464] sm:$0xf]  ;;  %v15278_v8 = vld [vmem:[#allocation17 + $0x410] sm:$0xf0] }
 0x42b   : > { %8335 = vmatpush.bf16.msrb.mxu3 %v15965_v58  ;;  %8247 = vmatpush.bf16.msra.mxu0 %v15021_v40  ;;  %v15329_v57 = vor.u32 %v18579_v31, %v15326_v33  ;;  %v14974_v58 = vld [vmem:[#allocation17 + $0x1b0] sm:$0xf0]  ;;  %v15281_v50 = vor.u32 %v18567_v32, %v15278_v8  ;;  %v15564_v33 = vld [vmem:[#allocation17 + $0x640] sm:$0xf]  ;;  %v18603_v34 = vld [vmem:[#allocation17 + $0x524] sm:$0xf] }
 0x42c   : > { %v5563_v62 = vpop.f32.mrf.mxu0  ;;  %8376 = vmatpush.bf16.msra.mxu2 %v14785_v27  ;;  %v5536_v9 = vadd.f32 %v20521_v42, %v5523_v26  ;;  %v15933_v27 = vor.u32 %v18733_v54, %v15932_v1  ;;  %v15917_v42 = vor.u32 %v18729_v60, %v15916_v2  ;;  %v14977_v49 = vor.u32 %v18491_v10, %v14974_v58  ;;  %v14958_v54 = vld [vmem:[#allocation17 + $0x190] sm:$0xf0]  ;;  %v18483_v2 = vld [vmem:[#allocation17 + $0x164] sm:$0xf] }
 0x42d   : > { %v18657_v62 = vld [vmem:[#allocation17 + $0x6cc] sm:$0xf0]  ;;  %v14961_v31 = vor.u32 %v18487_v5, %v14958_v54  ;;  %v14942_v60 = vld [vmem:[#allocation17 + $0x170] sm:$0xf0]  ;;  %v18703_v58 = vld [vmem:[#allocation17 + $0x844] sm:$0xf] }
 0x42e   : > { %v15629_v51 = vor.u32 %v18657_v62, %v15628_v4  ;;  %v5549_v18 = vadd.f32 %v20536_v22, %v5536_v9  ;;  %v15886_v9 = vld [vmem:[#allocation17 + $0x8d0] sm:$0xf0]  ;;  %v19391_v62 = vld [vmem:[#allocation15] sm:$0x3]  ;;  %v14884_v54 = vld [vmem:[#allocation17 + $0xe8] sm:$0xf] }
 0x42f   : > { %8336 = vmatpush.bf16.msrb.mxu3 %v15949_v6  ;;  %8292 = vmatpush.bf16.msrb.mxu0 %v15645_v29  ;;  %v18645_v6 = vld [vmem:[#allocation17 + $0x66c] sm:$0xf0]  ;;  %v18719_v29 = vld [vmem:[#allocation17 + $0x8c4] sm:$0xf]  ;;  %v15518_v10 = vld [vmem:[#allocation17 + $0x5f0] sm:$0xf0] }
 0x430   : > { %8377 = vmatpush.bf16.msra.mxu2 %v14769_v21  ;;  %v15009_v21 = vor.u32 %v18499_v0, %v15006_v17  ;;  %v5562_v25 = vadd.f32 %v20554_v38, %v5549_v18  ;;  %v15581_v40 = vor.u32 %v18645_v6, %v15580_v44  ;;  %v18715_v0 = vld [vmem:[#allocation17 + $0x8a4] sm:$0xf]  ;;  %v15870_v17 = vld [vmem:[#allocation17 + $0x8b0] sm:$0xf0]  ;;  %v15548_v18 = vld [vmem:[#allocation17 + $0x620] sm:$0xf] }
 0x431   : > { %v5524_v41 = vpop.f32.mrf.mxu1  ;;  %v15549_v45 = vor.u32 %v18637_v11, %v15548_v18  ;;  %v15822_v32 = vld [vmem:[#allocation17 + $0x850] sm:$0xf0]  ;;  %v18619_v6 = vld [vmem:[#allocation17 + $0x5a4] sm:$0xf]  ;;  %v14836_v11 = vld [vmem:[#allocation17 + $0x88] sm:$0xf] }
 0x432   : > { %v14990_v41 = vld [vmem:[#allocation17 + $0x1d0] sm:$0xf0]  ;;  %v15825_v8 = vor.u32 %v18703_v58, %v15822_v32  ;;  %v18755_v32 = vld [vmem:[#allocation17 + $0x9e4] sm:$0xf] }
 0x433   : > { %8378 = vmatmul.bf16.vlgmr.msra.gmra.mxu2 %v20529_v13  ;;  %8337 = vmatpush.bf16.msrb.mxu3 %v15933_v27  ;;  %v18641_v27 = vld [vmem:[#allocation17 + $0x64c] sm:$0xf0]  ;;  %v15790_v5 = vld [vmem:[#allocation17 + $0x810] sm:$0xf0] }
 0x434   : > { %8422 = vmatpush.bf16.msrb.mxu2 %v15393_v59  ;;  %8293 = vmatpush.bf16.msrb.mxu0 %v15629_v51  ;;  %v18495_v59 = vld [vmem:[#allocation17 + $0x1c4] sm:$0xf]  ;;  %v15565_v4 = vor.u32 %v18641_v27, %v15564_v33  ;;  %v14945_v51 = vor.u32 %v18483_v2, %v14942_v60  ;;  %v18466_v33 = vld [vmem:[#allocation17 + $0xd4] sm:$0xf0]  ;;  %v15454_v60 = vld [vmem:[#allocation17 + $0x570] sm:$0xf0] }
 0x435   : > { %v14993_v43 = vor.u32 %v18495_v59, %v14990_v41  ;;  %v15532_v59 = vld [vmem:[#allocation17 + $0x600] sm:$0xf]  ;;  %v18633_v41 = vld [vmem:[#allocation17 + $0x60c] sm:$0xf0]  ;;  %v18611_v2 = vld [vmem:[#allocation17 + $0x564] sm:$0xf] }
 0x436   : > { %v15533_v56 = vor.u32 %v18633_v41, %v15532_v59  ;;  %v18565_v59 = vld [vmem:[#allocation17 + $0x3ec] sm:$0xf0] }
 0x437   : > { %8338 = vmatpush.bf16.msrb.mxu3 %v15917_v42  ;;  %v14926_v42 = vld [vmem:[#allocation17 + $0x150] sm:$0xf0] }
 0x438   : > { %8423 = vmatpush.bf16.msrb.mxu2 %v15377_v24  ;;  %8294 = vmatpush.bf16.msrb.mxu0 %v15613_v12  ;;  %v18649_v24 = vld [vmem:[#allocation17 + $0x68c] sm:$0xf0]  ;;  %v18475_v12 = vld [vmem:[#allocation17 + $0x124] sm:$0xf] }
 0x439   : > { %v15597_v38 = vor.u32 %v18649_v24, %v15596_v20  ;;  %v14894_v20 = vld [vmem:[#allocation17 + $0x110] sm:$0xf0] }
 0x43a   : > { %8339 = vmatmul.bf16.vlgmr.msrb.gmra.mxu3 %v20573_v14 }
 0x43b   : > { %8383 = vmatpush.bf16.msra.mxu3 %v15009_v21  ;;  %v15873_v21 = vor.u32 %v18715_v0, %v15870_v17  ;;  %v15457_v0 = vor.u32 %v18611_v2, %v15454_v60  ;;  %v18607_v17 = vld [vmem:[#allocation17 + $0x544] sm:$0xf]  ;;  %v15998_v60 = vld [vmem:[#allocation17 + $0x9b0] sm:$0xf0] }
 0x43c   : > { %8424 = vmatpush.bf16.msrb.mxu2 %v15361_v28  ;;  %v15902_v28 = vld [vmem:[#allocation17 + $0x8f0] sm:$0xf0]  ;;  %8295 = vmatpush.bf16.msrb.mxu0 %v15597_v38  ;;  %v18747_v2 = vld [vmem:[#allocation17 + $0x9a4] sm:$0xf] }
 0x43d   : > { %v15905_v23 = vor.u32 %v18723_v35, %v15902_v28  ;;  %v19393_v35 = vld [vmem:[#allocation15 + $0x4] sm:$0x3]  ;;  %v18699_v28 = vld [vmem:[#allocation17 + $0x824] sm:$0xf] }
 0x43f   : > { %8384 = vmatpush.bf16.msra.mxu3 %v14993_v43  ;;  %v18471_v43 = vld [vmem:[#allocation17 + $0x104] sm:$0xf] }
 0x440   : > { %8425 = vmatpush.bf16.msrb.mxu2 %v15345_v3  ;;  %8296 = vmatpush.bf16.msrb.mxu0 %v15581_v40  ;;  %v14897_v38 = vor.u32 %v18471_v43, %v14894_v20  ;;  %v18470_v40 = vld [vmem:[#allocation17 + $0xf4] sm:$0xf0]  ;;  %v18785_v43 = vld [vmem:[#allocation17 + $0xacc] sm:$0xf0]  ;;  %v18599_v20 = vld [vmem:[#allocation17 + $0x504] sm:$0xf] }
 0x443   : > { %8385 = vmatpush.bf16.msra.mxu3 %v14977_v49 }
 0x444   : > { %8426 = vmatpush.bf16.msrb.mxu2 %v15329_v57  ;;  %v15889_v57 = vor.u32 %v18719_v29, %v15886_v9  ;;  %8297 = vmatpush.bf16.msrb.mxu0 %v15565_v4  ;;  %v15470_v29 = vld [vmem:[#allocation17 + $0x590] sm:$0xf0]  ;;  %v14885_v9 = vor.u32 %v18470_v40, %v14884_v54 }
 0x447   : > { %8386 = vmatpush.bf16.msra.mxu3 %v14961_v31  ;;  %v14868_v31 = vld [vmem:[#allocation17 + $0xc8] sm:$0xf] }
 0x448   : > { %8427 = vmatpush.bf16.msrb.mxu2 %v15313_v37  ;;  %8298 = vmatpush.bf16.msrb.mxu0 %v15549_v45  ;;  %v14929_v37 = vor.u32 %v18479_v7, %v14926_v42  ;;  %v14869_v4 = vor.u32 %v18466_v33, %v14868_v31  ;;  %v18458_v7 = vld [vmem:[#allocation17 + $0x94] sm:$0xf0]  ;;  %v16156_v45 = vld [vmem:[#allocation17 + $0xae0] sm:$0xf]  ;;  %v18553_v33 = vld [vmem:[#allocation17 + $0x38c] sm:$0xf0] }
 0x449   : > { %v5574_v22 = vpop.f32.mrf.mxu1  ;;  %v14837_v41 = vor.u32 %v18458_v7, %v14836_v11  ;;  %v15212_v31 = vld [vmem:[#allocation17 + $0x380] sm:$0xf]  ;;  %v15396_v11 = vld [vmem:[#allocation17 + $0x4e8] sm:$0xf]  ;;  %v18598_v7 = vld [vmem:[#allocation17 + $0x4f4] sm:$0xf0] }
 0x44a   : > { %v5575_v52 = vadd.f32 %v5574_v22, %v5562_v25  ;;  %v14910_v25 = vld [vmem:[#allocation17 + $0x130] sm:$0xf0]  ;;  %v19392_v22 = vld [vmem:[#allocation15 + $0x2] sm:$0x3] }
 0x44b   : > { %8387 = vmatpush.bf16.msra.mxu3 %v14945_v51  ;;  %v15438_v51 = vld [vmem:[#allocation17 + $0x550] sm:$0xf0] }
 0x44c   : > { %vm5581_vm11 = vcmp.gt.f32.partialorder %v5575_v52, 0.0  ;;  %v5585_v19 = vmul.f32 0.2, %v5575_v52  ;;  %8428 = vmatpush.bf16.msrb.mxu2 %v15297_v16  ;;  %8299 = vmatpush.bf16.msrb.mxu0 %v15533_v56  ;;  %v18627_v16 = vld [vmem:[#allocation17 + $0x5e4] sm:$0xf]  ;;  %v15441_v42 = vor.u32 %v18607_v17, %v15438_v51 }
 0x44d   : > { %v18442_v17 = vld [vmem:[#allocation17 + $0x14] sm:$0xf0] }
 0x44e   : > { %v5589_v26 = vsel %vm5581_vm11, %v5575_v52, %v5585_v19  ;;  %v18707_v52 = vld [vmem:[#allocation17 + $0x864] sm:$0xf]  ;;  %v15521_v19 = vor.u32 %v18627_v16, %v15518_v10  ;;  %v15244_v16 = vld [vmem:[#allocation17 + $0x3c0] sm:$0xf]  ;;  %v18561_v10 = vld [vmem:[#allocation17 + $0x3cc] sm:$0xf0] }
 0x44f   : > { %v5604_v1 = vmul.f32 %v5596_v46, %v5589_v26  ;;  %8388 = vmatpush.bf16.msra.mxu3 %v14929_v37  ;;  %v14913_v46 = vor.u32 %v18475_v12, %v14910_v25  ;;  %v15841_v24 = vor.u32 %v18707_v52, %v15838_v61  ;;  %v15806_v26 = vld [vmem:[#allocation17 + $0x830] sm:$0xf0]  ;;  %v15260_v37 = vld [vmem:[#allocation17 + $0x3e0] sm:$0xf]  ;;  %v15425_v61 = vor.u32 %v18603_v34, %v15422_v39  ;;  %v18743_v39 = vld [vmem:[#allocation17 + $0x984] sm:$0xf] }
 0x450   : > { %8429 = vmatpush.bf16.msrb.mxu2 %v15281_v50  ;;  %v15809_v44 = vor.u32 %v18699_v28, %v15806_v26  ;;  %v18695_v50 = vld [vmem:[#allocation17 + $0x804] sm:$0xf]  ;;  %v15261_v12 = vor.u32 %v18565_v59, %v15260_v37  ;;  %v16124_v28 = vld [vmem:[#allocation17 + $0xaa0] sm:$0xf]  ;;  %v18781_v26 = vld [vmem:[#allocation17 + $0xaac] sm:$0xf0] }
 0x451   : > { %v5619_v55 = vadd.f32 %v5611_v47, %v5604_v1  ;;  %v5576_v3 = vpop.f32.mrf.mxu1  ;;  %v15502_v47 = vld [vmem:[#allocation17 + $0x5d0] sm:$0xf0]  ;;  %v16125_v40 = vor.u32 %v18781_v26, %v16124_v28  ;;  %v18541_v28 = vld [vmem:[#allocation17 + $0x32c] sm:$0xf0]  ;;  %v18735_v26 = vld [vmem:[#allocation17 + $0x944] sm:$0xf] }
 0x452   : > { %v15505_v49 = vor.u32 %v18623_v30, %v15502_v47  ;;  %v15486_v1 = vld [vmem:[#allocation17 + $0x5b0] sm:$0xf0]  ;;  %v18615_v3 = vld [vmem:[#allocation17 + $0x584] sm:$0xf]  ;;  %v14804_v30 = vld [vmem:[#allocation17 + $0x48] sm:$0xf] }
 0x453   : > { %14744 = vmatpush.msk.msrb.mxu1 %vm5625_vm7, %v5619_v55  ;;  %8430 = vmatmul.bf16.vlgmr.msrb.gmra.mxu2 %v20541_v63  ;;  %v15473_v27 = vor.u32 %v18615_v3, %v15470_v29  ;;  %v18450_v47 = vld [vmem:[#allocation17 + $0x54] sm:$0xf0]  ;;  %v16108_v3 = vld [vmem:[#allocation17 + $0xa80] sm:$0xf]  ;;  %v18777_v29 = vld [vmem:[#allocation17 + $0xa8c] sm:$0xf0] }
 0x454   : > { %14745 = vmatmul.msk.f32.vlgmr.msrb.gmra.mxu1 %vm5621_vm8, %v19391_v62  ;;  %8474 = vmatpush.bf16.msra.mxu2 %v15905_v23  ;;  %v15489_v23 = vor.u32 %v18619_v6, %v15486_v1  ;;  %v14852_v62 = vld [vmem:[#allocation17 + $0xa8] sm:$0xf]  ;;  %v18557_v6 = vld [vmem:[#allocation17 + $0x3ac] sm:$0xf0]  ;;  %v14805_v1 = vor.u32 %v18450_v47, %v14804_v30  ;;  %v15982_v37 = vld [vmem:[#allocation17 + $0x990] sm:$0xf0] }
 0x455   : > { %14752 = vmatpush.msk.msra.mxu1 %vm5625_vm7, %v5619_v55  ;;  %8389 = vmatpush.bf16.msra.mxu3 %v14913_v46  ;;  %v16140_v46 = vld [vmem:[#allocation17 + $0xac0] sm:$0xf]  ;;  %v18590_v30 = vld [vmem:[#allocation17 + $0x4b4] sm:$0xf0] }
 0x457   : > { %14760 = vmatpush.msk.msrb.mxu1 %vm5625_vm7, %v5619_v55  ;;  %v15793_v55 = vor.u32 %v18695_v50, %v15790_v5  ;;  %v18751_v50 = vld [vmem:[#allocation17 + $0x9c4] sm:$0xf]  ;;  %v16014_v5 = vld [vmem:[#allocation17 + $0x9d0] sm:$0xf0] }
 0x458   : > { %8475 = vmatpush.bf16.msra.mxu2 %v15889_v57  ;;  %v18462_v57 = vld [vmem:[#allocation17 + $0xb4] sm:$0xf0] }
 0x459   : > { %8390 = vmatpush.bf16.msra.mxu3 %v14897_v38  ;;  %v14853_v18 = vor.u32 %v18462_v57, %v14852_v62  ;;  %v16030_v38 = vld [vmem:[#allocation17 + $0x9f0] sm:$0xf0]  ;;  %v16109_v62 = vor.u32 %v18777_v29, %v16108_v3  ;;  %v16092_v57 = vld [vmem:[#allocation17 + $0xa60] sm:$0xf]  ;;  %v18731_v29 = vld [vmem:[#allocation17 + $0x924] sm:$0xf] }
 0x45c   : > { %8476 = vmatpush.bf16.msra.mxu2 %v15873_v21  ;;  %14753 = vmatmul.msk.f32.vlgmr.msra.gmra.mxu1 %vm5621_vm8, %v19392_v22  ;;  %v18789_v21 = vld [vmem:[#allocation17 + $0xaec] sm:$0xf0]  ;;  %v18454_v22 = vld [vmem:[#allocation17 + $0x74] sm:$0xf0] }
 0x45d   : > { %8435 = vmatpush.bf16.msrb.mxu3 %v15521_v19  ;;  %v16157_v56 = vor.u32 %v18789_v21, %v16156_v45  ;;  %8253 = vmatpush.bf16.msra.mxu1 %v15261_v12  ;;  %v15245_v19 = vor.u32 %v18561_v10, %v15244_v16  ;;  %v15196_v45 = vld [vmem:[#allocation17 + $0x360] sm:$0xf]  ;;  %v18549_v21 = vld [vmem:[#allocation17 + $0x36c] sm:$0xf0]  ;;  %v15966_v16 = vld [vmem:[#allocation17 + $0x970] sm:$0xf0] }
 0x45e   : > { %8391 = vmatmul.bf16.vlgmr.msra.gmra.mxu3 %v20558_v15 }
 0x460   : > { %8477 = vmatpush.bf16.msra.mxu2 %v15857_v53  ;;  %v14820_v53 = vld [vmem:[#allocation17 + $0x68] sm:$0xf] }
 0x461   : > { %8436 = vmatpush.bf16.msrb.mxu3 %v15505_v49  ;;  %v14821_v58 = vor.u32 %v18454_v22, %v14820_v53  ;;  %8254 = vmatpush.bf16.msra.mxu1 %v15245_v19  ;;  %v16033_v49 = vor.u32 %v18755_v32, %v16030_v38  ;;  %v18769_v53 = vld [vmem:[#allocation17 + $0xa4c] sm:$0xf0]  ;;  %v15380_v22 = vld [vmem:[#allocation17 + $0x4c8] sm:$0xf]  ;;  %v16060_v38 = vld [vmem:[#allocation17 + $0xa20] sm:$0xf] }
 0x462   : > { %v18765_v19 = vld [vmem:[#allocation17 + $0xa2c] sm:$0xf0] }
 0x464   : > { %8478 = vmatpush.bf16.msra.mxu2 %v15841_v24  ;;  %14761 = vmatmul.msk.f32.vlgmr.msrb.gmra.mxu1 %vm5621_vm8, %v19393_v35  ;;  %v15406_v24 = vld [vmem:[#allocation17 + $0x510] sm:$0xf0] }
 0x465   : > { %8437 = vmatpush.bf16.msrb.mxu3 %v15489_v23  ;;  %v15409_v35 = vor.u32 %v18599_v20, %v15406_v24  ;;  %v14788_v23 = vld [vmem:[#allocation17 + $0x28] sm:$0xf]  ;;  %v18545_v20 = vld [vmem:[#allocation17 + $0x34c] sm:$0xf0]  ;;  %v18739_v24 = vld [vmem:[#allocation17 + $0x964] sm:$0xf] }
 0x466   : > { %v15969_v47 = vor.u32 %v18739_v24, %v15966_v16  ;;  %v15740_v16 = vld [vmem:[#allocation17 + $0x7a0] sm:$0xf] }
 0x468   : > { %8479 = vmatpush.bf16.msra.mxu2 %v15825_v8  ;;  %v16141_v8 = vor.u32 %v18785_v43, %v16140_v46  ;;  %v15985_v46 = vor.u32 %v18743_v39, %v15982_v37  ;;  %v15180_v43 = vld [vmem:[#allocation17 + $0x340] sm:$0xf]  ;;  %v18689_v37 = vld [vmem:[#allocation17 + $0x7cc] sm:$0xf0] }
 0x469   : > { %8438 = vmatpush.bf16.msrb.mxu3 %v15473_v27  ;;  %v15181_v10 = vor.u32 %v18545_v20, %v15180_v43  ;;  %v15756_v39 = vld [vmem:[#allocation17 + $0x7c0] sm:$0xf]  ;;  %v18523_v43 = vld [vmem:[#allocation17 + $0x2a4] sm:$0xf]  ;;  %v15102_v20 = vld [vmem:[#allocation17 + $0x2b0] sm:$0xf0] }
 0x46c   : > { %8480 = vmatpush.bf16.msra.mxu2 %v15809_v44  ;;  %v15228_v44 = vld [vmem:[#allocation17 + $0x3a0] sm:$0xf] }
 0x46d   : > { %8439 = vmatpush.bf16.msrb.mxu3 %v15457_v0  ;;  %v15229_v54 = vor.u32 %v18557_v6, %v15228_v44  ;;  %v14772_v0 = vld [vmem:[#allocation17 + $0x8] sm:$0xf]  ;;  %v16061_v6 = vor.u32 %v18765_v19, %v16060_v38  ;;  %v18498_v38 = vld [vmem:[#allocation17 + $0x1d4] sm:$0xf0] }
 0x46e   : > { %v14773_v34 = vor.u32 %v18442_v17, %v14772_v0 }
 0x46f   : > { %8255 = vmatpush.bf16.msra.mxu1 %v15229_v54  ;;  %v18531_v54 = vld [vmem:[#allocation17 + $0x2e4] sm:$0xf] }
 0x470   : > { %8481 = vmatpush.bf16.msra.mxu2 %v15793_v55  ;;  %v18446_v55 = vld [vmem:[#allocation17 + $0x34] sm:$0xf0] }
 0x471   : > { %v5695_v25 = vpop.f32.mrf.mxu0  ;;  %8440 = vmatpush.bf16.msrb.mxu3 %v15441_v42  ;;  %v14789_v27 = vor.u32 %v18446_v55, %v14788_v23  ;;  %v16001_v42 = vor.u32 %v18747_v2, %v15998_v60  ;;  %v15348_v23 = vld [vmem:[#allocation17 + $0x488] sm:$0xf]  ;;  %v18586_v55 = vld [vmem:[#allocation17 + $0x494] sm:$0xf0]  ;;  %v15772_v2 = vld [vmem:[#allocation17 + $0x7e0] sm:$0xf] }
 0x472   : > { %v20585_v52 = vpack.c.bf16 %v5695_v25, %v5695_v25  ;;  %v15397_v25 = vor.u32 %v18598_v7, %v15396_v11  ;;  %v18693_v60 = vld [vmem:[#allocation17 + $0x7ec] sm:$0xf0]  ;;  %v18527_v7 = vld [vmem:[#allocation17 + $0x2c4] sm:$0xf] }
 0x473   : > { %8482 = vmatmul.bf16.vlgmr.msra.gmra.mxu2 %v20550_v36  ;;  %v15773_v0 = vor.u32 %v18693_v60, %v15772_v2  ;;  %v14964_v60 = vld [vmem:[#allocation17 + $0x188] sm:$0xf] }
 0x474   : > { %8526 = vmatpush.bf16.msrb.mxu2 %v14885_v9  ;;  %8248 = vmatmul.bf16.vlgmr.msra.gmra.mxu0 %v20585_v52  ;;  %v16017_v9 = vor.u32 %v18751_v50, %v16014_v5  ;;  %v16044_v50 = vld [vmem:[#allocation17 + $0xa00] sm:$0xf]  ;;  %v18761_v5 = vld [vmem:[#allocation17 + $0xa0c] sm:$0xf0] }
 0x475   : > { %8344 = vmatpush.bf16.msra.mxu0 %v16157_v56  ;;  %8441 = vmatpush.bf16.msrb.mxu3 %v15425_v61  ;;  %v16076_v56 = vld [vmem:[#allocation17 + $0xa40] sm:$0xf]  ;;  %v18594_v61 = vld [vmem:[#allocation17 + $0x4d4] sm:$0xf0] }
 0x476   : > { %v15381_v32 = vor.u32 %v18594_v61, %v15380_v22  ;;  %v15316_v22 = vld [vmem:[#allocation17 + $0x448] sm:$0xf]  ;;  %v18578_v61 = vld [vmem:[#allocation17 + $0x454] sm:$0xf0] }
 0x478   : > { %8527 = vmatpush.bf16.msrb.mxu2 %v14869_v4  ;;  %v15213_v4 = vor.u32 %v18553_v33, %v15212_v31  ;;  %v18537_v31 = vld [vmem:[#allocation17 + $0x30c] sm:$0xf0]  ;;  %v15934_v33 = vld [vmem:[#allocation17 + $0x930] sm:$0xf0] }
 0x479   : > { %8345 = vmatpush.bf16.msra.mxu0 %v16141_v8  ;;  %8442 = vmatpush.bf16.msrb.mxu3 %v15409_v35  ;;  %v5780_v51 = vpop.f32.mrf.mxu0  ;;  %v15364_v8 = vld [vmem:[#allocation17 + $0x4a8] sm:$0xf]  ;;  %v15164_v35 = vld [vmem:[#allocation17 + $0x320] sm:$0xf]  ;;  %v15937_v11 = vor.u32 %v18731_v29, %v15934_v33 }
 0x47a   : > { %8256 = vmatpush.bf16.msra.mxu1 %v15213_v4  ;;  %v20589_v59 = vpack.c.bf16 %v5780_v51, %v5780_v51  ;;  %v15165_v44 = vor.u32 %v18541_v28, %v15164_v35  ;;  %v16045_v4 = vor.u32 %v18761_v5, %v16044_v50  ;;  %v15332_v51 = vld [vmem:[#allocation17 + $0x468] sm:$0xf]  ;;  %v18519_v35 = vld [vmem:[#allocation17 + $0x284] sm:$0xf]  ;;  %v15086_v28 = vld [vmem:[#allocation17 + $0x290] sm:$0xf0] }
 0x47b   : > { %v18494_v50 = vld [vmem:[#allocation17 + $0x1b4] sm:$0xf0]  ;;  %v15908_v29 = vld [vmem:[#allocation17 + $0x8e8] sm:$0xf]  ;;  %v15708_v33 = vld [vmem:[#allocation17 + $0x760] sm:$0xf] }
 0x47c   : > { %8528 = vmatpush.bf16.msrb.mxu2 %v14853_v18  ;;  %8443 = vmatmul.bf16.vlgmr.msrb.gmra.mxu3 %v20565_v48  ;;  %v18773_v18 = vld [vmem:[#allocation17 + $0xa6c] sm:$0xf0] }
 0x47d   : > { %8487 = vmatpush.bf16.msra.mxu3 %v16033_v49  ;;  %8346 = vmatpush.bf16.msra.mxu0 %v16125_v40  ;;  %v16093_v12 = vor.u32 %v18773_v18, %v16092_v57  ;;  %v15950_v49 = vld [vmem:[#allocation17 + $0x950] sm:$0xf0]  ;;  %v18582_v18 = vld [vmem:[#allocation17 + $0x474] sm:$0xf0] }
 0x47e   : > { %v15134_v40 = vld [vmem:[#allocation17 + $0x2f0] sm:$0xf0]  ;;  %v15953_v3 = vor.u32 %v18735_v26, %v15950_v49  ;;  %v15724_v49 = vld [vmem:[#allocation17 + $0x780] sm:$0xf] }
 0x47f   : > { %v15137_v17 = vor.u32 %v18531_v54, %v15134_v40  ;;  %v15089_v54 = vor.u32 %v18519_v35, %v15086_v28  ;;  %v18515_v40 = vld [vmem:[#allocation17 + $0x264] sm:$0xf]  ;;  %v15646_v35 = vld [vmem:[#allocation17 + $0x6f0] sm:$0xf0]  ;;  %v15660_v28 = vld [vmem:[#allocation17 + $0x700] sm:$0xf] }
 0x480   : > { %8529 = vmatpush.bf16.msrb.mxu2 %v14837_v41  ;;  %v15197_v41 = vor.u32 %v18549_v21, %v15196_v45  ;;  %v18727_v45 = vld [vmem:[#allocation17 + $0x904] sm:$0xf]  ;;  %v15918_v21 = vld [vmem:[#allocation17 + $0x910] sm:$0xf0] }
 0x481   : > { %8488 = vmatpush.bf16.msra.mxu3 %v16017_v9  ;;  %8347 = vmatpush.bf16.msra.mxu0 %v16109_v62  ;;  %v15148_v9 = vld [vmem:[#allocation17 + $0x300] sm:$0xf]  ;;  %v15349_v62 = vor.u32 %v18586_v55, %v15348_v23  ;;  %v5865_v57 = vpop.f32.mrf.mxu0  ;;  %v15284_v23 = vld [vmem:[#allocation17 + $0x408] sm:$0xf]  ;;  %v18570_v55 = vld [vmem:[#allocation17 + $0x414] sm:$0xf0] }
 0x482   : > { %8257 = vmatpush.bf16.msra.mxu1 %v15197_v41  ;;  %v15333_v41 = vor.u32 %v18582_v18, %v15332_v51  ;;  %v15285_v2 = vor.u32 %v18570_v55, %v15284_v23  ;;  %v15054_v51 = vld [vmem:[#allocation17 + $0x250] sm:$0xf0]  ;;  %v15892_v18 = vld [vmem:[#allocation17 + $0x8c8] sm:$0xf]  ;;  %v18655_v55 = vld [vmem:[#allocation17 + $0x6c4] sm:$0xf] }
 0x484   : > { %8530 = vmatpush.bf16.msrb.mxu2 %v14821_v58  ;;  %8300 = vmatmul.bf16.vlgmr.msrb.gmra.mxu0 %v20589_v59  ;;  %v16077_v58 = vor.u32 %v18769_v53, %v16076_v56  ;;  %v15757_v56 = vor.u32 %v18689_v37, %v15756_v39  ;;  %v18486_v39 = vld [vmem:[#allocation17 + $0x174] sm:$0xf0] }
 0x485   : > { %8489 = vmatpush.bf16.msra.mxu3 %v16001_v42  ;;  %8348 = vmatpush.bf16.msra.mxu0 %v16093_v12  ;;  %v15118_v42 = vld [vmem:[#allocation17 + $0x2d0] sm:$0xf0]  ;;  %v15012_v12 = vld [vmem:[#allocation17 + $0x1e8] sm:$0xf] }
 0x486   : > { %8258 = vmatpush.bf16.msra.mxu1 %v15181_v10  ;;  %v15121_v53 = vor.u32 %v18527_v7, %v15118_v42  ;;  %v18685_v10 = vld [vmem:[#allocation17 + $0x7ac] sm:$0xf0]  ;;  %v15692_v42 = vld [vmem:[#allocation17 + $0x740] sm:$0xf] }
 0x487   : > { %v15741_v19 = vor.u32 %v18685_v10, %v15740_v16 }
 0x488   : > { %8531 = vmatpush.bf16.msrb.mxu2 %v14805_v1  ;;  %v15365_v1 = vor.u32 %v18590_v30, %v15364_v8  ;;  %v15105_v8 = vor.u32 %v18523_v43, %v15102_v20  ;;  %v15300_v30 = vld [vmem:[#allocation17 + $0x428] sm:$0xf]  ;;  %v18669_v43 = vld [vmem:[#allocation17 + $0x72c] sm:$0xf0] }
 0x489   : > { %8490 = vmatpush.bf16.msra.mxu3 %v15985_v46  ;;  %8349 = vmatpush.bf16.msra.mxu0 %v16077_v58  ;;  %v15921_v46 = vor.u32 %v18727_v45, %v15918_v21  ;;  %v15317_v58 = vor.u32 %v18578_v61, %v15316_v22  ;;  %v18673_v45 = vld [vmem:[#allocation17 + $0x74c] sm:$0xf0]  ;;  %v14948_v21 = vld [vmem:[#allocation17 + $0x168] sm:$0xf]  ;;  %v18718_v22 = vld [vmem:[#allocation17 + $0x8b4] sm:$0xf0] }
 0x48a   : > { %8259 = vmatpush.bf16.msra.mxu1 %v15165_v44  ;;  %v18681_v44 = vld [vmem:[#allocation17 + $0x78c] sm:$0xf0]  ;;  %v15693_v37 = vor.u32 %v18673_v45, %v15692_v42  ;;  %v14949_v61 = vor.u32 %v18486_v39, %v14948_v21  ;;  %v14932_v20 = vld [vmem:[#allocation17 + $0x148] sm:$0xf]  ;;  %v18702_v21 = vld [vmem:[#allocation17 + $0x834] sm:$0xf0] }
 0x48b   : > { %v15725_v5 = vor.u32 %v18681_v44, %v15724_v49  ;;  %v14916_v49 = vld [vmem:[#allocation17 + $0x128] sm:$0xf]  ;;  %v18478_v44 = vld [vmem:[#allocation17 + $0x134] sm:$0xf0]  ;;  %v18647_v39 = vld [vmem:[#allocation17 + $0x684] sm:$0xf] }
 0x48c   : > { %8532 = vmatpush.bf16.msrb.mxu2 %v14789_v27  ;;  %v15149_v27 = vor.u32 %v18537_v31, %v15148_v9  ;;  %v18726_v9 = vld [vmem:[#allocation17 + $0x8f4] sm:$0xf0]  ;;  %v14917_v23 = vor.u32 %v18478_v44, %v14916_v49  ;;  %v15812_v45 = vld [vmem:[#allocation17 + $0x828] sm:$0xf] }
 0x48d   : > { %8491 = vmatpush.bf16.msra.mxu3 %v15969_v47  ;;  %8350 = vmatpush.bf16.msra.mxu0 %v16061_v6  ;;  %v18574_v47 = vld [vmem:[#allocation17 + $0x434] sm:$0xf0]  ;;  %v15460_v44 = vld [vmem:[#allocation17 + $0x568] sm:$0xf] }
 0x48e   : > { %8260 = vmatpush.bf16.msra.mxu1 %v15149_v27  ;;  %v15301_v6 = vor.u32 %v18574_v47, %v15300_v30  ;;  %v18677_v27 = vld [vmem:[#allocation17 + $0x76c] sm:$0xf0]  ;;  %v18714_v30 = vld [vmem:[#allocation17 + $0x894] sm:$0xf0] }
 0x490   : > { %8533 = vmatpush.bf16.msrb.mxu2 %v14773_v34  ;;  %v20593_v34 = vpack.c.bf16 %v5865_v57, %v5865_v57 }
 0x491   : > { %8492 = vmatpush.bf16.msra.mxu3 %v15953_v3  ;;  %8351 = vmatpush.bf16.msra.mxu0 %v16045_v4  ;;  %v15070_v3 = vld [vmem:[#allocation17 + $0x270] sm:$0xf0]  ;;  %v18490_v4 = vld [vmem:[#allocation17 + $0x194] sm:$0xf0] }
 0x492   : > { %8305 = vmatpush.bf16.msrb.mxu1 %v15773_v0  ;;  %v15073_v57 = vor.u32 %v18515_v40, %v15070_v3  ;;  %v15909_v0 = vor.u32 %v18726_v9, %v15908_v29  ;;  %v14965_v7 = vor.u32 %v18490_v4, %v14964_v60  ;;  %v18710_v40 = vld [vmem:[#allocation17 + $0x874] sm:$0xf0]  ;;  %v15630_v3 = vld [vmem:[#allocation17 + $0x6d0] sm:$0xf0]  ;;  %v14900_v29 = vld [vmem:[#allocation17 + $0x108] sm:$0xf] }
 0x493   : > { %8534 = vmatmul.bf16.vlgmr.msrb.gmra.mxu2 %v20529_v13  ;;  %v18474_v9 = vld [vmem:[#allocation17 + $0x114] sm:$0xf0]  ;;  %v15828_v60 = vld [vmem:[#allocation17 + $0x848] sm:$0xf] }
 0x494   : > { %8578 = vmatpush.bf16.msra.mxu2 %v15397_v25  ;;  %v18502_v25 = vld [vmem:[#allocation17 + $0x1f4] sm:$0xf0]  ;;  %8352 = vmatmul.bf16.vlgmr.msra.gmra.mxu0 %v20593_v34 }
 0x495   : > { %8396 = vmatpush.bf16.msrb.mxu0 %v15137_v17  ;;  %8493 = vmatpush.bf16.msra.mxu3 %v15937_v11  ;;  %v15013_v24 = vor.u32 %v18502_v25, %v15012_v12  ;;  %v18511_v17 = vld [vmem:[#allocation17 + $0x244] sm:$0xf]  ;;  %v18722_v11 = vld [vmem:[#allocation17 + $0x8d4] sm:$0xf0] }
 0x496   : > { %8306 = vmatpush.bf16.msrb.mxu1 %v15757_v56  ;;  %v15893_v12 = vor.u32 %v18722_v11, %v15892_v18  ;;  %v18507_v25 = vld [vmem:[#allocation17 + $0x224] sm:$0xf]  ;;  %v15038_v56 = vld [vmem:[#allocation17 + $0x230] sm:$0xf0]  ;;  %v18706_v4 = vld [vmem:[#allocation17 + $0x854] sm:$0xf0] }
 0x497   : > { %v15041_v10 = vor.u32 %v18507_v25, %v15038_v56  ;;  %v15508_v18 = vld [vmem:[#allocation17 + $0x5c8] sm:$0xf]  ;;  %v18626_v11 = vld [vmem:[#allocation17 + $0x5d4] sm:$0xf0] }
 0x498   : > { %8579 = vmatpush.bf16.msra.mxu2 %v15381_v32  ;;  %v14996_v32 = vld [vmem:[#allocation17 + $0x1c8] sm:$0xf]  ;;  %v18622_v56 = vld [vmem:[#allocation17 + $0x5b4] sm:$0xf0] }
 0x499   : > { %8397 = vmatpush.bf16.msrb.mxu0 %v15121_v53  ;;  %8494 = vmatpush.bf16.msra.mxu3 %v15921_v46  ;;  %v14997_v26 = vor.u32 %v18498_v38, %v14996_v32  ;;  %v15876_v53 = vld [vmem:[#allocation17 + $0x8a8] sm:$0xf]  ;;  %v15676_v46 = vld [vmem:[#allocation17 + $0x720] sm:$0xf]  ;;  %v18503_v32 = vld [vmem:[#allocation17 + $0x204] sm:$0xf] }
 0x49a   : > { %8307 = vmatpush.bf16.msrb.mxu1 %v15741_v19  ;;  %v15677_v16 = vor.u32 %v18669_v43, %v15676_v46  ;;  %v15022_v38 = vld [vmem:[#allocation17 + $0x210] sm:$0xf0]  ;;  %v18659_v19 = vld [vmem:[#allocation17 + $0x6e4] sm:$0xf]  ;;  %v15492_v25 = vld [vmem:[#allocation17 + $0x5a8] sm:$0xf] }
 0x49b   : > { %v18698_v46 = vld [vmem:[#allocation17 + $0x814] sm:$0xf0]  ;;  %v15582_v43 = vld [vmem:[#allocation17 + $0x670] sm:$0xf0] }
 0x49c   : > { %8580 = vmatpush.bf16.msra.mxu2 %v15365_v1  ;;  %v14980_v1 = vld [vmem:[#allocation17 + $0x1a8] sm:$0xf]  ;;  %8495 = vmatmul.bf16.vlgmr.msra.gmra.mxu3 %v20573_v14 }
 0x49d   : > { %8539 = vmatpush.bf16.msrb.mxu3 %v15013_v24  ;;  %8398 = vmatpush.bf16.msrb.mxu0 %v15105_v8  ;;  %v14981_v31 = vor.u32 %v18494_v50, %v14980_v1  ;;  %v18482_v24 = vld [vmem:[#allocation17 + $0x154] sm:$0xf0]  ;;  %v15860_v8 = vld [vmem:[#allocation17 + $0x888] sm:$0xf]  ;;  %v15025_v1 = vor.u32 %v18503_v32, %v15022_v38 }
 0x49e   : > { %8308 = vmatpush.bf16.msrb.mxu1 %v15725_v5  ;;  %v14933_v47 = vor.u32 %v18482_v24, %v14932_v20  ;;  %v15861_v50 = vor.u32 %v18714_v30, %v15860_v8  ;;  %v15649_v5 = vor.u32 %v18659_v19, %v15646_v35  ;;  %v18468_v20 = vld [vmem:[#allocation17 + $0xec] sm:$0xf]  ;;  %v14886_v24 = vld [vmem:[#allocation17 + $0xf8] sm:$0xf0]  ;;  %v18618_v32 = vld [vmem:[#allocation17 + $0x594] sm:$0xf0] }
 0x49f   : > { %v14889_v8 = vor.u32 %v18468_v20, %v14886_v24  ;;  %v18639_v30 = vld [vmem:[#allocation17 + $0x644] sm:$0xf]  ;;  %v18464_v35 = vld [vmem:[#allocation17 + $0xcc] sm:$0xf]  ;;  %v14822_v24 = vld [vmem:[#allocation17 + $0x78] sm:$0xf0] }
 0x4a0   : > { %8581 = vmatpush.bf16.msra.mxu2 %v15349_v62  ;;  %v15709_v62 = vor.u32 %v18677_v27, %v15708_v33  ;;  %v15524_v33 = vld [vmem:[#allocation17 + $0x5e8] sm:$0xf]  ;;  %v18630_v27 = vld [vmem:[#allocation17 + $0x5f4] sm:$0xf0]  ;;  %v18452_v20 = vld [vmem:[#allocation17 + $0x6c] sm:$0xf] }
 0x4a1   : > { %8540 = vmatpush.bf16.msrb.mxu3 %v14997_v26  ;;  %8399 = vmatpush.bf16.msrb.mxu0 %v15089_v54  ;;  %v18665_v26 = vld [vmem:[#allocation17 + $0x70c] sm:$0xf0]  ;;  %v15844_v54 = vld [vmem:[#allocation17 + $0x868] sm:$0xf] }
 0x4a2   : > { %8309 = vmatpush.bf16.msrb.mxu1 %v15709_v62  ;;  %v14901_v62 = vor.u32 %v18474_v9, %v14900_v29  ;;  %v18610_v29 = vld [vmem:[#allocation17 + $0x554] sm:$0xf0] }
 0x4a4   : > { %8582 = vmatpush.bf16.msra.mxu2 %v15333_v41  ;;  %v15057_v41 = vor.u32 %v18511_v17, %v15054_v51  ;;  %v15525_v17 = vor.u32 %v18630_v27, %v15524_v33  ;;  %v15829_v51 = vor.u32 %v18706_v4, %v15828_v60  ;;  %v18631_v27 = vld [vmem:[#allocation17 + $0x604] sm:$0xf]  ;;  %v16284_v60 = vld [vmem:[#allocation17 + $0xbe0] sm:$0xf]  ;;  %v18821_v4 = vld [vmem:[#allocation17 + $0xbec] sm:$0xf0] }
 0x4a5   : > { %8541 = vmatpush.bf16.msrb.mxu3 %v14981_v31  ;;  %8400 = vmatpush.bf16.msrb.mxu0 %v15073_v57  ;;  %v15845_v31 = vor.u32 %v18710_v40, %v15844_v54  ;;  %v18651_v57 = vld [vmem:[#allocation17 + $0x6a4] sm:$0xf]  ;;  %v15550_v54 = vld [vmem:[#allocation17 + $0x630] sm:$0xf0]  ;;  %v18460_v40 = vld [vmem:[#allocation17 + $0xac] sm:$0xf] }
 0x4a6   : > { %8310 = vmatpush.bf16.msrb.mxu1 %v15693_v37  ;;  %v15598_v37 = vld [vmem:[#allocation17 + $0x690] sm:$0xf0] }
 0x4a8   : > { %8583 = vmatpush.bf16.msra.mxu2 %v15317_v58  ;;  %v15877_v58 = vor.u32 %v18718_v22, %v15876_v53  ;;  %v15601_v53 = vor.u32 %v18647_v39, %v15598_v37  ;;  %v18643_v22 = vld [vmem:[#allocation17 + $0x664] sm:$0xf]  ;;  %v16285_v39 = vor.u32 %v18821_v4, %v16284_v60  ;;  %v16004_v4 = vld [vmem:[#allocation17 + $0x9a8] sm:$0xf] }
 0x4a9   : > { %8542 = vmatpush.bf16.msrb.mxu3 %v14965_v7  ;;  %8401 = vmatpush.bf16.msrb.mxu0 %v15057_v41  ;;  %v20599_v7 = vpop.f32.mrf.mxu2  ;;  %v15509_v41 = vor.u32 %v18626_v11, %v15508_v18  ;;  %v15585_v19 = vor.u32 %v18643_v22, %v15582_v43  ;;  %v18606_v18 = vld [vmem:[#allocation17 + $0x534] sm:$0xf0]  ;;  %v18456_v11 = vld [vmem:[#allocation17 + $0x8c] sm:$0xf]  ;;  %v18783_v22 = vld [vmem:[#allocation17 + $0xac4] sm:$0xf] }
 0x4aa   : > { %8311 = vmatpush.bf16.msrb.mxu1 %v15677_v16  ;;  %v15493_v16 = vor.u32 %v18622_v56, %v15492_v25  ;;  %v18602_v43 = vld [vmem:[#allocation17 + $0x514] sm:$0xf0] }
 0x4ac   : > { %8584 = vmatpush.bf16.msra.mxu2 %v15301_v6  ;;  %v15661_v6 = vor.u32 %v18665_v26, %v15660_v28  ;;  %v14870_v28 = vld [vmem:[#allocation17 + $0xd8] sm:$0xf0]  ;;  %v20602_v26 = vpop.f32.mrf.mxu3 }
 0x4ad   : > { %8543 = vmatpush.bf16.msrb.mxu3 %v14949_v61  ;;  %8402 = vmatpush.bf16.msrb.mxu0 %v15041_v10  ;;  %v15796_v61 = vld [vmem:[#allocation17 + $0x808] sm:$0xf] }
 0x4ae   : > { %8312 = vmatpush.bf16.msrb.mxu1 %v15661_v6  ;;  %v15797_v10 = vor.u32 %v18698_v46, %v15796_v61  ;;  %v18614_v6 = vld [vmem:[#allocation17 + $0x574] sm:$0xf0]  ;;  %v16142_v61 = vld [vmem:[#allocation17 + $0xad0] sm:$0xf0]  ;;  %v15412_v46 = vld [vmem:[#allocation17 + $0x508] sm:$0xf] }
 0x4b0   : > { %8585 = vmatpush.bf16.msra.mxu2 %v15285_v2  ;;  %v15633_v2 = vor.u32 %v18655_v55, %v15630_v3  ;;  %v15461_v55 = vor.u32 %v18614_v6, %v15460_v44  ;;  %v15444_v3 = vld [vmem:[#allocation17 + $0x548] sm:$0xf]  ;;  %v18448_v6 = vld [vmem:[#allocation17 + $0x4c] sm:$0xf] }
 0x4b1   : > { %8544 = vmatpush.bf16.msrb.mxu3 %v14933_v47  ;;  %8403 = vmatpush.bf16.msrb.mxu0 %v15025_v1  ;;  %v8225_v38 = vpop.f32.mrf.mxu2  ;;  %v15566_v47 = vld [vmem:[#allocation17 + $0x650] sm:$0xf0] }
 0x4b2   : > { %v15569_v1 = vor.u32 %v18639_v30, %v15566_v47  ;;  %v16145_v38 = vor.u32 %v18783_v22, %v16142_v61  ;;  %v15413_v30 = vor.u32 %v18602_v43, %v15412_v46  ;;  %v14825_v47 = vor.u32 %v18452_v20, %v14822_v24  ;;  %v18596_v22 = vld [vmem:[#allocation17 + $0x4ec] sm:$0xf]  ;;  %v15398_v61 = vld [vmem:[#allocation17 + $0x4f8] sm:$0xf0]  ;;  %v16204_v20 = vld [vmem:[#allocation17 + $0xb40] sm:$0xf] }
 0x4b3   : > { %8586 = vmatmul.bf16.vlgmr.msra.gmra.mxu2 %v20541_v63 }
 0x4b4   : > { %8630 = vmatpush.bf16.msrb.mxu2 %v15909_v0  ;;  %v15614_v0 = vld [vmem:[#allocation17 + $0x6b0] sm:$0xf0]  ;;  %8404 = vmatmul.bf16.vlgmr.msrb.gmra.mxu0 %v20585_v52 }
 0x4b5   : > { %8448 = vmatpush.bf16.msra.mxu0 %v15649_v5  ;;  %8545 = vmatpush.bf16.msrb.mxu3 %v14917_v23  ;;  %v15617_v42 = vor.u32 %v18651_v57, %v15614_v0  ;;  %v18635_v5 = vld [vmem:[#allocation17 + $0x624] sm:$0xf]  ;;  %v14854_v23 = vld [vmem:[#allocation17 + $0xb8] sm:$0xf0]  ;;  %v15445_v57 = vor.u32 %v18610_v29, %v15444_v3  ;;  %v18809_v3 = vld [vmem:[#allocation17 + $0xb8c] sm:$0xf0] }
 0x4b6   : > { %v14857_v33 = vor.u32 %v18460_v40, %v14854_v23  ;;  %v18787_v0 = vld [vmem:[#allocation17 + $0xae4] sm:$0xf]  ;;  %v16236_v23 = vld [vmem:[#allocation17 + $0xb80] sm:$0xf] }
 0x4b7   : > { %v18775_v29 = vld [vmem:[#allocation17 + $0xa84] sm:$0xf] }
 0x4b8   : > { %8631 = vmatpush.bf16.msrb.mxu2 %v15893_v12  ;;  %v15813_v12 = vor.u32 %v18702_v21, %v15812_v45 }
 0x4b9   : > { %8449 = vmatpush.bf16.msra.mxu0 %v15633_v2  ;;  %8546 = vmatpush.bf16.msrb.mxu3 %v14901_v62  ;;  %v20605_v9 = vpop.f32.mrf.mxu2  ;;  %v15534_v2 = vld [vmem:[#allocation17 + $0x610] sm:$0xf0]  ;;  %v8238_v62 = vpop.f32.mrf.mxu3 }
 0x4ba   : > { %v15537_v45 = vor.u32 %v18631_v27, %v15534_v2  ;;  %v18444_v27 = vld [vmem:[#allocation17 + $0x2c] sm:$0xf]  ;;  %v14790_v2 = vld [vmem:[#allocation17 + $0x38] sm:$0xf0]  ;;  %v18750_v62 = vld [vmem:[#allocation17 + $0x9b4] sm:$0xf0] }
 0x4bc   : > { %8632 = vmatpush.bf16.msrb.mxu2 %v15877_v58  ;;  %8547 = vmatmul.bf16.vlgmr.msrb.gmra.mxu3 %v20558_v15  ;;  %v15476_v58 = vld [vmem:[#allocation17 + $0x588] sm:$0xf] }
 0x4bd   : > { %8591 = vmatpush.bf16.msra.mxu3 %v15525_v17  ;;  %8450 = vmatpush.bf16.msra.mxu0 %v15617_v42  ;;  %v15477_v49 = vor.u32 %v18618_v32, %v15476_v58  ;;  %v16158_v17 = vld [vmem:[#allocation17 + $0xaf0] sm:$0xf0]  ;;  %v14838_v42 = vld [vmem:[#allocation17 + $0x98] sm:$0xf0]  ;;  %v18758_v58 = vld [vmem:[#allocation17 + $0x9f4] sm:$0xf0] }
 0x4be   : > { %v16161_v37 = vor.u32 %v18787_v0, %v16158_v17 }
 0x4c0   : > { %8633 = vmatpush.bf16.msrb.mxu2 %v15861_v50  ;;  %v14873_v50 = vor.u32 %v18464_v35, %v14870_v28  ;;  %v18813_v35 = vld [vmem:[#allocation17 + $0xbac] sm:$0xf0]  ;;  %v18779_v28 = vld [vmem:[#allocation17 + $0xaa4] sm:$0xf] }
 0x4c1   : > { %8592 = vmatpush.bf16.msra.mxu3 %v15509_v41  ;;  %8451 = vmatpush.bf16.msra.mxu0 %v15601_v53  ;;  %v16268_v41 = vld [vmem:[#allocation17 + $0xbc0] sm:$0xf]  ;;  %v14841_v53 = vor.u32 %v18456_v11, %v14838_v42  ;;  %v14793_v11 = vor.u32 %v18444_v27, %v14790_v2  ;;  %v18805_v42 = vld [vmem:[#allocation17 + $0xb6c] sm:$0xf0] }
 0x4c2   : > { %v16172_v2 = vld [vmem:[#allocation17 + $0xb00] sm:$0xf] }
 0x4c4   : > { %8634 = vmatpush.bf16.msrb.mxu2 %v15845_v31  ;;  %v15553_v31 = vor.u32 %v18635_v5, %v15550_v54  ;;  %v18754_v5 = vld [vmem:[#allocation17 + $0x9d4] sm:$0xf0] }
 0x4c5   : > { %8593 = vmatpush.bf16.msra.mxu3 %v15493_v16  ;;  %8452 = vmatpush.bf16.msra.mxu0 %v15585_v19  ;;  %v8277_v16 = vpop.f32.mrf.mxu2  ;;  %v16252_v19 = vld [vmem:[#allocation17 + $0xba0] sm:$0xf] }
 0x4c6   : > { %v16253_v54 = vor.u32 %v18813_v35, %v16252_v19  ;;  %v18801_v16 = vld [vmem:[#allocation17 + $0xb4c] sm:$0xf0]  ;;  %v15972_v19 = vld [vmem:[#allocation17 + $0x968] sm:$0xf]  ;;  %v18592_v35 = vld [vmem:[#allocation17 + $0x4cc] sm:$0xf] }
 0x4c8   : > { %8635 = vmatpush.bf16.msrb.mxu2 %v15829_v51  ;;  %v15428_v51 = vld [vmem:[#allocation17 + $0x528] sm:$0xf] }
 0x4c9   : > { %8594 = vmatpush.bf16.msra.mxu3 %v15477_v49  ;;  %8453 = vmatpush.bf16.msra.mxu0 %v15569_v1  ;;  %v15429_v56 = vor.u32 %v18606_v18, %v15428_v51  ;;  %v16126_v49 = vld [vmem:[#allocation17 + $0xab0] sm:$0xf0]  ;;  %v14806_v1 = vld [vmem:[#allocation17 + $0x58] sm:$0xf0]  ;;  %v16220_v51 = vld [vmem:[#allocation17 + $0xb60] sm:$0xf] }
 0x4ca   : > { %v16129_v40 = vor.u32 %v18779_v28, %v16126_v49  ;;  %v16221_v46 = vor.u32 %v18805_v42, %v16220_v51  ;;  %v15382_v28 = vld [vmem:[#allocation17 + $0x4d8] sm:$0xf0]  ;;  %v16205_v49 = vor.u32 %v18801_v16, %v16204_v20  ;;  %v18534_v42 = vld [vmem:[#allocation17 + $0x2f4] sm:$0xf0]  ;;  %v15246_v20 = vld [vmem:[#allocation17 + $0x3d0] sm:$0xf0] }
 0x4cc   : > { %8636 = vmatpush.bf16.msrb.mxu2 %v15813_v12  ;;  %v18817_v12 = vld [vmem:[#allocation17 + $0xbcc] sm:$0xf0] }
 0x4cd   : > { %8595 = vmatpush.bf16.msra.mxu3 %v15461_v55  ;;  %8454 = vmatpush.bf16.msra.mxu0 %v15553_v31  ;;  %v16269_v32 = vor.u32 %v18817_v12, %v16268_v41  ;;  %v14809_v55 = vor.u32 %v18448_v6, %v14806_v1  ;;  %v16110_v31 = vld [vmem:[#allocation17 + $0xa90] sm:$0xf0]  ;;  %v20613_v60 = vpop.f32.mrf.mxu2  ;;  %v14774_v41 = vld [vmem:[#allocation17 + $0x18] sm:$0xf0]  ;;  %v15988_v12 = vld [vmem:[#allocation17 + $0x988] sm:$0xf] }
 0x4ce   : > { %v16113_v0 = vor.u32 %v18775_v29, %v16110_v31  ;;  %v16188_v6 = vld [vmem:[#allocation17 + $0xb20] sm:$0xf]  ;;  %v18588_v29 = vld [vmem:[#allocation17 + $0x4ac] sm:$0xf]  ;;  %v15366_v31 = vld [vmem:[#allocation17 + $0x4b8] sm:$0xf0] }
 0x4d0   : > { %8637 = vmatpush.bf16.msrb.mxu2 %v15797_v10  ;;  %v16036_v10 = vld [vmem:[#allocation17 + $0x9e8] sm:$0xf] }
 0x4d1   : > { %v5715_v21 = vpop.f32.mrf.mxu1  ;;  %8596 = vmatpush.bf16.msra.mxu3 %v15445_v57  ;;  %8455 = vmatpush.bf16.msra.mxu0 %v15537_v45  ;;  %v16037_v44 = vor.u32 %v18758_v58, %v16036_v10  ;;  %v16237_v57 = vor.u32 %v18809_v3, %v16236_v23  ;;  %v18771_v45 = vld [vmem:[#allocation17 + $0xa64] sm:$0xf]  ;;  %v16078_v58 = vld [vmem:[#allocation17 + $0xa50] sm:$0xf0]  ;;  %v15385_v23 = vor.u32 %v18592_v35, %v15382_v28  ;;  %v18738_v3 = vld [vmem:[#allocation17 + $0x954] sm:$0xf0] }
 0x4d2   : > { %v20607_v25 = vpack.c.bf16 %v5715_v21, %v5715_v21  ;;  %v16094_v21 = vld [vmem:[#allocation17 + $0xa70] sm:$0xf0]  ;;  %v18767_v10 = vld [vmem:[#allocation17 + $0xa44] sm:$0xf]  ;;  %v18500_v35 = vld [vmem:[#allocation17 + $0x1ec] sm:$0xf] }
 0x4d3   : > { %8638 = vmatmul.bf16.vlgmr.msrb.gmra.mxu2 %v20550_v36  ;;  %v16097_v43 = vor.u32 %v18771_v45, %v16094_v21  ;;  %v15940_v45 = vld [vmem:[#allocation17 + $0x928] sm:$0xf]  ;;  %v15014_v28 = vld [vmem:[#allocation17 + $0x1f8] sm:$0xf0] }
 0x4d4   : > { %8682 = vmatpush.bf16.msra.mxu2 %v14889_v8  ;;  %8261 = vmatmul.bf16.vlgmr.msra.gmra.mxu1 %v20607_v25  ;;  %v20610_v8 = vpop.f32.mrf.mxu3 }
 0x4d5   : > { %8357 = vmatpush.bf16.msra.mxu1 %v16285_v39  ;;  %8500 = vmatpush.bf16.msrb.mxu0 %v16161_v37  ;;  %v16005_v39 = vor.u32 %v18750_v62, %v16004_v4  ;;  %v18440_v37 = vld [vmem:[#allocation17 + $0xc] sm:$0xf]  ;;  %v18793_v4 = vld [vmem:[#allocation17 + $0xb0c] sm:$0xf0]  ;;  %v18759_v62 = vld [vmem:[#allocation17 + $0xa04] sm:$0xf] }
 0x4d6   : > { %8597 = vmatpush.bf16.msra.mxu3 %v15429_v56  ;;  %8456 = vmatmul.bf16.vlgmr.msra.gmra.mxu0 %v20589_v59  ;;  %v14777_v24 = vor.u32 %v18440_v37, %v14774_v41  ;;  %v18584_v37 = vld [vmem:[#allocation17 + $0x48c] sm:$0xf]  ;;  %v15350_v41 = vld [vmem:[#allocation17 + $0x498] sm:$0xf0] }
 0x4d7   : > { %v15353_v16 = vor.u32 %v18584_v37, %v15350_v41  ;;  %v14982_v37 = vld [vmem:[#allocation17 + $0x1b8] sm:$0xf0] }
 0x4d8   : > { %8683 = vmatpush.bf16.msra.mxu2 %v14873_v50  ;;  %v16020_v50 = vld [vmem:[#allocation17 + $0x9c8] sm:$0xf] }
 0x4d9   : > { %8358 = vmatpush.bf16.msra.mxu1 %v16269_v32  ;;  %8501 = vmatpush.bf16.msrb.mxu0 %v16145_v38  ;;  %v5800_v17 = vpop.f32.mrf.mxu1  ;;  %v15401_v38 = vor.u32 %v18596_v22, %v15398_v61 }
 0x4da   : > { %8598 = vmatpush.bf16.msra.mxu3 %v15413_v30  ;;  %v20616_v56 = vpack.c.bf16 %v5800_v17, %v5800_v17  ;;  %v8329_v30 = vpop.f32.mrf.mxu2  ;;  %v15262_v17 = vld [vmem:[#allocation17 + $0x3f0] sm:$0xf0] }
 0x4db   : > { %v18580_v30 = vld [vmem:[#allocation17 + $0x46c] sm:$0xf] }
 0x4dc   : > { %8684 = vmatpush.bf16.msra.mxu2 %v14857_v33  ;;  %v16021_v33 = vor.u32 %v18754_v5, %v16020_v50  ;;  %v8290_v18 = vpop.f32.mrf.mxu3  ;;  %v18797_v50 = vld [vmem:[#allocation17 + $0xb2c] sm:$0xf0]  ;;  %v18763_v5 = vld [vmem:[#allocation17 + $0xa24] sm:$0xf] }
 0x4dd   : > { %8359 = vmatpush.bf16.msra.mxu1 %v16253_v54  ;;  %8502 = vmatpush.bf16.msrb.mxu0 %v16129_v40  ;;  %v16062_v54 = vld [vmem:[#allocation17 + $0xa30] sm:$0xf0]  ;;  %v15369_v18 = vor.u32 %v18588_v29, %v15366_v31  ;;  %v18576_v29 = vld [vmem:[#allocation17 + $0x44c] sm:$0xf]  ;;  %v15318_v31 = vld [vmem:[#allocation17 + $0x458] sm:$0xf0] }
 0x4de   : > { %8643 = vmatpush.bf16.msrb.mxu3 %v16037_v44  ;;  %v16081_v44 = vor.u32 %v18767_v10, %v16078_v58  ;;  %v16065_v27 = vor.u32 %v18763_v5, %v16062_v54  ;;  %v15124_v10 = vld [vmem:[#allocation17 + $0x2c8] sm:$0xf]  ;;  %v18530_v58 = vld [vmem:[#allocation17 + $0x2d4] sm:$0xf0]  ;;  %v15230_v54 = vld [vmem:[#allocation17 + $0x3b0] sm:$0xf0] }
 0x4df   : > { %8599 = vmatmul.bf16.vlgmr.msra.gmra.mxu3 %v20565_v48 }
 0x4e0   : > { %8685 = vmatpush.bf16.msra.mxu2 %v14841_v53  ;;  %v18746_v53 = vld [vmem:[#allocation17 + $0x994] sm:$0xf0] }
 0x4e1   : > { %8360 = vmatpush.bf16.msra.mxu1 %v16237_v57  ;;  %8503 = vmatpush.bf16.msrb.mxu0 %v16113_v0  ;;  %v15989_v32 = vor.u32 %v18746_v53, %v15988_v12  ;;  %v16046_v57 = vld [vmem:[#allocation17 + $0xa10] sm:$0xf0]  ;;  %v18563_v0 = vld [vmem:[#allocation17 + $0x3e4] sm:$0xf]  ;;  %v16173_v12 = vor.u32 %v18793_v4, %v16172_v2 }
 0x4e2   : > { %8644 = vmatpush.bf16.msrb.mxu3 %v16021_v33  ;;  %v16189_v33 = vor.u32 %v18797_v50, %v16188_v6  ;;  %v20622_v21 = vpop.f32.mrf.mxu2  ;;  %v16049_v53 = vor.u32 %v18759_v62, %v16046_v57  ;;  %v15265_v61 = vor.u32 %v18563_v0, %v15262_v17  ;;  %v18555_v6 = vld [vmem:[#allocation17 + $0x3a4] sm:$0xf]  ;;  %v15321_v0 = vor.u32 %v18576_v29, %v15318_v31  ;;  %v15214_v17 = vld [vmem:[#allocation17 + $0x390] sm:$0xf0]  ;;  %v15894_v29 = vld [vmem:[#allocation17 + $0x8d8] sm:$0xf0] }
 0x4e3   : > { %v15233_v4 = vor.u32 %v18555_v6, %v15230_v54  ;;  %v18551_v57 = vld [vmem:[#allocation17 + $0x384] sm:$0xf]  ;;  %v15182_v6 = vld [vmem:[#allocation17 + $0x350] sm:$0xf0] }
 0x4e4   : > { %8686 = vmatpush.bf16.msra.mxu2 %v14825_v47  ;;  %8313 = vmatmul.bf16.vlgmr.msrb.gmra.mxu1 %v20616_v56  ;;  %v18742_v47 = vld [vmem:[#allocation17 + $0x974] sm:$0xf0]  ;;  %v20619_v1 = vpop.f32.mrf.mxu3  ;;  %v15217_v41 = vor.u32 %v18551_v57, %v15214_v17  ;;  %v15044_v57 = vld [vmem:[#allocation17 + $0x228] sm:$0xf] }
 0x4e5   : > { %8361 = vmatpush.bf16.msra.mxu1 %v16221_v46  ;;  %8504 = vmatpush.bf16.msrb.mxu0 %v16097_v43  ;;  %v15973_v40 = vor.u32 %v18742_v47, %v15972_v19  ;;  %v18559_v43 = vld [vmem:[#allocation17 + $0x3c4] sm:$0xf]  ;;  %v18730_v19 = vld [vmem:[#allocation17 + $0x914] sm:$0xf0]  ;;  %v15334_v47 = vld [vmem:[#allocation17 + $0x478] sm:$0xf0] }
 0x4e6   : > { %8645 = vmatpush.bf16.msrb.mxu3 %v16005_v39  ;;  %v18734_v39 = vld [vmem:[#allocation17 + $0x934] sm:$0xf0]  ;;  %v15337_v5 = vor.u32 %v18580_v30, %v15334_v47  ;;  %v15910_v30 = vld [vmem:[#allocation17 + $0x8f8] sm:$0xf0] }
 0x4e8   : > { %8687 = vmatpush.bf16.msra.mxu2 %v14809_v55  ;;  %v15956_v55 = vld [vmem:[#allocation17 + $0x948] sm:$0xf] }
 0x4e9   : > { %8362 = vmatpush.bf16.msra.mxu1 %v16205_v49  ;;  %8505 = vmatpush.bf16.msrb.mxu0 %v16081_v44  ;;  %v15957_v51 = vor.u32 %v18738_v3, %v15956_v55  ;;  %v15249_v49 = vor.u32 %v18559_v43, %v15246_v20  ;;  %v15125_v44 = vor.u32 %v18530_v58, %v15124_v10  ;;  %v18518_v43 = vld [vmem:[#allocation17 + $0x274] sm:$0xf0]  ;;  %v15286_v10 = vld [vmem:[#allocation17 + $0x418] sm:$0xf0]  ;;  %v18488_v58 = vld [vmem:[#allocation17 + $0x18c] sm:$0xf] }
 0x4ea   : > { %8646 = vmatpush.bf16.msrb.mxu3 %v15989_v32  ;;  %v15924_v32 = vld [vmem:[#allocation17 + $0x908] sm:$0xf]  ;;  %v8381_v55 = vpop.f32.mrf.mxu2  ;;  %v15017_v3 = vor.u32 %v18500_v35, %v15014_v28 }
 0x4eb   : > { %v15925_v50 = vor.u32 %v18730_v19, %v15924_v32  ;;  %v14966_v32 = vld [vmem:[#allocation17 + $0x198] sm:$0xf0]  ;;  %v18724_v19 = vld [vmem:[#allocation17 + $0x8ec] sm:$0xf] }
 0x4ec   : > { %8688 = vmatpush.bf16.msra.mxu2 %v14793_v11  ;;  %v15140_v11 = vld [vmem:[#allocation17 + $0x2e8] sm:$0xf]  ;;  %v8342_v22 = vpop.f32.mrf.mxu3  ;;  %v14969_v54 = vor.u32 %v18488_v58, %v14966_v32  ;;  %v14950_v55 = vld [vmem:[#allocation17 + $0x178] sm:$0xf0]  ;;  %v18662_v58 = vld [vmem:[#allocation17 + $0x6f4] sm:$0xf0] }
 0x4ed   : > { %8363 = vmatpush.bf16.msra.mxu1 %v16189_v33  ;;  %8506 = vmatpush.bf16.msrb.mxu0 %v16065_v27  ;;  %v15141_v46 = vor.u32 %v18534_v42, %v15140_v11  ;;  %v18496_v33 = vld [vmem:[#allocation17 + $0x1cc] sm:$0xf]  ;;  %v14998_v27 = vld [vmem:[#allocation17 + $0x1d8] sm:$0xf0] }
 0x4ee   : > { %8647 = vmatpush.bf16.msrb.mxu3 %v15973_v40  ;;  %v15108_v40 = vld [vmem:[#allocation17 + $0x2a8] sm:$0xf]  ;;  %v15001_v11 = vor.u32 %v18496_v33, %v14998_v27  ;;  %v18572_v42 = vld [vmem:[#allocation17 + $0x42c] sm:$0xf]  ;;  %v18539_v27 = vld [vmem:[#allocation17 + $0x324] sm:$0xf] }
 0x4ef   : > { %v18476_v32 = vld [vmem:[#allocation17 + $0x12c] sm:$0xf] }
 0x4f0   : > { %8689 = vmatpush.bf16.msra.mxu2 %v14777_v24  ;;  %v15941_v24 = vor.u32 %v18734_v39, %v15940_v45  ;;  %v15302_v45 = vld [vmem:[#allocation17 + $0x438] sm:$0xf0]  ;;  %v18492_v39 = vld [vmem:[#allocation17 + $0x1ac] sm:$0xf] }
 0x4f1   : > { %8364 = vmatpush.bf16.msra.mxu1 %v16173_v12  ;;  %8507 = vmatpush.bf16.msrb.mxu0 %v16049_v53  ;;  %v18547_v53 = vld [vmem:[#allocation17 + $0x364] sm:$0xf]  ;;  %v15305_v22 = vor.u32 %v18572_v42, %v15302_v45  ;;  %v14934_v42 = vld [vmem:[#allocation17 + $0x158] sm:$0xf0]  ;;  %v18716_v45 = vld [vmem:[#allocation17 + $0x8ac] sm:$0xf] }
 0x4f2   : > { %8648 = vmatpush.bf16.msrb.mxu3 %v15957_v51  ;;  %v15092_v51 = vld [vmem:[#allocation17 + $0x288] sm:$0xf]  ;;  %v20633_v20 = vpop.f32.mrf.mxu2 }
 0x4f3   : > { %8690 = vmatmul.bf16.vlgmr.msra.gmra.mxu2 %v20529_v13  ;;  %v5885_v13 = vpop.f32.mrf.mxu1 }
 0x4f4   : > { %8734 = vmatpush.bf16.msrb.mxu2 %v15401_v38  ;;  %v20624_v38 = vpack.c.bf16 %v5885_v13, %v5885_v13  ;;  %8508 = vmatmul.bf16.vlgmr.msrb.gmra.mxu0 %v20593_v34  ;;  %v20628_v2 = vpop.f32.mrf.mxu3  ;;  %v20630_v13 = vpop.f32.mrf.mxu0 }
 0x4f5   : > { %8409 = vmatpush.bf16.msrb.mxu1 %v15265_v61  ;;  %8552 = vmatpush.bf16.msra.mxu0 %v15141_v46  ;;  %v15198_v61 = vld [vmem:[#allocation17 + $0x370] sm:$0xf0]  ;;  %v15076_v46 = vld [vmem:[#allocation17 + $0x268] sm:$0xf] }
 0x4f6   : > { %8649 = vmatpush.bf16.msrb.mxu3 %v15941_v24  ;;  %8365 = vmatmul.bf16.vlgmr.msra.gmra.mxu1 %v20624_v38  ;;  %v14985_v24 = vor.u32 %v18492_v39, %v14982_v37  ;;  %v15201_v35 = vor.u32 %v18547_v53, %v15198_v61  ;;  %v15077_v28 = vor.u32 %v18518_v43, %v15076_v46  ;;  %v15878_v39 = vld [vmem:[#allocation17 + $0x8b8] sm:$0xf0]  ;;  %v15150_v53 = vld [vmem:[#allocation17 + $0x310] sm:$0xf0]  ;;  %v18506_v61 = vld [vmem:[#allocation17 + $0x214] sm:$0xf0] }
 0x4f7   : > { %v18691_v46 = vld [vmem:[#allocation17 + $0x7e4] sm:$0xf]  ;;  %v15774_v43 = vld [vmem:[#allocation17 + $0x7f0] sm:$0xf0] }
 0x4f8   : > { %8735 = vmatpush.bf16.msrb.mxu2 %v15385_v23  ;;  %v18526_v23 = vld [vmem:[#allocation17 + $0x2b4] sm:$0xf0] }
 0x4f9   : > { %8410 = vmatpush.bf16.msrb.mxu1 %v15249_v49  ;;  %8553 = vmatpush.bf16.msra.mxu0 %v15125_v44  ;;  %v15109_v62 = vor.u32 %v18526_v23, %v15108_v40  ;;  %v18543_v49 = vld [vmem:[#allocation17 + $0x344] sm:$0xf]  ;;  %v15913_v40 = vor.u32 %v18724_v19, %v15910_v30  ;;  %v18484_v23 = vld [vmem:[#allocation17 + $0x16c] sm:$0xf]  ;;  %v14918_v19 = vld [vmem:[#allocation17 + $0x138] sm:$0xf0] }
 0x4fa   : > { %8650 = vmatpush.bf16.msrb.mxu3 %v15925_v50  ;;  %v15060_v50 = vld [vmem:[#allocation17 + $0x248] sm:$0xf]  ;;  %v15185_v31 = vor.u32 %v18543_v49, %v15182_v6  ;;  %v8433_v17 = vpop.f32.mrf.mxu2  ;;  %v18712_v30 = vld [vmem:[#allocation17 + $0x88c] sm:$0xf] }
 0x4fb   : > { %v18683_v17 = vld [vmem:[#allocation17 + $0x7a4] sm:$0xf] }
 0x4fc   : > { %8736 = vmatpush.bf16.msrb.mxu2 %v15369_v18  ;;  %v18522_v18 = vld [vmem:[#allocation17 + $0x294] sm:$0xf0]  ;;  %v8394_v47 = vpop.f32.mrf.mxu3 }
 0x4fd   : > { %8411 = vmatpush.bf16.msrb.mxu1 %v15233_v4  ;;  %8554 = vmatpush.bf16.msra.mxu0 %v15109_v62  ;;  %v15093_v12 = vor.u32 %v18522_v18, %v15092_v51  ;;  %v8251_v4 = vpop.f32.mrf.mxu0  ;;  %v15166_v62 = vld [vmem:[#allocation17 + $0x330] sm:$0xf0]  ;;  %v14953_v51 = vor.u32 %v18484_v23, %v14950_v55  ;;  %v15862_v47 = vld [vmem:[#allocation17 + $0x898] sm:$0xf0]  ;;  %v15636_v55 = vld [vmem:[#allocation17 + $0x6c8] sm:$0xf] }
 0x4fe   : > { %8695 = vmatpush.bf16.msra.mxu3 %v15017_v3  ;;  %v18720_v3 = vld [vmem:[#allocation17 + $0x8cc] sm:$0xf]  ;;  %v15169_v37 = vor.u32 %v18539_v27, %v15166_v62  ;;  %v15865_v23 = vor.u32 %v18712_v30, %v15862_v47  ;;  %v15846_v27 = vld [vmem:[#allocation17 + $0x878] sm:$0xf0] }
 0x4ff   : > { %8651 = vmatmul.bf16.vlgmr.msrb.gmra.mxu3 %v20573_v14  ;;  %v15897_v18 = vor.u32 %v18720_v3, %v15894_v29  ;;  %v18658_v3 = vld [vmem:[#allocation17 + $0x6d4] sm:$0xf0]  ;;  %v18472_v29 = vld [vmem:[#allocation17 + $0x10c] sm:$0xf]  ;;  %v15526_v62 = vld [vmem:[#allocation17 + $0x5f8] sm:$0xf0] }
 0x500   : > { %8737 = vmatpush.bf16.msrb.mxu2 %v15353_v16  ;;  %v18568_v16 = vld [vmem:[#allocation17 + $0x40c] sm:$0xf] }
 0x501   : > { %8412 = vmatpush.bf16.msrb.mxu1 %v15217_v41  ;;  %8555 = vmatpush.bf16.msra.mxu0 %v15093_v12  ;;  %v15289_v44 = vor.u32 %v18568_v16, %v15286_v10  ;;  %v18535_v12 = vld [vmem:[#allocation17 + $0x304] sm:$0xf]  ;;  %v15881_v16 = vor.u32 %v18716_v45, %v15878_v39  ;;  %v15652_v10 = vld [vmem:[#allocation17 + $0x6e8] sm:$0xf]  ;;  %v18628_v4 = vld [vmem:[#allocation17 + $0x5ec] sm:$0xf] }
 0x502   : > { %8696 = vmatpush.bf16.msra.mxu3 %v15001_v11  ;;  %v18480_v11 = vld [vmem:[#allocation17 + $0x14c] sm:$0xf]  ;;  %v15653_v6 = vor.u32 %v18662_v58, %v15652_v10  ;;  %v18654_v45 = vld [vmem:[#allocation17 + $0x6b4] sm:$0xf0]  ;;  %v15529_v39 = vor.u32 %v18628_v4, %v15526_v62  ;;  %v15726_v58 = vld [vmem:[#allocation17 + $0x790] sm:$0xf0] }
 0x503   : > { %v18700_v47 = vld [vmem:[#allocation17 + $0x82c] sm:$0xf]  ;;  %v15478_v4 = vld [vmem:[#allocation17 + $0x598] sm:$0xf0] }
 0x504   : > { %8738 = vmatpush.bf16.msrb.mxu2 %v15337_v5  ;;  %v18514_v5 = vld [vmem:[#allocation17 + $0x254] sm:$0xf0] }
 0x505   : > { %8413 = vmatpush.bf16.msrb.mxu1 %v15201_v35  ;;  %8556 = vmatpush.bf16.msra.mxu0 %v15077_v28  ;;  %v15061_v33 = vor.u32 %v18514_v5, %v15060_v50  ;;  %v20636_v35 = vpop.f32.mrf.mxu3  ;;  %v15153_v28 = vor.u32 %v18535_v12, %v15150_v53  ;;  %v18687_v50 = vld [vmem:[#allocation17 + $0x7c4] sm:$0xf]  ;;  %v15758_v5 = vld [vmem:[#allocation17 + $0x7d0] sm:$0xf0]  ;;  %v18624_v53 = vld [vmem:[#allocation17 + $0x5cc] sm:$0xf] }
 0x506   : > { %8697 = vmatpush.bf16.msra.mxu3 %v14985_v24  ;;  %v14937_v24 = vor.u32 %v18480_v11, %v14934_v42  ;;  %v15742_v11 = vld [vmem:[#allocation17 + $0x7b0] sm:$0xf0]  ;;  %v15620_v42 = vld [vmem:[#allocation17 + $0x6a8] sm:$0xf] }
 0x508   : > { %8739 = vmatpush.bf16.msrb.mxu2 %v15321_v0  ;;  %v18510_v0 = vld [vmem:[#allocation17 + $0x234] sm:$0xf0] }
 0x509   : > { %8414 = vmatpush.bf16.msrb.mxu1 %v15185_v31  ;;  %8557 = vmatpush.bf16.msra.mxu0 %v15061_v33  ;;  %v15045_v41 = vor.u32 %v18510_v0, %v15044_v57  ;;  %v14902_v31 = vld [vmem:[#allocation17 + $0x118] sm:$0xf0]  ;;  %v18708_v33 = vld [vmem:[#allocation17 + $0x86c] sm:$0xf]  ;;  %v15761_v57 = vor.u32 %v18687_v50, %v15758_v5  ;;  %v15637_v0 = vor.u32 %v18658_v3, %v15636_v55  ;;  %v18675_v5 = vld [vmem:[#allocation17 + $0x764] sm:$0xf] }
 0x50a   : > { %8698 = vmatpush.bf16.msra.mxu3 %v14969_v54  ;;  %v20640_v54 = vpop.f32.mrf.mxu2  ;;  %v15588_v55 = vld [vmem:[#allocation17 + $0x668] sm:$0xf]  ;;  %v18646_v3 = vld [vmem:[#allocation17 + $0x674] sm:$0xf0] }
 0x50c   : > { %8740 = vmatpush.bf16.msrb.mxu2 %v15305_v22  ;;  %v15028_v22 = vld [vmem:[#allocation17 + $0x208] sm:$0xf] }
 0x50d   : > { %8415 = vmatpush.bf16.msrb.mxu1 %v15169_v37  ;;  %8558 = vmatpush.bf16.msra.mxu0 %v15045_v41  ;;  %v15029_v49 = vor.u32 %v18506_v61, %v15028_v22  ;;  %v18704_v37 = vld [vmem:[#allocation17 + $0x84c] sm:$0xf]  ;;  %v15830_v41 = vld [vmem:[#allocation17 + $0x858] sm:$0xf0]  ;;  %v8446_v12 = vpop.f32.mrf.mxu3 }
 0x50e   : > { %8699 = vmatpush.bf16.msra.mxu3 %v14953_v51  ;;  %v14905_v51 = vor.u32 %v18472_v29, %v14902_v31  ;;  %v15510_v22 = vld [vmem:[#allocation17 + $0x5d8] sm:$0xf0]  ;;  %v15833_v10 = vor.u32 %v18704_v37, %v15830_v41  ;;  %v18696_v31 = vld [vmem:[#allocation17 + $0x80c] sm:$0xf] }
 0x50f   : > { %v15513_v30 = vor.u32 %v18624_v53, %v15510_v22  ;;  %v15462_v37 = vld [vmem:[#allocation17 + $0x578] sm:$0xf0]  ;;  %v18667_v53 = vld [vmem:[#allocation17 + $0x724] sm:$0xf]  ;;  %v15678_v22 = vld [vmem:[#allocation17 + $0x730] sm:$0xf0] }
 0x510   : > { %8741 = vmatpush.bf16.msrb.mxu2 %v15289_v44  ;;  %v15777_v44 = vor.u32 %v18691_v46, %v15774_v43  ;;  %v15745_v46 = vor.u32 %v18683_v17, %v15742_v11  ;;  %v15621_v43 = vor.u32 %v18654_v45, %v15620_v42  ;;  %v18671_v17 = vld [vmem:[#allocation17 + $0x744] sm:$0xf]  ;;  %v18642_v11 = vld [vmem:[#allocation17 + $0x654] sm:$0xf0] }
 0x511   : > { %8416 = vmatpush.bf16.msrb.mxu1 %v15153_v28  ;;  %8559 = vmatpush.bf16.msra.mxu0 %v15029_v49  ;;  %v15814_v28 = vld [vmem:[#allocation17 + $0x838] sm:$0xf0]  ;;  %v18620_v49 = vld [vmem:[#allocation17 + $0x5ac] sm:$0xf] }
 0x512   : > { %8700 = vmatpush.bf16.msra.mxu3 %v14937_v24  ;;  %v18679_v24 = vld [vmem:[#allocation17 + $0x784] sm:$0xf] }
 0x513   : > { %8742 = vmatmul.bf16.vlgmr.msrb.gmra.mxu2 %v20541_v63  ;;  %v20638_v63 = vpop.f32.mrf.mxu0 }
 0x514   : > { %8786 = vmatpush.bf16.msra.mxu2 %v15913_v40  ;;  %v14921_v40 = vor.u32 %v18476_v32, %v14918_v19  ;;  %8417 = vmatmul.bf16.vlgmr.msrb.gmra.mxu1 %v20607_v25  ;;  %v15604_v32 = vld [vmem:[#allocation17 + $0x688] sm:$0xf]  ;;  %v18650_v19 = vld [vmem:[#allocation17 + $0x694] sm:$0xf0] }
 0x515   : > { %8461 = vmatpush.bf16.msra.mxu1 %v15777_v44  ;;  %8604 = vmatpush.bf16.msrb.mxu0 %v15653_v6  ;;  %v15494_v44 = vld [vmem:[#allocation17 + $0x5b8] sm:$0xf0]  ;;  %v15729_v6 = vor.u32 %v18679_v24, %v15726_v58  ;;  %v15605_v50 = vor.u32 %v18650_v19, %v15604_v32  ;;  %v18608_v24 = vld [vmem:[#allocation17 + $0x54c] sm:$0xf]  ;;  %v15681_v58 = vor.u32 %v18667_v53, %v15678_v22  ;;  %v18663_v19 = vld [vmem:[#allocation17 + $0x704] sm:$0xf] }
 0x516   : > { %8701 = vmatpush.bf16.msra.mxu3 %v14921_v40  ;;  %8560 = vmatmul.bf16.vlgmr.msra.gmra.mxu0 %v20585_v52  ;;  %v15817_v40 = vor.u32 %v18700_v47, %v15814_v28  ;;  %v15497_v29 = vor.u32 %v18620_v49, %v15494_v44  ;;  %v15540_v47 = vld [vmem:[#allocation17 + $0x608] sm:$0xf]  ;;  %v18634_v28 = vld [vmem:[#allocation17 + $0x614] sm:$0xf0]  ;;  %v18819_v49 = vld [vmem:[#allocation17 + $0xbe4] sm:$0xf] }
 0x517   : > { %v16132_v53 = vld [vmem:[#allocation17 + $0xaa8] sm:$0xf]  ;;  %v18782_v22 = vld [vmem:[#allocation17 + $0xab4] sm:$0xf0] }
 0x518   : > { %8787 = vmatpush.bf16.msra.mxu2 %v15897_v18  ;;  %v15849_v18 = vor.u32 %v18708_v33, %v15846_v27  ;;  %v15798_v33 = vld [vmem:[#allocation17 + $0x818] sm:$0xf0]  ;;  %v18616_v27 = vld [vmem:[#allocation17 + $0x58c] sm:$0xf] }
 0x519   : > { %8462 = vmatpush.bf16.msra.mxu1 %v15761_v57  ;;  %8605 = vmatpush.bf16.msrb.mxu0 %v15637_v0  ;;  %v15589_v0 = vor.u32 %v18646_v3, %v15588_v55  ;;  %v15481_v45 = vor.u32 %v18616_v27, %v15478_v4  ;;  %v15430_v55 = vld [vmem:[#allocation17 + $0x538] sm:$0xf0] }
 0x51a   : > { %8702 = vmatpush.bf16.msra.mxu3 %v14905_v51  ;;  %v15694_v51 = vld [vmem:[#allocation17 + $0x750] sm:$0xf0] }
 0x51b   : > { %v8303_v61 = vpop.f32.mrf.mxu0  ;;  %v15697_v41 = vor.u32 %v18671_v17, %v15694_v51  ;;  %v18786_v17 = vld [vmem:[#allocation17 + $0xad4] sm:$0xf0]  ;;  %v15414_v51 = vld [vmem:[#allocation17 + $0x518] sm:$0xf0] }
 0x51c   : > { %8788 = vmatpush.bf16.msra.mxu2 %v15881_v16  ;;  %v8485_v16 = vpop.f32.mrf.mxu2  ;;  %v15556_v61 = vld [vmem:[#allocation17 + $0x628] sm:$0xf] }
 0x51d   : > { %8463 = vmatpush.bf16.msra.mxu1 %v15745_v46  ;;  %8606 = vmatpush.bf16.msrb.mxu0 %v15621_v43  ;;  %v18638_v46 = vld [vmem:[#allocation17 + $0x634] sm:$0xf0]  ;;  %v15446_v16 = vld [vmem:[#allocation17 + $0x558] sm:$0xf0] }
 0x51e   : > { %8747 = vmatpush.bf16.msrb.mxu3 %v15529_v39  ;;  %v18612_v39 = vld [vmem:[#allocation17 + $0x56c] sm:$0xf]  ;;  %v15557_v32 = vor.u32 %v18638_v46, %v15556_v61 }
 0x51f   : > { %8703 = vmatmul.bf16.vlgmr.msra.gmra.mxu3 %v20558_v15  ;;  %v15801_v15 = vor.u32 %v18696_v31, %v15798_v33  ;;  %v15465_v43 = vor.u32 %v18612_v39, %v15462_v37  ;;  %v20650_v3 = vpop.f32.mrf.mxu3  ;;  %v15541_v31 = vor.u32 %v18634_v28, %v15540_v47  ;;  %v18811_v37 = vld [vmem:[#allocation17 + $0xba4] sm:$0xf]  ;;  %v18778_v47 = vld [vmem:[#allocation17 + $0xa94] sm:$0xf0] }
 0x520   : > { %8789 = vmatpush.bf16.msra.mxu2 %v15865_v23  ;;  %v15710_v23 = vld [vmem:[#allocation17 + $0x770] sm:$0xf0] }
 0x521   : > { %8464 = vmatpush.bf16.msra.mxu1 %v15729_v6  ;;  %8607 = vmatpush.bf16.msrb.mxu0 %v15605_v50  ;;  %v15713_v57 = vor.u32 %v18675_v5, %v15710_v23  ;;  %v15449_v6 = vor.u32 %v18608_v24, %v15446_v16  ;;  %v16286_v50 = vld [vmem:[#allocation17 + $0xbf0] sm:$0xf0]  ;;  %v16164_v5 = vld [vmem:[#allocation17 + $0xae8] sm:$0xf]  ;;  %v18604_v23 = vld [vmem:[#allocation17 + $0x52c] sm:$0xf] }
 0x522   : > { %8748 = vmatpush.bf16.msrb.mxu3 %v15513_v30  ;;  %v15662_v30 = vld [vmem:[#allocation17 + $0x710] sm:$0xf0]  ;;  %v16289_v33 = vor.u32 %v18819_v49, %v16286_v50  ;;  %v15433_v4 = vor.u32 %v18604_v23, %v15430_v55  ;;  %v16022_v24 = vld [vmem:[#allocation17 + $0x9d8] sm:$0xf0]  ;;  %v18748_v49 = vld [vmem:[#allocation17 + $0x9ac] sm:$0xf] }
 0x523   : > { %v20645_v62 = vpop.f32.mrf.mxu0  ;;  %v16100_v23 = vld [vmem:[#allocation17 + $0xa68] sm:$0xf]  ;;  %v18774_v55 = vld [vmem:[#allocation17 + $0xa74] sm:$0xf0] }
 0x524   : > { %8790 = vmatpush.bf16.msra.mxu2 %v15849_v18  ;;  %v15572_v18 = vld [vmem:[#allocation17 + $0x648] sm:$0xf]  ;;  %v20647_v42 = vpop.f32.mrf.mxu2 }
 0x525   : > { %8465 = vmatpush.bf16.msra.mxu1 %v15713_v57  ;;  %8608 = vmatpush.bf16.msrb.mxu0 %v15589_v0  ;;  %v15573_v12 = vor.u32 %v18642_v11, %v15572_v18  ;;  %v16270_v57 = vld [vmem:[#allocation17 + $0xbd0] sm:$0xf0]  ;;  %v16148_v0 = vld [vmem:[#allocation17 + $0xac8] sm:$0xf]  ;;  %v18756_v18 = vld [vmem:[#allocation17 + $0x9ec] sm:$0xf] }
 0x526   : > { %8749 = vmatpush.bf16.msrb.mxu3 %v15497_v29  ;;  %v15665_v29 = vor.u32 %v18663_v19, %v15662_v30  ;;  %v16038_v11 = vld [vmem:[#allocation17 + $0x9f8] sm:$0xf0]  ;;  %v16149_v39 = vor.u32 %v18786_v17, %v16148_v0  ;;  %v16238_v19 = vld [vmem:[#allocation17 + $0xb90] sm:$0xf0]  ;;  %v16116_v30 = vld [vmem:[#allocation17 + $0xa88] sm:$0xf] }
 0x527   : > { %v16041_v61 = vor.u32 %v18756_v18, %v16038_v11  ;;  %v8498_v46 = vpop.f32.mrf.mxu3  ;;  %v16117_v50 = vor.u32 %v18778_v47, %v16116_v30  ;;  %v16206_v17 = vld [vmem:[#allocation17 + $0xb50] sm:$0xf0]  ;;  %v18740_v18 = vld [vmem:[#allocation17 + $0x96c] sm:$0xf]  ;;  %v15974_v11 = vld [vmem:[#allocation17 + $0x978] sm:$0xf0] }
 0x528   : > { %8791 = vmatpush.bf16.msra.mxu2 %v15833_v10  ;;  %v15958_v46 = vld [vmem:[#allocation17 + $0x958] sm:$0xf0]  ;;  %v16052_v30 = vld [vmem:[#allocation17 + $0xa08] sm:$0xf]  ;;  %v18762_v47 = vld [vmem:[#allocation17 + $0xa14] sm:$0xf0] }
 0x529   : > { %8466 = vmatpush.bf16.msra.mxu1 %v15697_v41  ;;  %8609 = vmatpush.bf16.msrb.mxu0 %v15573_v12  ;;  %v16254_v12 = vld [vmem:[#allocation17 + $0xbb0] sm:$0xf0] }
 0x52a   : > { %8750 = vmatpush.bf16.msrb.mxu3 %v15481_v45  ;;  %v16257_v16 = vor.u32 %v18811_v37, %v16254_v12  ;;  %v18795_v37 = vld [vmem:[#allocation17 + $0xb24] sm:$0xf]  ;;  %v16068_v12 = vld [vmem:[#allocation17 + $0xa28] sm:$0xf] }
 0x52b   : > { %v8355_v10 = vpop.f32.mrf.mxu0 }
 0x52c   : > { %8792 = vmatpush.bf16.msra.mxu2 %v15817_v40  ;;  %v8537_v44 = vpop.f32.mrf.mxu2  ;;  %v18790_v40 = vld [vmem:[#allocation17 + $0xaf4] sm:$0xf0]  ;;  %v16133_v10 = vor.u32 %v18782_v22, %v16132_v53  ;;  %v15977_v22 = vor.u32 %v18740_v18, %v15974_v11 }
 0x52d   : > { %8467 = vmatpush.bf16.msra.mxu1 %v15681_v58  ;;  %8610 = vmatpush.bf16.msrb.mxu0 %v15557_v32  ;;  %v16165_v27 = vor.u32 %v18790_v40, %v16164_v5  ;;  %v18807_v58 = vld [vmem:[#allocation17 + $0xb84] sm:$0xf]  ;;  %v16006_v44 = vld [vmem:[#allocation17 + $0x9b8] sm:$0xf0]  ;;  %v16222_v40 = vld [vmem:[#allocation17 + $0xb70] sm:$0xf0] }
 0x52e   : > { %8751 = vmatpush.bf16.msrb.mxu3 %v15465_v43  ;;  %v18752_v43 = vld [vmem:[#allocation17 + $0x9cc] sm:$0xf]  ;;  %v18803_v5 = vld [vmem:[#allocation17 + $0xb64] sm:$0xf]  ;;  %v18766_v53 = vld [vmem:[#allocation17 + $0xa34] sm:$0xf0] }
 0x52f   : > { %v16025_v28 = vor.u32 %v18752_v43, %v16022_v24  ;;  %v20659_v24 = vld [vmem:[#allocation18] sm:$0xf] }
 0x530   : > { %8793 = vmatpush.bf16.msra.mxu2 %v15801_v15  ;;  %v18600_v15 = vld [vmem:[#allocation17 + $0x50c] sm:$0xf] }
 0x531   : > { %8468 = vmatpush.bf16.msra.mxu1 %v15665_v29  ;;  %8611 = vmatpush.bf16.msrb.mxu0 %v15541_v31  ;;  %v15417_v41 = vor.u32 %v18600_v15, %v15414_v51  ;;  %v16009_v29 = vor.u32 %v18748_v49, %v16006_v44  ;;  %v18744_v31 = vld [vmem:[#allocation17 + $0x98c] sm:$0xf]  ;;  %v16084_v15 = vld [vmem:[#allocation17 + $0xa48] sm:$0xf]  ;;  %v18770_v51 = vld [vmem:[#allocation17 + $0xa54] sm:$0xf0] }
 0x532   : > { %8752 = vmatpush.bf16.msrb.mxu3 %v15449_v6  ;;  %v16241_v6 = vor.u32 %v18807_v58, %v16238_v19  ;;  %v18791_v58 = vld [vmem:[#allocation17 + $0xb04] sm:$0xf]  ;;  %v16174_v19 = vld [vmem:[#allocation17 + $0xb10] sm:$0xf0]  ;;  %v18566_v44 = vld [vmem:[#allocation17 + $0x3f4] sm:$0xf0] }
 0x533   : > { %8794 = vmatmul.bf16.vlgmr.msra.gmra.mxu2 %v20550_v36  ;;  %v18815_v36 = vld [vmem:[#allocation17 + $0xbc4] sm:$0xf] }
 0x534   : > { %v16273_v45 = vor.u32 %v18815_v36, %v16270_v57  ;;  %8469 = vmatmul.bf16.vlgmr.msra.gmra.mxu1 %v20616_v56  ;;  %8612 = vmatmul.bf16.vlgmr.msrb.gmra.mxu0 %v20589_v59  ;;  %v16225_v36 = vor.u32 %v18803_v5, %v16222_v40  ;;  %v18799_v57 = vld [vmem:[#allocation17 + $0xb44] sm:$0xf]  ;;  %v18732_v40 = vld [vmem:[#allocation17 + $0x92c] sm:$0xf] }
 0x535   : > { %8513 = vmatpush.bf16.msrb.mxu1 %v16289_v33  ;;  %8656 = vmatpush.bf16.msra.mxu0 %v16165_v27  ;;  %v15990_v33 = vld [vmem:[#allocation17 + $0x998] sm:$0xf0]  ;;  %v20657_v27 = vpop.f32.mrf.mxu0 }
 0x536   : > { %8753 = vmatpush.bf16.msrb.mxu3 %v15433_v4  ;;  %v20654_v32 = vpop.f32.mrf.mxu2  ;;  %v16101_v4 = vor.u32 %v18774_v55, %v16100_v23  ;;  %v15942_v23 = vld [vmem:[#allocation17 + $0x938] sm:$0xf0]  ;;  %v16177_v55 = vor.u32 %v18791_v58, %v16174_v19  ;;  %v18520_v58 = vld [vmem:[#allocation17 + $0x28c] sm:$0xf] }
 0x537   : > { %v15094_v19 = vld [vmem:[#allocation17 + $0x298] sm:$0xf0] }
 0x539   : > { %8514 = vmatpush.bf16.msrb.mxu1 %v16273_v45  ;;  %8657 = vmatpush.bf16.msra.mxu0 %v16149_v39  ;;  %v16209_v45 = vor.u32 %v18799_v57, %v16206_v17  ;;  %v16085_v39 = vor.u32 %v18770_v51, %v16084_v15  ;;  %v15945_v57 = vor.u32 %v18732_v40, %v15942_v23  ;;  %v18528_v17 = vld [vmem:[#allocation17 + $0x2cc] sm:$0xf]  ;;  %v15126_v15 = vld [vmem:[#allocation17 + $0x2d8] sm:$0xf0] }
 0x53a   : > { %8754 = vmatpush.bf16.msrb.mxu3 %v15417_v41  ;;  %v16190_v41 = vld [vmem:[#allocation17 + $0xb30] sm:$0xf0]  ;;  %v18728_v51 = vld [vmem:[#allocation17 + $0x90c] sm:$0xf]  ;;  %v15129_v11 = vor.u32 %v18528_v17, %v15126_v15  ;;  %v15078_v40 = vld [vmem:[#allocation17 + $0x278] sm:$0xf0] }
 0x53b   : > { %v15172_v17 = vld [vmem:[#allocation17 + $0x328] sm:$0xf] }
 0x53d   : > { %8515 = vmatpush.bf16.msrb.mxu1 %v16257_v16  ;;  %8658 = vmatpush.bf16.msra.mxu0 %v16133_v10  ;;  %v8407_v43 = vpop.f32.mrf.mxu0  ;;  %v16193_v16 = vor.u32 %v18795_v37, %v16190_v41  ;;  %v16069_v10 = vor.u32 %v18766_v53, %v16068_v12  ;;  %v18558_v41 = vld [vmem:[#allocation17 + $0x3b4] sm:$0xf0]  ;;  %v18524_v12 = vld [vmem:[#allocation17 + $0x2ac] sm:$0xf]  ;;  %v15110_v53 = vld [vmem:[#allocation17 + $0x2b8] sm:$0xf0] }
 0x53e   : > { %8799 = vmatpush.bf16.msra.mxu3 %v16041_v61  ;;  %v8589_v0 = vpop.f32.mrf.mxu2  ;;  %v18736_v61 = vld [vmem:[#allocation17 + $0x94c] sm:$0xf]  ;;  %v15220_v43 = vld [vmem:[#allocation17 + $0x388] sm:$0xf] }
 0x53f   : > { %8755 = vmatmul.bf16.vlgmr.msrb.gmra.mxu3 %v20565_v48  ;;  %v15993_v48 = vor.u32 %v18744_v31, %v15990_v33  ;;  %v15961_v49 = vor.u32 %v18736_v61, %v15958_v46  ;;  %v20661_v5 = vpop.f32.mrf.mxu3  ;;  %v6286_v31 = vperm.slane %v20659_v24, 0  ;;  %v18562_v0 = vld [vmem:[#allocation17 + $0x3d4] sm:$0xf0]  ;;  %v15113_v46 = vor.u32 %v18524_v12, %v15110_v53  ;;  %v18504_v53 = vld [vmem:[#allocation17 + $0x20c] sm:$0xf] }
 0x541   : > { %8516 = vmatpush.bf16.msrb.mxu1 %v16241_v6  ;;  %8659 = vmatpush.bf16.msra.mxu0 %v16117_v50  ;;  %v18532_v6 = vld [vmem:[#allocation17 + $0x2ec] sm:$0xf]  ;;  %v15142_v50 = vld [vmem:[#allocation17 + $0x2f8] sm:$0xf0] }
 0x542   : > { %8800 = vmatpush.bf16.msra.mxu3 %v16025_v28  ;;  %v15268_v28 = vld [vmem:[#allocation17 + $0x3e8] sm:$0xf] }
 0x543   : > { %v15269_v33 = vor.u32 %v18566_v44, %v15268_v28  ;;  %v15097_v28 = vor.u32 %v18520_v58, %v15094_v19 }
 0x545   : > { %8517 = vmatpush.bf16.msrb.mxu1 %v16225_v36  ;;  %8660 = vmatpush.bf16.msra.mxu0 %v16101_v4  ;;  %v15145_v36 = vor.u32 %v18532_v6, %v15142_v50  ;;  %v15252_v4 = vld [vmem:[#allocation17 + $0x3c8] sm:$0xf]  ;;  %v18550_v6 = vld [vmem:[#allocation17 + $0x374] sm:$0xf0]  ;;  %v18516_v50 = vld [vmem:[#allocation17 + $0x26c] sm:$0xf] }
 0x546   : > { %8801 = vmatpush.bf16.msra.mxu3 %v16009_v29  ;;  %v16053_v29 = vor.u32 %v18762_v47, %v16052_v30  ;;  %v15253_v18 = vor.u32 %v18562_v0, %v15252_v4  ;;  %v18512_v4 = vld [vmem:[#allocation17 + $0x24c] sm:$0xf] }
 0x549   : > { %8518 = vmatpush.bf16.msrb.mxu1 %v16209_v45  ;;  %8661 = vmatpush.bf16.msra.mxu0 %v16085_v39  ;;  %v15236_v45 = vld [vmem:[#allocation17 + $0x3a8] sm:$0xf]  ;;  %v8224_v39 = vadd.f32 %v20599_v7, %v6286_v31  ;;  %v18554_v7 = vld [vmem:[#allocation17 + $0x394] sm:$0xf0] }
 0x54a   : > { %8802 = vmatpush.bf16.msra.mxu3 %v15993_v48  ;;  %v15926_v48 = vld [vmem:[#allocation17 + $0x918] sm:$0xf0]  ;;  %v15237_v61 = vor.u32 %v18558_v41, %v15236_v45  ;;  %v15221_v47 = vor.u32 %v18554_v7, %v15220_v43  ;;  %v18538_v41 = vld [vmem:[#allocation17 + $0x314] sm:$0xf0]  ;;  %v18660_v43 = vld [vmem:[#allocation17 + $0x6ec] sm:$0xf] }
 0x54b   : > { %v15929_v37 = vor.u32 %v18728_v51, %v15926_v48  ;;  %v18542_v51 = vld [vmem:[#allocation17 + $0x334] sm:$0xf0]  ;;  %v18508_v48 = vld [vmem:[#allocation17 + $0x22c] sm:$0xf] }
 0x54c   : > { %v15173_v45 = vor.u32 %v18542_v51, %v15172_v17  ;;  %v18648_v17 = vld [vmem:[#allocation17 + $0x68c] sm:$0xf] }
 0x54d   : > { %8519 = vmatpush.bf16.msrb.mxu1 %v16193_v16  ;;  %8662 = vmatpush.bf16.msra.mxu0 %v16069_v10  ;;  %v8237_v10 = vadd.f32 %v20602_v26, %v8224_v39 }
 0x54e   : > { %8803 = vmatpush.bf16.msra.mxu3 %v15977_v22  ;;  %v8550_v22 = vpop.f32.mrf.mxu3 }
 0x54f   : > { %v8250_v44 = vadd.f32 %v20630_v13, %v8237_v10  ;;  %v15030_v22 = vld [vmem:[#allocation17 + $0x218] sm:$0xf0] }
 0x550   : > { %v15654_v10 = vld [vmem:[#allocation17 + $0x6f8] sm:$0xf0]  ;;  %v15033_v19 = vor.u32 %v18504_v53, %v15030_v22 }
 0x551   : > { %8520 = vmatpush.bf16.msrb.mxu1 %v16177_v55  ;;  %8663 = vmatpush.bf16.msra.mxu0 %v16053_v29  ;;  %v8262_v30 = vpop.f32.mrf.mxu1  ;;  %v15081_v55 = vor.u32 %v18516_v50, %v15078_v40  ;;  %v15188_v29 = vld [vmem:[#allocation17 + $0x348] sm:$0xf] }
 0x552   : > { %8804 = vmatpush.bf16.msra.mxu3 %v15961_v49  ;;  %v15204_v49 = vld [vmem:[#allocation17 + $0x368] sm:$0xf] }
 0x553   : > { %v20672_v23 = vpop.f32.mrf.mxu0  ;;  %v15205_v26 = vor.u32 %v18550_v6, %v15204_v49  ;;  %v15764_v49 = vld [vmem:[#allocation17 + $0x7c8] sm:$0xf]  ;;  %v15638_v6 = vld [vmem:[#allocation17 + $0x6d8] sm:$0xf0] }
 0x554   : > { %8521 = vmatmul.bf16.vlgmr.msrb.gmra.mxu1 %v20624_v38  ;;  %8664 = vmatmul.bf16.vlgmr.msra.gmra.mxu0 %v20593_v34 }
 0x555   : > { %8565 = vmatpush.bf16.msra.mxu1 %v15269_v33  ;;  %8708 = vmatpush.bf16.msrb.mxu0 %v15145_v36  ;;  %v8263_v33 = vadd.f32 %v8262_v30, %v8250_v44  ;;  %v18546_v36 = vld [vmem:[#allocation17 + $0x354] sm:$0xf0] }
 0x556   : > { %8805 = vmatpush.bf16.msra.mxu3 %v15945_v57  ;;  %v20667_v16 = vpop.f32.mrf.mxu2  ;;  %v15062_v57 = vld [vmem:[#allocation17 + $0x258] sm:$0xf0]  ;;  %v15189_v0 = vor.u32 %v18546_v36, %v15188_v29  ;;  %v18690_v44 = vld [vmem:[#allocation17 + $0x7d4] sm:$0xf0] }
 0x557   : > { %v8276_v15 = vadd.f32 %v20605_v9, %v8263_v33  ;;  %v15765_v40 = vor.u32 %v18690_v44, %v15764_v49  ;;  %v18686_v29 = vld [vmem:[#allocation17 + $0x7b4] sm:$0xf0]  ;;  %v15622_v33 = vld [vmem:[#allocation17 + $0x6b8] sm:$0xf0] }
 0x559   : > { %8566 = vmatpush.bf16.msra.mxu1 %v15253_v18  ;;  %8709 = vmatpush.bf16.msrb.mxu0 %v15129_v11  ;;  %v8264_v13 = vpop.f32.mrf.mxu1  ;;  %v15046_v18 = vld [vmem:[#allocation17 + $0x238] sm:$0xf0]  ;;  %v8289_v12 = vadd.f32 %v20610_v8, %v8276_v15  ;;  %v18656_v8 = vld [vmem:[#allocation17 + $0x6cc] sm:$0xf] }
 0x55a   : > { %8806 = vmatpush.bf16.msra.mxu3 %v15929_v37  ;;  %v15049_v39 = vor.u32 %v18508_v48, %v15046_v18  ;;  %v15156_v37 = vld [vmem:[#allocation17 + $0x308] sm:$0xf]  ;;  %v15606_v15 = vld [vmem:[#allocation17 + $0x698] sm:$0xf0] }
 0x55b   : > { %v8459_v11 = vpop.f32.mrf.mxu0  ;;  %v15157_v58 = vor.u32 %v18538_v41, %v15156_v37  ;;  %v8302_v30 = vadd.f32 %v20638_v63, %v8289_v12  ;;  %v15609_v18 = vor.u32 %v18648_v17, %v15606_v15  ;;  %v15590_v37 = vld [vmem:[#allocation17 + $0x678] sm:$0xf0]  ;;  %v18822_v17 = vld [vmem:[#allocation17 + $0xbf4] sm:$0xf0]  ;;  %v18788_v15 = vld [vmem:[#allocation17 + $0xaec] sm:$0xf] }
 0x55c   : > { %v15716_v11 = vld [vmem:[#allocation17 + $0x768] sm:$0xf] }
 0x55d   : > { %8567 = vmatpush.bf16.msra.mxu1 %v15237_v61  ;;  %8710 = vmatpush.bf16.msrb.mxu0 %v15113_v46  ;;  %v15780_v61 = vld [vmem:[#allocation17 + $0x7e8] sm:$0xf]  ;;  %v18694_v46 = vld [vmem:[#allocation17 + $0x7f4] sm:$0xf0] }
 0x55e   : > { %8807 = vmatmul.bf16.vlgmr.msra.gmra.mxu3 %v20573_v14  ;;  %v8641_v31 = vpop.f32.mrf.mxu2  ;;  %v15065_v14 = vor.u32 %v18512_v4, %v15062_v57 }
 0x55f   : > { %v18652_v31 = vld [vmem:[#allocation17 + $0x6ac] sm:$0xf] }
 0x560   : > { %v15625_v13 = vor.u32 %v18652_v31, %v15622_v33 }
 0x561   : > { %8568 = vmatpush.bf16.msra.mxu1 %v15221_v47  ;;  %8711 = vmatpush.bf16.msrb.mxu0 %v15097_v28  ;;  %v8314_v9 = vpop.f32.mrf.mxu1  ;;  %v15781_v47 = vor.u32 %v18694_v46, %v15780_v61  ;;  %v15657_v28 = vor.u32 %v18660_v43, %v15654_v10  ;;  %v20691_v61 = vld [vmem:[#allocation18 + $0x8] sm:$0xf] }
 0x562   : > { %v20676_v7 = vpop.f32.mrf.mxu3  ;;  %v8315_v50 = vadd.f32 %v8314_v9, %v8302_v30  ;;  %v15700_v10 = vld [vmem:[#allocation17 + $0x748] sm:$0xf]  ;;  %v18674_v9 = vld [vmem:[#allocation17 + $0x754] sm:$0xf0] }
 0x563   : > { %v15701_v49 = vor.u32 %v18674_v9, %v15700_v10  ;;  %v16260_v10 = vld [vmem:[#allocation17 + $0xba8] sm:$0xf]  ;;  %v18814_v9 = vld [vmem:[#allocation17 + $0xbb4] sm:$0xf0] }
 0x564   : > { %v8328_v36 = vadd.f32 %v20613_v60, %v8315_v50  ;;  %v18670_v50 = vld [vmem:[#allocation17 + $0x734] sm:$0xf0] }
 0x565   : > { %8569 = vmatpush.bf16.msra.mxu1 %v15205_v26  ;;  %8712 = vmatpush.bf16.msrb.mxu0 %v15081_v55  ;;  %v15641_v26 = vor.u32 %v18656_v8, %v15638_v6  ;;  %v15748_v55 = vld [vmem:[#allocation17 + $0x7a8] sm:$0xf] }
 0x566   : > { %v15749_v57 = vor.u32 %v18686_v29, %v15748_v55  ;;  %v8341_v51 = vadd.f32 %v20619_v1, %v8328_v36  ;;  %v15684_v8 = vld [vmem:[#allocation17 + $0x728] sm:$0xf]  ;;  %v20697_v29 = vld [vmem:[%s21122_s24] sm:$0x1] }
 0x567   : > { %v15685_v36 = vor.u32 %v18670_v50, %v15684_v8  ;;  %v16118_v8 = vld [vmem:[#allocation17 + $0xa98] sm:$0xf0] }
 0x568   : > { %v8354_v41 = vadd.f32 %v20645_v62, %v8341_v51  ;;  %v8868_v62 = vperm.slane %v20691_v61, 0  ;;  %v16166_v51 = vld [vmem:[#allocation17 + $0xaf8] sm:$0xf0] }
 0x569   : > { %8570 = vmatpush.bf16.msra.mxu1 %v15189_v0  ;;  %8713 = vmatpush.bf16.msrb.mxu0 %v15065_v14  ;;  %v8316_v63 = vpop.f32.mrf.mxu1  ;;  %v15732_v0 = vld [vmem:[#allocation17 + $0x788] sm:$0xf]  ;;  %v18682_v14 = vld [vmem:[#allocation17 + $0x794] sm:$0xf0] }
 0x56a   : > { %v8602_v4 = vpop.f32.mrf.mxu3  ;;  %v15733_v60 = vor.u32 %v18682_v14, %v15732_v0  ;;  %v15542_v0 = vld [vmem:[#allocation17 + $0x618] sm:$0xf0]  ;;  %v16292_v14 = vld [vmem:[#allocation17 + $0xbe8] sm:$0xf] }
 0x56b   : > { %v15668_v4 = vld [vmem:[#allocation17 + $0x708] sm:$0xf] }
 0x56d   : > { %8571 = vmatpush.bf16.msra.mxu1 %v15173_v45  ;;  %8714 = vmatpush.bf16.msrb.mxu0 %v15049_v39  ;;  %v20685_v45 = vld [vmem:[#allocation18 + $0x4] sm:$0xf]  ;;  %v18644_v39 = vld [vmem:[#allocation17 + $0x66c] sm:$0xf] }
 0x56e   : > { %v8853_v1 = vperm.slane %v20685_v45, 0  ;;  %v15593_v43 = vor.u32 %v18644_v39, %v15590_v37  ;;  %v16169_v39 = vor.u32 %v18788_v15, %v16166_v51  ;;  %v16276_v37 = vld [vmem:[#allocation17 + $0xbc8] sm:$0xf] }
 0x571   : > { %8572 = vmatpush.bf16.msra.mxu1 %v15157_v58  ;;  %8715 = vmatpush.bf16.msrb.mxu0 %v15033_v19  ;;  %v20688_v53 = vpop.f32.mrf.mxu0  ;;  %v18640_v58 = vld [vmem:[#allocation17 + $0x64c] sm:$0xf]  ;;  %v15574_v19 = vld [vmem:[#allocation17 + $0x658] sm:$0xf0] }
 0x572   : > { %v15577_v44 = vor.u32 %v18640_v58, %v15574_v19  ;;  %v18780_v58 = vld [vmem:[#allocation17 + $0xaac] sm:$0xf]  ;;  %v16134_v19 = vld [vmem:[#allocation17 + $0xab8] sm:$0xf0] }
 0x573   : > { %v8366_v12 = vpop.f32.mrf.mxu1 }
 0x574   : > { %8573 = vmatmul.bf16.vlgmr.msra.gmra.mxu1 %v20607_v25  ;;  %8716 = vmatmul.bf16.vlgmr.msrb.gmra.mxu0 %v20585_v52  ;;  %v18678_v52 = vld [vmem:[#allocation17 + $0x774] sm:$0xf0]  ;;  %v8367_v22 = vadd.f32 %v8366_v12, %v8354_v41  ;;  %v18784_v12 = vld [vmem:[#allocation17 + $0xacc] sm:$0xf] }
 0x575   : > { %8617 = vmatpush.bf16.msrb.mxu1 %v15781_v47  ;;  %8760 = vmatpush.bf16.msra.mxu0 %v15657_v28  ;;  %v15717_v46 = vor.u32 %v18678_v52, %v15716_v11  ;;  %v16293_v52 = vor.u32 %v18822_v17, %v16292_v14  ;;  %v18818_v41 = vld [vmem:[#allocation17 + $0xbd4] sm:$0xf0]  ;;  %v16086_v14 = vld [vmem:[#allocation17 + $0xa58] sm:$0xf0] }
 0x576   : > { %v20683_v48 = vpop.f32.mrf.mxu2  ;;  %vm8838_vm12 = vcmp.gt.f32.partialorder %v8367_v22, 0.0  ;;  %v8842_v30 = vmul.f32 0.2, %v8367_v22 }
 0x578   : > { %v8846_v28 = vsel %vm8838_vm12, %v8367_v22, %v8842_v30  ;;  %v16150_v22 = vld [vmem:[#allocation17 + $0xad8] sm:$0xf0] }
 0x579   : > { %8618 = vmatpush.bf16.msrb.mxu1 %v15765_v40  ;;  %8761 = vmatpush.bf16.msra.mxu0 %v15641_v26  ;;  %v8861_v6 = vmul.f32 %v8853_v1, %v8846_v28  ;;  %v18636_v40 = vld [vmem:[#allocation17 + $0x62c] sm:$0xf]  ;;  %v15558_v26 = vld [vmem:[#allocation17 + $0x638] sm:$0xf0]  ;;  %v8511_v33 = vpop.f32.mrf.mxu0  ;;  %v16244_v28 = vld [vmem:[#allocation17 + $0xb88] sm:$0xf] }
 0x57a   : > { %v15561_v63 = vor.u32 %v18636_v40, %v15558_v26  ;;  %v20709_v1 = vld [vmem:[%s21122_s24 + $0x1] sm:$0x1]  ;;  %v16228_v26 = vld [vmem:[#allocation17 + $0xb68] sm:$0xf] }
 0x57b   : > { %v8876_v55 = vadd.f32 %v8868_v62, %v8861_v6  ;;  %v8368_v31 = vpop.f32.mrf.mxu1  ;;  %v16261_v62 = vor.u32 %v18814_v9, %v16260_v10  ;;  %v16102_v33 = vld [vmem:[#allocation17 + $0xa78] sm:$0xf0]  ;;  %v18794_v10 = vld [vmem:[#allocation17 + $0xb14] sm:$0xf0]  ;;  %v18760_v9 = vld [vmem:[#allocation17 + $0xa0c] sm:$0xf] }
 0x57c   : > { %v18772_v31 = vld [vmem:[#allocation17 + $0xa6c] sm:$0xf] }
 0x57d   : > { %8619 = vmatpush.bf16.msrb.mxu1 %v15749_v57  ;;  %8762 = vmatpush.bf16.msra.mxu0 %v15625_v13  ;;  %v18666_v57 = vld [vmem:[#allocation17 + $0x714] sm:$0xf0]  ;;  %v18632_v13 = vld [vmem:[#allocation17 + $0x60c] sm:$0xf] }
 0x57e   : > { %v8693_v47 = vpop.f32.mrf.mxu2  ;;  %16298 = vmatpush.msk.msrb.mxu2 %vm8885_vm13, %v8876_v55  ;;  %v15545_v11 = vor.u32 %v18632_v13, %v15542_v0  ;;  %v18802_v13 = vld [vmem:[#allocation17 + $0xb54] sm:$0xf0]  ;;  %v18768_v0 = vld [vmem:[#allocation17 + $0xa4c] sm:$0xf] }
 0x57f   : > { %16299 = vmatmul.msk.f32.vlgmr.msrb.gmra.mxu2 %vm8881_vm14, %v20697_v29  ;;  %v16137_v47 = vor.u32 %v18780_v58, %v16134_v19  ;;  %v16089_v51 = vor.u32 %v18768_v0, %v16086_v14  ;;  %v16054_v58 = vld [vmem:[#allocation17 + $0xa18] sm:$0xf0]  ;;  %v18564_v19 = vld [vmem:[#allocation17 + $0x3ec] sm:$0xf] }
 0x580   : > { %16307 = vmatpush.msk.msra.mxu2 %vm8885_vm13, %v8876_v55  ;;  %v16438_v14 = vld [vmem:[#allocation20 + $0xe0] sm:$0xf] }
 0x581   : > { %8620 = vmatpush.bf16.msrb.mxu1 %v15733_v60  ;;  %8763 = vmatpush.bf16.msra.mxu0 %v15609_v18  ;;  %v15669_v18 = vor.u32 %v18666_v57, %v15668_v4  ;;  %v16105_v4 = vor.u32 %v18772_v31, %v16102_v33  ;;  %v16212_v57 = vld [vmem:[#allocation17 + $0xb48] sm:$0xf] }
 0x582   : > { %v20703_v60 = vpop.f32.mrf.mxu3  ;;  %16316 = vmatpush.msk.msrb.mxu2 %vm8885_vm13, %v8876_v55  ;;  %v18806_v55 = vld [vmem:[#allocation17 + $0xb74] sm:$0xf0]  ;;  %v16213_v15 = vor.u32 %v18802_v13, %v16212_v57  ;;  %v15222_v57 = vld [vmem:[#allocation17 + $0x398] sm:$0xf0] }
 0x585   : > { %8621 = vmatpush.bf16.msrb.mxu1 %v15717_v46  ;;  %8764 = vmatpush.bf16.msra.mxu0 %v15593_v43  ;;  %v16277_v46 = vor.u32 %v18818_v41, %v16276_v37  ;;  %v16153_v43 = vor.u32 %v18784_v12, %v16150_v22 }
 0x587   : > { %16308 = vmatmul.msk.f32.vlgmr.msra.gmra.mxu2 %vm8881_vm14, %v20709_v1 }
 0x589   : > { %8622 = vmatpush.bf16.msrb.mxu1 %v15701_v49  ;;  %8765 = vmatpush.bf16.msra.mxu0 %v15577_v44  ;;  %v18810_v49 = vld [vmem:[#allocation17 + $0xb94] sm:$0xf0]  ;;  %v18776_v44 = vld [vmem:[#allocation17 + $0xa8c] sm:$0xf] }
 0x58a   : > { %v8654_v30 = vpop.f32.mrf.mxu3  ;;  %v16245_v50 = vor.u32 %v18810_v49, %v16244_v28  ;;  %v16121_v40 = vor.u32 %v18776_v44, %v16118_v8  ;;  %v16057_v28 = vor.u32 %v18760_v9, %v16054_v58  ;;  %v18560_v44 = vld [vmem:[#allocation17 + $0x3cc] sm:$0xf]  ;;  %v15254_v8 = vld [vmem:[#allocation17 + $0x3d8] sm:$0xf0] }
 0x58b   : > { %v15270_v30 = vld [vmem:[#allocation17 + $0x3f8] sm:$0xf0]  ;;  %v16406_v9 = vld [vmem:[#allocation20 + $0xa0] sm:$0xf] }
 0x58c   : > { %v15273_v49 = vor.u32 %v18564_v19, %v15270_v30  ;;  %v18845_v19 = vld [vmem:[#allocation20 + $0xac] sm:$0xf0]  ;;  %v18540_v30 = vld [vmem:[#allocation17 + $0x32c] sm:$0xf] }
 0x58d   : > { %8623 = vmatpush.bf16.msrb.mxu1 %v15685_v36  ;;  %8766 = vmatpush.bf16.msra.mxu0 %v15561_v63  ;;  %v16229_v63 = vor.u32 %v18806_v55, %v16228_v26  ;;  %v18556_v26 = vld [vmem:[#allocation17 + $0x3ac] sm:$0xf]  ;;  %v15238_v55 = vld [vmem:[#allocation17 + $0x3b8] sm:$0xf0] }
 0x591   : > { %8624 = vmatpush.bf16.msrb.mxu1 %v15669_v18  ;;  %8767 = vmatpush.bf16.msra.mxu0 %v15545_v11  ;;  %v16196_v18 = vld [vmem:[#allocation17 + $0xb28] sm:$0xf]  ;;  %v18798_v11 = vld [vmem:[#allocation17 + $0xb34] sm:$0xf0] }
 0x592   : > { %v16197_v12 = vor.u32 %v18798_v11, %v16196_v18  ;;  %v15206_v18 = vld [vmem:[#allocation17 + $0x378] sm:$0xf0] }
 0x593   : > { %v20719_v36 = vpop.f32.mrf.mxu0 }
 0x594   : > { %8625 = vmatmul.bf16.vlgmr.msrb.gmra.mxu1 %v20616_v56  ;;  %8768 = vmatmul.bf16.vlgmr.msra.gmra.mxu0 %v20589_v59  ;;  %v20717_v59 = vpop.f32.mrf.mxu1 }
 0x595   : > { %8669 = vmatpush.bf16.msra.mxu1 %v16293_v52  ;;  %8812 = vmatpush.bf16.msrb.mxu0 %v16169_v39  ;;  %v18764_v52 = vld [vmem:[#allocation17 + $0xa2c] sm:$0xf]  ;;  %v16070_v39 = vld [vmem:[#allocation17 + $0xa38] sm:$0xf0] }
 0x596   : > { %v20715_v6 = vpop.f32.mrf.mxu2  ;;  %v16073_v22 = vor.u32 %v18764_v52, %v16070_v39  ;;  %v16422_v39 = vld [vmem:[#allocation20 + $0xc0] sm:$0xf] }
 0x599   : > { %8670 = vmatpush.bf16.msra.mxu1 %v16277_v46  ;;  %8813 = vmatpush.bf16.msrb.mxu0 %v16153_v43  ;;  %v16180_v46 = vld [vmem:[#allocation17 + $0xb08] sm:$0xf]  ;;  %v20724_v43 = vld [vmem:[%s21122_s24 + $0x2] sm:$0x1] }
 0x59a   : > { %16317 = vmatmul.msk.f32.vlgmr.msrb.gmra.mxu2 %vm8881_vm14, %v20724_v43 }
 0x59b   : > { %v8563_v41 = vpop.f32.mrf.mxu0 }
 0x59c   : > { %v8420_v37 = vpop.f32.mrf.mxu1  ;;  %v18849_v41 = vld [vmem:[#allocation20 + $0xcc] sm:$0xf0] }
 0x59d   : > { %8671 = vmatpush.bf16.msra.mxu1 %v16261_v62  ;;  %8814 = vmatpush.bf16.msrb.mxu0 %v16137_v47  ;;  %v16181_v47 = vor.u32 %v18794_v10, %v16180_v46  ;;  %v16423_v46 = vor.u32 %v18849_v41, %v16422_v39  ;;  %v18684_v41 = vld [vmem:[#allocation17 + $0x7ac] sm:$0xf] }
 0x59e   : > { %v8745_v17 = vpop.f32.mrf.mxu2 }
 0x5a1   : > { %8672 = vmatpush.bf16.msra.mxu1 %v16245_v50  ;;  %8815 = vmatpush.bf16.msrb.mxu0 %v16121_v40  ;;  %v6287_v50 = vperm.slane %v20659_v24, 1  ;;  %v15257_v40 = vor.u32 %v18560_v44, %v15254_v8  ;;  %v16390_v8 = vld [vmem:[#allocation20 + $0x80] sm:$0xf] }
 0x5a2   : > { %v20728_v62 = vpop.f32.mrf.mxu3 }
 0x5a3   : > { %v8380_v31 = vadd.f32 %v20622_v21, %v6287_v50  ;;  %v18841_v50 = vld [vmem:[#allocation20 + $0x8c] sm:$0xf0] }
 0x5a5   : > { %8673 = vmatpush.bf16.msra.mxu1 %v16229_v63  ;;  %8816 = vmatpush.bf16.msrb.mxu0 %v16105_v4  ;;  %v15241_v63 = vor.u32 %v18556_v26, %v15238_v55  ;;  %v18552_v4 = vld [vmem:[#allocation17 + $0x38c] sm:$0xf]  ;;  %v8393_v13 = vadd.f32 %v20628_v2, %v8380_v31  ;;  %v15158_v55 = vld [vmem:[#allocation17 + $0x318] sm:$0xf0]  ;;  %v16391_v31 = vor.u32 %v18841_v50, %v16390_v8 }
 0x5a6   : > { %v15225_v17 = vor.u32 %v18552_v4, %v15222_v57  ;;  %v18536_v26 = vld [vmem:[#allocation17 + $0x30c] sm:$0xf]  ;;  %v15718_v8 = vld [vmem:[#allocation17 + $0x778] sm:$0xf0] }
 0x5a7   : > { %v16374_v4 = vld [vmem:[#allocation20 + $0x60] sm:$0xf] }
 0x5a9   : > { %8674 = vmatpush.bf16.msra.mxu1 %v16213_v15  ;;  %8817 = vmatpush.bf16.msrb.mxu0 %v16089_v51  ;;  %v18853_v15 = vld [vmem:[#allocation20 + $0xec] sm:$0xf0]  ;;  %v18548_v51 = vld [vmem:[#allocation17 + $0x36c] sm:$0xf] }
 0x5aa   : > { %v8706_v33 = vpop.f32.mrf.mxu3  ;;  %v16439_v11 = vor.u32 %v18853_v15, %v16438_v14  ;;  %v15209_v37 = vor.u32 %v18548_v51, %v15206_v18  ;;  %v18688_v51 = vld [vmem:[#allocation17 + $0x7cc] sm:$0xf]  ;;  %v15766_v18 = vld [vmem:[#allocation17 + $0x7d8] sm:$0xf0] }
 0x5ab   : > { %v18692_v33 = vld [vmem:[#allocation17 + $0x7ec] sm:$0xf] }
 0x5ac   : > { %11474 = vmatpush.bf16.msra.mxu2 %v16439_v11 }
 0x5ad   : > { %8675 = vmatpush.bf16.msra.mxu1 %v16197_v12  ;;  %8818 = vmatpush.bf16.msrb.mxu0 %v16073_v22  ;;  %v18544_v12 = vld [vmem:[#allocation17 + $0x34c] sm:$0xf]  ;;  %v15190_v22 = vld [vmem:[#allocation17 + $0x358] sm:$0xf0] }
 0x5ae   : > { %v15193_v58 = vor.u32 %v18544_v12, %v15190_v22  ;;  %v16342_v12 = vld [vmem:[#allocation20 + $0x20] sm:$0xf]  ;;  %v18829_v22 = vld [vmem:[#allocation20 + $0x2c] sm:$0xf0] }
 0x5b0   : > { %11475 = vmatpush.bf16.msra.mxu2 %v16423_v46 }
 0x5b1   : > { %8676 = vmatpush.bf16.msra.mxu1 %v16181_v47  ;;  %8819 = vmatpush.bf16.msrb.mxu0 %v16057_v28  ;;  %v8470_v52 = vpop.f32.mrf.mxu1  ;;  %v20738_v21 = vpop.f32.mrf.mxu0  ;;  %v15174_v47 = vld [vmem:[#allocation17 + $0x338] sm:$0xf0]  ;;  %v16407_v28 = vor.u32 %v18845_v19, %v16406_v9  ;;  %v18680_v9 = vld [vmem:[#allocation17 + $0x78c] sm:$0xf] }
 0x5b4   : > { %8677 = vmatmul.bf16.vlgmr.msra.gmra.mxu1 %v20624_v38  ;;  %8820 = vmatmul.bf16.vlgmr.msrb.gmra.mxu0 %v20593_v34  ;;  %v8406_v34 = vadd.f32 %v20657_v27, %v8393_v13  ;;  %v15161_v13 = vor.u32 %v18536_v26, %v15158_v55  ;;  %v16934_v26 = vld [vmem:[#allocation20 + $0x4c0] sm:$0xf] }
 0x5b5   : > { %8721 = vmatpush.bf16.msrb.mxu1 %v15273_v49  ;;  %11476 = vmatpush.bf16.msra.mxu2 %v16407_v28  ;;  %v16950_v28 = vld [vmem:[#allocation20 + $0x4e0] sm:$0xf] }
 0x5b6   : > { %v20735_v0 = vpop.f32.mrf.mxu2  ;;  %v8419_v2 = vadd.f32 %v20717_v59, %v8406_v34  ;;  %v15177_v59 = vor.u32 %v18540_v30, %v15174_v47  ;;  %v18833_v34 = vld [vmem:[#allocation20 + $0x4c] sm:$0xf0] }
 0x5b7   : > { %v18825_v30 = vld [vmem:[#allocation20 + $0xc] sm:$0xf0] }
 0x5b8   : > { %v8432_v27 = vadd.f32 %v20633_v20, %v8419_v2  ;;  %v18837_v20 = vld [vmem:[#allocation20 + $0x6c] sm:$0xf0] }
 0x5b9   : > { %8722 = vmatpush.bf16.msrb.mxu1 %v15257_v40  ;;  %v8472_v49 = vpop.f32.mrf.mxu1  ;;  %v8615_v44 = vpop.f32.mrf.mxu0  ;;  %11477 = vmatpush.bf16.msra.mxu2 %v16391_v31  ;;  %v16375_v14 = vor.u32 %v18837_v20, %v16374_v4  ;;  %v15750_v2 = vld [vmem:[#allocation17 + $0x7b8] sm:$0xf0] }
 0x5ba   : > { %v8445_v40 = vadd.f32 %v20636_v35, %v8432_v27  ;;  %v16358_v35 = vld [vmem:[#allocation20 + $0x40] sm:$0xf]  ;;  %v18981_v44 = vld [vmem:[#allocation20 + $0x4ec] sm:$0xf0] }
 0x5bb   : > { %v16359_v39 = vor.u32 %v18833_v34, %v16358_v35  ;;  %v16326_v27 = vld [vmem:[#allocation20] sm:$0xf]  ;;  %v18977_v31 = vld [vmem:[#allocation20 + $0x4cc] sm:$0xf0] }
 0x5bc   : > { %v16327_v47 = vor.u32 %v18825_v30, %v16326_v27  ;;  %v15702_v4 = vld [vmem:[#allocation17 + $0x758] sm:$0xf0]  ;;  %v16935_v20 = vor.u32 %v18977_v31, %v16934_v26 }
 0x5bd   : > { %8723 = vmatpush.bf16.msrb.mxu1 %v15241_v63  ;;  %v15782_v63 = vld [vmem:[#allocation17 + $0x7f8] sm:$0xf0]  ;;  %11478 = vmatpush.bf16.msra.mxu2 %v16375_v14  ;;  %v8869_v14 = vperm.slane %v20691_v61, 1 }
 0x5be   : > { %v8797_v10 = vpop.f32.mrf.mxu2  ;;  %v15785_v15 = vor.u32 %v18692_v33, %v15782_v63  ;;  %v8854_v33 = vperm.slane %v20685_v45, 1  ;;  %v18672_v63 = vld [vmem:[#allocation17 + $0x74c] sm:$0xf]  ;;  %v15686_v35 = vld [vmem:[#allocation17 + $0x738] sm:$0xf0] }
 0x5c1   : > { %8724 = vmatpush.bf16.msrb.mxu1 %v15225_v17  ;;  %v8458_v17 = vadd.f32 %v20672_v23, %v8445_v40  ;;  %11479 = vmatpush.bf16.msra.mxu2 %v16359_v39  ;;  %v16343_v23 = vor.u32 %v18829_v22, %v16342_v12  ;;  %v18969_v12 = vld [vmem:[#allocation20 + $0x48c] sm:$0xf0] }
 0x5c2   : > { %v20743_v57 = vpop.f32.mrf.mxu3 }
 0x5c3   : > { %v8471_v11 = vadd.f32 %v8470_v52, %v8458_v17  ;;  %v15753_v52 = vor.u32 %v18684_v41, %v15750_v2  ;;  %v16902_v2 = vld [vmem:[#allocation20 + $0x480] sm:$0xf] }
 0x5c5   : > { %8725 = vmatpush.bf16.msrb.mxu1 %v15209_v37  ;;  %v15769_v37 = vor.u32 %v18688_v51, %v15766_v18  ;;  %v8484_v46 = vadd.f32 %v20640_v54, %v8471_v11  ;;  %11480 = vmatpush.bf16.msra.mxu2 %v16343_v23  ;;  %v18676_v54 = vld [vmem:[#allocation17 + $0x76c] sm:$0xf]  ;;  %v18973_v51 = vld [vmem:[#allocation20 + $0x4ac] sm:$0xf0] }
 0x5c6   : > { %v15721_v55 = vor.u32 %v18676_v54, %v15718_v8  ;;  %v18668_v11 = vld [vmem:[#allocation17 + $0x72c] sm:$0xf]  ;;  %v18961_v8 = vld [vmem:[#allocation20 + $0x44c] sm:$0xf0] }
 0x5c7   : > { %v8497_v19 = vadd.f32 %v20650_v3, %v8484_v46  ;;  %v15689_v22 = vor.u32 %v18668_v11, %v15686_v35  ;;  %v16903_v46 = vor.u32 %v18969_v12, %v16902_v2  ;;  %v18664_v23 = vld [vmem:[#allocation17 + $0x70c] sm:$0xf] }
 0x5c8   : > { %v16870_v54 = vld [vmem:[#allocation20 + $0x440] sm:$0xf] }
 0x5c9   : > { %8726 = vmatpush.bf16.msrb.mxu1 %v15193_v58  ;;  %v15734_v58 = vld [vmem:[#allocation17 + $0x798] sm:$0xf0]  ;;  %11481 = vmatpush.bf16.msra.mxu2 %v16327_v47  ;;  %v18800_v35 = vld [vmem:[#allocation17 + $0xb4c] sm:$0xf] }
 0x5ca   : > { %v8758_v10 = vpop.f32.mrf.mxu3  ;;  %v15737_v49 = vor.u32 %v18680_v9, %v15734_v58  ;;  %v16294_v9 = vld [vmem:[#allocation17 + $0xbf8] sm:$0xf0]  ;;  %v16886_v58 = vld [vmem:[#allocation20 + $0x460] sm:$0xf] }
 0x5cb   : > { %v15670_v10 = vld [vmem:[#allocation17 + $0x718] sm:$0xf0] }
 0x5cc   : > { %v15673_v30 = vor.u32 %v18664_v23, %v15670_v10  ;;  %v16182_v23 = vld [vmem:[#allocation17 + $0xb18] sm:$0xf0] }
 0x5cd   : > { %8727 = vmatpush.bf16.msrb.mxu1 %v15177_v59  ;;  %v8510_v59 = vadd.f32 %v20688_v53, %v8497_v19  ;;  %v16918_v53 = vld [vmem:[#allocation20 + $0x4a0] sm:$0xf]  ;;  %v18965_v19 = vld [vmem:[#allocation20 + $0x46c] sm:$0xf0] }
 0x5ce   : > { %v16919_v34 = vor.u32 %v18973_v51, %v16918_v53  ;;  %v16887_v47 = vor.u32 %v18965_v19, %v16886_v58  ;;  %v16230_v51 = vld [vmem:[#allocation17 + $0xb78] sm:$0xf0]  ;;  %v17462_v58 = vld [vmem:[#allocation20 + $0x8e0] sm:$0xf] }
 0x5cf   : > { %v19109_v19 = vld [vmem:[#allocation20 + $0x8ec] sm:$0xf0] }
 0x5d1   : > { %8728 = vmatpush.bf16.msrb.mxu1 %v15161_v13  ;;  %v8522_v50 = vpop.f32.mrf.mxu1  ;;  %v20750_v40 = vpop.f32.mrf.mxu0 }
 0x5d2   : > { %v8523_v3 = vadd.f32 %v8522_v50, %v8510_v59  ;;  %v16854_v59 = vld [vmem:[#allocation20 + $0x420] sm:$0xf]  ;;  %v18957_v50 = vld [vmem:[#allocation20 + $0x42c] sm:$0xf0] }
 0x5d3   : > { %v16855_v31 = vor.u32 %v18957_v50, %v16854_v59  ;;  %v19105_v59 = vld [vmem:[#allocation20 + $0x8cc] sm:$0xf0]  ;;  %v16550_v50 = vld [vmem:[#allocation20 + $0x1c0] sm:$0xf] }
 0x5d4   : > { %8729 = vmatmul.bf16.vlgmr.msrb.gmra.mxu1 %v20607_v25  ;;  %v16951_v25 = vor.u32 %v18981_v44, %v16950_v28  ;;  %vm8839_vm15 = vcmp.gt.f32.partialorder %v8523_v3, 0.0  ;;  %v8843_v13 = vmul.f32 0.2, %v8523_v3  ;;  %v16278_v44 = vld [vmem:[#allocation17 + $0xbd8] sm:$0xf0] }
 0x5d5   : > { %8773 = vmatpush.bf16.msra.mxu1 %v15785_v15  ;;  %v15705_v15 = vor.u32 %v18672_v63, %v15702_v4  ;;  %v18808_v4 = vld [vmem:[#allocation17 + $0xb8c] sm:$0xf] }
 0x5d6   : > { %11526 = vmatpush.bf16.msrb.mxu2 %v16951_v25  ;;  %v8847_v17 = vsel %vm8839_vm15, %v8523_v3, %v8843_v13  ;;  %v16871_v25 = vor.u32 %v18961_v8, %v16870_v54  ;;  %v18812_v3 = vld [vmem:[#allocation17 + $0xbac] sm:$0xf] }
 0x5d7   : > { %v8862_v18 = vmul.f32 %v8854_v33, %v8847_v17  ;;  %v16838_v13 = vld [vmem:[#allocation20 + $0x400] sm:$0xf] }
 0x5d9   : > { %8774 = vmatpush.bf16.msra.mxu1 %v15769_v37  ;;  %v8877_v39 = vadd.f32 %v8869_v14, %v8862_v18  ;;  %v8524_v37 = vpop.f32.mrf.mxu1  ;;  %v8667_v41 = vpop.f32.mrf.mxu0  ;;  %v18953_v14 = vld [vmem:[#allocation20 + $0x40c] sm:$0xf0] }
 0x5da   : > { %11527 = vmatpush.bf16.msrb.mxu2 %v16935_v20  ;;  %v16246_v20 = vld [vmem:[#allocation17 + $0xb98] sm:$0xf0]  ;;  %v16839_v53 = vor.u32 %v18953_v14, %v16838_v13  ;;  %v18796_v37 = vld [vmem:[#allocation17 + $0xb2c] sm:$0xf] }
 0x5db   : > { %16300 = vmatpush.msk.msrb.mxu3 %vm8885_vm13, %v8877_v39  ;;  %v16249_v17 = vor.u32 %v18808_v4, %v16246_v20  ;;  %v16198_v41 = vld [vmem:[#allocation17 + $0xb38] sm:$0xf0] }
 0x5dc   : > { %16301 = vmatmul.msk.f32.vlgmr.msrb.gmra.mxu3 %vm8881_vm14, %v20697_v29  ;;  %v18877_v4 = vld [vmem:[#allocation20 + $0x1ac] sm:$0xf0] }
 0x5dd   : > { %8775 = vmatpush.bf16.msra.mxu1 %v15753_v52  ;;  %v18820_v52 = vld [vmem:[#allocation17 + $0xbec] sm:$0xf]  ;;  %16309 = vmatpush.msk.msra.mxu3 %vm8885_vm13, %v8877_v39 }
 0x5de   : > { %11528 = vmatpush.bf16.msrb.mxu2 %v16919_v34  ;;  %v16297_v28 = vor.u32 %v18820_v52, %v16294_v9  ;;  %v16214_v34 = vld [vmem:[#allocation17 + $0xb58] sm:$0xf0]  ;;  %v6288_v52 = vperm.slane %v20659_v24, 2 }
 0x5df   : > { %16318 = vmatpush.msk.msrb.mxu3 %vm8885_vm13, %v8877_v39  ;;  %v16217_v39 = vor.u32 %v18800_v35, %v16214_v34  ;;  %v18881_v24 = vld [vmem:[#allocation20 + $0x1cc] sm:$0xf0]  ;;  %v17398_v34 = vld [vmem:[#allocation20 + $0x860] sm:$0xf] }
 0x5e0   : > { %v8536_v9 = vadd.f32 %v20647_v42, %v6288_v52  ;;  %v19089_v52 = vld [vmem:[#allocation20 + $0x84c] sm:$0xf0] }
 0x5e1   : > { %8776 = vmatpush.bf16.msra.mxu1 %v15737_v49  ;;  %v20758_v27 = vpop.f32.mrf.mxu3  ;;  %v18816_v49 = vld [vmem:[#allocation17 + $0xbcc] sm:$0xf] }
 0x5e2   : > { %11529 = vmatpush.bf16.msrb.mxu2 %v16903_v46  ;;  %v16281_v26 = vor.u32 %v18816_v49, %v16278_v44  ;;  %v18792_v46 = vld [vmem:[#allocation17 + $0xb0c] sm:$0xf]  ;;  %v17463_v44 = vor.u32 %v19109_v19, %v17462_v58  ;;  %v8549_v54 = vadd.f32 %v20661_v5, %v8536_v9  ;;  %v19101_v5 = vld [vmem:[#allocation20 + $0x8ac] sm:$0xf0] }
 0x5e3   : > { %v16185_v10 = vor.u32 %v18792_v46, %v16182_v23  ;;  %v17382_v23 = vld [vmem:[#allocation20 + $0x840] sm:$0xf]  ;;  %v18865_v58 = vld [vmem:[#allocation20 + $0x14c] sm:$0xf0] }
 0x5e4   : > { %16310 = vmatmul.msk.f32.vlgmr.msra.gmra.mxu3 %vm8881_vm14, %v20709_v1  ;;  %v16486_v9 = vld [vmem:[#allocation20 + $0x140] sm:$0xf] }
 0x5e5   : > { %8777 = vmatpush.bf16.msra.mxu1 %v15721_v55  ;;  %v16262_v55 = vld [vmem:[#allocation17 + $0xbb8] sm:$0xf0]  ;;  %v16487_v19 = vor.u32 %v18865_v58, %v16486_v9  ;;  %v16392_v9 = vld [vmem:[#allocation20 + $0x90] sm:$0xf0]  ;;  %v17030_v58 = vld [vmem:[#allocation20 + $0x580] sm:$0xf] }
 0x5e6   : > { %11530 = vmatpush.bf16.msrb.mxu2 %v16887_v47  ;;  %v16265_v63 = vor.u32 %v18812_v3, %v16262_v55  ;;  %v18885_v47 = vld [vmem:[#allocation20 + $0x1ec] sm:$0xf0]  ;;  %v16551_v3 = vor.u32 %v18881_v24, %v16550_v50  ;;  %v16454_v24 = vld [vmem:[#allocation20 + $0x100] sm:$0xf] }
 0x5e7   : > { %v19081_v50 = vld [vmem:[#allocation20 + $0x80c] sm:$0xf0] }
 0x5e9   : > { %8778 = vmatpush.bf16.msra.mxu1 %v15705_v15  ;;  %v8810_v33 = vpop.f32.mrf.mxu3  ;;  %v18804_v15 = vld [vmem:[#allocation17 + $0xb6c] sm:$0xf] }
 0x5ea   : > { %11531 = vmatpush.bf16.msrb.mxu2 %v16871_v25  ;;  %v16233_v11 = vor.u32 %v18804_v15, %v16230_v51  ;;  %v17446_v25 = vld [vmem:[#allocation20 + $0x8c0] sm:$0xf]  ;;  %v18873_v15 = vld [vmem:[#allocation20 + $0x18c] sm:$0xf0] }
 0x5eb   : > { %v17447_v55 = vor.u32 %v19105_v59, %v17446_v25  ;;  %v17430_v33 = vld [vmem:[#allocation20 + $0x8a0] sm:$0xf] }
 0x5ec   : > { %16319 = vmatmul.msk.f32.vlgmr.msrb.gmra.mxu3 %vm8881_vm14, %v20724_v43  ;;  %v17431_v13 = vor.u32 %v19101_v5, %v17430_v33  ;;  %v17350_v59 = vld [vmem:[#allocation20 + $0x800] sm:$0xf]  ;;  %v19013_v5 = vld [vmem:[#allocation20 + $0x5ec] sm:$0xf0] }
 0x5ed   : > { %8779 = vmatpush.bf16.msra.mxu1 %v15689_v22  ;;  %v16201_v22 = vor.u32 %v18796_v37, %v16198_v41  ;;  %v19093_v41 = vld [vmem:[#allocation20 + $0x86c] sm:$0xf0]  ;;  %v17078_v33 = vld [vmem:[#allocation20 + $0x5e0] sm:$0xf] }
 0x5ee   : > { %11532 = vmatpush.bf16.msrb.mxu2 %v16855_v31  ;;  %v17399_v46 = vor.u32 %v19093_v41, %v17398_v34  ;;  %v8855_v34 = vperm.slane %v20685_v45, 2  ;;  %v19001_v45 = vld [vmem:[#allocation20 + $0x58c] sm:$0xf0] }
 0x5f1   : > { %8780 = vmatpush.bf16.msra.mxu1 %v15673_v30  ;;  %v20766_v18 = vpop.f32.mrf.mxu0  ;;  %v16566_v30 = vld [vmem:[#allocation20 + $0x1e0] sm:$0xf] }
 0x5f2   : > { %11533 = vmatpush.bf16.msrb.mxu2 %v16839_v53  ;;  %v19097_v53 = vld [vmem:[#allocation20 + $0x88c] sm:$0xf0] }
 0x5f4   : > { %8781 = vmatmul.bf16.vlgmr.msra.gmra.mxu1 %v20616_v56  ;;  %v8574_v56 = vpop.f32.mrf.mxu1 }
 0x5f5   : > { %8825 = vmatpush.bf16.msrb.mxu1 %v16297_v28  ;;  %v16567_v28 = vor.u32 %v18885_v47, %v16566_v30  ;;  %v17366_v47 = vld [vmem:[#allocation20 + $0x820] sm:$0xf] }
 0x5f7   : > { %11487 = vmatpush.bf16.msra.mxu3 %v16567_v28  ;;  %v19085_v28 = vld [vmem:[#allocation20 + $0x82c] sm:$0xf0] }
 0x5f9   : > { %8826 = vmatpush.bf16.msrb.mxu1 %v16281_v26  ;;  %v8719_v12 = vpop.f32.mrf.mxu0 }
 0x5fa   : > { %v18869_v12 = vld [vmem:[#allocation20 + $0x16c] sm:$0xf0] }
 0x5fb   : > { %11488 = vmatpush.bf16.msra.mxu3 %v16551_v3  ;;  %v16440_v3 = vld [vmem:[#allocation20 + $0xf0] sm:$0xf0] }
 0x5fc   : > { %v8576_v2 = vpop.f32.mrf.mxu1 }
 0x5fd   : > { %8827 = vmatpush.bf16.msrb.mxu1 %v16265_v63  ;;  %v16534_v63 = vld [vmem:[#allocation20 + $0x1a0] sm:$0xf] }
 0x5fe   : > { %v16535_v20 = vor.u32 %v18877_v4, %v16534_v63  ;;  %v16502_v2 = vld [vmem:[#allocation20 + $0x160] sm:$0xf]  ;;  %v17351_v63 = vor.u32 %v19081_v50, %v17350_v59  ;;  %v18831_v59 = vld [vmem:[#allocation20 + $0x44] sm:$0xf]  ;;  %v16360_v50 = vld [vmem:[#allocation20 + $0x50] sm:$0xf0] }
 0x600   : > { %11489 = vmatpush.bf16.msra.mxu3 %v16535_v20  ;;  %v17079_v20 = vor.u32 %v19013_v5, %v17078_v33  ;;  %v16982_v33 = vld [vmem:[#allocation20 + $0x520] sm:$0xf] }
 0x601   : > { %8828 = vmatpush.bf16.msrb.mxu1 %v16249_v17  ;;  %v16518_v17 = vld [vmem:[#allocation20 + $0x180] sm:$0xf] }
 0x602   : > { %v8915_v49 = vpop.f32.mrf.mxu2  ;;  %v16519_v35 = vor.u32 %v18873_v15, %v16518_v17  ;;  %v17062_v17 = vld [vmem:[#allocation20 + $0x5c0] sm:$0xf]  ;;  %v19009_v15 = vld [vmem:[#allocation20 + $0x5cc] sm:$0xf0] }
 0x603   : > { %v20772_v8 = vpack.c.bf16 %v8915_v49, %v8915_v49  ;;  %v16470_v49 = vld [vmem:[#allocation20 + $0x120] sm:$0xf] }
 0x604   : > { %11490 = vmatpush.bf16.msra.mxu3 %v16519_v35 }
 0x605   : > { %8829 = vmatpush.bf16.msrb.mxu1 %v16233_v11  ;;  %11482 = vmatmul.bf16.vlgmr.msra.gmra.mxu2 %v20772_v8 }
 0x606   : > { %11578 = vmatpush.bf16.msra.mxu2 %v17463_v44  ;;  %v18861_v44 = vld [vmem:[#allocation20 + $0x12c] sm:$0xf0] }
 0x609   : > { %8830 = vmatpush.bf16.msrb.mxu1 %v16217_v39 }
 0x60a   : > { %11579 = vmatpush.bf16.msra.mxu2 %v17447_v55  ;;  %v9000_v39 = vpop.f32.mrf.mxu2 }
 0x60d   : > { %8831 = vmatpush.bf16.msrb.mxu1 %v16201_v22  ;;  %v16503_v22 = vor.u32 %v18869_v12, %v16502_v2  ;;  %v8870_v2 = vperm.slane %v20691_v61, 2  ;;  %v19005_v12 = vld [vmem:[#allocation20 + $0x5ac] sm:$0xf0]  ;;  %v16376_v61 = vld [vmem:[#allocation20 + $0x70] sm:$0xf0] }
 0x60e   : > { %11580 = vmatpush.bf16.msra.mxu2 %v17431_v13 }
 0x60f   : > { %11491 = vmatpush.bf16.msra.mxu3 %v16503_v22 }
 0x611   : > { %8832 = vmatpush.bf16.msrb.mxu1 %v16185_v10  ;;  %v8626_v26 = vpop.f32.mrf.mxu1  ;;  %v20775_v42 = vpop.f32.mrf.mxu0 }
 0x613   : > { %11492 = vmatpush.bf16.msra.mxu3 %v16487_v19  ;;  %v17031_v19 = vor.u32 %v19001_v45, %v17030_v58  ;;  %v16856_v58 = vld [vmem:[#allocation20 + $0x430] sm:$0xf0]  ;;  %v16694_v45 = vld [vmem:[#allocation20 + $0x2e0] sm:$0xf] }
 0x614   : > { %8833 = vmatmul.bf16.vlgmr.msrb.gmra.mxu1 %v20624_v38  ;;  %v8562_v38 = vadd.f32 %v20719_v36, %v8549_v54  ;;  %v17414_v36 = vld [vmem:[#allocation20 + $0x880] sm:$0xf]  ;;  %v16471_v54 = vor.u32 %v18861_v44, %v16470_v49  ;;  %v18835_v49 = vld [vmem:[#allocation20 + $0x64] sm:$0xf] }
 0x615   : > { %v17014_v44 = vld [vmem:[#allocation20 + $0x560] sm:$0xf] }
 0x616   : > { %v8575_v31 = vadd.f32 %v8574_v56, %v8562_v38  ;;  %v17415_v56 = vor.u32 %v19097_v53, %v17414_v36  ;;  %v18857_v38 = vld [vmem:[#allocation20 + $0x10c] sm:$0xf0] }
 0x617   : > { %11493 = vmatpush.bf16.msra.mxu3 %v16471_v54  ;;  %v16455_v55 = vor.u32 %v18857_v38, %v16454_v24  ;;  %v18997_v54 = vld [vmem:[#allocation20 + $0x56c] sm:$0xf0]  ;;  %v16998_v24 = vld [vmem:[#allocation20 + $0x540] sm:$0xf] }
 0x618   : > { %v8588_v14 = vadd.f32 %v20654_v32, %v8575_v31  ;;  %v20780_v32 = vpack.c.bf16 %v9000_v39, %v9000_v39  ;;  %11581 = vmatpush.bf16.msra.mxu2 %v17415_v56  ;;  %v18843_v39 = vld [vmem:[#allocation20 + $0xa4] sm:$0xf]  ;;  %v18993_v38 = vld [vmem:[#allocation20 + $0x54c] sm:$0xf0] }
 0x619   : > { %v8628_v51 = vpop.f32.mrf.mxu1  ;;  %v8771_v11 = vpop.f32.mrf.mxu0 }
 0x61a   : > { %v8601_v37 = vadd.f32 %v20676_v7, %v8588_v14  ;;  %11534 = vmatmul.bf16.vlgmr.msrb.gmra.mxu2 %v20780_v32  ;;  %v17383_v7 = vor.u32 %v19089_v52, %v17382_v23  ;;  %v16424_v14 = vld [vmem:[#allocation20 + $0xd0] sm:$0xf0]  ;;  %v18839_v23 = vld [vmem:[#allocation20 + $0x84] sm:$0xf] }
 0x61b   : > { %11494 = vmatpush.bf16.msra.mxu3 %v16455_v55  ;;  %v18827_v55 = vld [vmem:[#allocation20 + $0x24] sm:$0xf] }
 0x61c   : > { %v8614_v10 = vadd.f32 %v20738_v21, %v8601_v37  ;;  %11582 = vmatpush.bf16.msra.mxu2 %v17399_v46  ;;  %v17367_v21 = vor.u32 %v19085_v28, %v17366_v47  ;;  %v16408_v37 = vld [vmem:[#allocation20 + $0xb0] sm:$0xf0]  ;;  %v16395_v28 = vor.u32 %v18839_v23, %v16392_v9  ;;  %v18959_v23 = vld [vmem:[#allocation20 + $0x444] sm:$0xf] }
 0x61d   : > { %v9085_v4 = vpop.f32.mrf.mxu2  ;;  %v16411_v46 = vor.u32 %v18843_v39, %v16408_v37  ;;  %v16920_v39 = vld [vmem:[#allocation20 + $0x4b0] sm:$0xf0]  ;;  %v18955_v9 = vld [vmem:[#allocation20 + $0x424] sm:$0xf] }
 0x61e   : > { %v8627_v30 = vadd.f32 %v8626_v26, %v8614_v10  ;;  %v18851_v26 = vld [vmem:[#allocation20 + $0xe4] sm:$0xf]  ;;  %v20787_v53 = vpack.c.bf16 %v9085_v4, %v9085_v4 }
 0x61f   : > { %v16443_v13 = vor.u32 %v18851_v26, %v16440_v3  ;;  %11539 = vmatpush.bf16.msrb.mxu3 %v17079_v20  ;;  %v16999_v26 = vor.u32 %v18993_v38, %v16998_v24  ;;  %v16363_v3 = vor.u32 %v18831_v59, %v16360_v50  ;;  %v18823_v4 = vld [vmem:[#allocation20 + $0x4] sm:$0xf]  ;;  %v16328_v20 = vld [vmem:[#allocation20 + $0x10] sm:$0xf0] }
 0x620   : > { %v8640_v25 = vadd.f32 %v20667_v16, %v8627_v30  ;;  %11583 = vmatpush.bf16.msra.mxu2 %v17383_v7  ;;  %v18847_v16 = vld [vmem:[#allocation20 + $0xc4] sm:$0xf]  ;;  %v17464_v50 = vld [vmem:[#allocation20 + $0x8f0] sm:$0xf0] }
 0x621   : > { %v16427_v56 = vor.u32 %v18847_v16, %v16424_v14  ;;  %v16952_v16 = vld [vmem:[#allocation20 + $0x4f0] sm:$0xf0]  ;;  %v16966_v14 = vld [vmem:[#allocation20 + $0x500] sm:$0xf]  ;;  %v19107_v59 = vld [vmem:[#allocation20 + $0x8e4] sm:$0xf] }
 0x622   : > { %v8653_v31 = vadd.f32 %v20703_v60, %v8640_v25  ;;  %v17063_v60 = vor.u32 %v19009_v15, %v17062_v17  ;;  %v17015_v25 = vor.u32 %v18997_v54, %v17014_v44  ;;  %v16331_v15 = vor.u32 %v18823_v4, %v16328_v20  ;;  %v16840_v44 = vld [vmem:[#allocation20 + $0x410] sm:$0xf0]  ;;  %v16678_v54 = vld [vmem:[#allocation20 + $0x2c0] sm:$0xf]  ;;  %v19137_v20 = vld [vmem:[#allocation20 + $0x9cc] sm:$0xf0] }
 0x624   : > { %11584 = vmatpush.bf16.msra.mxu2 %v17367_v21  ;;  %v8666_v36 = vadd.f32 %v20750_v40, %v8653_v31  ;;  %11540 = vmatpush.bf16.msrb.mxu3 %v17063_v60  ;;  %v17046_v40 = vld [vmem:[#allocation20 + $0x5a0] sm:$0xf]  ;;  %v16379_v21 = vor.u32 %v18835_v49, %v16376_v61  ;;  %v16344_v31 = vld [vmem:[#allocation20 + $0x30] sm:$0xf0]  ;;  %v18975_v60 = vld [vmem:[#allocation20 + $0x4c4] sm:$0xf] }
 0x625   : > { %v17047_v10 = vor.u32 %v19005_v12, %v17046_v40  ;;  %v16904_v40 = vld [vmem:[#allocation20 + $0x490] sm:$0xf0]  ;;  %v17590_v49 = vld [vmem:[#allocation20 + $0x9e0] sm:$0xf]  ;;  %v18951_v61 = vld [vmem:[#allocation20 + $0x404] sm:$0xf] }
 0x628   : > { %11585 = vmatpush.bf16.msra.mxu2 %v17351_v63  ;;  %11541 = vmatpush.bf16.msrb.mxu3 %v17047_v10  ;;  %v16347_v63 = vor.u32 %v18827_v55, %v16344_v31  ;;  %v16872_v10 = vld [vmem:[#allocation20 + $0x450] sm:$0xf0]  ;;  %v17467_v31 = vor.u32 %v19107_v59, %v17464_v50  ;;  %v18893_v59 = vld [vmem:[#allocation20 + $0x22c] sm:$0xf0] }
 0x62b   : > { %11586 = vmatmul.bf16.vlgmr.msra.gmra.mxu2 %v20787_v53 }
 0x62c   : > { %11630 = vmatpush.bf16.msrb.mxu2 %v16443_v13  ;;  %11542 = vmatpush.bf16.msrb.mxu3 %v17031_v19  ;;  %v18979_v13 = vld [vmem:[#allocation20 + $0x4e4] sm:$0xf]  ;;  %v18917_v19 = vld [vmem:[#allocation20 + $0x2ec] sm:$0xf0] }
 0x630   : > { %11631 = vmatpush.bf16.msrb.mxu2 %v16427_v56  ;;  %11543 = vmatpush.bf16.msrb.mxu3 %v17015_v25  ;;  %v18913_v25 = vld [vmem:[#allocation20 + $0x2cc] sm:$0xf0] }
 0x631   : > { %v8678_v51 = vpop.f32.mrf.mxu1  ;;  %v20789_v11 = vpop.f32.mrf.mxu0  ;;  %v16679_v24 = vor.u32 %v18913_v25, %v16678_v54  ;;  %v17510_v25 = vld [vmem:[#allocation20 + $0x940] sm:$0xf] }
 0x632   : > { %v8679_v35 = vadd.f32 %v8678_v51, %v8666_v36  ;;  %v18985_v36 = vld [vmem:[#allocation20 + $0x50c] sm:$0xf0]  ;;  %v16955_v51 = vor.u32 %v18979_v13, %v16952_v16  ;;  %v19103_v13 = vld [vmem:[#allocation20 + $0x8c4] sm:$0xf]  ;;  %v17448_v16 = vld [vmem:[#allocation20 + $0x8d0] sm:$0xf0] }
 0x633   : > { %v16967_v17 = vor.u32 %v18985_v36, %v16966_v14 }
 0x634   : > { %vm8840_vm0 = vcmp.gt.f32.partialorder %v8679_v35, 0.0  ;;  %v8844_v41 = vmul.f32 0.2, %v8679_v35  ;;  %11632 = vmatpush.bf16.msrb.mxu2 %v16411_v46  ;;  %11544 = vmatpush.bf16.msrb.mxu3 %v16999_v26  ;;  %v16888_v46 = vld [vmem:[#allocation20 + $0x470] sm:$0xf0]  ;;  %v16843_v26 = vor.u32 %v18951_v61, %v16840_v44 }
 0x636   : > { %v8848_v22 = vsel %vm8840_vm0, %v8679_v35, %v8844_v41  ;;  %v16936_v35 = vld [vmem:[#allocation20 + $0x4d0] sm:$0xf0]  ;;  %v18967_v41 = vld [vmem:[#allocation20 + $0x484] sm:$0xf] }
 0x637   : > { %v8863_v52 = vmul.f32 %v8855_v34, %v8848_v22  ;;  %v16939_v56 = vor.u32 %v18975_v60, %v16936_v35  ;;  %v18971_v34 = vld [vmem:[#allocation20 + $0x4a4] sm:$0xf]  ;;  %v16907_v12 = vor.u32 %v18967_v41, %v16904_v40  ;;  %v16646_v60 = vld [vmem:[#allocation20 + $0x280] sm:$0xf]  ;;  %v18905_v35 = vld [vmem:[#allocation20 + $0x28c] sm:$0xf0] }
 0x638   : > { %11633 = vmatpush.bf16.msrb.mxu2 %v16395_v28  ;;  %v16923_v37 = vor.u32 %v18971_v34, %v16920_v39  ;;  %v18963_v22 = vld [vmem:[#allocation20 + $0x464] sm:$0xf]  ;;  %v16859_v28 = vor.u32 %v18955_v9, %v16856_v58  ;;  %v17432_v39 = vld [vmem:[#allocation20 + $0x8b0] sm:$0xf0]  ;;  %v17542_v40 = vld [vmem:[#allocation20 + $0x980] sm:$0xf] }
 0x639   : > { %v8878_v30 = vadd.f32 %v8870_v2, %v8863_v52  ;;  %v8680_v7 = vpop.f32.mrf.mxu1  ;;  %v8823_v47 = vpop.f32.mrf.mxu0  ;;  %v16875_v52 = vor.u32 %v18959_v23, %v16872_v10  ;;  %v19099_v34 = vld [vmem:[#allocation20 + $0x8a4] sm:$0xf]  ;;  %v17416_v23 = vld [vmem:[#allocation20 + $0x890] sm:$0xf0]  ;;  %v17526_v58 = vld [vmem:[#allocation20 + $0x960] sm:$0xf] }
 0x63a   : > { %v19394_v7 = vld [vmem:[#allocation18] sm:$0xf]  ;;  %v17435_v41 = vor.u32 %v19099_v34, %v17432_v39  ;;  %v17190_v34 = vld [vmem:[#allocation20 + $0x6c0] sm:$0xf]  ;;  %v19041_v39 = vld [vmem:[#allocation20 + $0x6cc] sm:$0xf0] }
 0x63b   : > { %16302 = vmatpush.msk.msra.mxu0 %vm8885_vm13, %v8878_v30  ;;  %v6289_v47 = vperm.slane %v19394_v7, 3 }
 0x63c   : > { %16303 = vmatmul.msk.f32.vlgmr.msra.gmra.mxu0 %vm8881_vm14, %v20697_v29  ;;  %11634 = vmatpush.bf16.msrb.mxu2 %v16379_v21  ;;  %v18989_v29 = vld [vmem:[#allocation20 + $0x52c] sm:$0xf0] }
 0x63d   : > { %16311 = vmatpush.msk.msrb.mxu0 %vm8885_vm13, %v8878_v30  ;;  %v16983_v5 = vor.u32 %v18989_v29, %v16982_v33  ;;  %v19141_v21 = vld [vmem:[#allocation20 + $0x9ec] sm:$0xf0]  ;;  %v8692_v38 = vadd.f32 %v20683_v48, %v6289_v47  ;;  %v17574_v33 = vld [vmem:[#allocation20 + $0x9c0] sm:$0xf] }
 0x63e   : > { %v17591_v55 = vor.u32 %v19141_v21, %v17590_v49  ;;  %v16662_v29 = vld [vmem:[#allocation20 + $0x2a0] sm:$0xf]  ;;  %v19125_v47 = vld [vmem:[#allocation20 + $0x96c] sm:$0xf0]  ;;  %v17400_v49 = vld [vmem:[#allocation20 + $0x870] sm:$0xf0] }
 0x63f   : > { %16320 = vmatpush.msk.msra.mxu0 %vm8885_vm13, %v8878_v30  ;;  %11545 = vmatpush.bf16.msrb.mxu3 %v16983_v5  ;;  %v16695_v30 = vor.u32 %v18917_v19, %v16694_v45  ;;  %v18909_v5 = vld [vmem:[#allocation20 + $0x2ac] sm:$0xf0]  ;;  %v16614_v19 = vld [vmem:[#allocation20 + $0x240] sm:$0xf]  ;;  %v17527_v44 = vor.u32 %v19125_v47, %v17526_v58  ;;  %v18850_v58 = vld [vmem:[#allocation20 + $0xd4] sm:$0xf0] }
 0x640   : > { %11635 = vmatpush.bf16.msrb.mxu2 %v16363_v3  ;;  %v16663_v14 = vor.u32 %v18909_v5, %v16662_v29  ;;  %v16598_v21 = vld [vmem:[#allocation20 + $0x220] sm:$0xf]  ;;  %v19083_v5 = vld [vmem:[#allocation20 + $0x824] sm:$0xf] }
 0x643   : > { %11546 = vmatpush.bf16.msrb.mxu3 %v16967_v17  ;;  %v17575_v17 = vor.u32 %v19137_v20, %v17574_v33  ;;  %v18889_v20 = vld [vmem:[#allocation20 + $0x20c] sm:$0xf0] }
 0x644   : > { %16312 = vmatmul.msk.f32.vlgmr.msrb.gmra.mxu0 %vm8881_vm14, %v20709_v1  ;;  %11636 = vmatpush.bf16.msrb.mxu2 %v16347_v63  ;;  %v8705_v63 = vadd.f32 %v20728_v62, %v8692_v38  ;;  %v19087_v38 = vld [vmem:[#allocation20 + $0x844] sm:$0xf] }
 0x645   : > { %11500 = vmatpush.bf16.msrb.mxu0 %v16695_v30  ;;  %v18897_v30 = vld [vmem:[#allocation20 + $0x24c] sm:$0xf0] }
 0x646   : > { %v8718_v36 = vadd.f32 %v20766_v18, %v8705_v63  ;;  %v16582_v63 = vld [vmem:[#allocation20 + $0x200] sm:$0xf] }
 0x648   : > { %11637 = vmatpush.bf16.msrb.mxu2 %v16331_v15  ;;  %v17451_v15 = vor.u32 %v19103_v13, %v17448_v16  ;;  %v17368_v13 = vld [vmem:[#allocation20 + $0x830] sm:$0xf0]  ;;  %v17206_v16 = vld [vmem:[#allocation20 + $0x6e0] sm:$0xf] }
 0x649   : > { %11501 = vmatpush.bf16.msrb.mxu0 %v16679_v24  ;;  %v19121_v24 = vld [vmem:[#allocation20 + $0x94c] sm:$0xf0] }
 0x64a   : > { %v17511_v33 = vor.u32 %v19121_v24, %v17510_v25  ;;  %v19033_v25 = vld [vmem:[#allocation20 + $0x68c] sm:$0xf0] }
 0x64b   : > { %11638 = vmatmul.bf16.vlgmr.msrb.gmra.mxu2 %v20772_v8 }
 0x64c   : > { %16321 = vmatmul.msk.f32.vlgmr.msra.gmra.mxu0 %vm8881_vm14, %v20724_v43  ;;  %11682 = vmatpush.bf16.msra.mxu2 %v16955_v51  ;;  %v16891_v43 = vor.u32 %v18963_v22, %v16888_v46  ;;  %v17558_v51 = vld [vmem:[#allocation20 + $0x9a0] sm:$0xf]  ;;  %v19129_v46 = vld [vmem:[#allocation20 + $0x98c] sm:$0xf0] }
 0x64d   : > { %11502 = vmatpush.bf16.msrb.mxu0 %v16663_v14  ;;  %v19045_v14 = vld [vmem:[#allocation20 + $0x6ec] sm:$0xf0] }
 0x650   : > { %11683 = vmatpush.bf16.msra.mxu2 %v16939_v56  ;;  %v19133_v56 = vld [vmem:[#allocation20 + $0x9ac] sm:$0xf0] }
 0x651   : > { %v20803_v1 = vpop.f32.mrf.mxu1  ;;  %v17559_v18 = vor.u32 %v19133_v56, %v17558_v51  ;;  %v17371_v51 = vor.u32 %v19083_v5, %v17368_v13  ;;  %v17352_v56 = vld [vmem:[#allocation20 + $0x810] sm:$0xf0]  ;;  %v18871_v5 = vld [vmem:[#allocation20 + $0x184] sm:$0xf]  ;;  %v16398_v13 = vld [vmem:[#allocation20 + $0x88] sm:$0xf] }
 0x652   : > { %v8731_v62 = vadd.f32 %v20803_v1, %v8718_v36  ;;  %v17207_v36 = vor.u32 %v19045_v14, %v17206_v16 }
 0x654   : > { %11684 = vmatpush.bf16.msra.mxu2 %v16923_v37  ;;  %v16647_v37 = vor.u32 %v18905_v35, %v16646_v60  ;;  %v8744_v22 = vadd.f32 %v20715_v6, %v8731_v62  ;;  %v16615_v6 = vor.u32 %v18897_v30, %v16614_v19  ;;  %v19113_v60 = vld [vmem:[#allocation20 + $0x90c] sm:$0xf0]  ;;  %v18883_v35 = vld [vmem:[#allocation20 + $0x1e4] sm:$0xf] }
 0x655   : > { %v19079_v62 = vld [vmem:[#allocation20 + $0x804] sm:$0xf] }
 0x656   : > { %11503 = vmatpush.bf16.msrb.mxu0 %v16647_v37  ;;  %v8757_v7 = vadd.f32 %v20743_v57, %v8744_v22  ;;  %v16599_v57 = vor.u32 %v18893_v59, %v16598_v21  ;;  %v16568_v37 = vld [vmem:[#allocation20 + $0x1f0] sm:$0xf0]  ;;  %v16414_v59 = vld [vmem:[#allocation20 + $0xa8] sm:$0xf] }
 0x657   : > { %v16536_v21 = vld [vmem:[#allocation20 + $0x1b0] sm:$0xf0] }
 0x658   : > { %11685 = vmatpush.bf16.msra.mxu2 %v16907_v12  ;;  %v18901_v12 = vld [vmem:[#allocation20 + $0x26c] sm:$0xf0]  ;;  %v8770_v50 = vadd.f32 %v20775_v42, %v8757_v7  ;;  %v16583_v42 = vor.u32 %v18889_v20, %v16582_v63  ;;  %v19395_v7 = vld [vmem:[#allocation18 + $0x4] sm:$0xf]  ;;  %v16520_v63 = vld [vmem:[#allocation20 + $0x190] sm:$0xf0] }
 0x659   : > { %v8732_v2 = vpop.f32.mrf.mxu1  ;;  %v8856_v47 = vperm.slane %v19395_v7, 3 }
 0x65a   : > { %v16630_v2 = vld [vmem:[#allocation20 + $0x260] sm:$0xf] }
 0x65b   : > { %v16631_v1 = vor.u32 %v18901_v12, %v16630_v2  ;;  %v17355_v12 = vor.u32 %v19079_v62, %v17352_v56  ;;  %v19397_v62 = vld [vmem:[%s21122_s24] sm:$0x1]  ;;  %v16382_v56 = vld [vmem:[#allocation20 + $0x68] sm:$0xf] }
 0x65c   : > { %11686 = vmatpush.bf16.msra.mxu2 %v16891_v43  ;;  %v19095_v43 = vld [vmem:[#allocation20 + $0x884] sm:$0xf] }
 0x65d   : > { %v17419_v9 = vor.u32 %v19095_v43, %v17416_v23  ;;  %11504 = vmatpush.bf16.msrb.mxu0 %v16631_v1  ;;  %v18879_v23 = vld [vmem:[#allocation20 + $0x1c4] sm:$0xf]  ;;  %v17174_v1 = vld [vmem:[#allocation20 + $0x6a0] sm:$0xf] }
 0x65f   : > { %v8935_v3 = vpop.f32.mrf.mxu3 }
 0x660   : > { %11687 = vmatpush.bf16.msra.mxu2 %v16875_v52  ;;  %v20808_v4 = vpack.c.bf16 %v8935_v3, %v8935_v3  ;;  %v17543_v52 = vor.u32 %v19129_v46, %v17542_v40  ;;  %v17191_v40 = vor.u32 %v19041_v39, %v17190_v34  ;;  %v16571_v46 = vor.u32 %v18883_v35, %v16568_v37  ;;  %v18838_v34 = vld [vmem:[#allocation20 + $0x74] sm:$0xf0]  ;;  %v17110_v37 = vld [vmem:[#allocation20 + $0x620] sm:$0xf] }
 0x661   : > { %11505 = vmatpush.bf16.msrb.mxu0 %v16615_v6 }
 0x662   : > { %11495 = vmatmul.bf16.vlgmr.msra.gmra.mxu3 %v20808_v4 }
 0x663   : > { %11591 = vmatpush.bf16.msra.mxu3 %v17591_v55  ;;  %v17494_v55 = vld [vmem:[#allocation20 + $0x920] sm:$0xf] }
 0x664   : > { %11688 = vmatpush.bf16.msra.mxu2 %v16859_v28  ;;  %v19091_v28 = vld [vmem:[#allocation20 + $0x864] sm:$0xf] }
 0x665   : > { %v17403_v54 = vor.u32 %v19091_v28, %v17400_v49  ;;  %11506 = vmatpush.bf16.msrb.mxu0 %v16599_v57 }
 0x667   : > { %11592 = vmatpush.bf16.msra.mxu3 %v17575_v17  ;;  %v9020_v45 = vpop.f32.mrf.mxu3 }
 0x668   : > { %11689 = vmatpush.bf16.msra.mxu2 %v16843_v26  ;;  %v20816_v61 = vpack.c.bf16 %v9020_v45, %v9020_v45  ;;  %v17384_v26 = vld [vmem:[#allocation20 + $0x850] sm:$0xf0] }
 0x669   : > { %v17387_v29 = vor.u32 %v19087_v38, %v17384_v26  ;;  %11507 = vmatpush.bf16.msrb.mxu0 %v16583_v42  ;;  %v19396_v38 = vld [vmem:[#allocation18 + $0x8] sm:$0xf]  ;;  %v18842_v42 = vld [vmem:[#allocation20 + $0x94] sm:$0xf0] }
 0x66a   : > { %v8871_v26 = vperm.slane %v19396_v38, 3  ;;  %v19007_v38 = vld [vmem:[#allocation20 + $0x5c4] sm:$0xf] }
 0x66b   : > { %11690 = vmatmul.bf16.vlgmr.msra.gmra.mxu2 %v20780_v32  ;;  %11593 = vmatpush.bf16.msra.mxu3 %v17559_v18  ;;  %v16446_v18 = vld [vmem:[#allocation20 + $0xe8] sm:$0xf] }
 0x66c   : > { %11734 = vmatpush.bf16.msrb.mxu2 %v17467_v31  ;;  %v19117_v31 = vld [vmem:[#allocation20 + $0x92c] sm:$0xf0] }
 0x66d   : > { %11552 = vmatpush.bf16.msra.mxu0 %v17207_v36  ;;  %v16523_v36 = vor.u32 %v18871_v5, %v16520_v63  ;;  %v17048_v5 = vld [vmem:[#allocation20 + $0x5b0] sm:$0xf0]  ;;  %v16926_v63 = vld [vmem:[#allocation20 + $0x4a8] sm:$0xf] }
 0x66f   : > { %11594 = vmatpush.bf16.msra.mxu3 %v17543_v52  ;;  %v9105_v22 = vpop.f32.mrf.mxu3  ;;  %v16552_v52 = vld [vmem:[#allocation20 + $0x1d0] sm:$0xf0] }
 0x670   : > { %11735 = vmatpush.bf16.msrb.mxu2 %v17451_v15  ;;  %v17495_v15 = vor.u32 %v19117_v31, %v17494_v55  ;;  %v20823_v30 = vpack.c.bf16 %v9105_v22, %v9105_v22  ;;  %v16555_v49 = vor.u32 %v18879_v23, %v16552_v52  ;;  %v17142_v31 = vld [vmem:[#allocation20 + $0x660] sm:$0xf]  ;;  %v18834_v22 = vld [vmem:[#allocation20 + $0x54] sm:$0xf0]  ;;  %v19017_v23 = vld [vmem:[#allocation20 + $0x60c] sm:$0xf0] }
 0x671   : > { %v8782_v48 = vpop.f32.mrf.mxu1  ;;  %11553 = vmatpush.bf16.msra.mxu0 %v17191_v40  ;;  %v18863_v40 = vld [vmem:[#allocation20 + $0x144] sm:$0xf]  ;;  %v16472_v52 = vld [vmem:[#allocation20 + $0x130] sm:$0xf0] }
 0x672   : > { %v8783_v3 = vadd.f32 %v8782_v48, %v8770_v50  ;;  %11547 = vmatmul.bf16.vlgmr.msrb.gmra.mxu3 %v20816_v61  ;;  %v17478_v48 = vld [vmem:[#allocation20 + $0x900] sm:$0xf]  ;;  %v18846_v50 = vld [vmem:[#allocation20 + $0xb4] sm:$0xf0] }
 0x673   : > { %11595 = vmatpush.bf16.msra.mxu3 %v17527_v44  ;;  %v18875_v44 = vld [vmem:[#allocation20 + $0x1a4] sm:$0xf]  ;;  %v16415_v55 = vor.u32 %v18846_v50, %v16414_v59 }
 0x674   : > { %11736 = vmatpush.bf16.msrb.mxu2 %v17435_v41  ;;  %v8796_v17 = vadd.f32 %v20735_v0, %v8783_v3  ;;  %v18854_v41 = vld [vmem:[#allocation20 + $0xf4] sm:$0xf0]  ;;  %v17479_v0 = vor.u32 %v19113_v60, %v17478_v48  ;;  %v16539_v3 = vor.u32 %v18875_v44, %v16536_v21  ;;  %v19025_v48 = vld [vmem:[#allocation20 + $0x64c] sm:$0xf0]  ;;  %v16504_v60 = vld [vmem:[#allocation20 + $0x170] sm:$0xf0] }
 0x675   : > { %v16447_v43 = vor.u32 %v18854_v41, %v16446_v18  ;;  %v19021_v18 = vld [vmem:[#allocation20 + $0x62c] sm:$0xf0]  ;;  %v16383_v41 = vor.u32 %v18838_v34, %v16382_v56  ;;  %v16334_v44 = vld [vmem:[#allocation20 + $0x8] sm:$0xf]  ;;  %v18982_v21 = vld [vmem:[#allocation20 + $0x4f4] sm:$0xf0] }
 0x676   : > { %v8809_v2 = vadd.f32 %v20758_v27, %v8796_v17  ;;  %v17126_v17 = vld [vmem:[#allocation20 + $0x640] sm:$0xf] }
 0x677   : > { %11596 = vmatpush.bf16.msra.mxu3 %v17511_v33  ;;  %v19029_v33 = vld [vmem:[#allocation20 + $0x66c] sm:$0xf0]  ;;  %v17127_v35 = vor.u32 %v19025_v48, %v17126_v17  ;;  %v18970_v17 = vld [vmem:[#allocation20 + $0x494] sm:$0xf0] }
 0x678   : > { %11737 = vmatpush.bf16.msrb.mxu2 %v17419_v9  ;;  %v16430_v9 = vld [vmem:[#allocation20 + $0xc8] sm:$0xf]  ;;  %v8822_v19 = vadd.f32 %v20789_v11, %v8809_v2  ;;  %v17143_v20 = vor.u32 %v19029_v33, %v17142_v31  ;;  %v16488_v2 = vld [vmem:[#allocation20 + $0x150] sm:$0xf0] }
 0x679   : > { %v8784_v10 = vpop.f32.mrf.mxu1  ;;  %v16431_v6 = vor.u32 %v18850_v58, %v16430_v9  ;;  %v16350_v58 = vld [vmem:[#allocation20 + $0x28] sm:$0xf] }
 0x67a   : > { %v19037_v10 = vld [vmem:[#allocation20 + $0x6ac] sm:$0xf0] }
 0x67b   : > { %11597 = vmatpush.bf16.msra.mxu3 %v17495_v15  ;;  %v17175_v45 = vor.u32 %v19037_v10, %v17174_v1  ;;  %v16399_v15 = vor.u32 %v18842_v42, %v16398_v13  ;;  %v18859_v10 = vld [vmem:[#allocation20 + $0x124] sm:$0xf] }
 0x67c   : > { %11738 = vmatpush.bf16.msrb.mxu2 %v17403_v54  ;;  %v17158_v54 = vld [vmem:[#allocation20 + $0x680] sm:$0xf] }
 0x67d   : > { %11554 = vmatpush.bf16.msra.mxu0 %v17175_v45  ;;  %v17159_v11 = vor.u32 %v19033_v25, %v17158_v54  ;;  %v18830_v45 = vld [vmem:[#allocation20 + $0x34] sm:$0xf0]  ;;  %v16958_v25 = vld [vmem:[#allocation20 + $0x4e8] sm:$0xf] }
 0x67e   : > { %v16351_v7 = vor.u32 %v18830_v45, %v16350_v58  ;;  %v18826_v54 = vld [vmem:[#allocation20 + $0x14] sm:$0xf0]  ;;  %v17702_v45 = vld [vmem:[#allocation20 + $0xac0] sm:$0xf] }
 0x67f   : > { %11598 = vmatpush.bf16.msra.mxu3 %v17479_v0  ;;  %v17111_v0 = vor.u32 %v19021_v18, %v17110_v37  ;;  %v17000_v37 = vld [vmem:[#allocation20 + $0x550] sm:$0xf0]  ;;  %v16878_v18 = vld [vmem:[#allocation20 + $0x448] sm:$0xf] }
 0x680   : > { %11739 = vmatpush.bf16.msrb.mxu2 %v17387_v29 }
 0x681   : > { %11555 = vmatpush.bf16.msra.mxu0 %v17159_v11  ;;  %v16335_v11 = vor.u32 %v18826_v54, %v16334_v44  ;;  %v16806_v44 = vld [vmem:[#allocation20 + $0x3c0] sm:$0xf]  ;;  %v18945_v54 = vld [vmem:[#allocation20 + $0x3cc] sm:$0xf0] }
 0x682   : > { %11599 = vmatmul.bf16.vlgmr.msra.gmra.mxu3 %v20823_v30 }
 0x683   : > { %11643 = vmatpush.bf16.msrb.mxu3 %v16571_v46  ;;  %v16491_v46 = vor.u32 %v18863_v40, %v16488_v2  ;;  %v17718_v2 = vld [vmem:[#allocation20 + $0xae0] sm:$0xf] }
 0x684   : > { %11740 = vmatpush.bf16.msrb.mxu2 %v17371_v51  ;;  %v18867_v51 = vld [vmem:[#allocation20 + $0x164] sm:$0xf] }
 0x685   : > { %11556 = vmatpush.bf16.msra.mxu0 %v17143_v20  ;;  %v16507_v39 = vor.u32 %v18867_v51, %v16504_v60  ;;  %v18974_v20 = vld [vmem:[#allocation20 + $0x4b4] sm:$0xf0]  ;;  %v18995_v51 = vld [vmem:[#allocation20 + $0x564] sm:$0xf]  ;;  %v17016_v60 = vld [vmem:[#allocation20 + $0x570] sm:$0xf0] }
 0x686   : > { %v16927_v42 = vor.u32 %v18974_v20, %v16926_v63  ;;  %v17019_v56 = vor.u32 %v18995_v51, %v17016_v60  ;;  %v19135_v63 = vld [vmem:[#allocation20 + $0x9c4] sm:$0xf]  ;;  %v17576_v20 = vld [vmem:[#allocation20 + $0x9d0] sm:$0xf0]  ;;  %v18937_v51 = vld [vmem:[#allocation20 + $0x38c] sm:$0xf0] }
 0x687   : > { %11644 = vmatpush.bf16.msrb.mxu3 %v16555_v49  ;;  %v19011_v49 = vld [vmem:[#allocation20 + $0x5e4] sm:$0xf] }
 0x688   : > { %11741 = vmatpush.bf16.msrb.mxu2 %v17355_v12  ;;  %v16366_v12 = vld [vmem:[#allocation20 + $0x48] sm:$0xf] }
 0x689   : > { %11557 = vmatpush.bf16.msra.mxu0 %v17127_v35  ;;  %v16367_v1 = vor.u32 %v18834_v22, %v16366_v12  ;;  %v16894_v35 = vld [vmem:[#allocation20 + $0x468] sm:$0xf]  ;;  %v18987_v12 = vld [vmem:[#allocation20 + $0x524] sm:$0xf] }
 0x68b   : > { %11742 = vmatmul.bf16.vlgmr.msrb.gmra.mxu2 %v20787_v53  ;;  %11645 = vmatpush.bf16.msrb.mxu3 %v16539_v3  ;;  %v16942_v3 = vld [vmem:[#allocation20 + $0x4c8] sm:$0xf] }
 0x68c   : > { %11786 = vmatpush.bf16.msra.mxu2 %v16447_v43  ;;  %v17094_v43 = vld [vmem:[#allocation20 + $0x600] sm:$0xf] }
 0x68d   : > { %11558 = vmatpush.bf16.msra.mxu0 %v17111_v0  ;;  %v17095_v9 = vor.u32 %v19017_v23, %v17094_v43  ;;  %v19173_v0 = vld [vmem:[#allocation20 + $0xaec] sm:$0xf0]  ;;  %v16822_v43 = vld [vmem:[#allocation20 + $0x3e0] sm:$0xf] }
 0x68e   : > { %v18949_v23 = vld [vmem:[#allocation20 + $0x3ec] sm:$0xf0]  ;;  %v17719_v58 = vor.u32 %v19173_v0, %v17718_v2  ;;  %v16758_v0 = vld [vmem:[#allocation20 + $0x360] sm:$0xf] }
 0x68f   : > { %11646 = vmatpush.bf16.msrb.mxu3 %v16523_v36  ;;  %v16910_v36 = vld [vmem:[#allocation20 + $0x488] sm:$0xf] }
 0x690   : > { %11787 = vmatpush.bf16.msra.mxu2 %v16431_v6  ;;  %v17080_v6 = vld [vmem:[#allocation20 + $0x5f0] sm:$0xf0] }
 0x691   : > { %v8834_v27 = vpop.f32.mrf.mxu1  ;;  %11559 = vmatpush.bf16.msra.mxu0 %v17095_v9  ;;  %v17083_v50 = vor.u32 %v19011_v49, %v17080_v6  ;;  %v19139_v6 = vld [vmem:[#allocation20 + $0x9e4] sm:$0xf] }
 0x692   : > { %v8835_v28 = vadd.f32 %v8834_v27, %v8822_v19  ;;  %v19398_v19 = vld [vmem:[%s21122_s24 + $0x1] sm:$0x1]  ;;  %v16475_v27 = vor.u32 %v18859_v10, %v16472_v52  ;;  %v18958_v10 = vld [vmem:[#allocation20 + $0x434] sm:$0xf0]  ;;  %v16823_v52 = vor.u32 %v18949_v23, %v16822_v43  ;;  %v17544_v43 = vld [vmem:[#allocation20 + $0x990] sm:$0xf0] }
 0x693   : > { %11647 = vmatpush.bf16.msrb.mxu3 %v16507_v39  ;;  %v18991_v39 = vld [vmem:[#allocation20 + $0x544] sm:$0xf] }
 0x694   : > { %vm8841_vm1 = vcmp.gt.f32.partialorder %v8835_v28, 0.0  ;;  %v8845_v24 = vmul.f32 0.2, %v8835_v28  ;;  %11788 = vmatpush.bf16.msra.mxu2 %v16415_v55  ;;  %v18978_v55 = vld [vmem:[#allocation20 + $0x4d4] sm:$0xf0]  ;;  %v17003_v40 = vor.u32 %v18991_v39, %v17000_v37 }
 0x695   : > { %v16943_v33 = vor.u32 %v18978_v55, %v16942_v3  ;;  %v19165_v3 = vld [vmem:[#allocation20 + $0xaac] sm:$0xf0]  ;;  %v17438_v39 = vld [vmem:[#allocation20 + $0x8a8] sm:$0xf]  ;;  %v19102_v37 = vld [vmem:[#allocation20 + $0x8b4] sm:$0xf0] }
 0x696   : > { %v8849_v57 = vsel %vm8841_vm1, %v8835_v28, %v8845_v24  ;;  %v16456_v28 = vld [vmem:[#allocation20 + $0x110] sm:$0xf0]  ;;  %v16959_v24 = vor.u32 %v18982_v21, %v16958_v25  ;;  %v16846_v21 = vld [vmem:[#allocation20 + $0x408] sm:$0xf] }
 0x697   : > { %v8864_v29 = vmul.f32 %v8856_v47, %v8849_v57  ;;  %11648 = vmatpush.bf16.msrb.mxu3 %v16491_v46  ;;  %v18855_v47 = vld [vmem:[#allocation20 + $0x104] sm:$0xf]  ;;  %v19399_v57 = vld [vmem:[%s21122_s24 + $0x2] sm:$0x1]  ;;  %v16984_v46 = vld [vmem:[#allocation20 + $0x530] sm:$0xf0] }
 0x698   : > { %11789 = vmatpush.bf16.msra.mxu2 %v16399_v15  ;;  %v16459_v59 = vor.u32 %v18855_v47, %v16456_v28  ;;  %v16911_v15 = vor.u32 %v18970_v17, %v16910_v36  ;;  %v18983_v47 = vld [vmem:[#allocation20 + $0x504] sm:$0xf]  ;;  %v16968_v28 = vld [vmem:[#allocation20 + $0x510] sm:$0xf0]  ;;  %v17670_v36 = vld [vmem:[#allocation20 + $0xa80] sm:$0xf] }
 0x699   : > { %v8879_v16 = vadd.f32 %v8871_v26, %v8864_v29  ;;  %v8836_v14 = vpop.f32.mrf.mxu1  ;;  %v17064_v26 = vld [vmem:[#allocation20 + $0x5d0] sm:$0xf0]  ;;  %v19003_v29 = vld [vmem:[#allocation20 + $0x5a4] sm:$0xf]  ;;  %v19161_v17 = vld [vmem:[#allocation20 + $0xa8c] sm:$0xf0] }
 0x69a   : > { %v17067_v31 = vor.u32 %v19007_v38, %v17064_v26  ;;  %v17051_v13 = vor.u32 %v19003_v29, %v17048_v5  ;;  %v17032_v14 = vld [vmem:[#allocation20 + $0x590] sm:$0xf0]  ;;  %v19110_v38 = vld [vmem:[#allocation20 + $0x8f4] sm:$0xf0]  ;;  %v16971_v26 = vor.u32 %v18983_v47, %v16968_v28  ;;  %v18941_v29 = vld [vmem:[#allocation20 + $0x3ac] sm:$0xf0] }
 0x69b   : > { %16304 = vmatpush.msk.msra.mxu1 %vm8885_vm13, %v8879_v16  ;;  %11649 = vmatpush.bf16.msrb.mxu3 %v16475_v27  ;;  %v16987_v27 = vor.u32 %v18987_v12, %v16984_v46  ;;  %v17592_v25 = vld [vmem:[#allocation20 + $0x9f0] sm:$0xf0]  ;;  %v18933_v12 = vld [vmem:[#allocation20 + $0x36c] sm:$0xf0]  ;;  %v19127_v46 = vld [vmem:[#allocation20 + $0x984] sm:$0xf] }
 0x69c   : > { %16305 = vmatmul.msk.f32.vlgmr.msra.gmra.mxu1 %vm8881_vm14, %v19397_v62  ;;  %11790 = vmatpush.bf16.msra.mxu2 %v16383_v41  ;;  %v18966_v62 = vld [vmem:[#allocation20 + $0x474] sm:$0xf0]  ;;  %v17595_v55 = vor.u32 %v19139_v6, %v17592_v25  ;;  %v18929_v47 = vld [vmem:[#allocation20 + $0x34c] sm:$0xf0]  ;;  %v17528_v6 = vld [vmem:[#allocation20 + $0x970] sm:$0xf0] }
 0x69d   : > { %16313 = vmatpush.msk.msrb.mxu1 %vm8885_vm13, %v8879_v16  ;;  %v16895_v34 = vor.u32 %v18966_v62, %v16894_v35  ;;  %v18962_v41 = vld [vmem:[#allocation20 + $0x454] sm:$0xf0]  ;;  %v19131_v35 = vld [vmem:[#allocation20 + $0x9a4] sm:$0xf]  ;;  %v17560_v62 = vld [vmem:[#allocation20 + $0x9b0] sm:$0xf0] }
 0x69e   : > { %v16879_v22 = vor.u32 %v18962_v41, %v16878_v18  ;;  %v17654_v41 = vld [vmem:[#allocation20 + $0xa60] sm:$0xf]  ;;  %v17563_v2 = vor.u32 %v19131_v35, %v17560_v62  ;;  %v17406_v25 = vld [vmem:[#allocation20 + $0x868] sm:$0xf] }
 0x69f   : > { %16322 = vmatpush.msk.msra.mxu1 %vm8885_vm13, %v8879_v16  ;;  %11650 = vmatpush.bf16.msrb.mxu3 %v16459_v59  ;;  %v18999_v16 = vld [vmem:[#allocation20 + $0x584] sm:$0xf]  ;;  %v18954_v59 = vld [vmem:[#allocation20 + $0x414] sm:$0xf0]  ;;  %v17374_v62 = vld [vmem:[#allocation20 + $0x828] sm:$0xf] }
 0x6a0   : > { %11791 = vmatpush.bf16.msra.mxu2 %v16367_v1  ;;  %v17035_v48 = vor.u32 %v18999_v16, %v17032_v14  ;;  %v16862_v1 = vld [vmem:[#allocation20 + $0x428] sm:$0xf]  ;;  %v19106_v14 = vld [vmem:[#allocation20 + $0x8d4] sm:$0xf0] }
 0x6a1   : > { %v16863_v49 = vor.u32 %v18958_v10, %v16862_v1  ;;  %v17454_v16 = vld [vmem:[#allocation20 + $0x8c8] sm:$0xf]  ;;  %v16759_v1 = vor.u32 %v18933_v12, %v16758_v0  ;;  %v19111_v0 = vld [vmem:[#allocation20 + $0x904] sm:$0xf]  ;;  %v17480_v12 = vld [vmem:[#allocation20 + $0x910] sm:$0xf0] }
 0x6a2   : > { %11651 = vmatmul.bf16.vlgmr.msrb.gmra.mxu3 %v20808_v4  ;;  %v17455_v60 = vor.u32 %v19106_v14, %v17454_v16  ;;  %v16696_v16 = vld [vmem:[#allocation20 + $0x2f0] sm:$0xf0]  ;;  %v16710_v14 = vld [vmem:[#allocation20 + $0x300] sm:$0xf] }
 0x6a3   : > { %11695 = vmatpush.bf16.msra.mxu3 %v17083_v50  ;;  %v16807_v50 = vor.u32 %v18945_v54, %v16806_v44 }
 0x6a4   : > { %16314 = vmatmul.msk.f32.vlgmr.msrb.gmra.mxu1 %vm8881_vm14, %v19398_v19  ;;  %11792 = vmatpush.bf16.msra.mxu2 %v16351_v7  ;;  %v19169_v7 = vld [vmem:[#allocation20 + $0xacc] sm:$0xf0] }
 0x6a5   : > { %11513 = vmatpush.bf16.msrb.mxu1 %v16823_v52  ;;  %v17422_v52 = vld [vmem:[#allocation20 + $0x888] sm:$0xf] }
 0x6a7   : > { %11696 = vmatpush.bf16.msra.mxu3 %v17067_v31  ;;  %v16847_v31 = vor.u32 %v18954_v59, %v16846_v21  ;;  %v19094_v21 = vld [vmem:[#allocation20 + $0x874] sm:$0xf0]  ;;  %v17622_v59 = vld [vmem:[#allocation20 + $0xa20] sm:$0xf] }
 0x6a8   : > { %11793 = vmatpush.bf16.msra.mxu2 %v16335_v11  ;;  %v17703_v11 = vor.u32 %v19169_v7, %v17702_v45  ;;  %v19153_v45 = vld [vmem:[#allocation20 + $0xa4c] sm:$0xf0]  ;;  %v16742_v7 = vld [vmem:[#allocation20 + $0x340] sm:$0xf] }
 0x6a9   : > { %11514 = vmatpush.bf16.msrb.mxu1 %v16807_v50  ;;  %v16743_v44 = vor.u32 %v18929_v47, %v16742_v7  ;;  %v19149_v50 = vld [vmem:[#allocation20 + $0xa2c] sm:$0xf0]  ;;  %v18852_v7 = vld [vmem:[#allocation20 + $0xec] sm:$0xf]  ;;  %v16448_v47 = vld [vmem:[#allocation20 + $0xf8] sm:$0xf0] }
 0x6ab   : > { %11794 = vmatmul.bf16.vlgmr.msra.gmra.mxu2 %v20772_v8  ;;  %11697 = vmatpush.bf16.msra.mxu3 %v17051_v13 }
 0x6ac   : > { %16323 = vmatmul.msk.f32.vlgmr.msra.gmra.mxu1 %vm8881_vm14, %v19399_v57  ;;  %11838 = vmatpush.bf16.msrb.mxu2 %v16959_v24  ;;  %v17470_v24 = vld [vmem:[#allocation20 + $0x8e8] sm:$0xf]  ;;  %v17686_v57 = vld [vmem:[#allocation20 + $0xaa0] sm:$0xf] }
 0x6ad   : > { %v17471_v5 = vor.u32 %v19110_v38, %v17470_v24  ;;  %v16726_v24 = vld [vmem:[#allocation20 + $0x320] sm:$0xf]  ;;  %v18925_v38 = vld [vmem:[#allocation20 + $0x32c] sm:$0xf0] }
 0x6af   : > { %11698 = vmatpush.bf16.msra.mxu3 %v17035_v48  ;;  %v17579_v48 = vor.u32 %v19135_v63, %v17576_v20  ;;  %v19145_v63 = vld [vmem:[#allocation20 + $0xa0c] sm:$0xf0]  ;;  %v18915_v20 = vld [vmem:[#allocation20 + $0x2e4] sm:$0xf] }
 0x6b0   : > { %11839 = vmatpush.bf16.msrb.mxu2 %v16943_v33  ;;  %v16790_v33 = vld [vmem:[#allocation20 + $0x3a0] sm:$0xf] }
 0x6b1   : > { %v16791_v13 = vor.u32 %v18941_v29, %v16790_v33  ;;  %v17390_v33 = vld [vmem:[#allocation20 + $0x848] sm:$0xf]  ;;  %v19090_v29 = vld [vmem:[#allocation20 + $0x854] sm:$0xf0] }
 0x6b3   : > { %11699 = vmatpush.bf16.msra.mxu3 %v17019_v56  ;;  %11515 = vmatpush.bf16.msrb.mxu1 %v16791_v13  ;;  %v20852_v13 = vpop.f32.mrf.mxu2 }
 0x6b4   : > { %11840 = vmatpush.bf16.msrb.mxu2 %v16927_v42  ;;  %v17687_v42 = vor.u32 %v19165_v3, %v17686_v57  ;;  %v19119_v57 = vld [vmem:[#allocation20 + $0x944] sm:$0xf]  ;;  %v17512_v3 = vld [vmem:[#allocation20 + $0x950] sm:$0xf0] }
 0x6b7   : > { %11700 = vmatpush.bf16.msra.mxu3 %v17003_v40  ;;  %v19157_v40 = vld [vmem:[#allocation20 + $0xa6c] sm:$0xf0] }
 0x6b8   : > { %11841 = vmatpush.bf16.msrb.mxu2 %v16911_v15  ;;  %v16774_v15 = vld [vmem:[#allocation20 + $0x380] sm:$0xf]  ;;  %v17655_v10 = vor.u32 %v19157_v40, %v17654_v41 }
 0x6b9   : > { %v8955_v9 = vpop.f32.mrf.mxu0  ;;  %v16775_v56 = vor.u32 %v18937_v51, %v16774_v15  ;;  %v17496_v15 = vld [vmem:[#allocation20 + $0x930] sm:$0xf0] }
 0x6ba   : > { %v20844_v19 = vpack.c.bf16 %v8955_v9, %v8955_v9  ;;  %v19098_v9 = vld [vmem:[#allocation20 + $0x894] sm:$0xf0] }
 0x6bb   : > { %11701 = vmatpush.bf16.msra.mxu3 %v16987_v27  ;;  %11516 = vmatpush.bf16.msrb.mxu1 %v16775_v56  ;;  %v17547_v27 = vor.u32 %v19127_v46, %v17544_v43  ;;  %v17423_v28 = vor.u32 %v19098_v9, %v17422_v52  ;;  %v19086_v56 = vld [vmem:[#allocation20 + $0x834] sm:$0xf0]  ;;  %v16574_v46 = vld [vmem:[#allocation20 + $0x1e8] sm:$0xf] }
 0x6bc   : > { %11842 = vmatpush.bf16.msrb.mxu2 %v16895_v34  ;;  %11508 = vmatmul.bf16.vlgmr.msrb.gmra.mxu0 %v20844_v19  ;;  %v17671_v34 = vor.u32 %v19161_v17, %v17670_v36  ;;  %v18921_v36 = vld [vmem:[#allocation20 + $0x30c] sm:$0xf0]  ;;  %v17391_v17 = vor.u32 %v19090_v29, %v17390_v33  ;;  %v18886_v52 = vld [vmem:[#allocation20 + $0x1f4] sm:$0xf0]  ;;  %v17358_v9 = vld [vmem:[#allocation20 + $0x808] sm:$0xf] }
 0x6bd   : > { %11604 = vmatpush.bf16.msrb.mxu0 %v17719_v58  ;;  %v17638_v58 = vld [vmem:[#allocation20 + $0xa40] sm:$0xf]  ;;  %v16711_v51 = vor.u32 %v18921_v36, %v16710_v14  ;;  %v18844_v36 = vld [vmem:[#allocation20 + $0xac] sm:$0xf] }
 0x6be   : > { %v17639_v54 = vor.u32 %v19153_v45, %v17638_v58  ;;  %v19082_v58 = vld [vmem:[#allocation20 + $0x814] sm:$0xf0]  ;;  %v17286_v29 = vld [vmem:[#allocation20 + $0x780] sm:$0xf] }
 0x6bf   : > { %11702 = vmatpush.bf16.msra.mxu3 %v16971_v26  ;;  %11517 = vmatpush.bf16.msrb.mxu1 %v16759_v1  ;;  %v17407_v26 = vor.u32 %v19094_v21, %v17406_v25  ;;  %v17318_v1 = vld [vmem:[#allocation20 + $0x7c0] sm:$0xf]  ;;  %v17359_v25 = vor.u32 %v19082_v58, %v17358_v9 }
 0x6c0   : > { %11843 = vmatpush.bf16.msrb.mxu2 %v16879_v22  ;;  %v17439_v22 = vor.u32 %v19102_v37, %v17438_v39  ;;  %v19077_v39 = vld [vmem:[#allocation20 + $0x7ec] sm:$0xf0]  ;;  %v16699_v37 = vor.u32 %v18915_v20, %v16696_v16  ;;  %v17302_v21 = vld [vmem:[#allocation20 + $0x7a0] sm:$0xf]  ;;  %v16542_v20 = vld [vmem:[#allocation20 + $0x1a8] sm:$0xf] }
 0x6c1   : > { %11605 = vmatpush.bf16.msrb.mxu0 %v17703_v11  ;;  %v9040_v18 = vpop.f32.mrf.mxu0 }
 0x6c2   : > { %11703 = vmatmul.bf16.vlgmr.msra.gmra.mxu3 %v20816_v61  ;;  %v20849_v23 = vpack.c.bf16 %v9040_v18, %v9040_v18  ;;  %v18911_v18 = vld [vmem:[#allocation20 + $0x2c4] sm:$0xf] }
 0x6c3   : > { %11747 = vmatpush.bf16.msrb.mxu3 %v17595_v55  ;;  %11518 = vmatpush.bf16.msrb.mxu1 %v16743_v44  ;;  %v16727_v55 = vor.u32 %v18925_v38, %v16726_v24  ;;  %v16664_v44 = vld [vmem:[#allocation20 + $0x2b0] sm:$0xf0]  ;;  %v18882_v24 = vld [vmem:[#allocation20 + $0x1d4] sm:$0xf0] }
 0x6c4   : > { %11844 = vmatpush.bf16.msrb.mxu2 %v16863_v49  ;;  %v19123_v49 = vld [vmem:[#allocation20 + $0x964] sm:$0xf] }
 0x6c5   : > { %11606 = vmatpush.bf16.msrb.mxu0 %v17687_v42  ;;  %v17531_v11 = vor.u32 %v19123_v49, %v17528_v6  ;;  %v17515_v42 = vor.u32 %v19119_v57, %v17512_v3  ;;  %v17483_v49 = vor.u32 %v19111_v0, %v17480_v12  ;;  %v18907_v6 = vld [vmem:[#allocation20 + $0x2a4] sm:$0xf]  ;;  %v18848_v57 = vld [vmem:[#allocation20 + $0xcc] sm:$0xf]  ;;  %v16432_v3 = vld [vmem:[#allocation20 + $0xd8] sm:$0xf0] }
 0x6c6   : > { %v16616_v0 = vld [vmem:[#allocation20 + $0x250] sm:$0xf0] }
 0x6c7   : > { %11748 = vmatpush.bf16.msrb.mxu3 %v17579_v48  ;;  %11519 = vmatpush.bf16.msrb.mxu1 %v16727_v55  ;;  %v19115_v48 = vld [vmem:[#allocation20 + $0x924] sm:$0xf] }
 0x6c8   : > { %11845 = vmatpush.bf16.msrb.mxu2 %v16847_v31  ;;  %v17623_v31 = vor.u32 %v19149_v50, %v17622_v59  ;;  %v17499_v40 = vor.u32 %v19115_v48, %v17496_v15  ;;  %v19069_v59 = vld [vmem:[#allocation20 + $0x7ac] sm:$0xf0]  ;;  %v16451_v50 = vor.u32 %v18852_v7, %v16448_v47  ;;  %v18903_v55 = vld [vmem:[#allocation20 + $0x284] sm:$0xf] }
 0x6c9   : > { %11607 = vmatpush.bf16.msrb.mxu0 %v17671_v34  ;;  %v9125_v34 = vpop.f32.mrf.mxu0  ;;  %v17303_v38 = vor.u32 %v19069_v59, %v17302_v21  ;;  %v18899_v15 = vld [vmem:[#allocation20 + $0x264] sm:$0xf]  ;;  %v18866_v21 = vld [vmem:[#allocation20 + $0x154] sm:$0xf0] }
 0x6ca   : > { %v20854_v43 = vpack.c.bf16 %v9125_v34, %v9125_v34  ;;  %v16526_v34 = vld [vmem:[#allocation20 + $0x188] sm:$0xf]  ;;  %v18891_v47 = vld [vmem:[#allocation20 + $0x224] sm:$0xf] }
 0x6cb   : > { %11846 = vmatmul.bf16.vlgmr.msrb.gmra.mxu2 %v20780_v32  ;;  %11749 = vmatpush.bf16.msrb.mxu3 %v17563_v2  ;;  %v16680_v2 = vld [vmem:[#allocation20 + $0x2d0] sm:$0xf0] }
 0x6cc   : > { %11890 = vmatpush.bf16.msra.mxu2 %v17471_v5  ;;  %11560 = vmatmul.bf16.vlgmr.msra.gmra.mxu0 %v20849_v23  ;;  %v17606_v5 = vld [vmem:[#allocation20 + $0xa00] sm:$0xf] }
 0x6cd   : > { %11608 = vmatpush.bf16.msrb.mxu0 %v17655_v10  ;;  %v17607_v35 = vor.u32 %v19145_v63, %v17606_v5  ;;  %11520 = vmatpush.bf16.msrb.mxu1 %v16711_v51  ;;  %v19073_v10 = vld [vmem:[#allocation20 + $0x7cc] sm:$0xf0]  ;;  %v16435_v63 = vor.u32 %v18848_v57, %v16432_v3  ;;  %v16632_v51 = vld [vmem:[#allocation20 + $0x270] sm:$0xf0]  ;;  %v19043_v57 = vld [vmem:[#allocation20 + $0x6e4] sm:$0xf] }
 0x6ce   : > { %v17319_v45 = vor.u32 %v19073_v10, %v17318_v1  ;;  %v19065_v5 = vld [vmem:[#allocation20 + $0x78c] sm:$0xf0]  ;;  %v16510_v10 = vld [vmem:[#allocation20 + $0x168] sm:$0xf] }
 0x6cf   : > { %11750 = vmatpush.bf16.msrb.mxu3 %v17547_v27  ;;  %v16683_v27 = vor.u32 %v18911_v18, %v16680_v2  ;;  %v17287_v16 = vor.u32 %v19065_v5, %v17286_v29  ;;  %v16635_v18 = vor.u32 %v18899_v15, %v16632_v51  ;;  %v18895_v2 = vld [vmem:[#allocation20 + $0x244] sm:$0xf]  ;;  %v16478_v5 = vld [vmem:[#allocation20 + $0x128] sm:$0xf] }
 0x6d0   : > { %11891 = vmatpush.bf16.msra.mxu2 %v17455_v60  ;;  %v17334_v60 = vld [vmem:[#allocation20 + $0x7e0] sm:$0xf]  ;;  %v16619_v58 = vor.u32 %v18895_v2, %v16616_v0  ;;  %v19039_v51 = vld [vmem:[#allocation20 + $0x6c4] sm:$0xf]  ;;  %v16960_v2 = vld [vmem:[#allocation20 + $0x4f8] sm:$0xf0] }
 0x6d1   : > { %11609 = vmatpush.bf16.msrb.mxu0 %v17639_v54  ;;  %v17335_v41 = vor.u32 %v19077_v39, %v17334_v60  ;;  %v16575_v54 = vor.u32 %v18886_v52, %v16574_v46  ;;  %v18874_v39 = vld [vmem:[#allocation20 + $0x194] sm:$0xf0]  ;;  %v19057_v46 = vld [vmem:[#allocation20 + $0x74c] sm:$0xf0] }
 0x6d2   : > { %v16527_v12 = vor.u32 %v18874_v39, %v16526_v34  ;;  %v18870_v52 = vld [vmem:[#allocation20 + $0x174] sm:$0xf0]  ;;  %v17086_v34 = vld [vmem:[#allocation20 + $0x5e8] sm:$0xf] }
 0x6d3   : > { %11751 = vmatpush.bf16.msrb.mxu3 %v17531_v11  ;;  %11565 = vmatpush.bf16.msra.mxu1 %v17335_v41  ;;  %v16558_v11 = vld [vmem:[#allocation20 + $0x1c8] sm:$0xf]  ;;  %v18840_v41 = vld [vmem:[#allocation20 + $0x8c] sm:$0xf]  ;;  %v19014_v39 = vld [vmem:[#allocation20 + $0x5f4] sm:$0xf0] }
 0x6d4   : > { %11892 = vmatpush.bf16.msra.mxu2 %v17439_v22  ;;  %v17375_v22 = vor.u32 %v19086_v56, %v17374_v62  ;;  %v16559_v33 = vor.u32 %v18882_v24, %v16558_v11  ;;  %v19061_v62 = vld [vmem:[#allocation20 + $0x76c] sm:$0xf0]  ;;  %v18832_v11 = vld [vmem:[#allocation20 + $0x4c] sm:$0xf]  ;;  %v16368_v24 = vld [vmem:[#allocation20 + $0x58] sm:$0xf0] }
 0x6d5   : > { %11610 = vmatpush.bf16.msrb.mxu0 %v17623_v31  ;;  %v16648_v31 = vld [vmem:[#allocation20 + $0x290] sm:$0xf0]  ;;  %v16371_v29 = vor.u32 %v18832_v11, %v16368_v24  ;;  %v16928_v11 = vld [vmem:[#allocation20 + $0x4b8] sm:$0xf0]  ;;  %v19027_v24 = vld [vmem:[#allocation20 + $0x664] sm:$0xf] }
 0x6d6   : > { %v16651_v14 = vor.u32 %v18903_v55, %v16648_v31  ;;  %v17208_v55 = vld [vmem:[#allocation20 + $0x6f0] sm:$0xf0]  ;;  %v17222_v31 = vld [vmem:[#allocation20 + $0x700] sm:$0xf] }
 0x6d7   : > { %11752 = vmatpush.bf16.msrb.mxu3 %v17515_v42  ;;  %11566 = vmatpush.bf16.msra.mxu1 %v17319_v45  ;;  %v18878_v42 = vld [vmem:[#allocation20 + $0x1b4] sm:$0xf0]  ;;  %v18836_v45 = vld [vmem:[#allocation20 + $0x6c] sm:$0xf] }
 0x6d8   : > { %11893 = vmatpush.bf16.msra.mxu2 %v17423_v28  ;;  %v11485_v28 = vpop.f32.mrf.mxu2  ;;  %v16543_v60 = vor.u32 %v18878_v42, %v16542_v20 }
 0x6d9   : > { %11611 = vmatpush.bf16.msrb.mxu0 %v17607_v35  ;;  %v17270_v35 = vld [vmem:[#allocation20 + $0x760] sm:$0xf]  ;;  %v16600_v28 = vld [vmem:[#allocation20 + $0x230] sm:$0xf0] }
 0x6db   : > { %11753 = vmatpush.bf16.msrb.mxu3 %v17499_v40  ;;  %11567 = vmatpush.bf16.msra.mxu1 %v17303_v38  ;;  %v16400_v40 = vld [vmem:[#allocation20 + $0x98] sm:$0xf0]  ;;  %v18887_v38 = vld [vmem:[#allocation20 + $0x204] sm:$0xf] }
 0x6dc   : > { %11894 = vmatpush.bf16.msra.mxu2 %v17407_v26  ;;  %11612 = vmatmul.bf16.vlgmr.msrb.gmra.mxu0 %v20854_v43  ;;  %v16667_v26 = vor.u32 %v18907_v6, %v16664_v44  ;;  %v16403_v1 = vor.u32 %v18840_v41, %v16400_v40  ;;  %v17238_v6 = vld [vmem:[#allocation20 + $0x720] sm:$0xf]  ;;  %v19053_v44 = vld [vmem:[#allocation20 + $0x72c] sm:$0xf0]  ;;  %v18980_v40 = vld [vmem:[#allocation20 + $0x4ec] sm:$0xf] }
 0x6dd   : > { %11656 = vmatpush.bf16.msra.mxu0 %v16699_v37  ;;  %v17271_v37 = vor.u32 %v19061_v62, %v17270_v35  ;;  %v17239_v59 = vor.u32 %v19053_v44, %v17238_v6  ;;  %v16462_v62 = vld [vmem:[#allocation20 + $0x108] sm:$0xf] }
 0x6df   : > { %11754 = vmatpush.bf16.msrb.mxu3 %v17483_v49  ;;  %11568 = vmatpush.bf16.msra.mxu1 %v17287_v16  ;;  %v16511_v49 = vor.u32 %v18870_v52, %v16510_v10  ;;  %v18828_v16 = vld [vmem:[#allocation20 + $0x2c] sm:$0xf]  ;;  %v20864_v10 = vld [vmem:[#allocation21] sm:$0xf]  ;;  %v16963_v52 = vor.u32 %v18980_v40, %v16960_v2 }
 0x6e0   : > { %11895 = vmatpush.bf16.msra.mxu2 %v17391_v17  ;;  %v16416_v17 = vld [vmem:[#allocation20 + $0xb8] sm:$0xf0]  ;;  %v20858_v48 = vpop.f32.mrf.mxu2  ;;  %v11466_v6 = vperm.slane %v20864_v10, 0  ;;  %v18960_v2 = vld [vmem:[#allocation20 + $0x44c] sm:$0xf] }
 0x6e1   : > { %11657 = vmatpush.bf16.msra.mxu0 %v16683_v27  ;;  %v16419_v56 = vor.u32 %v18844_v36, %v16416_v17  ;;  %v16384_v27 = vld [vmem:[#allocation20 + $0x78] sm:$0xf0]  ;;  %v17211_v17 = vor.u32 %v19043_v57, %v17208_v55  ;;  %v17038_v55 = vld [vmem:[#allocation20 + $0x588] sm:$0xf] }
 0x6e2   : > { %11755 = vmatmul.bf16.vlgmr.msrb.gmra.mxu3 %v20823_v30 }
 0x6e3   : > { %11799 = vmatpush.bf16.msra.mxu3 %v16575_v54  ;;  %11569 = vmatpush.bf16.msra.mxu1 %v17271_v37  ;;  %v16387_v54 = vor.u32 %v18836_v45, %v16384_v27  ;;  %v18824_v37 = vld [vmem:[#allocation20 + $0xc] sm:$0xf] }
 0x6e4   : > { %11896 = vmatpush.bf16.msra.mxu2 %v17375_v22  ;;  %v17254_v22 = vld [vmem:[#allocation20 + $0x740] sm:$0xf] }
 0x6e5   : > { %11658 = vmatpush.bf16.msra.mxu0 %v16667_v26  ;;  %v17255_v9 = vor.u32 %v19057_v46, %v17254_v22  ;;  %v16584_v26 = vld [vmem:[#allocation20 + $0x210] sm:$0xf0]  ;;  %v17087_v46 = vor.u32 %v19014_v39, %v17086_v34 }
 0x6e6   : > { %v16587_v42 = vor.u32 %v18887_v38, %v16584_v26  ;;  %v17176_v22 = vld [vmem:[#allocation20 + $0x6b0] sm:$0xf0]  ;;  %v11484_v26 = vadd.f32 %v20852_v13, %v11466_v6  ;;  %v16864_v6 = vld [vmem:[#allocation20 + $0x438] sm:$0xf0] }
 0x6e7   : > { %11800 = vmatpush.bf16.msra.mxu3 %v16559_v33  ;;  %11570 = vmatpush.bf16.msra.mxu1 %v17255_v9  ;;  %v19049_v33 = vld [vmem:[#allocation20 + $0x70c] sm:$0xf0]  ;;  %v17070_v9 = vld [vmem:[#allocation20 + $0x5c8] sm:$0xf]  ;;  %v17144_v38 = vld [vmem:[#allocation20 + $0x670] sm:$0xf0] }
 0x6e8   : > { %11897 = vmatpush.bf16.msra.mxu2 %v17359_v25  ;;  %v11537_v7 = vpop.f32.mrf.mxu2  ;;  %v16494_v25 = vld [vmem:[#allocation20 + $0x148] sm:$0xf]  ;;  %v17223_v20 = vor.u32 %v19049_v33, %v17222_v31  ;;  %v19002_v31 = vld [vmem:[#allocation20 + $0x594] sm:$0xf0] }
 0x6e9   : > { %11659 = vmatpush.bf16.msra.mxu0 %v16651_v14  ;;  %v16495_v3 = vor.u32 %v18866_v21, %v16494_v25  ;;  %v16352_v14 = vld [vmem:[#allocation20 + $0x38] sm:$0xf0]  ;;  %v18976_v7 = vld [vmem:[#allocation20 + $0x4cc] sm:$0xf]  ;;  %v17054_v25 = vld [vmem:[#allocation20 + $0x5a8] sm:$0xf] }
 0x6ea   : > { %v16355_v35 = vor.u32 %v18828_v16, %v16352_v14  ;;  %v19006_v21 = vld [vmem:[#allocation20 + $0x5b4] sm:$0xf0]  ;;  %v11496_v16 = vpop.f32.mrf.mxu3 }
 0x6eb   : > { %11898 = vmatmul.bf16.vlgmr.msra.gmra.mxu2 %v20787_v53  ;;  %11801 = vmatpush.bf16.msra.mxu3 %v16543_v60  ;;  %v17192_v60 = vld [vmem:[#allocation20 + $0x6d0] sm:$0xf0]  ;;  %v17055_v57 = vor.u32 %v19006_v21, %v17054_v25  ;;  %v20872_v14 = vadd.f32 %v11496_v16, %v11484_v26  ;;  %v17830_v21 = vld [vmem:[#allocation20 + $0xbc0] sm:$0xf]  ;;  %v19108_v16 = vld [vmem:[#allocation20 + $0x8ec] sm:$0xf] }
 0x6ec   : > { %11942 = vmatpush.bf16.msrb.mxu2 %v16451_v50  ;;  %v16603_v50 = vor.u32 %v18891_v47, %v16600_v28  ;;  %11571 = vmatpush.bf16.msra.mxu1 %v17239_v59  ;;  %v17195_v41 = vor.u32 %v19039_v51, %v17192_v60  ;;  %v16944_v47 = vld [vmem:[#allocation20 + $0x4d8] sm:$0xf0]  ;;  %v19031_v28 = vld [vmem:[#allocation20 + $0x684] sm:$0xf]  ;;  %v18964_v60 = vld [vmem:[#allocation20 + $0x46c] sm:$0xf] }
 0x6ed   : > { %11660 = vmatpush.bf16.msra.mxu0 %v16635_v18  ;;  %v16336_v18 = vld [vmem:[#allocation20 + $0x18] sm:$0xf0] }
 0x6ef   : > { %11802 = vmatpush.bf16.msra.mxu3 %v16527_v12  ;;  %v19035_v12 = vld [vmem:[#allocation20 + $0x6a4] sm:$0xf] }
 0x6f0   : > { %11943 = vmatpush.bf16.msrb.mxu2 %v16435_v63  ;;  %v18862_v63 = vld [vmem:[#allocation20 + $0x134] sm:$0xf0]  ;;  %v20861_v36 = vpop.f32.mrf.mxu2  ;;  %11572 = vmatpush.bf16.msra.mxu1 %v17223_v20  ;;  %v17179_v27 = vor.u32 %v19035_v12, %v17176_v22  ;;  %v19023_v20 = vld [vmem:[#allocation20 + $0x644] sm:$0xf]  ;;  %v17096_v22 = vld [vmem:[#allocation20 + $0x610] sm:$0xf0] }
 0x6f1   : > { %11661 = vmatpush.bf16.msra.mxu0 %v16619_v58  ;;  %v16479_v15 = vor.u32 %v18862_v63, %v16478_v5  ;;  %v19010_v58 = vld [vmem:[#allocation20 + $0x5d4] sm:$0xf0]  ;;  %v18968_v5 = vld [vmem:[#allocation20 + $0x48c] sm:$0xf]  ;;  %v16912_v63 = vld [vmem:[#allocation20 + $0x498] sm:$0xf0] }
 0x6f2   : > { %v17071_v44 = vor.u32 %v19010_v58, %v17070_v9  ;;  %v16915_v13 = vor.u32 %v18968_v5, %v16912_v63  ;;  %v19015_v12 = vld [vmem:[#allocation20 + $0x604] sm:$0xf]  ;;  %v19205_v9 = vld [vmem:[#allocation20 + $0xbec] sm:$0xf0]  ;;  %v18952_v5 = vld [vmem:[#allocation20 + $0x40c] sm:$0xf] }
 0x6f3   : > { %11803 = vmatpush.bf16.msra.mxu3 %v16511_v49  ;;  %v17160_v49 = vld [vmem:[#allocation20 + $0x690] sm:$0xf0]  ;;  %v19171_v58 = vld [vmem:[#allocation20 + $0xae4] sm:$0xf]  ;;  %v16848_v63 = vld [vmem:[#allocation20 + $0x418] sm:$0xf0] }
 0x6f4   : > { %11944 = vmatpush.bf16.msrb.mxu2 %v16419_v56  ;;  %v18858_v56 = vld [vmem:[#allocation20 + $0x114] sm:$0xf0]  ;;  %v17163_v59 = vor.u32 %v19031_v28, %v17160_v49  ;;  %v17099_v28 = vor.u32 %v19015_v12, %v17096_v22  ;;  %v18956_v49 = vld [vmem:[#allocation20 + $0x42c] sm:$0xf]  ;;  %v19193_v12 = vld [vmem:[#allocation20 + $0xb8c] sm:$0xf0] }
 0x6f5   : > { %11662 = vmatpush.bf16.msra.mxu0 %v16603_v50  ;;  %v16463_v0 = vor.u32 %v18858_v56, %v16462_v62  ;;  %v18972_v50 = vld [vmem:[#allocation20 + $0x4ac] sm:$0xf]  ;;  %v19019_v62 = vld [vmem:[#allocation20 + $0x624] sm:$0xf]  ;;  %v17112_v56 = vld [vmem:[#allocation20 + $0x630] sm:$0xf0]  ;;  %v16867_v26 = vor.u32 %v18956_v49, %v16864_v6 }
 0x6f6   : > { %v17115_v40 = vor.u32 %v19019_v62, %v17112_v56  ;;  %v16851_v56 = vor.u32 %v18952_v5, %v16848_v63  ;;  %v19159_v22 = vld [vmem:[#allocation20 + $0xa84] sm:$0xf]  ;;  %v17440_v49 = vld [vmem:[#allocation20 + $0x8b8] sm:$0xf0]  ;;  %v17782_v6 = vld [vmem:[#allocation20 + $0xb60] sm:$0xf] }
 0x6f7   : > { %11804 = vmatpush.bf16.msra.mxu3 %v16495_v3  ;;  %v16931_v3 = vor.u32 %v18972_v50, %v16928_v11  ;;  %v19201_v11 = vld [vmem:[#allocation20 + $0xbcc] sm:$0xf0]  ;;  %v19151_v63 = vld [vmem:[#allocation20 + $0xa44] sm:$0xf] }
 0x6f8   : > { %11945 = vmatpush.bf16.msrb.mxu2 %v16403_v1  ;;  %v16339_v1 = vor.u32 %v18824_v37, %v16336_v18  ;;  %v11589_v45 = vpop.f32.mrf.mxu2  ;;  %v17006_v37 = vld [vmem:[#allocation20 + $0x548] sm:$0xf]  ;;  %v18994_v18 = vld [vmem:[#allocation20 + $0x554] sm:$0xf0]  ;;  %v19185_v5 = vld [vmem:[#allocation20 + $0xb4c] sm:$0xf0] }
 0x6f9   : > { %11663 = vmatpush.bf16.msra.mxu0 %v16587_v42  ;;  %v17128_v42 = vld [vmem:[#allocation20 + $0x650] sm:$0xf0] }
 0x6fa   : > { %v17131_v51 = vor.u32 %v19023_v20, %v17128_v42  ;;  %v17720_v45 = vld [vmem:[#allocation20 + $0xaf0] sm:$0xf0]  ;;  %v17831_v20 = vor.u32 %v19201_v11, %v17830_v21 }
 0x6fb   : > { %11805 = vmatpush.bf16.msra.mxu3 %v16479_v15  ;;  %v18998_v15 = vld [vmem:[#allocation20 + $0x574] sm:$0xf0]  ;;  %v17723_v25 = vor.u32 %v19171_v58, %v17720_v45  ;;  %v17566_v58 = vld [vmem:[#allocation20 + $0x9a8] sm:$0xf]  ;;  %v17656_v21 = vld [vmem:[#allocation20 + $0xa70] sm:$0xf0] }
 0x6fc   : > { %11946 = vmatpush.bf16.msrb.mxu2 %v16387_v54  ;;  %11664 = vmatmul.bf16.vlgmr.msra.gmra.mxu0 %v20844_v19  ;;  %v16947_v54 = vor.u32 %v18976_v7, %v16944_v47  ;;  %v16990_v7 = vld [vmem:[#allocation20 + $0x528] sm:$0xf]  ;;  %v18990_v47 = vld [vmem:[#allocation20 + $0x534] sm:$0xf0] }
 0x6fd   : > { %11708 = vmatpush.bf16.msrb.mxu0 %v17211_v17  ;;  %v17022_v17 = vld [vmem:[#allocation20 + $0x568] sm:$0xf]  ;;  %v16991_v50 = vor.u32 %v18990_v47, %v16990_v7  ;;  %v19134_v45 = vld [vmem:[#allocation20 + $0x9b4] sm:$0xf0] }
 0x6fe   : > { %v17023_v34 = vor.u32 %v18998_v15, %v17022_v17 }
 0x6ff   : > { %11806 = vmatpush.bf16.msra.mxu3 %v16463_v0  ;;  %v16880_v0 = vld [vmem:[#allocation20 + $0x458] sm:$0xf0] }
 0x700   : > { %11947 = vmatpush.bf16.msrb.mxu2 %v16371_v29  ;;  %v20870_v33 = vpop.f32.mrf.mxu2  ;;  %v17147_v29 = vor.u32 %v19027_v24, %v17144_v38  ;;  %v19167_v24 = vld [vmem:[#allocation20 + $0xac4] sm:$0xf]  ;;  %v17704_v38 = vld [vmem:[#allocation20 + $0xad0] sm:$0xf0] }
 0x701   : > { %11709 = vmatpush.bf16.msrb.mxu0 %v17195_v41  ;;  %v17707_v42 = vor.u32 %v19167_v24, %v17704_v38  ;;  %v17550_v38 = vld [vmem:[#allocation20 + $0x988] sm:$0xf] }
 0x702   : > { %11807 = vmatmul.bf16.vlgmr.msra.gmra.mxu3 %v20808_v4 }
 0x703   : > { %11851 = vmatpush.bf16.msrb.mxu3 %v17087_v46  ;;  %v17846_v46 = vld [vmem:[#allocation20 + $0xbe0] sm:$0xf] }
 0x704   : > { %11948 = vmatpush.bf16.msrb.mxu2 %v16355_v35  ;;  %v16896_v35 = vld [vmem:[#allocation20 + $0x478] sm:$0xf0] }
 0x705   : > { %11710 = vmatpush.bf16.msrb.mxu0 %v17179_v27  ;;  %v16899_v39 = vor.u32 %v18964_v60, %v16896_v35  ;;  %v16883_v27 = vor.u32 %v18960_v2, %v16880_v0  ;;  %v19163_v60 = vld [vmem:[#allocation20 + $0xaa4] sm:$0xf]  ;;  %v17688_v35 = vld [vmem:[#allocation20 + $0xab0] sm:$0xf0]  ;;  %v17456_v2 = vld [vmem:[#allocation20 + $0x8d8] sm:$0xf0] }
 0x706   : > { %v17798_v0 = vld [vmem:[#allocation20 + $0xb80] sm:$0xf] }
 0x707   : > { %11852 = vmatpush.bf16.msrb.mxu3 %v17071_v44 }
 0x708   : > { %11949 = vmatpush.bf16.msrb.mxu2 %v16339_v1  ;;  %v11641_v41 = vpop.f32.mrf.mxu2  ;;  %v11498_v1 = vpop.f32.mrf.mxu3 }
 0x709   : > { %11711 = vmatpush.bf16.msrb.mxu0 %v17163_v59  ;;  %v17691_v41 = vor.u32 %v19163_v60, %v17688_v35  ;;  %v19092_v35 = vld [vmem:[#allocation20 + $0x86c] sm:$0xf] }
 0x70b   : > { %11950 = vmatmul.bf16.vlgmr.msrb.gmra.mxu2 %v20772_v8  ;;  %11853 = vmatpush.bf16.msrb.mxu3 %v17055_v57  ;;  %v17039_v8 = vor.u32 %v19002_v31, %v17038_v55  ;;  %v16974_v57 = vld [vmem:[#allocation20 + $0x508] sm:$0xf] }
 0x70c   : > { %11994 = vmatpush.bf16.msra.mxu2 %v16963_v52  ;;  %v17007_v52 = vor.u32 %v18994_v18, %v17006_v37  ;;  %v17598_v55 = vld [vmem:[#allocation20 + $0x9e8] sm:$0xf]  ;;  %v19138_v37 = vld [vmem:[#allocation20 + $0x9d4] sm:$0xf0] }
 0x70d   : > { %11712 = vmatpush.bf16.msrb.mxu0 %v17147_v29  ;;  %v19142_v29 = vld [vmem:[#allocation20 + $0x9f4] sm:$0xf0] }
 0x70e   : > { %v17599_v62 = vor.u32 %v19142_v29, %v17598_v55  ;;  %v19096_v55 = vld [vmem:[#allocation20 + $0x88c] sm:$0xf]  ;;  %v17424_v29 = vld [vmem:[#allocation20 + $0x898] sm:$0xf0] }
 0x70f   : > { %11854 = vmatpush.bf16.msrb.mxu3 %v17039_v8  ;;  %v17472_v8 = vld [vmem:[#allocation20 + $0x8f8] sm:$0xf0] }
 0x710   : > { %11995 = vmatpush.bf16.msra.mxu2 %v16947_v54  ;;  %v17847_v54 = vor.u32 %v19205_v9, %v17846_v46  ;;  %v20876_v31 = vpop.f32.mrf.mxu2  ;;  %v20879_v17 = vpop.f32.mrf.mxu3  ;;  %v17672_v46 = vld [vmem:[#allocation20 + $0xa90] sm:$0xf0] }
 0x711   : > { %11713 = vmatpush.bf16.msrb.mxu0 %v17131_v51  ;;  %v19197_v51 = vld [vmem:[#allocation20 + $0xbac] sm:$0xf0]  ;;  %v17675_v7 = vor.u32 %v19159_v22, %v17672_v46 }
 0x713   : > { %11855 = vmatpush.bf16.msrb.mxu3 %v17023_v34  ;;  %v17475_v34 = vor.u32 %v19108_v16, %v17472_v8  ;;  %v17427_v8 = vor.u32 %v19096_v55, %v17424_v29 }
 0x714   : > { %11996 = vmatpush.bf16.msra.mxu2 %v16931_v3  ;;  %v18986_v3 = vld [vmem:[#allocation20 + $0x514] sm:$0xf0] }
 0x715   : > { %11714 = vmatpush.bf16.msrb.mxu0 %v17115_v40  ;;  %v16975_v15 = vor.u32 %v18986_v3, %v16974_v57  ;;  %v19104_v40 = vld [vmem:[#allocation20 + $0x8cc] sm:$0xf] }
 0x716   : > { %v17459_v9 = vor.u32 %v19104_v40, %v17456_v2  ;;  %v17518_v2 = vld [vmem:[#allocation20 + $0x948] sm:$0xf] }
 0x717   : > { %11856 = vmatpush.bf16.msrb.mxu3 %v17007_v52 }
 0x718   : > { %11997 = vmatpush.bf16.msra.mxu2 %v16915_v13  ;;  %v17814_v13 = vld [vmem:[#allocation20 + $0xba0] sm:$0xf]  ;;  %v11693_v52 = vpop.f32.mrf.mxu2 }
 0x719   : > { %v8975_v44 = vpop.f32.mrf.mxu1  ;;  %11715 = vmatpush.bf16.msrb.mxu0 %v17099_v28  ;;  %v17815_v18 = vor.u32 %v19197_v51, %v17814_v13  ;;  %v19100_v28 = vld [vmem:[#allocation20 + $0x8ac] sm:$0xf]  ;;  %v17534_v13 = vld [vmem:[#allocation20 + $0x968] sm:$0xf]  ;;  %v17734_v52 = vld [vmem:[#allocation20 + $0xb00] sm:$0xf] }
 0x71a   : > { %v20874_v59 = vpack.c.bf16 %v8975_v44, %v8975_v44  ;;  %v11550_v44 = vpop.f32.mrf.mxu3  ;;  %v17443_v24 = vor.u32 %v19100_v28, %v17440_v49  ;;  %v16702_v28 = vld [vmem:[#allocation20 + $0x2e8] sm:$0xf]  ;;  %v18918_v49 = vld [vmem:[#allocation20 + $0x2f4] sm:$0xf0] }
 0x71b   : > { %11857 = vmatpush.bf16.msrb.mxu3 %v16991_v50  ;;  %v17567_v50 = vor.u32 %v19134_v45, %v17566_v58  ;;  %v19143_v58 = vld [vmem:[#allocation20 + $0xa04] sm:$0xf]  ;;  %v17608_v45 = vld [vmem:[#allocation20 + $0xa10] sm:$0xf0]  ;;  %v16703_v29 = vor.u32 %v18918_v49, %v16702_v28  ;;  %v18906_v28 = vld [vmem:[#allocation20 + $0x294] sm:$0xf0] }
 0x71c   : > { %11998 = vmatpush.bf16.msra.mxu2 %v16899_v39  ;;  %11521 = vmatmul.bf16.vlgmr.msrb.gmra.mxu1 %v20874_v59  ;;  %v17582_v39 = vld [vmem:[#allocation20 + $0x9c8] sm:$0xf] }
 0x71d   : > { %11617 = vmatpush.bf16.msrb.mxu1 %v17847_v54  ;;  %11760 = vmatpush.bf16.msra.mxu0 %v17723_v25  ;;  %v17583_v1 = vor.u32 %v19138_v37, %v17582_v39  ;;  %v19189_v54 = vld [vmem:[#allocation20 + $0xb6c] sm:$0xf0]  ;;  %v19155_v25 = vld [vmem:[#allocation20 + $0xa64] sm:$0xf] }
 0x71e   : > { %11716 = vmatmul.bf16.vlgmr.msrb.gmra.mxu0 %v20849_v23  ;;  %v17783_v57 = vor.u32 %v19189_v54, %v17782_v6  ;;  %v17659_v3 = vor.u32 %v19155_v25, %v17656_v21  ;;  %v19181_v39 = vld [vmem:[#allocation20 + $0xb2c] sm:$0xf0]  ;;  %v19147_v37 = vld [vmem:[#allocation20 + $0xa24] sm:$0xf]  ;;  %v17502_v54 = vld [vmem:[#allocation20 + $0x928] sm:$0xf] }
 0x71f   : > { %11858 = vmatpush.bf16.msrb.mxu3 %v16975_v15  ;;  %v19126_v15 = vld [vmem:[#allocation20 + $0x974] sm:$0xf0] }
 0x720   : > { %11999 = vmatpush.bf16.msra.mxu2 %v16883_v27  ;;  %v17799_v27 = vor.u32 %v19193_v12, %v17798_v0  ;;  %v20886_v16 = vpop.f32.mrf.mxu2  ;;  %v19122_v0 = vld [vmem:[#allocation20 + $0x954] sm:$0xf0]  ;;  %v19088_v12 = vld [vmem:[#allocation20 + $0x84c] sm:$0xf] }
 0x721   : > { %11618 = vmatpush.bf16.msrb.mxu1 %v17831_v20  ;;  %11761 = vmatpush.bf16.msra.mxu0 %v17707_v42  ;;  %v9060_v47 = vpop.f32.mrf.mxu1  ;;  %v17640_v20 = vld [vmem:[#allocation20 + $0xa50] sm:$0xf0]  ;;  %v19118_v25 = vld [vmem:[#allocation20 + $0x934] sm:$0xf0] }
 0x722   : > { %11859 = vmatmul.bf16.vlgmr.msrb.gmra.mxu3 %v20816_v61  ;;  %v20884_v11 = vpack.c.bf16 %v9060_v47, %v9060_v47  ;;  %v17643_v60 = vor.u32 %v19151_v63, %v17640_v20  ;;  %v16824_v47 = vld [vmem:[#allocation20 + $0x3f0] sm:$0xf0]  ;;  %v16686_v20 = vld [vmem:[#allocation20 + $0x2c8] sm:$0xf] }
 0x723   : > { %11903 = vmatpush.bf16.msra.mxu3 %v17599_v62  ;;  %v17408_v62 = vld [vmem:[#allocation20 + $0x878] sm:$0xf0]  ;;  %v16808_v63 = vld [vmem:[#allocation20 + $0x3d0] sm:$0xf0] }
 0x724   : > { %12000 = vmatpush.bf16.msra.mxu2 %v16867_v26  ;;  %v19130_v26 = vld [vmem:[#allocation20 + $0x994] sm:$0xf0]  ;;  %v17411_v40 = vor.u32 %v19092_v35, %v17408_v62  ;;  %v16576_v35 = vld [vmem:[#allocation20 + $0x1f8] sm:$0xf0]  ;;  %v19080_v62 = vld [vmem:[#allocation20 + $0x80c] sm:$0xf] }
 0x725   : > { %11619 = vmatpush.bf16.msrb.mxu1 %v17815_v18  ;;  %11762 = vmatpush.bf16.msra.mxu0 %v17691_v41  ;;  %v17551_v42 = vor.u32 %v19130_v26, %v17550_v38  ;;  %v17624_v18 = vld [vmem:[#allocation20 + $0xa30] sm:$0xf0]  ;;  %v17535_v41 = vor.u32 %v19126_v15, %v17534_v13  ;;  %v19084_v38 = vld [vmem:[#allocation20 + $0x82c] sm:$0xf]  ;;  %v17376_v26 = vld [vmem:[#allocation20 + $0x838] sm:$0xf0] }
 0x726   : > { %v17627_v46 = vor.u32 %v19147_v37, %v17624_v18  ;;  %v17379_v13 = vor.u32 %v19084_v38, %v17376_v26  ;;  %v17486_v15 = vld [vmem:[#allocation20 + $0x908] sm:$0xf]  ;;  %v18939_v18 = vld [vmem:[#allocation20 + $0x3a4] sm:$0xf]  ;;  %v18902_v26 = vld [vmem:[#allocation20 + $0x274] sm:$0xf0] }
 0x727   : > { %11904 = vmatpush.bf16.msra.mxu3 %v17583_v1  ;;  %v17392_v1 = vld [vmem:[#allocation20 + $0x858] sm:$0xf0]  ;;  %v16638_v38 = vld [vmem:[#allocation20 + $0x268] sm:$0xf] }
 0x728   : > { %12001 = vmatpush.bf16.msra.mxu2 %v16851_v56  ;;  %v17750_v56 = vld [vmem:[#allocation20 + $0xb20] sm:$0xf]  ;;  %v11745_v6 = vpop.f32.mrf.mxu2  ;;  %v17395_v44 = vor.u32 %v19088_v12, %v17392_v1  ;;  %v18880_v1 = vld [vmem:[#allocation20 + $0x1cc] sm:$0xf] }
 0x729   : > { %11620 = vmatpush.bf16.msrb.mxu1 %v17799_v27  ;;  %11763 = vmatpush.bf16.msra.mxu0 %v17675_v7  ;;  %v17751_v22 = vor.u32 %v19181_v39, %v17750_v56  ;;  %v18947_v27 = vld [vmem:[#allocation20 + $0x3e4] sm:$0xf]  ;;  %v17519_v7 = vor.u32 %v19122_v0, %v17518_v2  ;;  %v16670_v2 = vld [vmem:[#allocation20 + $0x2a8] sm:$0xf]  ;;  %v18910_v0 = vld [vmem:[#allocation20 + $0x2b4] sm:$0xf0] }
 0x72a   : > { %v16827_v55 = vor.u32 %v18947_v27, %v16824_v47  ;;  %v16654_v47 = vld [vmem:[#allocation20 + $0x288] sm:$0xf]  ;;  %v18876_v6 = vld [vmem:[#allocation20 + $0x1ac] sm:$0xf] }
 0x72b   : > { %12002 = vmatmul.bf16.vlgmr.msra.gmra.mxu2 %v20780_v32  ;;  %v17766_v32 = vld [vmem:[#allocation20 + $0xb40] sm:$0xf]  ;;  %11905 = vmatpush.bf16.msra.mxu3 %v17567_v50  ;;  %v17611_v50 = vor.u32 %v19143_v58, %v17608_v45  ;;  %v16671_v58 = vor.u32 %v18910_v0, %v16670_v2  ;;  %v18935_v45 = vld [vmem:[#allocation20 + $0x384] sm:$0xf]  ;;  %v16496_v2 = vld [vmem:[#allocation20 + $0x158] sm:$0xf0] }
 0x72c   : > { %12046 = vmatpush.bf16.msrb.mxu2 %v17475_v34  ;;  %11573 = vmatmul.bf16.vlgmr.msra.gmra.mxu1 %v20884_v11  ;;  %v17767_v51 = vor.u32 %v19185_v5, %v17766_v32  ;;  %v20889_v34 = vpop.f32.mrf.mxu3  ;;  %v18943_v32 = vld [vmem:[#allocation20 + $0x3c4] sm:$0xf]  ;;  %v17503_v5 = vor.u32 %v19118_v25, %v17502_v54  ;;  %v16655_v25 = vor.u32 %v18906_v28, %v16654_v47  ;;  %v19046_v47 = vld [vmem:[#allocation20 + $0x6f4] sm:$0xf0]  ;;  %v18860_v28 = vld [vmem:[#allocation20 + $0x12c] sm:$0xf] }
 0x72d   : > { %11621 = vmatpush.bf16.msrb.mxu1 %v17783_v57  ;;  %11764 = vmatpush.bf16.msra.mxu0 %v17659_v3  ;;  %v11467_v3 = vperm.slane %v20864_v10, 1  ;;  %v17360_v10 = vld [vmem:[#allocation20 + $0x818] sm:$0xf0]  ;;  %v16811_v39 = vor.u32 %v18943_v32, %v16808_v63 }
 0x72e   : > { %v16528_v32 = vld [vmem:[#allocation20 + $0x198] sm:$0xf0] }
 0x72f   : > { %11906 = vmatpush.bf16.msra.mxu3 %v17551_v42  ;;  %v18914_v42 = vld [vmem:[#allocation20 + $0x2d4] sm:$0xf0]  ;;  %v11640_v56 = vadd.f32 %v20870_v33, %v11467_v3 }
 0x730   : > { %12047 = vmatpush.bf16.msrb.mxu2 %v17459_v9  ;;  %v19177_v9 = vld [vmem:[#allocation20 + $0xb0c] sm:$0xf0]  ;;  %v16687_v37 = vor.u32 %v18914_v42, %v16686_v20  ;;  %v20895_v12 = vpop.f32.mrf.mxu2  ;;  %v16639_v20 = vor.u32 %v18902_v26, %v16638_v38  ;;  %v18927_v42 = vld [vmem:[#allocation20 + $0x344] sm:$0xf] }
 0x731   : > { %11622 = vmatpush.bf16.msrb.mxu1 %v17767_v51  ;;  %11765 = vmatpush.bf16.msra.mxu0 %v17643_v60  ;;  %v17735_v21 = vor.u32 %v19177_v9, %v17734_v52  ;;  %v19114_v51 = vld [vmem:[#allocation20 + $0x914] sm:$0xf0]  ;;  %v18884_v60 = vld [vmem:[#allocation20 + $0x1ec] sm:$0xf]  ;;  %v16560_v52 = vld [vmem:[#allocation20 + $0x1d8] sm:$0xf0] }
 0x732   : > { %v16563_v49 = vor.u32 %v18880_v1, %v16560_v52  ;;  %v16712_v1 = vld [vmem:[#allocation20 + $0x310] sm:$0xf0]  ;;  %v16590_v52 = vld [vmem:[#allocation20 + $0x208] sm:$0xf]  ;;  %v19071_v38 = vld [vmem:[#allocation20 + $0x7c4] sm:$0xf] }
 0x733   : > { %11907 = vmatpush.bf16.msra.mxu3 %v17535_v41  ;;  %v17487_v41 = vor.u32 %v19114_v51, %v17486_v15  ;;  %v18898_v15 = vld [vmem:[#allocation20 + $0x254] sm:$0xf0] }
 0x734   : > { %12048 = vmatpush.bf16.msrb.mxu2 %v17443_v24  ;;  %v9145_v24 = vpop.f32.mrf.mxu1  ;;  %v11602_v57 = vpop.f32.mrf.mxu3 }
 0x735   : > { %11623 = vmatpush.bf16.msrb.mxu1 %v17751_v22  ;;  %11766 = vmatpush.bf16.msra.mxu0 %v17627_v46  ;;  %v16579_v22 = vor.u32 %v18884_v60, %v16576_v35  ;;  %v17363_v46 = vor.u32 %v19080_v62, %v17360_v10  ;;  %v18868_v60 = vld [vmem:[#allocation20 + $0x16c] sm:$0xf]  ;;  %v16512_v35 = vld [vmem:[#allocation20 + $0x178] sm:$0xf0]  ;;  %v18923_v10 = vld [vmem:[#allocation20 + $0x324] sm:$0xf] }
 0x737   : > { %11908 = vmatpush.bf16.msra.mxu3 %v17519_v7  ;;  %v16776_v7 = vld [vmem:[#allocation20 + $0x390] sm:$0xf0] }
 0x738   : > { %12049 = vmatpush.bf16.msrb.mxu2 %v17427_v8  ;;  %v20892_v8 = vpack.c.bf16 %v9145_v24, %v9145_v24  ;;  %v16779_v54 = vor.u32 %v18935_v45, %v16776_v7  ;;  %v16760_v24 = vld [vmem:[#allocation20 + $0x370] sm:$0xf0]  ;;  %v11797_v3 = vpop.f32.mrf.mxu2  ;;  %v17214_v7 = vld [vmem:[#allocation20 + $0x6e8] sm:$0xf] }
 0x739   : > { %11624 = vmatpush.bf16.msrb.mxu1 %v17735_v21  ;;  %11767 = vmatpush.bf16.msra.mxu0 %v17611_v50  ;;  %v18931_v21 = vld [vmem:[#allocation20 + $0x364] sm:$0xf]  ;;  %v11509_v50 = vpop.f32.mrf.mxu0  ;;  %v17336_v45 = vld [vmem:[#allocation20 + $0x7f0] sm:$0xf0] }
 0x73a   : > { %v20904_v57 = vadd.f32 %v11509_v50, %v20872_v14  ;;  %v16763_v63 = vor.u32 %v18931_v21, %v16760_v24  ;;  %v17215_v24 = vor.u32 %v19046_v47, %v17214_v7  ;;  %v17320_v3 = vld [vmem:[#allocation20 + $0x7d0] sm:$0xf0]  ;;  %v17150_v7 = vld [vmem:[#allocation20 + $0x668] sm:$0xf]  ;;  %v19030_v47 = vld [vmem:[#allocation20 + $0x674] sm:$0xf0] }
 0x73b   : > { %11909 = vmatpush.bf16.msra.mxu3 %v17503_v5 }
 0x73c   : > { %12050 = vmatpush.bf16.msrb.mxu2 %v17411_v40  ;;  %v16792_v40 = vld [vmem:[#allocation20 + $0x3b0] sm:$0xf0]  ;;  %11625 = vmatmul.bf16.vlgmr.msrb.gmra.mxu1 %v20892_v8  ;;  %v11652_v33 = vpop.f32.mrf.mxu3 }
 0x73d   : > { %11669 = vmatpush.bf16.msra.mxu1 %v16827_v55  ;;  %11812 = vmatpush.bf16.msrb.mxu0 %v16703_v29  ;;  %v16795_v9 = vor.u32 %v18939_v18, %v16792_v40  ;;  %v20899_v27 = vadd.f32 %v11652_v33, %v11640_v56  ;;  %v18872_v29 = vld [vmem:[#allocation20 + $0x18c] sm:$0xf]  ;;  %v18894_v18 = vld [vmem:[#allocation20 + $0x234] sm:$0xf0] }
 0x73e   : > { %11768 = vmatmul.bf16.vlgmr.msra.gmra.mxu0 %v20854_v43  ;;  %v16531_v51 = vor.u32 %v18872_v29, %v16528_v32  ;;  %v18864_v40 = vld [vmem:[#allocation20 + $0x14c] sm:$0xf]  ;;  %v18890_v33 = vld [vmem:[#allocation20 + $0x214] sm:$0xf0] }
 0x73f   : > { %11910 = vmatpush.bf16.msra.mxu3 %v17487_v41  ;;  %v16515_v41 = vor.u32 %v18868_v60, %v16512_v35  ;;  %v19042_v29 = vld [vmem:[#allocation20 + $0x6d4] sm:$0xf0]  ;;  %v18856_v32 = vld [vmem:[#allocation20 + $0x10c] sm:$0xf]  ;;  %v17182_v60 = vld [vmem:[#allocation20 + $0x6a8] sm:$0xf] }
 0x740   : > { %12051 = vmatpush.bf16.msrb.mxu2 %v17395_v44  ;;  %v16544_v44 = vld [vmem:[#allocation20 + $0x1b8] sm:$0xf0]  ;;  %v19038_v35 = vld [vmem:[#allocation20 + $0x6b4] sm:$0xf0] }
 0x741   : > { %11670 = vmatpush.bf16.msra.mxu1 %v16811_v39  ;;  %11813 = vmatpush.bf16.msrb.mxu0 %v16687_v37  ;;  %v16547_v55 = vor.u32 %v18876_v6, %v16544_v44  ;;  %v11511_v56 = vpop.f32.mrf.mxu0  ;;  %v16728_v39 = vld [vmem:[#allocation20 + $0x330] sm:$0xf0]  ;;  %v16606_v37 = vld [vmem:[#allocation20 + $0x228] sm:$0xf] }
 0x742   : > { %11911 = vmatmul.bf16.vlgmr.msra.gmra.mxu3 %v20823_v30  ;;  %v16731_v0 = vor.u32 %v18923_v10, %v16728_v39  ;;  %v19008_v10 = vld [vmem:[#allocation20 + $0x5cc] sm:$0xf]  ;;  %v17072_v56 = vld [vmem:[#allocation20 + $0x5d8] sm:$0xf0] }
 0x743   : > { %11955 = vmatpush.bf16.msrb.mxu3 %v16579_v22  ;;  %v16607_v22 = vor.u32 %v18894_v18, %v16606_v37 }
 0x744   : > { %12052 = vmatpush.bf16.msrb.mxu2 %v17379_v13  ;;  %v11654_v5 = vpop.f32.mrf.mxu3  ;;  %v16622_v13 = vld [vmem:[#allocation20 + $0x248] sm:$0xf] }
 0x745   : > { %11671 = vmatpush.bf16.msra.mxu1 %v16795_v9  ;;  %11814 = vmatpush.bf16.msrb.mxu0 %v16671_v58  ;;  %v16623_v62 = vor.u32 %v18898_v15, %v16622_v13  ;;  %v19075_v9 = vld [vmem:[#allocation20 + $0x7e4] sm:$0xf]  ;;  %v16499_v58 = vor.u32 %v18864_v40, %v16496_v2  ;;  %v16464_v5 = vld [vmem:[#allocation20 + $0x118] sm:$0xf0]  ;;  %v17288_v2 = vld [vmem:[#allocation20 + $0x790] sm:$0xf0] }
 0x746   : > { %v17339_v50 = vor.u32 %v19075_v9, %v17336_v45  ;;  %v19067_v13 = vld [vmem:[#allocation20 + $0x7a4] sm:$0xf]  ;;  %v16467_v15 = vor.u32 %v18856_v32, %v16464_v5  ;;  %v17272_v45 = vld [vmem:[#allocation20 + $0x770] sm:$0xf0]  ;;  %v17024_v32 = vld [vmem:[#allocation20 + $0x578] sm:$0xf0] }
 0x747   : > { %11956 = vmatpush.bf16.msrb.mxu3 %v16563_v49  ;;  %v16480_v49 = vld [vmem:[#allocation20 + $0x138] sm:$0xf0]  ;;  %v19063_v40 = vld [vmem:[#allocation20 + $0x784] sm:$0xf] }
 0x748   : > { %12053 = vmatpush.bf16.msrb.mxu2 %v17363_v46  ;;  %v18919_v46 = vld [vmem:[#allocation20 + $0x304] sm:$0xf]  ;;  %v16483_v26 = vor.u32 %v18860_v28, %v16480_v49  ;;  %v19000_v49 = vld [vmem:[#allocation20 + $0x58c] sm:$0xf] }
 0x749   : > { %11672 = vmatpush.bf16.msra.mxu1 %v16779_v54  ;;  %11815 = vmatpush.bf16.msrb.mxu0 %v16655_v25  ;;  %v16715_v44 = vor.u32 %v18919_v46, %v16712_v1  ;;  %v16591_v54 = vor.u32 %v18890_v33, %v16590_v52  ;;  %v20910_v21 = vpop.f32.mrf.mxu0  ;;  %v17075_v46 = vor.u32 %v19008_v10, %v17072_v56  ;;  %v19004_v1 = vld [vmem:[#allocation20 + $0x5ac] sm:$0xf]  ;;  %v17056_v52 = vld [vmem:[#allocation20 + $0x5b8] sm:$0xf0]  ;;  %v19047_v10 = vld [vmem:[#allocation20 + $0x704] sm:$0xf] }
 0x74a   : > { %v17291_v33 = vor.u32 %v19063_v40, %v17288_v2  ;;  %v17059_v28 = vor.u32 %v19004_v1, %v17056_v52  ;;  %v17224_v56 = vld [vmem:[#allocation20 + $0x710] sm:$0xf0]  ;;  %v17726_v2 = vld [vmem:[#allocation20 + $0xae8] sm:$0xf] }
 0x74b   : > { %12054 = vmatmul.bf16.vlgmr.msrb.gmra.mxu2 %v20787_v53  ;;  %v16744_v53 = vld [vmem:[#allocation20 + $0x350] sm:$0xf0]  ;;  %11957 = vmatpush.bf16.msrb.mxu3 %v16547_v55  ;;  %v17198_v55 = vld [vmem:[#allocation20 + $0x6c8] sm:$0xf]  ;;  %v17227_v52 = vor.u32 %v19047_v10, %v17224_v56  ;;  %v19162_v10 = vld [vmem:[#allocation20 + $0xa94] sm:$0xf0] }
 0x74c   : > { %v16747_v14 = vor.u32 %v18927_v42, %v16744_v53  ;;  %v20906_v6 = vpop.f32.mrf.mxu3  ;;  %v17323_v42 = vor.u32 %v19071_v38, %v17320_v3  ;;  %v17199_v53 = vor.u32 %v19042_v29, %v17198_v55  ;;  %v19055_v38 = vld [vmem:[#allocation20 + $0x744] sm:$0xf]  ;;  %v17134_v3 = vld [vmem:[#allocation20 + $0x648] sm:$0xf]  ;;  %v19026_v55 = vld [vmem:[#allocation20 + $0x654] sm:$0xf0] }
 0x74d   : > { %11673 = vmatpush.bf16.msra.mxu1 %v16763_v63  ;;  %11816 = vmatpush.bf16.msrb.mxu0 %v16639_v20  ;;  %v19012_v63 = vld [vmem:[#allocation20 + $0x5ec] sm:$0xf]  ;;  %v17088_v20 = vld [vmem:[#allocation20 + $0x5f8] sm:$0xf0]  ;;  %v17848_v40 = vld [vmem:[#allocation20 + $0xbf0] sm:$0xf0] }
 0x74e   : > { %v20908_v25 = vpop.f32.mrf.mxu2 }
 0x74f   : > { %11958 = vmatpush.bf16.msrb.mxu3 %v16531_v51  ;;  %v17304_v51 = vld [vmem:[#allocation20 + $0x7b0] sm:$0xf0] }
 0x750   : > { %v17307_v18 = vor.u32 %v19067_v13, %v17304_v51  ;;  %v19022_v13 = vld [vmem:[#allocation20 + $0x634] sm:$0xf0]  ;;  %v18992_v51 = vld [vmem:[#allocation20 + $0x54c] sm:$0xf] }
 0x751   : > { %11674 = vmatpush.bf16.msra.mxu1 %v16747_v14  ;;  %11817 = vmatpush.bf16.msrb.mxu0 %v16623_v62  ;;  %v17091_v14 = vor.u32 %v19012_v63, %v17088_v20  ;;  %v11563_v37 = vpop.f32.mrf.mxu0  ;;  %v17135_v63 = vor.u32 %v19026_v55, %v17134_v3  ;;  %v19051_v20 = vld [vmem:[#allocation20 + $0x724] sm:$0xf] }
 0x752   : > { %v19018_v37 = vld [vmem:[#allocation20 + $0x614] sm:$0xf0] }
 0x753   : > { %11959 = vmatpush.bf16.msrb.mxu3 %v16515_v41  ;;  %v17183_v41 = vor.u32 %v19038_v35, %v17182_v60  ;;  %v17008_v60 = vld [vmem:[#allocation20 + $0x558] sm:$0xf0] }
 0x754   : > { %v11706_v62 = vpop.f32.mrf.mxu3 }
 0x755   : > { %11675 = vmatpush.bf16.msra.mxu1 %v16731_v0  ;;  %11818 = vmatpush.bf16.msrb.mxu0 %v16607_v22  ;;  %v17166_v0 = vld [vmem:[#allocation20 + $0x688] sm:$0xf]  ;;  %v19034_v22 = vld [vmem:[#allocation20 + $0x694] sm:$0xf0] }
 0x756   : > { %v11849_v39 = vpop.f32.mrf.mxu2  ;;  %v17167_v9 = vor.u32 %v19034_v22, %v17166_v0  ;;  %v19174_v0 = vld [vmem:[#allocation20 + $0xaf4] sm:$0xf0]  ;;  %v18988_v22 = vld [vmem:[#allocation20 + $0x52c] sm:$0xf] }
 0x757   : > { %11960 = vmatpush.bf16.msrb.mxu3 %v16499_v58  ;;  %v19059_v58 = vld [vmem:[#allocation20 + $0x764] sm:$0xf]  ;;  %v17102_v39 = vld [vmem:[#allocation20 + $0x608] sm:$0xf] }
 0x759   : > { %11676 = vmatpush.bf16.msra.mxu1 %v16715_v44  ;;  %11819 = vmatpush.bf16.msrb.mxu0 %v16591_v54  ;;  %v17040_v44 = vld [vmem:[#allocation20 + $0x598] sm:$0xf0]  ;;  %v20915_v54 = vpop.f32.mrf.mxu0 }
 0x75a   : > { %v17043_v29 = vor.u32 %v19000_v49, %v17040_v44  ;;  %v17710_v49 = vld [vmem:[#allocation20 + $0xac8] sm:$0xf]  ;;  %v19170_v44 = vld [vmem:[#allocation20 + $0xad4] sm:$0xf0] }
 0x75b   : > { %11961 = vmatpush.bf16.msrb.mxu3 %v16483_v26  ;;  %v17256_v26 = vld [vmem:[#allocation20 + $0x750] sm:$0xf0]  ;;  %v17711_v55 = vor.u32 %v19170_v44, %v17710_v49  ;;  %v17646_v44 = vld [vmem:[#allocation20 + $0xa48] sm:$0xf] }
 0x75c   : > { %11677 = vmatmul.bf16.vlgmr.msra.gmra.mxu1 %v20874_v59  ;;  %11820 = vmatmul.bf16.vlgmr.msrb.gmra.mxu0 %v20844_v19  ;;  %v17259_v5 = vor.u32 %v19055_v38, %v17256_v26  ;;  %v19140_v38 = vld [vmem:[#allocation20 + $0x9ec] sm:$0xf]  ;;  %v17600_v26 = vld [vmem:[#allocation20 + $0x9f8] sm:$0xf0]  ;;  %v17768_v49 = vld [vmem:[#allocation20 + $0xb50] sm:$0xf0] }
 0x75d   : > { %11721 = vmatpush.bf16.msrb.mxu1 %v17339_v50  ;;  %11864 = vmatpush.bf16.msra.mxu0 %v17215_v24  ;;  %v17275_v50 = vor.u32 %v19059_v58, %v17272_v45  ;;  %v17151_v24 = vor.u32 %v19030_v47, %v17150_v7  ;;  %v17727_v45 = vor.u32 %v19174_v0, %v17726_v2  ;;  %v19199_v7 = vld [vmem:[#allocation20 + $0xbc4] sm:$0xf]  ;;  %v17784_v2 = vld [vmem:[#allocation20 + $0xb70] sm:$0xf0]  ;;  %v17662_v0 = vld [vmem:[#allocation20 + $0xa68] sm:$0xf] }
 0x75f   : > { %11962 = vmatpush.bf16.msrb.mxu3 %v16467_v15 }
 0x761   : > { %11722 = vmatpush.bf16.msrb.mxu1 %v17323_v42  ;;  %11865 = vmatpush.bf16.msra.mxu0 %v17199_v53  ;;  %v17240_v42 = vld [vmem:[#allocation20 + $0x730] sm:$0xf0]  ;;  %v17118_v53 = vld [vmem:[#allocation20 + $0x628] sm:$0xf]  ;;  %v11615_v35 = vpop.f32.mrf.mxu0 }
 0x762   : > { %11963 = vmatmul.bf16.vlgmr.msrb.gmra.mxu3 %v20808_v4  ;;  %v18996_v4 = vld [vmem:[#allocation20 + $0x56c] sm:$0xf]  ;;  %v17119_v62 = vor.u32 %v19022_v13, %v17118_v53  ;;  %v17584_v13 = vld [vmem:[#allocation20 + $0x9d8] sm:$0xf0]  ;;  %v19191_v35 = vld [vmem:[#allocation20 + $0xb84] sm:$0xf] }
 0x763   : > { %12007 = vmatpush.bf16.msra.mxu3 %v17091_v14  ;;  %v17027_v15 = vor.u32 %v18996_v4, %v17024_v32  ;;  %v17243_v14 = vor.u32 %v19051_v20, %v17240_v42  ;;  %v17816_v32 = vld [vmem:[#allocation20 + $0xbb0] sm:$0xf0]  ;;  %v17603_v20 = vor.u32 %v19140_v38, %v17600_v26  ;;  %v19136_v53 = vld [vmem:[#allocation20 + $0x9cc] sm:$0xf]  ;;  %v17536_v38 = vld [vmem:[#allocation20 + $0x978] sm:$0xf0] }
 0x764   : > { %v17587_v56 = vor.u32 %v19136_v53, %v17584_v13  ;;  %v20927_v26 = vld [vmem:[#allocation21] sm:$0xf] }
 0x765   : > { %11723 = vmatpush.bf16.msrb.mxu1 %v17307_v18  ;;  %11866 = vmatpush.bf16.msra.mxu0 %v17183_v41  ;;  %v19203_v18 = vld [vmem:[#allocation20 + $0xbe4] sm:$0xf]  ;;  %v17011_v41 = vor.u32 %v18992_v51, %v17008_v60  ;;  %v20917_v1 = vpop.f32.mrf.mxu3 }
 0x766   : > { %v17851_v58 = vor.u32 %v19203_v18, %v17848_v40  ;;  %v19187_v40 = vld [vmem:[#allocation20 + $0xb64] sm:$0xf] }
 0x767   : > { %12008 = vmatpush.bf16.msra.mxu3 %v17075_v46  ;;  %v16992_v46 = vld [vmem:[#allocation20 + $0x538] sm:$0xf0] }
 0x768   : > { %v16995_v47 = vor.u32 %v18988_v22, %v16992_v46  ;;  %v19158_v22 = vld [vmem:[#allocation20 + $0xa74] sm:$0xf0] }
 0x769   : > { %11724 = vmatpush.bf16.msrb.mxu1 %v17291_v33  ;;  %11867 = vmatpush.bf16.msra.mxu0 %v17167_v9  ;;  %v17103_v33 = vor.u32 %v19018_v37, %v17102_v39  ;;  %v19132_v39 = vld [vmem:[#allocation20 + $0x9ac] sm:$0xf]  ;;  %v17568_v37 = vld [vmem:[#allocation20 + $0x9b8] sm:$0xf0] }
 0x76a   : > { %v17571_v46 = vor.u32 %v19132_v39, %v17568_v37  ;;  %v18950_v39 = vld [vmem:[#allocation20 + $0x3f4] sm:$0xf0]  ;;  %v18916_v37 = vld [vmem:[#allocation20 + $0x2ec] sm:$0xf] }
 0x76b   : > { %12009 = vmatpush.bf16.msra.mxu3 %v17059_v28  ;;  %v17832_v28 = vld [vmem:[#allocation20 + $0xbd0] sm:$0xf0] }
 0x76c   : > { %v17835_v3 = vor.u32 %v19199_v7, %v17832_v28  ;;  %v17663_v7 = vor.u32 %v19158_v22, %v17662_v0 }
 0x76d   : > { %11725 = vmatpush.bf16.msrb.mxu1 %v17275_v50  ;;  %11868 = vmatpush.bf16.msra.mxu0 %v17151_v24  ;;  %v18984_v50 = vld [vmem:[#allocation20 + $0x50c] sm:$0xf]  ;;  %v16976_v24 = vld [vmem:[#allocation20 + $0x518] sm:$0xf0]  ;;  %v11758_v42 = vpop.f32.mrf.mxu3 }
 0x76e   : > { %v20919_v9 = vpop.f32.mrf.mxu2  ;;  %v16979_v4 = vor.u32 %v18984_v50, %v16976_v24  ;;  %v19154_v50 = vld [vmem:[#allocation20 + $0xa54] sm:$0xf0]  ;;  %v19124_v24 = vld [vmem:[#allocation20 + $0x96c] sm:$0xf]  ;;  %v17520_v42 = vld [vmem:[#allocation20 + $0x958] sm:$0xf0] }
 0x76f   : > { %12010 = vmatpush.bf16.msra.mxu3 %v17043_v29  ;;  %v19195_v29 = vld [vmem:[#allocation20 + $0xba4] sm:$0xf] }
 0x770   : > { %v17819_v51 = vor.u32 %v19195_v29, %v17816_v32  ;;  %v17647_v29 = vor.u32 %v19154_v50, %v17646_v44  ;;  %v17752_v32 = vld [vmem:[#allocation20 + $0xb30] sm:$0xf0]  ;;  %v19112_v44 = vld [vmem:[#allocation20 + $0x90c] sm:$0xf]  ;;  %v17488_v50 = vld [vmem:[#allocation20 + $0x918] sm:$0xf0] }
 0x771   : > { %11726 = vmatpush.bf16.msrb.mxu1 %v17259_v5  ;;  %11869 = vmatpush.bf16.msra.mxu0 %v17135_v63  ;;  %v17694_v5 = vld [vmem:[#allocation20 + $0xaa8] sm:$0xf]  ;;  %v19166_v63 = vld [vmem:[#allocation20 + $0xab4] sm:$0xf0] }
 0x772   : > { %v17695_v60 = vor.u32 %v19166_v63, %v17694_v5  ;;  %v17630_v5 = vld [vmem:[#allocation20 + $0xa28] sm:$0xf]  ;;  %v17539_v63 = vor.u32 %v19124_v24, %v17536_v38 }
 0x773   : > { %12011 = vmatpush.bf16.msra.mxu3 %v17027_v15  ;;  %v16798_v38 = vld [vmem:[#allocation20 + $0x3a8] sm:$0xf] }
 0x775   : > { %11727 = vmatpush.bf16.msrb.mxu1 %v17243_v14  ;;  %11870 = vmatpush.bf16.msra.mxu0 %v17119_v62  ;;  %v17800_v14 = vld [vmem:[#allocation20 + $0xb90] sm:$0xf0]  ;;  %v17678_v62 = vld [vmem:[#allocation20 + $0xa88] sm:$0xf] }
 0x776   : > { %v11901_v15 = vpop.f32.mrf.mxu2  ;;  %v17803_v18 = vor.u32 %v19191_v35, %v17800_v14  ;;  %v17736_v35 = vld [vmem:[#allocation20 + $0xb10] sm:$0xf0]  ;;  %v17614_v14 = vld [vmem:[#allocation20 + $0xa08] sm:$0xf] }
 0x777   : > { %12012 = vmatpush.bf16.msra.mxu3 %v17011_v41  ;;  %v17679_v41 = vor.u32 %v19162_v10, %v17678_v62  ;;  %v19146_v62 = vld [vmem:[#allocation20 + $0xa14] sm:$0xf0]  ;;  %v16830_v10 = vld [vmem:[#allocation20 + $0x3e8] sm:$0xf] }
 0x779   : > { %11728 = vmatpush.bf16.msrb.mxu1 %v17227_v52  ;;  %11871 = vmatpush.bf16.msra.mxu0 %v17103_v33  ;;  %v19128_v52 = vld [vmem:[#allocation20 + $0x98c] sm:$0xf]  ;;  %v17552_v33 = vld [vmem:[#allocation20 + $0x998] sm:$0xf0] }
 0x77b   : > { %12013 = vmatpush.bf16.msra.mxu3 %v16995_v47  ;;  %v19183_v47 = vld [vmem:[#allocation20 + $0xb44] sm:$0xf] }
 0x77c   : > { %11729 = vmatmul.bf16.vlgmr.msrb.gmra.mxu1 %v20884_v11  ;;  %11872 = vmatmul.bf16.vlgmr.msra.gmra.mxu0 %v20849_v23 }
 0x77d   : > { %11773 = vmatpush.bf16.msra.mxu1 %v17851_v58  ;;  %11916 = vmatpush.bf16.msrb.mxu0 %v17727_v45  ;;  %v11665_v58 = vpop.f32.mrf.mxu0  ;;  %v17787_v45 = vor.u32 %v19187_v40, %v17784_v2  ;;  %v19116_v40 = vld [vmem:[#allocation20 + $0x92c] sm:$0xf]  ;;  %v17504_v2 = vld [vmem:[#allocation20 + $0x938] sm:$0xf0] }
 0x77e   : > { %v20925_v28 = vadd.f32 %v11665_v58, %v20899_v27  ;;  %v19150_v27 = vld [vmem:[#allocation20 + $0xa34] sm:$0xf0]  ;;  %v16814_v58 = vld [vmem:[#allocation20 + $0x3c8] sm:$0xf] }
 0x77f   : > { %12014 = vmatpush.bf16.msra.mxu3 %v16979_v4  ;;  %v19179_v4 = vld [vmem:[#allocation20 + $0xb24] sm:$0xf] }
 0x780   : > { %v17755_v15 = vor.u32 %v19179_v4, %v17752_v32  ;;  %v16672_v4 = vld [vmem:[#allocation20 + $0x2b8] sm:$0xf0] }
 0x781   : > { %11774 = vmatpush.bf16.msra.mxu1 %v17835_v3  ;;  %11917 = vmatpush.bf16.msrb.mxu0 %v17711_v55  ;;  %v11468_v3 = vperm.slane %v20927_v26, 2  ;;  %v17771_v55 = vor.u32 %v19183_v47, %v17768_v49  ;;  %v18912_v47 = vld [vmem:[#allocation20 + $0x2cc] sm:$0xf]  ;;  %v16688_v49 = vld [vmem:[#allocation20 + $0x2d8] sm:$0xf0] }
 0x782   : > { %12015 = vmatmul.bf16.vlgmr.msra.gmra.mxu3 %v20816_v61  ;;  %v17555_v61 = vor.u32 %v19128_v52, %v17552_v33  ;;  %v16831_v52 = vor.u32 %v18950_v39, %v16830_v10  ;;  %v16691_v24 = vor.u32 %v18912_v47, %v16688_v49  ;;  %v18900_v10 = vld [vmem:[#allocation20 + $0x26c] sm:$0xf] }
 0x783   : > { %12059 = vmatpush.bf16.msrb.mxu3 %v17603_v20  ;;  %v19120_v20 = vld [vmem:[#allocation20 + $0x94c] sm:$0xf]  ;;  %v11796_v13 = vadd.f32 %v20895_v12, %v11468_v3  ;;  %v17491_v3 = vor.u32 %v19112_v44, %v17488_v50 }
 0x785   : > { %11775 = vmatpush.bf16.msra.mxu1 %v17819_v51  ;;  %11918 = vmatpush.bf16.msrb.mxu0 %v17695_v60  ;;  %v11667_v53 = vpop.f32.mrf.mxu0  ;;  %v17631_v51 = vor.u32 %v19150_v27, %v17630_v5  ;;  %v19175_v60 = vld [vmem:[#allocation20 + $0xb04] sm:$0xf] }
 0x786   : > { %v17739_v22 = vor.u32 %v19175_v60, %v17736_v35  ;;  %v18904_v53 = vld [vmem:[#allocation20 + $0x28c] sm:$0xf]  ;;  %v16766_v35 = vld [vmem:[#allocation20 + $0x368] sm:$0xf] }
 0x787   : > { %12060 = vmatpush.bf16.msrb.mxu3 %v17587_v56  ;;  %v17523_v56 = vor.u32 %v19120_v20, %v17520_v42  ;;  %v16782_v20 = vld [vmem:[#allocation20 + $0x388] sm:$0xf]  ;;  %v18938_v42 = vld [vmem:[#allocation20 + $0x394] sm:$0xf0] }
 0x789   : > { %11776 = vmatpush.bf16.msra.mxu1 %v17803_v18  ;;  %11919 = vmatpush.bf16.msrb.mxu0 %v17679_v41  ;;  %v16704_v18 = vld [vmem:[#allocation20 + $0x2f8] sm:$0xf0]  ;;  %v11808_v41 = vpop.f32.mrf.mxu3 }
 0x78a   : > { %v20933_v0 = vadd.f32 %v11808_v41, %v11796_v13  ;;  %v16707_v33 = vor.u32 %v18916_v37, %v16704_v18  ;;  %v16656_v13 = vld [vmem:[#allocation20 + $0x298] sm:$0xf0]  ;;  %v16750_v41 = vld [vmem:[#allocation20 + $0x348] sm:$0xf] }
 0x78b   : > { %12061 = vmatpush.bf16.msrb.mxu3 %v17571_v46  ;;  %v17615_v46 = vor.u32 %v19146_v62, %v17614_v14  ;;  %v16659_v60 = vor.u32 %v18904_v53, %v16656_v13  ;;  %v18934_v62 = vld [vmem:[#allocation20 + $0x374] sm:$0xf0] }
 0x78c   : > { %v16767_v37 = vor.u32 %v18934_v62, %v16766_v35  ;;  %v17200_v35 = vld [vmem:[#allocation20 + $0x6d8] sm:$0xf0]  ;;  %v17310_v62 = vld [vmem:[#allocation20 + $0x7a8] sm:$0xf] }
 0x78d   : > { %11777 = vmatpush.bf16.msra.mxu1 %v17787_v45  ;;  %11920 = vmatpush.bf16.msrb.mxu0 %v17663_v7  ;;  %v17507_v45 = vor.u32 %v19116_v40, %v17504_v2  ;;  %v18946_v7 = vld [vmem:[#allocation20 + $0x3d4] sm:$0xf0]  ;;  %v18896_v2 = vld [vmem:[#allocation20 + $0x24c] sm:$0xf] }
 0x78e   : > { %v20931_v12 = vpop.f32.mrf.mxu2  ;;  %v18930_v40 = vld [vmem:[#allocation20 + $0x354] sm:$0xf0] }
 0x78f   : > { %12062 = vmatpush.bf16.msrb.mxu3 %v17555_v61  ;;  %v16815_v61 = vor.u32 %v18946_v7, %v16814_v58  ;;  %v18926_v58 = vld [vmem:[#allocation20 + $0x334] sm:$0xf0]  ;;  %v16608_v7 = vld [vmem:[#allocation20 + $0x238] sm:$0xf0] }
 0x791   : > { %11778 = vmatpush.bf16.msra.mxu1 %v17771_v55  ;;  %11921 = vmatpush.bf16.msrb.mxu0 %v17647_v29  ;;  %v18942_v55 = vld [vmem:[#allocation20 + $0x3b4] sm:$0xf0]  ;;  %v18908_v29 = vld [vmem:[#allocation20 + $0x2ac] sm:$0xf]  ;;  %v11810_v32 = vpop.f32.mrf.mxu3 }
 0x792   : > { %v16799_v27 = vor.u32 %v18942_v55, %v16798_v38  ;;  %v18888_v38 = vld [vmem:[#allocation20 + $0x20c] sm:$0xf]  ;;  %v19078_v55 = vld [vmem:[#allocation20 + $0x7f4] sm:$0xf0] }
 0x793   : > { %12063 = vmatpush.bf16.msrb.mxu3 %v17539_v63  ;;  %v16675_v63 = vor.u32 %v18908_v29, %v16672_v4  ;;  %v19044_v29 = vld [vmem:[#allocation20 + $0x6ec] sm:$0xf]  ;;  %v17216_v4 = vld [vmem:[#allocation20 + $0x6f8] sm:$0xf0] }
 0x794   : > { %v17219_v13 = vor.u32 %v19044_v29, %v17216_v4  ;;  %v17136_v29 = vld [vmem:[#allocation20 + $0x658] sm:$0xf0] }
 0x795   : > { %11779 = vmatpush.bf16.msra.mxu1 %v17755_v15  ;;  %11922 = vmatpush.bf16.msrb.mxu0 %v17631_v51  ;;  %v16783_v51 = vor.u32 %v18938_v42, %v16782_v20 }
 0x796   : > { %v11953_v5 = vpop.f32.mrf.mxu2 }
 0x797   : > { %12064 = vmatpush.bf16.msrb.mxu3 %v17523_v56  ;;  %v16640_v56 = vld [vmem:[#allocation20 + $0x278] sm:$0xf0] }
 0x798   : > { %v16643_v18 = vor.u32 %v18900_v10, %v16640_v56  ;;  %v19070_v10 = vld [vmem:[#allocation20 + $0x7b4] sm:$0xf0]  ;;  %v19036_v56 = vld [vmem:[#allocation20 + $0x6ac] sm:$0xf] }
 0x799   : > { %11780 = vmatpush.bf16.msra.mxu1 %v17739_v22  ;;  %11923 = vmatpush.bf16.msrb.mxu0 %v17615_v46  ;;  %v11522_v15 = vpop.f32.mrf.mxu1  ;;  %v16624_v22 = vld [vmem:[#allocation20 + $0x258] sm:$0xf0] }
 0x79a   : > { %v11523_v14 = vadd.f32 %v11522_v15, %v20904_v57  ;;  %v16627_v57 = vor.u32 %v18896_v2, %v16624_v22  ;;  %v17326_v15 = vld [vmem:[#allocation20 + $0x7c8] sm:$0xf]  ;;  %v17311_v22 = vor.u32 %v19070_v10, %v17310_v62  ;;  %v19206_v62 = vld [vmem:[#allocation20 + $0xbf4] sm:$0xf0]  ;;  %v19172_v10 = vld [vmem:[#allocation20 + $0xaec] sm:$0xf] }
 0x79b   : > { %12065 = vmatpush.bf16.msrb.mxu3 %v17507_v45  ;;  %v20939_v39 = vpop.f32.mrf.mxu0  ;;  %v18892_v45 = vld [vmem:[#allocation20 + $0x22c] sm:$0xf] }
 0x79c   : > { %11781 = vmatmul.bf16.vlgmr.msra.gmra.mxu1 %v20892_v8  ;;  %11924 = vmatmul.bf16.vlgmr.msrb.gmra.mxu0 %v20854_v43  ;;  %v11536_v46 = vadd.f32 %v20858_v48, %v11523_v14  ;;  %v16611_v50 = vor.u32 %v18892_v45, %v16608_v7  ;;  %v16592_v48 = vld [vmem:[#allocation20 + $0x218] sm:$0xf0]  ;;  %v17278_v7 = vld [vmem:[#allocation20 + $0x768] sm:$0xf] }
 0x79d   : > { %11825 = vmatpush.bf16.msrb.mxu1 %v16831_v52  ;;  %11968 = vmatpush.bf16.msra.mxu0 %v16707_v33  ;;  %v16751_v52 = vor.u32 %v18930_v40, %v16750_v41  ;;  %v16734_v33 = vld [vmem:[#allocation20 + $0x328] sm:$0xf] }
 0x79e   : > { %v11549_v47 = vadd.f32 %v20879_v17, %v11536_v46  ;;  %v16735_v44 = vor.u32 %v18926_v58, %v16734_v33  ;;  %v17168_v33 = vld [vmem:[#allocation20 + $0x698] sm:$0xf0] }
 0x79f   : > { %12066 = vmatpush.bf16.msrb.mxu3 %v17491_v3  ;;  %v17342_v3 = vld [vmem:[#allocation20 + $0x7e8] sm:$0xf] }
 0x7a0   : > { %v11562_v32 = vadd.f32 %v20910_v21, %v11549_v47  ;;  %v17343_v53 = vor.u32 %v19078_v55, %v17342_v3  ;;  %v19062_v47 = vld [vmem:[#allocation20 + $0x774] sm:$0xf0]  ;;  %v19024_v55 = vld [vmem:[#allocation20 + $0x64c] sm:$0xf] }
 0x7a1   : > { %11826 = vmatpush.bf16.msrb.mxu1 %v16815_v61  ;;  %11969 = vmatpush.bf16.msra.mxu0 %v16691_v24  ;;  %v16718_v61 = vld [vmem:[#allocation20 + $0x308] sm:$0xf]  ;;  %v18922_v24 = vld [vmem:[#allocation20 + $0x314] sm:$0xf0] }
 0x7a2   : > { %12067 = vmatmul.bf16.vlgmr.msrb.gmra.mxu3 %v20823_v30  ;;  %v11524_v30 = vpop.f32.mrf.mxu1 }
 0x7a3   : > { %v11719_v49 = vpop.f32.mrf.mxu0  ;;  %v17294_v30 = vld [vmem:[#allocation20 + $0x788] sm:$0xf] }
 0x7a4   : > { %v17152_v49 = vld [vmem:[#allocation20 + $0x678] sm:$0xf0] }
 0x7a5   : > { %11827 = vmatpush.bf16.msrb.mxu1 %v16799_v27  ;;  %11970 = vmatpush.bf16.msra.mxu0 %v16675_v63  ;;  %v16719_v27 = vor.u32 %v18922_v24, %v16718_v61  ;;  %v16595_v63 = vor.u32 %v18888_v38, %v16592_v48  ;;  %v20946_v42 = vpop.f32.mrf.mxu3  ;;  %v17279_v24 = vor.u32 %v19062_v47, %v17278_v7  ;;  %v17262_v48 = vld [vmem:[#allocation20 + $0x748] sm:$0xf]  ;;  %v19164_v7 = vld [vmem:[#allocation20 + $0xaac] sm:$0xf]  ;;  %v17696_v47 = vld [vmem:[#allocation20 + $0xab8] sm:$0xf0] }
 0x7a9   : > { %11828 = vmatpush.bf16.msrb.mxu1 %v16783_v51  ;;  %11971 = vmatpush.bf16.msra.mxu0 %v16659_v60  ;;  %v19074_v51 = vld [vmem:[#allocation20 + $0x7d4] sm:$0xf0]  ;;  %v19040_v60 = vld [vmem:[#allocation20 + $0x6cc] sm:$0xf] }
 0x7aa   : > { %v11574_v17 = vpop.f32.mrf.mxu1  ;;  %v17327_v21 = vor.u32 %v19074_v51, %v17326_v15  ;;  %v17203_v14 = vor.u32 %v19040_v60, %v17200_v35  ;;  %v17230_v15 = vld [vmem:[#allocation20 + $0x708] sm:$0xf]  ;;  %v19050_v51 = vld [vmem:[#allocation20 + $0x714] sm:$0xf0]  ;;  %v19016_v35 = vld [vmem:[#allocation20 + $0x60c] sm:$0xf] }
 0x7ab   : > { %v11575_v20 = vadd.f32 %v11574_v17, %v11562_v32  ;;  %v17139_v32 = vor.u32 %v19024_v55, %v17136_v29  ;;  %v17246_v17 = vld [vmem:[#allocation20 + $0x728] sm:$0xf] }
 0x7ad   : > { %11829 = vmatpush.bf16.msrb.mxu1 %v16767_v37  ;;  %11972 = vmatpush.bf16.msra.mxu0 %v16643_v18  ;;  %v17184_v37 = vld [vmem:[#allocation20 + $0x6b8] sm:$0xf0]  ;;  %v11588_v18 = vadd.f32 %v20861_v36, %v11575_v20  ;;  %v11862_v2 = vpop.f32.mrf.mxu3 }
 0x7ae   : > { %v20944_v5 = vpop.f32.mrf.mxu2  ;;  %v17187_v46 = vor.u32 %v19036_v56, %v17184_v37  ;;  %v17728_v56 = vld [vmem:[#allocation20 + $0xaf8] sm:$0xf0] }
 0x7af   : > { %v11601_v58 = vadd.f32 %v20889_v34, %v11588_v18  ;;  %v19058_v34 = vld [vmem:[#allocation20 + $0x754] sm:$0xf0] }
 0x7b0   : > { %v17263_v4 = vor.u32 %v19058_v34, %v17262_v48  ;;  %v19160_v48 = vld [vmem:[#allocation20 + $0xa8c] sm:$0xf]  ;;  %v17680_v34 = vld [vmem:[#allocation20 + $0xa98] sm:$0xf0] }
 0x7b1   : > { %11830 = vmatpush.bf16.msrb.mxu1 %v16751_v52  ;;  %11973 = vmatpush.bf16.msra.mxu0 %v16627_v57  ;;  %v19066_v52 = vld [vmem:[#allocation20 + $0x794] sm:$0xf0]  ;;  %v19032_v57 = vld [vmem:[#allocation20 + $0x68c] sm:$0xf]  ;;  %v17683_v29 = vor.u32 %v19160_v48, %v17680_v34 }
 0x7b2   : > { %v11576_v40 = vpop.f32.mrf.mxu1  ;;  %v17295_v36 = vor.u32 %v19066_v52, %v17294_v30  ;;  %v17171_v45 = vor.u32 %v19032_v57, %v17168_v33  ;;  %v19202_v30 = vld [vmem:[#allocation20 + $0xbd4] sm:$0xf0]  ;;  %v19168_v52 = vld [vmem:[#allocation20 + $0xacc] sm:$0xf]  ;;  %v17712_v57 = vld [vmem:[#allocation20 + $0xad8] sm:$0xf0] }
 0x7b3   : > { %v18936_v34 = vld [vmem:[#allocation20 + $0x38c] sm:$0xf] }
 0x7b5   : > { %11831 = vmatpush.bf16.msrb.mxu1 %v16735_v44  ;;  %11974 = vmatpush.bf16.msra.mxu0 %v16611_v50  ;;  %v11614_v44 = vadd.f32 %v20915_v54, %v11601_v58  ;;  %v19020_v54 = vld [vmem:[#allocation20 + $0x62c] sm:$0xf]  ;;  %v17715_v58 = vor.u32 %v19168_v52, %v17712_v57  ;;  %v17742_v52 = vld [vmem:[#allocation20 + $0xb08] sm:$0xf]  ;;  %v19178_v57 = vld [vmem:[#allocation20 + $0xb14] sm:$0xf0] }
 0x7b6   : > { %v12005_v41 = vpop.f32.mrf.mxu2 }
 0x7b7   : > { %v17231_v41 = vor.u32 %v19050_v51, %v17230_v15  ;;  %v17774_v15 = vld [vmem:[#allocation20 + $0xb48] sm:$0xf]  ;;  %v19186_v51 = vld [vmem:[#allocation20 + $0xb54] sm:$0xf0] }
 0x7b9   : > { %11832 = vmatpush.bf16.msrb.mxu1 %v16719_v27  ;;  %11975 = vmatpush.bf16.msra.mxu0 %v16595_v63  ;;  %v19054_v27 = vld [vmem:[#allocation20 + $0x734] sm:$0xf0]  ;;  %v17120_v63 = vld [vmem:[#allocation20 + $0x638] sm:$0xf0] }
 0x7ba   : > { %v11626_v50 = vpop.f32.mrf.mxu1 }
 0x7bb   : > { %v20953_v61 = vadd.f32 %v11626_v50, %v11614_v44  ;;  %v20955_v3 = vpop.f32.mrf.mxu0  ;;  %v17699_v50 = vor.u32 %v19164_v7, %v17696_v47 }
 0x7bc   : > { %11833 = vmatmul.bf16.vlgmr.msrb.gmra.mxu1 %v20874_v59  ;;  %11976 = vmatmul.bf16.vlgmr.msra.gmra.mxu0 %v20844_v19  ;;  %v19028_v19 = vld [vmem:[#allocation20 + $0x66c] sm:$0xf] }
 0x7bd   : > { %11877 = vmatpush.bf16.msra.mxu1 %v17343_v53  ;;  %12020 = vmatpush.bf16.msrb.mxu0 %v17219_v13  ;;  %v17155_v38 = vor.u32 %v19028_v19, %v17152_v49  ;;  %v17247_v53 = vor.u32 %v19054_v27, %v17246_v17  ;;  %v17123_v13 = vor.u32 %v19020_v54, %v17120_v63  ;;  %v19156_v17 = vld [vmem:[#allocation20 + $0xa6c] sm:$0xf]  ;;  %v17664_v27 = vld [vmem:[#allocation20 + $0xa78] sm:$0xf0]  ;;  %vm12098_vm2 = vcmp.gt.f32.partialorder %v20953_v61, 0.0 }
 0x7c1   : > { %11878 = vmatpush.bf16.msra.mxu1 %v17327_v21  ;;  %12021 = vmatpush.bf16.msrb.mxu0 %v17203_v14  ;;  %v17104_v21 = vld [vmem:[#allocation20 + $0x618] sm:$0xf0]  ;;  %v17854_v14 = vld [vmem:[#allocation20 + $0xbe8] sm:$0xf] }
 0x7c2   : > { %v11628_v20 = vpop.f32.mrf.mxu1  ;;  %v17107_v40 = vor.u32 %v19016_v35, %v17104_v21  ;;  %v17855_v2 = vor.u32 %v19206_v62, %v17854_v14  ;;  %v17648_v35 = vld [vmem:[#allocation20 + $0xa58] sm:$0xf0]  ;;  %v17775_v14 = vor.u32 %v19186_v51, %v17774_v15  ;;  %v18924_v51 = vld [vmem:[#allocation20 + $0x32c] sm:$0xf] }
 0x7c3   : > { %v11771_v60 = vpop.f32.mrf.mxu0 }
 0x7c4   : > { %v19152_v60 = vld [vmem:[#allocation20 + $0xa4c] sm:$0xf] }
 0x7c5   : > { %11879 = vmatpush.bf16.msra.mxu1 %v17311_v22  ;;  %12022 = vmatpush.bf16.msrb.mxu0 %v17187_v46  ;;  %v20959_v18 = vpop.f32.mrf.mxu3  ;;  %v17731_v22 = vor.u32 %v19172_v10, %v17728_v56  ;;  %v17838_v46 = vld [vmem:[#allocation20 + $0xbc8] sm:$0xf]  ;;  %v17651_v62 = vor.u32 %v19152_v60, %v17648_v35  ;;  %v16736_v60 = vld [vmem:[#allocation20 + $0x338] sm:$0xf0] }
 0x7c6   : > { %v17839_v33 = vor.u32 %v19202_v30, %v17838_v46  ;;  %v17758_v10 = vld [vmem:[#allocation20 + $0xb28] sm:$0xf] }
 0x7c9   : > { %11880 = vmatpush.bf16.msra.mxu1 %v17295_v36  ;;  %12023 = vmatpush.bf16.msrb.mxu0 %v17171_v45  ;;  %v17822_v36 = vld [vmem:[#allocation20 + $0xba8] sm:$0xf]  ;;  %v19198_v45 = vld [vmem:[#allocation20 + $0xbb4] sm:$0xf0] }
 0x7ca   : > { %v17823_v44 = vor.u32 %v19198_v45, %v17822_v36  ;;  %v18948_v36 = vld [vmem:[#allocation20 + $0x3ec] sm:$0xf]  ;;  %v16832_v45 = vld [vmem:[#allocation20 + $0x3f8] sm:$0xf0] }
 0x7cd   : > { %11881 = vmatpush.bf16.msra.mxu1 %v17279_v24  ;;  %12024 = vmatpush.bf16.msrb.mxu0 %v17155_v38  ;;  %v11914_v49 = vpop.f32.mrf.mxu3  ;;  %v17806_v24 = vld [vmem:[#allocation20 + $0xb88] sm:$0xf]  ;;  %v19194_v38 = vld [vmem:[#allocation20 + $0xb94] sm:$0xf0] }
 0x7ce   : > { %v20957_v37 = vpop.f32.mrf.mxu2  ;;  %v17807_v55 = vor.u32 %v19194_v38, %v17806_v24  ;;  %v18944_v49 = vld [vmem:[#allocation20 + $0x3cc] sm:$0xf]  ;;  %v16800_v38 = vld [vmem:[#allocation20 + $0x3b8] sm:$0xf0] }
 0x7cf   : > { %v18940_v24 = vld [vmem:[#allocation20 + $0x3ac] sm:$0xf] }
 0x7d0   : > { %v16803_v48 = vor.u32 %v18940_v24, %v16800_v38  ;;  %v20995_v38 = vld [vmem:[#allocation23] sm:$0xf] }
 0x7d1   : > { %11882 = vmatpush.bf16.msra.mxu1 %v17263_v4  ;;  %12025 = vmatpush.bf16.msrb.mxu0 %v17139_v32  ;;  %v17790_v4 = vld [vmem:[#allocation20 + $0xb68] sm:$0xf]  ;;  %v19190_v32 = vld [vmem:[#allocation20 + $0xb74] sm:$0xf0] }
 0x7d2   : > { %v17791_v63 = vor.u32 %v19190_v32, %v17790_v4  ;;  %v18932_v4 = vld [vmem:[#allocation20 + $0x36c] sm:$0xf]  ;;  %v16768_v32 = vld [vmem:[#allocation20 + $0x378] sm:$0xf0] }
 0x7d5   : > { %11883 = vmatpush.bf16.msra.mxu1 %v17247_v53  ;;  %12026 = vmatpush.bf16.msrb.mxu0 %v17123_v13  ;;  %v17667_v13 = vor.u32 %v19156_v17, %v17664_v27 }
 0x7d6   : > { %v12057_v19 = vpop.f32.mrf.mxu2 }
 0x7d7   : > { %v16835_v19 = vor.u32 %v18948_v36, %v16832_v45 }
 0x7d9   : > { %11884 = vmatpush.bf16.msra.mxu1 %v17231_v41  ;;  %12027 = vmatpush.bf16.msrb.mxu0 %v17107_v40  ;;  %v11678_v54 = vpop.f32.mrf.mxu1  ;;  %v19148_v41 = vld [vmem:[#allocation20 + $0xa2c] sm:$0xf] }
 0x7da   : > { %v11679_v20 = vadd.f32 %v11678_v54, %v20925_v28  ;;  %v19182_v28 = vld [vmem:[#allocation20 + $0xb34] sm:$0xf0] }
 0x7db   : > { %v17759_v30 = vor.u32 %v19182_v28, %v17758_v10  ;;  %v18920_v10 = vld [vmem:[#allocation20 + $0x30c] sm:$0xf] }
 0x7dc   : > { %11885 = vmatmul.bf16.vlgmr.msra.gmra.mxu1 %v20884_v11  ;;  %12028 = vmatmul.bf16.vlgmr.msrb.gmra.mxu0 %v20849_v23  ;;  %v11821_v23 = vpop.f32.mrf.mxu0  ;;  %v11692_v21 = vadd.f32 %v20876_v31, %v11679_v20  ;;  %v16752_v20 = vld [vmem:[#allocation20 + $0x358] sm:$0xf0]  ;;  %v19076_v28 = vld [vmem:[#allocation20 + $0x7ec] sm:$0xf] }
 0x7dd   : > { %11929 = vmatpush.bf16.msrb.mxu1 %v17855_v2  ;;  %12072 = vmatpush.bf16.msra.mxu0 %v17731_v22  ;;  %v20965_v53 = vadd.f32 %v11821_v23, %v20933_v0  ;;  %v17632_v0 = vld [vmem:[#allocation20 + $0xa38] sm:$0xf0]  ;;  %v11469_v2 = vperm.slane %v20927_v26, 3  ;;  %v16771_v23 = vor.u32 %v18932_v4, %v16768_v32  ;;  %v12142_v4 = vperm.slane %v20995_v38, 0 }
 0x7de   : > { %v11705_v56 = vadd.f32 %v20906_v6, %v11692_v21  ;;  %v17635_v31 = vor.u32 %v19148_v41, %v17632_v0  ;;  %v17344_v41 = vld [vmem:[#allocation20 + $0x7f8] sm:$0xf0] }
 0x7df   : > { %v11952_v6 = vadd.f32 %v20931_v12, %v11469_v2  ;;  %v19072_v2 = vld [vmem:[#allocation20 + $0x7cc] sm:$0xf] }
 0x7e0   : > { %v11718_v40 = vadd.f32 %v20939_v39, %v11705_v56  ;;  %v17743_v39 = vor.u32 %v19178_v57, %v17742_v52  ;;  %v16720_v56 = vld [vmem:[#allocation20 + $0x318] sm:$0xf0]  ;;  %v20985_v52 = vld [vmem:[#allocation21 + $0x4] sm:$0xf] }
 0x7e1   : > { %11930 = vmatpush.bf16.msrb.mxu1 %v17839_v33  ;;  %12073 = vmatpush.bf16.msra.mxu0 %v17715_v58  ;;  %v11680_v22 = vpop.f32.mrf.mxu1  ;;  %v19144_v33 = vld [vmem:[#allocation20 + $0xa0c] sm:$0xf]  ;;  %v17616_v58 = vld [vmem:[#allocation20 + $0xa18] sm:$0xf0]  ;;  %v12113_v36 = vperm.slane %v20985_v52, 0 }
 0x7e2   : > { %v17619_v47 = vor.u32 %v19144_v33, %v17616_v58  ;;  %v17328_v22 = vld [vmem:[#allocation20 + $0x7d8] sm:$0xf0]  ;;  %v19064_v33 = vld [vmem:[#allocation20 + $0x78c] sm:$0xf] }
 0x7e3   : > { %v17296_v58 = vld [vmem:[#allocation20 + $0x798] sm:$0xf0] }
 0x7e4   : > { %v11823_v46 = vpop.f32.mrf.mxu0 }
 0x7e5   : > { %11931 = vmatpush.bf16.msrb.mxu1 %v17823_v44  ;;  %12074 = vmatpush.bf16.msra.mxu0 %v17699_v50  ;;  %v11964_v7 = vpop.f32.mrf.mxu3  ;;  %v16816_v44 = vld [vmem:[#allocation20 + $0x3d8] sm:$0xf0]  ;;  %v19068_v46 = vld [vmem:[#allocation20 + $0x7ac] sm:$0xf] }
 0x7e6   : > { %v20972_v26 = vadd.f32 %v11964_v7, %v11952_v6  ;;  %v16819_v50 = vor.u32 %v18944_v49, %v16816_v44  ;;  %v20990_v6 = vld [vmem:[#allocation21 + $0x8] sm:$0xf]  ;;  %v17299_v7 = vor.u32 %v19064_v33, %v17296_v58  ;;  %v19192_v33 = vld [vmem:[#allocation20 + $0xb8c] sm:$0xf]  ;;  %v17808_v58 = vld [vmem:[#allocation20 + $0xb98] sm:$0xf0] }
 0x7e9   : > { %11932 = vmatpush.bf16.msrb.mxu1 %v17807_v55  ;;  %12075 = vmatpush.bf16.msra.mxu0 %v17683_v29  ;;  %v16784_v55 = vld [vmem:[#allocation20 + $0x398] sm:$0xf0] }
 0x7ea   : > { %v16787_v29 = vor.u32 %v18936_v34, %v16784_v55 }
 0x7ed   : > { %11933 = vmatpush.bf16.msrb.mxu1 %v17791_v63  ;;  %12076 = vmatpush.bf16.msra.mxu0 %v17667_v13  ;;  %v11966_v12 = vpop.f32.mrf.mxu3  ;;  %v18928_v63 = vld [vmem:[#allocation20 + $0x34c] sm:$0xf] }
 0x7ee   : > { %v12114_v12 = vperm.slane %v20985_v52, 1 }
 0x7f1   : > { %11934 = vmatpush.bf16.msrb.mxu1 %v17775_v14  ;;  %12077 = vmatpush.bf16.msra.mxu0 %v17651_v62  ;;  %v16739_v62 = vor.u32 %v18924_v51, %v16736_v60 }
 0x7f5   : > { %11935 = vmatpush.bf16.msrb.mxu1 %v17759_v30  ;;  %12078 = vmatpush.bf16.msra.mxu0 %v17635_v31  ;;  %v12102_v31 = vmul.f32 0.2, %v20953_v61 }
 0x7f7   : > { %v12106_v45 = vsel %vm12098_vm2, %v20953_v61, %v12102_v31  ;;  %v19056_v61 = vld [vmem:[#allocation20 + $0x74c] sm:$0xf] }
 0x7f9   : > { %11936 = vmatpush.bf16.msrb.mxu1 %v17743_v39  ;;  %12079 = vmatpush.bf16.msra.mxu0 %v17619_v47  ;;  %v11730_v17 = vpop.f32.mrf.mxu1  ;;  %v20976_v27 = vpop.f32.mrf.mxu0  ;;  %v17280_v39 = vld [vmem:[#allocation20 + $0x778] sm:$0xf0]  ;;  %v12121_v47 = vmul.f32 %v12113_v36, %v12106_v45  ;;  %v17811_v36 = vor.u32 %v19192_v33, %v17808_v58  ;;  %v19188_v45 = vld [vmem:[#allocation20 + $0xb6c] sm:$0xf] }
 0x7fa   : > { %v11731_v54 = vadd.f32 %v11730_v17, %v11718_v40  ;;  %v17347_v40 = vor.u32 %v19076_v28, %v17344_v41 }
 0x7fc   : > { %11937 = vmatmul.bf16.vlgmr.msrb.gmra.mxu1 %v20892_v8  ;;  %12080 = vmatmul.bf16.vlgmr.msra.gmra.mxu0 %v20854_v43  ;;  %v11744_v13 = vadd.f32 %v20886_v16, %v11731_v54  ;;  %v16755_v43 = vor.u32 %v18928_v63, %v16752_v20  ;;  %v16723_v16 = vor.u32 %v18920_v10, %v16720_v56  ;;  %v17248_v63 = vld [vmem:[#allocation20 + $0x738] sm:$0xf0]  ;;  %v12143_v20 = vperm.slane %v20995_v38, 1 }
 0x7fd   : > { %11981 = vmatpush.bf16.msra.mxu1 %v16835_v19  ;;  %v12128_v19 = vperm.slane %v20990_v6, 0  ;;  %v17856_v10 = vld [vmem:[#allocation20 + $0xbf8] sm:$0xf0] }
 0x7fe   : > { %v11757_v15 = vadd.f32 %v20917_v1, %v11744_v13  ;;  %v17331_v1 = vor.u32 %v19072_v2, %v17328_v22  ;;  %v19200_v22 = vld [vmem:[#allocation20 + $0xbcc] sm:$0xf] }
 0x7ff   : > { %v12136_v55 = vadd.f32 %v12128_v19, %v12121_v47 }
 0x800   : > { %v11770_v35 = vadd.f32 %v20955_v3, %v11757_v15  ;;  %v17312_v3 = vld [vmem:[#allocation20 + $0x7b8] sm:$0xf0] }
 0x801   : > { %11982 = vmatpush.bf16.msra.mxu1 %v16819_v50  ;;  %v11732_v21 = vpop.f32.mrf.mxu1  ;;  %v11875_v14 = vpop.f32.mrf.mxu0  ;;  %v17315_v57 = vor.u32 %v19068_v46, %v17312_v3  ;;  %v12150_v51 = vmul.f32 %v12142_v4, %v12136_v55  ;;  %v19196_v3 = vld [vmem:[#allocation20 + $0xbac] sm:$0xf] }
 0x802   : > { %v17232_v21 = vld [vmem:[#allocation20 + $0x718] sm:$0xf0] }
 0x803   : > { %v12155_v56 = vsel %vm12154_vm4, %v12150_v51, 0.0 }
 0x805   : > { %11983 = vmatpush.bf16.msra.mxu1 %v16803_v48  ;;  %v20981_v0 = vpop.f32.mrf.mxu3  ;;  %v17264_v48 = vld [vmem:[#allocation20 + $0x758] sm:$0xf0] }
 0x806   : > { %v17267_v17 = vor.u32 %v19056_v61, %v17264_v48  ;;  %v19180_v48 = vld [vmem:[#allocation20 + $0xb2c] sm:$0xf] }
 0x809   : > { %11984 = vmatpush.bf16.msra.mxu1 %v16787_v29  ;;  %v12129_v29 = vperm.slane %v20990_v6, 1 }
 0x80d   : > { %11985 = vmatpush.bf16.msra.mxu1 %v16771_v23  ;;  %v12018_v30 = vpop.f32.mrf.mxu3  ;;  %v19052_v23 = vld [vmem:[#allocation20 + $0x72c] sm:$0xf] }
 0x80e   : > { %v17251_v60 = vor.u32 %v19052_v23, %v17248_v63  ;;  %v17824_v30 = vld [vmem:[#allocation20 + $0xbb8] sm:$0xf0] }
 0x811   : > { %11986 = vmatpush.bf16.msra.mxu1 %v16755_v43 }
 0x815   : > { %11987 = vmatpush.bf16.msra.mxu1 %v16739_v62  ;;  %v19204_v62 = vld [vmem:[#allocation20 + $0xbec] sm:$0xf] }
 0x816   : > { %v17859_v2 = vor.u32 %v19204_v62, %v17856_v10  ;;  %v12144_v62 = vperm.slane %v20995_v38, 2 }
 0x819   : > { %11988 = vmatpush.bf16.msra.mxu1 %v16723_v16  ;;  %v11782_v49 = vpop.f32.mrf.mxu1  ;;  %v20993_v44 = vpop.f32.mrf.mxu0 }
 0x81a   : > { %v11783_v50 = vadd.f32 %v11782_v49, %v11770_v35  ;;  %v19048_v35 = vld [vmem:[#allocation20 + $0x70c] sm:$0xf] }
 0x81b   : > { %v17235_v16 = vor.u32 %v19048_v35, %v17232_v21 }
 0x81c   : > { %11989 = vmatmul.bf16.vlgmr.msra.gmra.mxu1 %v20874_v59  ;;  %v19060_v59 = vld [vmem:[#allocation20 + $0x76c] sm:$0xf]  ;;  %vm12099_vm3 = vcmp.gt.f32.partialorder %v11783_v50, 0.0  ;;  %v12103_v34 = vmul.f32 0.2, %v11783_v50 }
 0x81d   : > { %12033 = vmatpush.bf16.msrb.mxu1 %v17347_v40  ;;  %v17283_v24 = vor.u32 %v19060_v59, %v17280_v39 }
 0x81e   : > { %v12107_v32 = vsel %vm12099_vm3, %v11783_v50, %v12103_v34  ;;  %v19184_v50 = vld [vmem:[#allocation20 + $0xb4c] sm:$0xf]  ;;  %v17760_v34 = vld [vmem:[#allocation20 + $0xb38] sm:$0xf0] }
 0x81f   : > { %v12122_v54 = vmul.f32 %v12114_v12, %v12107_v32  ;;  %v19176_v32 = vld [vmem:[#allocation20 + $0xb0c] sm:$0xf] }
 0x821   : > { %12034 = vmatpush.bf16.msrb.mxu1 %v17331_v1  ;;  %v12137_v13 = vadd.f32 %v12129_v29, %v12122_v54  ;;  %v11784_v43 = vpop.f32.mrf.mxu1  ;;  %v11927_v15 = vpop.f32.mrf.mxu0  ;;  %v17840_v1 = vld [vmem:[#allocation20 + $0xbd8] sm:$0xf0] }
 0x822   : > { %v17843_v46 = vor.u32 %v19200_v22, %v17840_v1 }
 0x823   : > { %v12151_v14 = vmul.f32 %v12143_v20, %v12137_v13 }
 0x825   : > { %12035 = vmatpush.bf16.msrb.mxu1 %v17315_v57  ;;  %v12156_v28 = vsel %vm12154_vm4, %v12151_v14, 0.0  ;;  %v21003_v41 = vpop.f32.mrf.mxu3  ;;  %v17827_v57 = vor.u32 %v19196_v3, %v17824_v30 }
 0x826   : > { %v21005_v40 = vadd.f32 %v12156_v28, %v12155_v56 }
 0x829   : > { %12036 = vmatpush.bf16.msrb.mxu1 %v17299_v7  ;;  %v17792_v7 = vld [vmem:[#allocation20 + $0xb78] sm:$0xf0] }
 0x82a   : > { %v17795_v49 = vor.u32 %v19188_v45, %v17792_v7 }
 0x82d   : > { %12037 = vmatpush.bf16.msrb.mxu1 %v17283_v24  ;;  %v12070_v31 = vpop.f32.mrf.mxu3  ;;  %v17776_v24 = vld [vmem:[#allocation20 + $0xb58] sm:$0xf0] }
 0x82e   : > { %v17779_v12 = vor.u32 %v19184_v50, %v17776_v24  ;;  %v19903_v24 = vmov 0  }
 0x82f   : > { %19383 = vset.pattern.permute.xlu0 %v19903_v24 }
 0x831   : > { %12038 = vmatpush.bf16.msrb.mxu1 %v17267_v17 }
 0x835   : > { %12039 = vmatpush.bf16.msrb.mxu1 %v17251_v60  ;;  %v12115_v60 = vperm.slane %v20985_v52, 2 }
 0x839   : > { %12040 = vmatpush.bf16.msrb.mxu1 %v17235_v16  ;;  %v11834_v59 = vpop.f32.mrf.mxu1  ;;  %v11977_v39 = vpop.f32.mrf.mxu0 }
 0x83a   : > { %v11835_v47 = vadd.f32 %v11834_v59, %v20965_v53  ;;  %v11978_v19 = vadd.f32 %v11977_v39, %v20972_v26  ;;  %v17763_v53 = vor.u32 %v19180_v48, %v17760_v34  ;;  %v17744_v26 = vld [vmem:[#allocation20 + $0xb18] sm:$0xf0] }
 0x83b   : > { %v17747_v17 = vor.u32 %v19176_v32, %v17744_v26 }
 0x83c   : > { %12041 = vmatmul.bf16.vlgmr.msrb.gmra.mxu1 %v20884_v11  ;;  %v11848_v11 = vadd.f32 %v20908_v25, %v11835_v47  ;;  %v12145_v47 = vperm.slane %v20995_v38, 3 }
 0x83d   : > { %12085 = vmatpush.bf16.msra.mxu1 %v17859_v2 }
 0x83e   : > { %v11861_v61 = vadd.f32 %v20946_v42, %v11848_v11  ;;  %v12164_v11 = vld [vmem:[#allocation2] sm:$0x1] }
 0x840   : > { %v11874_v55 = vadd.f32 %v20976_v27, %v11861_v61 }
 0x841   : > { %12086 = vmatpush.bf16.msra.mxu1 %v17843_v46  ;;  %v11836_v29 = vpop.f32.mrf.mxu1  ;;  %v11979_v4 = vpop.f32.mrf.mxu0 }
 0x845   : > { %12087 = vmatpush.bf16.msra.mxu1 %v17827_v57 }
 0x849   : > { %12088 = vmatpush.bf16.msra.mxu1 %v17811_v36 }
 0x84d   : > { %12089 = vmatpush.bf16.msra.mxu1 %v17795_v49 }
 0x851   : > { %12090 = vmatpush.bf16.msra.mxu1 %v17779_v12 }
 0x855   : > { %12091 = vmatpush.bf16.msra.mxu1 %v17763_v53 }
 0x859   : > { %12092 = vmatpush.bf16.msra.mxu1 %v17747_v17  ;;  %v11886_v25 = vpop.f32.mrf.mxu1  ;;  %v12029_v54 = vpop.f32.mrf.mxu0 }
 0x85a   : > { %v11887_v23 = vadd.f32 %v11886_v25, %v11874_v55 }
 0x85c   : > { %12093 = vmatmul.bf16.vlgmr.msra.gmra.mxu1 %v20892_v8  ;;  %v11900_v42 = vadd.f32 %v20919_v9, %v11887_v23  ;;  %v12130_v8 = vperm.slane %v20990_v6, 2 }
 0x85e   : > { %v11913_v63 = vadd.f32 %v20959_v18, %v11900_v42 }
 0x860   : > { %v11926_v27 = vadd.f32 %v20993_v44, %v11913_v63 }
 0x861   : > { %v11888_v20 = vpop.f32.mrf.mxu1  ;;  %v12031_v13 = vpop.f32.mrf.mxu0 }
 0x879   : > { %v11938_v43 = vpop.f32.mrf.mxu1  ;;  %v12081_v15 = vpop.f32.mrf.mxu0 }
 0x87a   : > { %v11939_v51 = vadd.f32 %v11938_v43, %v11926_v27 }
 0x87c   : > { %vm12100_vm5 = vcmp.gt.f32.partialorder %v11939_v51, 0.0  ;;  %v12104_v35 = vmul.f32 0.2, %v11939_v51 }
 0x87e   : > { %v12108_v21 = vsel %vm12100_vm5, %v11939_v51, %v12104_v35 }
 0x87f   : > { %v12123_v14 = vmul.f32 %v12115_v60, %v12108_v21 }
 0x881   : > { %v11940_v9 = vpop.f32.mrf.mxu1  ;;  %v12083_v10 = vpop.f32.mrf.mxu0  ;;  %v12138_v18 = vadd.f32 %v12130_v8, %v12123_v14 }
 0x883   : > { %v12152_v56 = vmul.f32 %v12144_v62, %v12138_v18 }
 0x885   : > { %v12158_v44 = vsel %vm12154_vm4, %v12152_v56, 0.0 }
 0x886   : > { %v12159_v28 = vadd.f32 %v12158_v44, %v21005_v40  ;;  %v12116_v40 = vperm.slane %v20985_v52, 3 }
 0x899   : > { %v11990_v16 = vpop.f32.mrf.mxu1 }
 0x89a   : > { %v11991_v2 = vadd.f32 %v11990_v16, %v11978_v19 }
 0x89c   : > { %v12004_v22 = vadd.f32 %v20944_v5, %v11991_v2  ;;  %v12131_v5 = vperm.slane %v20990_v6, 3 }
 0x89e   : > { %v12017_v1 = vadd.f32 %v20981_v0, %v12004_v22 }
 0x8a0   : > { %v12030_v46 = vadd.f32 %v12029_v54, %v12017_v1 }
 0x8a1   : > { %v11992_v3 = vpop.f32.mrf.mxu1 }
 0x8b9   : > { %v12042_v30 = vpop.f32.mrf.mxu1 }
 0x8ba   : > { %v12043_v31 = vadd.f32 %v12042_v30, %v12030_v46 }
 0x8bc   : > { %v12056_v57 = vadd.f32 %v20957_v37, %v12043_v31 }
 0x8be   : > { %v12069_v33 = vadd.f32 %v21003_v41, %v12056_v57 }
 0x8c0   : > { %v12082_v58 = vadd.f32 %v12081_v15, %v12069_v33 }
 0x8c1   : > { %v12044_v36 = vpop.f32.mrf.mxu1 }
 0x8d9   : > { %v12094_v45 = vpop.f32.mrf.mxu1 }
 0x8da   : > { %v12095_v7 = vadd.f32 %v12094_v45, %v12082_v58 }
 0x8dc   : > { %vm12101_vm6 = vcmp.gt.f32.partialorder %v12095_v7, 0.0  ;;  %v12105_v59 = vmul.f32 0.2, %v12095_v7 }
 0x8de   : > { %v12109_v39 = vsel %vm12101_vm6, %v12095_v7, %v12105_v59 }
 0x8df   : > { %v12124_v0 = vmul.f32 %v12116_v40, %v12109_v39 }
 0x8e1   : > { %v12096_v19 = vpop.f32.mrf.mxu1  ;;  %v12139_v49 = vadd.f32 %v12131_v5, %v12124_v0 }
 0x8e3   : > { %v12153_v50 = vmul.f32 %v12145_v47, %v12139_v49 }
 0x8e5   : > { %v12160_v37 = vsel %vm12154_vm4, %v12153_v50, 0.0 }
 0x8e6   : > { %v12161_v41 = vadd.f32 %v12160_v37, %v12159_v28 }
 0x8e8   : > { %12162 = vadd.xlane.f32.xlu0 %v12161_v41 }
 0x95b   : > { %v12163_v12 = vpop.xlane.xlu0 %12162 }
 0x95c   : > { %v12165_v52 = vadd.f32 %v12164_v11, %v12163_v12 }
 0x95e   : > { %v12166_v61 = vsub.f32 0.0, %v12165_v52 }
 0x960   : > { %v12167_v48 = vmul.f32 1.442695, %v12166_v61 }
 0x962   : > { %19384 = vpow2.f32 %v12167_v48 }
 0x968   : > { %v19385_v6 = vpop.eup %19384 }
 0x969   : > { %v12169_v34 = vadd.f32 1.0, %v19385_v6 }
 0x96b   : > { %19386 = vrcp.f32 %v12169_v34  ;;  %v12181_v4 = vand.u32 2147483648, %v12169_v34  ;;  %v12179_v32 = vand.u32 2147483647, %v12169_v34  ;;  %vm12175_vm8 = vweird.f32 %v12169_v34 }
 0x96d   : > { %v12182_v17 = vor.u32 1.1754944e-38, %v12181_v4  ;;  %vm12180_vm10 = vcmp.eq.f32.partialorder %v12179_v32, 8.507059e+37 }
 0x971   : > { %v19387_v38 = vpop.eup %19386 }
 0x972   : > { %v12171_v55 = vmul.f32 %v19387_v38, %v12169_v34  ;;  %vm12176_vm7 = vweird.f32 %v19387_v38 }
 0x973   : > { %vm12177_vm9 = vmor %vm12175_vm8, %vm12176_vm7 }
 0x974   : > { %v12172_v29 = vsub.f32 1.0, %v12171_v55 }
 0x976   : > { %v12173_v53 = vmul.f32 %v19387_v38, %v12172_v29 }
 0x978   : > { %v12174_v26 = vadd.f32 %v19387_v38, %v12173_v53 }
 0x97a   : > { %v12178_v25 = vsel %vm12177_vm9, %v19387_v38, %v12174_v26 }
 0x97b   : > { %v12183_v54 = vsel %vm12180_vm10, %v12182_v17, %v12178_v25 }
 0x97c   : > { %12187 = vperm.xlu0 %19383, %v12183_v54  }
 0x9ee   : > { %v12188_v23 = vpop.permute.xlu0 %12187 }
 0x9ef   : > { %12190 = vst [vmem:[%s711_s3] sm:$0x1] %v12188_v23 }
 0x9f0   : > { %19818 = shalt.err (!%p19815_p9)
}
 0x9f1   : > { %19257 = dma.vmem_to_hbm [thread:$0]  (%p20141_p4), %s12203_s18, 16, %s12205_s1, %s12192_s10  }
 0x9f2 PF: > { %s12216_s27 = sand.u32 1, %s19869_s20   ;;  %p21124_p10 = scmp.ge.s32.totalorder %s19881_s23, 2 }
 0x9f3   : > { %s12217_s7 = scalar_lea.sflag [#allocation5], %s12216_s27 }
 0x9f4   : > { %p19301_p13 = pnand %p21124_p10, %p20145_p6 }
 0x9f6   : > { %p19302_p11 = pneg %p19301_p13 }
 0x9f8   : > { %19864 = dma.done.wait (%p19302_p11), %s12217_s7, 16  }
 0x9f9   : > { %19866 = vsyncadd (%p19302_p11), %s12217_s7, 4294967280  ;;  %p36_p0 = scmp.ge.s32.totalorder %s20115_s16, 4   ;;  %s21125_s20 = smov %s19873_s21 }
 0x9fa   : > { %s21126_s21 = smov %s19877_s22  ;;  %s21127_s22 = smov %s20126_s25 }
 0x9fb   : > { %s21128_s23 = smov %s20115_s16  ;;  %38 = sbr.rel (!%p36_p0) target bundleno = 22 (0x16), region = 189 }
 0xa00   :  { %12222 = vsyncpa [#allocation4], 1 }
 0xa01   :  { %12224 = vsyncpa [#allocation4 + $0x1], 1 }
 0xa02   :  { %12225 = vsyncpa [#allocation7], 1 }
 0xa03   :  { %12226 = vsyncpa [#allocation10], 1 }
 0xa04   :  { %12227 = vsyncpa [#allocation13], 1 }
 0xa05   :  { %12228 = vsyncpa [#allocation16], 1 }
 0xa06   :  { %12229 = vsyncpa [#allocation19], 1 }
 0xa07   :  { %12230 = vsyncpa [#allocation22], 1 }
 0xa08   :  { %12231 = vsyncpa [#allocation5], 1 }
 0xa09   :  { %12233 = vsyncpa [#allocation5 + $0x1], 1 }

</bundles_post_ra>
